<compile_context>
chip_gen: v7x
topology: tpu7x:2x2x1
jax: 0.10.0
libtpu: 0.0.40
codegen_flags: <defaults>
</compile_context>

<pallas_src>
import numpy as np
import jax
import jax.numpy as jnp
from jax import lax
from jax.experimental import pallas as pl
from jax.experimental.pallas import tpu as pltpu

LN_EPS = 1e-5


# ----------------------------------------------------------------------------
# helpers
# ----------------------------------------------------------------------------
def _pick_hw_tile(hw, c, block_bytes=4 * 1024 * 1024):
    """Pixel-tile size: full HW if tiny, else a 128-multiple under the VMEM budget."""
    if hw <= 128:
        return hw                                  # full-extent last dim is legal
    cap = max(128, (block_bytes // (4 * c)) // 128 * 128)
    hw_ceil = -(-hw // 128) * 128
    return min(cap, hw_ceil, 2048)


# ----------------------------------------------------------------------------
# Kernel 1: attention spatial pooling (conv_mask -> softmax over HW -> weighted
#           channel sum) with an online-softmax accumulator, plus — on the last
#           pixel tile of each batch — the two context MLP branches producing
#           scale = sigmoid(channel_mul_conv(ctx)) and shift = channel_add_conv(ctx).
# ----------------------------------------------------------------------------
def _make_pool_ctx_kernel(hw_valid, tile):
    ragged = (hw_valid % tile) != 0                # static decision

    def kernel(x_ref, wm_ref, bm_ref,
               wm1_ref, bm1_ref, gm_ref, bbm_ref, wm2_ref, bm2_ref,
               wa1_ref, ba1_ref, ga_ref, bba_ref, wa2_ref, ba2_ref,
               scale_ref, shift_ref,
               m_scr, d_scr, acc_scr):
        # x_ref  : (1, C, T) pixels of this tile, channels on sublanes
        # wm_ref : (C, 1)    conv_mask weight; bm_ref: (1,1) conv_mask bias
        # w*1    : (C, P)    first 1x1 conv (in, out);  w*2: (C, P) torch layout (out, in)
        # scale_ref / shift_ref : (1, C, 1) outputs, written on the last tile
        t = pl.program_id(1)
        T = x_ref.shape[2]

        @pl.when(t == 0)
        def _():
            m_scr[...] = jnp.full(m_scr.shape, -jnp.inf, dtype=m_scr.dtype)
            d_scr[...] = jnp.zeros(d_scr.shape, dtype=d_scr.dtype)
            acc_scr[...] = jnp.zeros(acc_scr.shape, dtype=acc_scr.dtype)

        x = x_ref[0]                                                      # (C, T)
        # 1x1 conv to one channel: per-pixel logit (channel reduction on sublanes)
        logit = jnp.sum(x * wm_ref[...], axis=0, keepdims=True) + bm_ref[...]  # (1, T)

        if ragged:   # mask the out-of-bounds tail of the last (partial) tile
            lane = lax.broadcasted_iota(jnp.int32, (1, T), 1)
            valid = (t * T + lane) < hw_valid
            logit = jnp.where(valid, logit, -1e30)
            x = jnp.where(valid, x, 0.0)            # keep garbage out of the accumulator

        # online softmax + weighted channel accumulation
        m_prev = m_scr[...]                                               # (1, 1)
        m_new = jnp.maximum(m_prev, jnp.max(logit, axis=1, keepdims=True))
        alpha = jnp.exp(m_prev - m_new)
        p = jnp.exp(logit - m_new)                                        # (1, T)
        d_scr[...] = alpha * d_scr[...] + jnp.sum(p, axis=1, keepdims=True)
        acc_scr[...] = alpha * acc_scr[...] + jnp.sum(x * p, axis=1, keepdims=True)
        m_scr[...] = m_new

        @pl.when(t == pl.num_programs(1) - 1)
        def _():
            ctx = acc_scr[...] / d_scr[...]                               # (C, 1)

            def branch(w1_ref, b1_ref, g_ref, bb_ref, w2_ref, b2_ref):
                # conv1x1 C->P: column ctx against (C,P) weight, sublane reduce
                h = jnp.sum(ctx * w1_ref[...], axis=0, keepdims=True) + b1_ref[...]  # (1,P)
                mu = jnp.mean(h, axis=-1, keepdims=True)
                var = jnp.mean((h - mu) ** 2, axis=-1, keepdims=True)
                h = (h - mu) * lax.rsqrt(var + LN_EPS) * g_ref[...] + bb_ref[...]
                h = jnp.maximum(h, 0.0)                                   # ReLU
                # conv1x1 P->C: (C,P) torch-layout weight times row h, lane reduce
                return jnp.sum(w2_ref[...] * h, axis=1, keepdims=True) + b2_ref[...]  # (C,1)

            z = branch(wm1_ref, bm1_ref, gm_ref, bbm_ref, wm2_ref, bm2_ref)
            scale_ref[0] = (1.0 / (1.0 + jnp.exp(-z))).astype(scale_ref.dtype)   # sigmoid
            shift_ref[0] = branch(wa1_ref, ba1_ref, ga_ref, bba_ref,
                                  wa2_ref, ba2_ref).astype(shift_ref.dtype)

    return kernel


# ----------------------------------------------------------------------------
# Kernel 2: fused elementwise epilogue  out = x * scale + shift
# ----------------------------------------------------------------------------
def _epilogue_kernel(x_ref, scale_ref, shift_ref, o_ref):
    # x_ref: (1, C, T); scale/shift: (1, C, 1) broadcast over pixels (lanes)
    o_ref[0] = x_ref[0] * scale_ref[0] + shift_ref[0]


# ----------------------------------------------------------------------------
# Wrapper: CB2d forward
# ----------------------------------------------------------------------------
def cb2d_forward(x, params):
    B, C, H, W = x.shape
    HW = H * W
    xf = x.reshape(B, C, HW)                       # free: NCHW is already contiguous

    T = _pick_hw_tile(HW, C)
    n_tiles = pl.cdiv(HW, T)
    P = params["w1_mul"].shape[1]

    def const2d(shape):
        return pl.BlockSpec(shape, lambda b, t: (0, 0))

    branch_specs = [const2d((C, P)), const2d((1, P)), const2d((1, P)),
                    const2d((1, P)), const2d((C, P)), const2d((C, 1))]

    # ---- kernel 1: attention pooling + context MLPs -> scale, shift (B, C, 1) ----
    scale, shift = pl.pallas_call(
        _make_pool_ctx_kernel(HW, T),
        out_shape=(jax.ShapeDtypeStruct((B, C, 1), jnp.float32),
                   jax.ShapeDtypeStruct((B, C, 1), jnp.float32)),
        grid=(B, n_tiles),
        in_specs=[pl.BlockSpec((1, C, T), lambda b, t: (b, 0, t)),
                  const2d((C, 1)), const2d((1, 1))] + branch_specs + branch_specs,
        out_specs=[pl.BlockSpec((1, C, 1), lambda b, t: (b, 0, 0)),
                   pl.BlockSpec((1, C, 1), lambda b, t: (b, 0, 0))],
        scratch_shapes=[
            pltpu.VMEM((1, 1), jnp.float32),       # running max
            pltpu.VMEM((1, 1), jnp.float32),       # running softmax denom
            pltpu.VMEM((C, 1), jnp.float32),       # running weighted channel sum
        ],
        compiler_params=pltpu.CompilerParams(
            dimension_semantics=("parallel", "arbitrary")),
    )(xf, params["w_mask"], params["b_mask"],
      params["w1_mul"], params["b1_mul"], params["g_mul"], params["bb_mul"],
      params["w2_mul"], params["b2_mul"],
      params["w1_add"], params["b1_add"], params["g_add"], params["bb_add"],
      params["w2_add"], params["b2_add"])

    # ---- kernel 2: out = x * sigmoid(mul_term) + add_term ----
    out_flat = pl.pallas_call(
        _epilogue_kernel,
        out_shape=jax.ShapeDtypeStruct((B, C, HW), jnp.float32),
        grid=(B, n_tiles),
        in_specs=[pl.BlockSpec((1, C, T), lambda b, t: (b, 0, t)),
                  pl.BlockSpec((1, C, 1), lambda b, t: (b, 0, 0)),
                  pl.BlockSpec((1, C, 1), lambda b, t: (b, 0, 0))],
        out_specs=pl.BlockSpec((1, C, T), lambda b, t: (b, 0, t)),
        compiler_params=pltpu.CompilerParams(
            dimension_semantics=("parallel", "parallel")),
    )(xf, scale, shift)

    return out_flat.reshape(B, C, H, W)


# ----------------------------------------------------------------------------
# Parameters.  conv1 (C->P) weights stored as (in, out) = torch weight.T; conv2
# (P->C) weights stored in torch layout (C_out, P_in); biases column/row shaped
# to match the kernel.  NOTE: CB2d.reset_parameters() zero-inits the last conv
# of each branch; random weights are used here so the numerical check is
# non-trivial (the forward math is identical).
# ----------------------------------------------------------------------------
def init_params(key, C):
    assert C % 4 == 0
    P = C // 4
    ks = jax.random.split(key, 14)

    def u(k, shape, fan_in):
        b = 1.0 / np.sqrt(fan_in)
        return jax.random.uniform(k, shape, jnp.float32, -b, b)

    params = {
        "w_mask": u(ks[0], (C, 1), C),     # conv_mask weight (per-channel)
        "b_mask": u(ks[1], (1, 1), C),     # conv_mask bias
    }
    for i, name in enumerate(("add", "mul")):
        o = 2 + 6 * i
        params[f"w1_{name}"] = u(ks[o + 0], (C, P), C)            # (in, out)
        params[f"b1_{name}"] = u(ks[o + 1], (1, P), C)
        params[f"g_{name}"] = (jnp.ones((1, P), jnp.float32)
                               + 0.1 * jax.random.normal(ks[o + 2], (1, P), jnp.float32))
        params[f"bb_{name}"] = 0.1 * jax.random.normal(ks[o + 3], (1, P), jnp.float32)
        params[f"w2_{name}"] = u(ks[o + 4], (C, P), P)            # torch (out, in)
        params[f"b2_{name}"] = u(ks[o + 5], (C, 1), P)
    return params


# ----------------------------------------------------------------------------
# Pure-JAX reference (same math, no Pallas) for a sanity check.
# ----------------------------------------------------------------------------
def reference(x, p):
    B, C, H, W = x.shape
    xf = x.reshape(B, C, H * W)
    logits = jnp.einsum("bcn,c->bn", xf, p["w_mask"][:, 0]) + p["b_mask"][0, 0]
    attn = jax.nn.softmax(logits, axis=-1)                  # (B, HW)
    ctx = jnp.einsum("bcn,bn->bc", xf, attn)                # (B, C)

    def branch(name):
        h = ctx @ p[f"w1_{name}"] + p[f"b1_{name}"]
        mu = jnp.mean(h, axis=-1, keepdims=True)
        var = jnp.mean((h - mu) ** 2, axis=-1, keepdims=True)
        h = (h - mu) / jnp.sqrt(var + LN_EPS) * p[f"g_{name}"] + p[f"bb_{name}"]
        h = jnp.maximum(h, 0.0)
        return jnp.einsum("bp,cp->bc", h, p[f"w2_{name}"]) + p[f"b2_{name}"][:, 0]

    scale = jax.nn.sigmoid(branch("mul"))                   # channel_mul term
    shift = branch("add")                                   # channel_add term
    out = xf * scale[:, :, None] + shift[:, :, None]
    return out.reshape(B, C, H, W)


if __name__ == "__main__":
    key = jax.random.PRNGKey(0)
    kx1, kp1, kx2, kp2 = jax.random.split(key, 4)
    fwd = jax.jit(cb2d_forward)

    # Test 1: multi-tile online softmax + ragged tail (HW=2304 -> 2048-tile + partial)
    B, C, H, W = 2, 64, 48, 48
    x = jax.random.normal(kx1, (B, C, H, W), jnp.float32)
    params = init_params(kp1, C)
    out = jax.block_until_ready(fwd(x, params))
    assert out.shape == (B, C, H, W)
    np.testing.assert_allclose(np.asarray(out), np.asarray(reference(x, params)),
                               rtol=1e-3, atol=1e-3)

    # Test 2: small HW < 128 -> single full-extent block, no padding/masking anywhere
    B2, C2, H2, W2 = 1, 32, 10, 10
    x2 = jax.random.normal(kx2, (B2, C2, H2, W2), jnp.float32)
    params2 = init_params(kp2, C2)
    out2 = jax.block_until_ready(fwd(x2, params2))
    np.testing.assert_allclose(np.asarray(out2), np.asarray(reference(x2, params2)),
                               rtol=1e-3, atol=1e-3)

    print("KERNEL_OK")
</pallas_src>

<mosaic_0001>
module attributes {stable_mosaic.version = 11 : i64} {
  func.func @kernel(%arg0: i32, %arg1: i32, %arg2: memref<1x64x2048xf32, #tpu.memory_space<vmem>>, %arg3: memref<64x1xf32, #tpu.memory_space<vmem>>, %arg4: memref<1x1xf32, #tpu.memory_space<vmem>>, %arg5: memref<64x16xf32, #tpu.memory_space<vmem>>, %arg6: memref<1x16xf32, #tpu.memory_space<vmem>>, %arg7: memref<1x16xf32, #tpu.memory_space<vmem>>, %arg8: memref<1x16xf32, #tpu.memory_space<vmem>>, %arg9: memref<64x16xf32, #tpu.memory_space<vmem>>, %arg10: memref<64x1xf32, #tpu.memory_space<vmem>>, %arg11: memref<64x16xf32, #tpu.memory_space<vmem>>, %arg12: memref<1x16xf32, #tpu.memory_space<vmem>>, %arg13: memref<1x16xf32, #tpu.memory_space<vmem>>, %arg14: memref<1x16xf32, #tpu.memory_space<vmem>>, %arg15: memref<64x16xf32, #tpu.memory_space<vmem>>, %arg16: memref<64x1xf32, #tpu.memory_space<vmem>>, %arg17: memref<1x64x1xf32, #tpu.memory_space<vmem>>, %arg18: memref<1x64x1xf32, #tpu.memory_space<vmem>>, %arg19: memref<1x1xf32, #tpu.memory_space<vmem>>, %arg20: memref<1x1xf32, #tpu.memory_space<vmem>>, %arg21: memref<64x1xf32, #tpu.memory_space<vmem>>) attributes {dimension_semantics = [#tpu.dimension_semantics<parallel>, #tpu.dimension_semantics<arbitrary>], iteration_bounds = array<i64: 2, 2>, scalar_prefetch = 0 : i64, scratch_operands = 3 : i64, tpu.core_type = #tpu.core_type<tc>, window_params = [{transform_indices = @transform_0, window_bounds = array<i64: 1, 64, 2048>}, {pipeline_mode = #tpu.pipeline_mode<synchronous>, transform_indices = @transform_1, window_bounds = array<i64: 64, 1>}, {pipeline_mode = #tpu.pipeline_mode<synchronous>, transform_indices = @transform_2, window_bounds = array<i64: 1, 1>}, {pipeline_mode = #tpu.pipeline_mode<synchronous>, transform_indices = @transform_3, window_bounds = array<i64: 64, 16>}, {pipeline_mode = #tpu.pipeline_mode<synchronous>, transform_indices = @transform_4, window_bounds = array<i64: 1, 16>}, {pipeline_mode = #tpu.pipeline_mode<synchronous>, transform_indices = @transform_5, window_bounds = array<i64: 1, 16>}, {pipeline_mode = #tpu.pipeline_mode<synchronous>, transform_indices = @transform_6, window_bounds = array<i64: 1, 16>}, {pipeline_mode = #tpu.pipeline_mode<synchronous>, transform_indices = @transform_7, window_bounds = array<i64: 64, 16>}, {pipeline_mode = #tpu.pipeline_mode<synchronous>, transform_indices = @transform_8, window_bounds = array<i64: 64, 1>}, {pipeline_mode = #tpu.pipeline_mode<synchronous>, transform_indices = @transform_9, window_bounds = array<i64: 64, 16>}, {pipeline_mode = #tpu.pipeline_mode<synchronous>, transform_indices = @transform_10, window_bounds = array<i64: 1, 16>}, {pipeline_mode = #tpu.pipeline_mode<synchronous>, transform_indices = @transform_11, window_bounds = array<i64: 1, 16>}, {pipeline_mode = #tpu.pipeline_mode<synchronous>, transform_indices = @transform_12, window_bounds = array<i64: 1, 16>}, {pipeline_mode = #tpu.pipeline_mode<synchronous>, transform_indices = @transform_13, window_bounds = array<i64: 64, 16>}, {pipeline_mode = #tpu.pipeline_mode<synchronous>, transform_indices = @transform_14, window_bounds = array<i64: 64, 1>}, {transform_indices = @transform_15, window_bounds = array<i64: 1, 64, 1>}, {transform_indices = @transform_16, window_bounds = array<i64: 1, 64, 1>}]} {
    %c0_i32 = arith.constant 0 : i32
    %0 = arith.cmpi eq, %arg1, %c0_i32 : i32
    %1 = arith.extui %0 : i1 to i32
    %c0_i32_0 = arith.constant 0 : i32
    %2 = arith.cmpi ne, %1, %c0_i32_0 : i32
    scf.if %2 {
      %cst_25 = arith.constant 0xFF800000 : f32
      %53 = vector.broadcast %cst_25 : f32 to vector<1x1xf32>
      %c0_26 = arith.constant 0 : index
      %c0_27 = arith.constant 0 : index
      %54 = vector.load %arg19[%c0_26, %c0_27] : memref<1x1xf32, #tpu.memory_space<vmem>>, vector<1x1xf32>
      tpu.vector_store %arg19[%c0_26, %c0_27], %53 {strides = array<i32>} : memref<1x1xf32, #tpu.memory_space<vmem>>, vector<1x1xf32>,
      %cst_28 = arith.constant 0.000000e+00 : f32
      %55 = vector.broadcast %cst_28 : f32 to vector<1x1xf32>
      %c0_29 = arith.constant 0 : index
      %c0_30 = arith.constant 0 : index
      %56 = vector.load %arg20[%c0_29, %c0_30] : memref<1x1xf32, #tpu.memory_space<vmem>>, vector<1x1xf32>
      tpu.vector_store %arg20[%c0_29, %c0_30], %55 {strides = array<i32>} : memref<1x1xf32, #tpu.memory_space<vmem>>, vector<1x1xf32>,
      %cst_31 = arith.constant 0.000000e+00 : f32
      %57 = vector.broadcast %cst_31 : f32 to vector<64x1xf32>
      %c0_32 = arith.constant 0 : index
      %c0_33 = arith.constant 0 : index
      %58 = vector.load %arg21[%c0_32, %c0_33] : memref<64x1xf32, #tpu.memory_space<vmem>>, vector<64x1xf32>
      tpu.vector_store %arg21[%c0_32, %c0_33], %57 {strides = array<i32>} : memref<64x1xf32, #tpu.memory_space<vmem>>, vector<64x1xf32>,
    } else {
    }
    %c0 = arith.constant 0 : index
    %c0_1 = arith.constant 0 : index
    %c0_2 = arith.constant 0 : index
    %3 = vector.load %arg2[%c0, %c0_1, %c0_2] : memref<1x64x2048xf32, #tpu.memory_space<vmem>>, vector<1x64x2048xf32>
    %4 = vector.shape_cast %3 : vector<1x64x2048xf32> to vector<64x2048xf32>
    %c0_3 = arith.constant 0 : index
    %c0_4 = arith.constant 0 : index
    %5 = vector.load %arg3[%c0_3, %c0_4] : memref<64x1xf32, #tpu.memory_space<vmem>>, vector<64x1xf32>
    %6 = vector.broadcast %5 : vector<64x1xf32> to vector<64x2048xf32>
    %7 = arith.mulf %4, %6 : vector<64x2048xf32>
    %cst = arith.constant dense<0.000000e+00> : vector<2048xf32>
    %8 = vector.multi_reduction <add>, %7, %cst [0] : vector<64x2048xf32> to vector<2048xf32>
    %9 = vector.shape_cast %8 : vector<2048xf32> to vector<1x2048xf32>
    %c0_5 = arith.constant 0 : index
    %c0_6 = arith.constant 0 : index
    %10 = vector.load %arg4[%c0_5, %c0_6] : memref<1x1xf32, #tpu.memory_space<vmem>>, vector<1x1xf32>
    %11 = vector.broadcast %10 : vector<1x1xf32> to vector<1x2048xf32>
    %12 = arith.addf %9, %11 : vector<1x2048xf32>
    %13 = tpu.iota {dimensions = array<i32: 1>} : vector<1x2048xi32>
    %c2048_i32 = arith.constant 2048 : i32
    %14 = arith.muli %arg1, %c2048_i32 : i32
    %15 = vector.broadcast %14 : i32 to vector<1x2048xi32>
    %16 = arith.addi %15, %13 : vector<1x2048xi32>
    %c2304_i32 = arith.constant 2304 : i32
    %17 = vector.broadcast %c2304_i32 : i32 to vector<1x2048xi32>
    %18 = arith.cmpi slt, %16, %17 : vector<1x2048xi32>
    %cst_7 = arith.constant -1.000000e+30 : f32
    %19 = vector.broadcast %cst_7 : f32 to vector<1x2048xf32>
    %20 = arith.select %18, %12, %19 : vector<1x2048xi1>, vector<1x2048xf32>
    %cst_8 = arith.constant 0.000000e+00 : f32
    %21 = vector.shape_cast %18 : vector<1x2048xi1> to vector<1x2048xi1>
    %22 = vector.broadcast %21 : vector<1x2048xi1> to vector<64x2048xi1>
    %23 = vector.broadcast %cst_8 : f32 to vector<64x2048xf32>
    %24 = arith.select %22, %4, %23 : vector<64x2048xi1>, vector<64x2048xf32>
    %c0_9 = arith.constant 0 : index
    %c0_10 = arith.constant 0 : index
    %25 = vector.load %arg19[%c0_9, %c0_10] : memref<1x1xf32, #tpu.memory_space<vmem>>, vector<1x1xf32>
    %cst_11 = arith.constant dense<0xFF800000> : vector<1xf32>
    %26 = vector.multi_reduction <maximumf>, %20, %cst_11 [1] : vector<1x2048xf32> to vector<1xf32>
    %27 = vector.shape_cast %26 : vector<1xf32> to vector<1x1xf32>
    %28 = arith.maximumf %25, %27 : vector<1x1xf32>
    %29 = arith.subf %25, %28 : vector<1x1xf32>
    %30 = math.exp %29 : vector<1x1xf32>
    %31 = vector.broadcast %28 : vector<1x1xf32> to vector<1x2048xf32>
    %32 = arith.subf %20, %31 : vector<1x2048xf32>
    %33 = math.exp %32 : vector<1x2048xf32>
    %c0_12 = arith.constant 0 : index
    %c0_13 = arith.constant 0 : index
    %34 = vector.load %arg20[%c0_12, %c0_13] : memref<1x1xf32, #tpu.memory_space<vmem>>, vector<1x1xf32>
    %35 = arith.mulf %30, %34 : vector<1x1xf32>
    %cst_14 = arith.constant dense<0.000000e+00> : vector<1xf32>
    %36 = vector.multi_reduction <add>, %33, %cst_14 [1] : vector<1x2048xf32> to vector<1xf32>
    %37 = vector.shape_cast %36 : vector<1xf32> to vector<1x1xf32>
    %38 = arith.addf %35, %37 : vector<1x1xf32>
    %c0_15 = arith.constant 0 : index
    %c0_16 = arith.constant 0 : index
    %39 = vector.load %arg20[%c0_15, %c0_16] : memref<1x1xf32, #tpu.memory_space<vmem>>, vector<1x1xf32>
    tpu.vector_store %arg20[%c0_15, %c0_16], %38 {strides = array<i32>} : memref<1x1xf32, #tpu.memory_space<vmem>>, vector<1x1xf32>,
    %c0_17 = arith.constant 0 : index
    %c0_18 = arith.constant 0 : index
    %40 = vector.load %arg21[%c0_17, %c0_18] : memref<64x1xf32, #tpu.memory_space<vmem>>, vector<64x1xf32>
    %41 = vector.broadcast %30 : vector<1x1xf32> to vector<64x1xf32>
    %42 = arith.mulf %41, %40 : vector<64x1xf32>
    %43 = vector.broadcast %33 : vector<1x2048xf32> to vector<64x2048xf32>
    %44 = arith.mulf %24, %43 : vector<64x2048xf32>
    %cst_19 = arith.constant dense<0.000000e+00> : vector<64xf32>
    %45 = vector.multi_reduction <add>, %44, %cst_19 [1] : vector<64x2048xf32> to vector<64xf32>
    %46 = vector.shape_cast %45 : vector<64xf32> to vector<64x1xf32>
    %47 = arith.addf %42, %46 : vector<64x1xf32>
    %c0_20 = arith.constant 0 : index
    %c0_21 = arith.constant 0 : index
    %48 = vector.load %arg21[%c0_20, %c0_21] : memref<64x1xf32, #tpu.memory_space<vmem>>, vector<64x1xf32>
    tpu.vector_store %arg21[%c0_20, %c0_21], %47 {strides = array<i32>} : memref<64x1xf32, #tpu.memory_space<vmem>>, vector<64x1xf32>,
    %c0_22 = arith.constant 0 : index
    %c0_23 = arith.constant 0 : index
    %49 = vector.load %arg19[%c0_22, %c0_23] : memref<1x1xf32, #tpu.memory_space<vmem>>, vector<1x1xf32>
    tpu.vector_store %arg19[%c0_22, %c0_23], %28 {strides = array<i32>} : memref<1x1xf32, #tpu.memory_space<vmem>>, vector<1x1xf32>,
    %c1_i32 = arith.constant 1 : i32
    %50 = arith.cmpi eq, %arg1, %c1_i32 : i32
    %51 = arith.extui %50 : i1 to i32
    %c0_i32_24 = arith.constant 0 : i32
    %52 = arith.cmpi ne, %51, %c0_i32_24 : i32
    scf.if %52 {
      %c0_25 = arith.constant 0 : index
      %c0_26 = arith.constant 0 : index
      %53 = vector.load %arg21[%c0_25, %c0_26] : memref<64x1xf32, #tpu.memory_space<vmem>>, vector<64x1xf32>
      %c0_27 = arith.constant 0 : index
      %c0_28 = arith.constant 0 : index
      %54 = vector.load %arg20[%c0_27, %c0_28] : memref<1x1xf32, #tpu.memory_space<vmem>>, vector<1x1xf32>
      %55 = vector.broadcast %54 : vector<1x1xf32> to vector<64x1xf32>
      %56 = arith.divf %53, %55 : vector<64x1xf32>
      %c0_29 = arith.constant 0 : index
      %c0_30 = arith.constant 0 : index
      %57 = vector.load %arg5[%c0_29, %c0_30] : memref<64x16xf32, #tpu.memory_space<vmem>>, vector<64x16xf32>
      %58 = vector.broadcast %56 : vector<64x1xf32> to vector<64x16xf32>
      %59 = arith.mulf %58, %57 : vector<64x16xf32>
      %cst_31 = arith.constant dense<0.000000e+00> : vector<16xf32>
      %60 = vector.multi_reduction <add>, %59, %cst_31 [0] : vector<64x16xf32> to vector<16xf32>
      %61 = vector.shape_cast %60 : vector<16xf32> to vector<1x16xf32>
      %c0_32 = arith.constant 0 : index
      %c0_33 = arith.constant 0 : index
      %62 = vector.load %arg6[%c0_32, %c0_33] : memref<1x16xf32, #tpu.memory_space<vmem>>, vector<1x16xf32>
      %63 = arith.addf %61, %62 : vector<1x16xf32>
      %cst_34 = arith.constant dense<0.000000e+00> : vector<1xf32>
      %64 = vector.multi_reduction <add>, %63, %cst_34 [1] : vector<1x16xf32> to vector<1xf32>
      %65 = vector.shape_cast %64 : vector<1xf32> to vector<1x1xf32>
      %cst_35 = arith.constant 1.600000e+01 : f32
      %66 = vector.broadcast %cst_35 : f32 to vector<1x1xf32>
      %67 = arith.divf %65, %66 : vector<1x1xf32>
      %68 = vector.broadcast %67 : vector<1x1xf32> to vector<1x16xf32>
      %69 = arith.subf %63, %68 : vector<1x16xf32>
      %70 = arith.mulf %69, %69 : vector<1x16xf32>
      %cst_36 = arith.constant dense<0.000000e+00> : vector<1xf32>
      %71 = vector.multi_reduction <add>, %70, %cst_36 [1] : vector<1x16xf32> to vector<1xf32>
      %72 = vector.shape_cast %71 : vector<1xf32> to vector<1x1xf32>
      %cst_37 = arith.constant 1.600000e+01 : f32
      %73 = vector.broadcast %cst_37 : f32 to vector<1x1xf32>
      %74 = arith.divf %72, %73 : vector<1x1xf32>
      %75 = vector.broadcast %67 : vector<1x1xf32> to vector<1x16xf32>
      %76 = arith.subf %63, %75 : vector<1x16xf32>
      %cst_38 = arith.constant 9.99999974E-6 : f32
      %77 = vector.broadcast %cst_38 : f32 to vector<1x1xf32>
      %78 = arith.addf %74, %77 : vector<1x1xf32>
      %79 = math.rsqrt %78 : vector<1x1xf32>
      %80 = vector.broadcast %79 : vector<1x1xf32> to vector<1x16xf32>
      %81 = arith.mulf %76, %80 : vector<1x16xf32>
      %c0_39 = arith.constant 0 : index
      %c0_40 = arith.constant 0 : index
      %82 = vector.load %arg7[%c0_39, %c0_40] : memref<1x16xf32, #tpu.memory_space<vmem>>, vector<1x16xf32>
      %83 = arith.mulf %81, %82 : vector<1x16xf32>
      %c0_41 = arith.constant 0 : index
      %c0_42 = arith.constant 0 : index
      %84 = vector.load %arg8[%c0_41, %c0_42] : memref<1x16xf32, #tpu.memory_space<vmem>>, vector<1x16xf32>
      %85 = arith.addf %83, %84 : vector<1x16xf32>
      %cst_43 = arith.constant 0.000000e+00 : f32
      %86 = vector.broadcast %cst_43 : f32 to vector<1x16xf32>
      %87 = arith.maximumf %85, %86 : vector<1x16xf32>
      %c0_44 = arith.constant 0 : index
      %c0_45 = arith.constant 0 : index
      %88 = vector.load %arg9[%c0_44, %c0_45] : memref<64x16xf32, #tpu.memory_space<vmem>>, vector<64x16xf32>
      %89 = vector.broadcast %87 : vector<1x16xf32> to vector<64x16xf32>
      %90 = arith.mulf %88, %89 : vector<64x16xf32>
      %cst_46 = arith.constant dense<0.000000e+00> : vector<64xf32>
      %91 = vector.multi_reduction <add>, %90, %cst_46 [1] : vector<64x16xf32> to vector<64xf32>
      %92 = vector.shape_cast %91 : vector<64xf32> to vector<64x1xf32>
      %c0_47 = arith.constant 0 : index
      %c0_48 = arith.constant 0 : index
      %93 = vector.load %arg10[%c0_47, %c0_48] : memref<64x1xf32, #tpu.memory_space<vmem>>, vector<64x1xf32>
      %94 = arith.addf %92, %93 : vector<64x1xf32>
      %cst_49 = arith.constant 0.000000e+00 : f32
      %95 = vector.broadcast %cst_49 : f32 to vector<64x1xf32>
      %96 = arith.subf %95, %94 : vector<64x1xf32>
      %97 = math.exp %96 : vector<64x1xf32>
      %cst_50 = arith.constant 1.000000e+00 : f32
      %98 = vector.broadcast %cst_50 : f32 to vector<64x1xf32>
      %99 = arith.addf %98, %97 : vector<64x1xf32>
      %cst_51 = arith.constant 1.000000e+00 : f32
      %100 = vector.broadcast %cst_51 : f32 to vector<64x1xf32>
      %101 = arith.divf %100, %99 : vector<64x1xf32>
      %c0_52 = arith.constant 0 : index
      %c0_53 = arith.constant 0 : index
      %c0_54 = arith.constant 0 : index
      %102 = vector.load %arg17[%c0_52, %c0_53, %c0_54] : memref<1x64x1xf32, #tpu.memory_space<vmem>>, vector<1x64x1xf32>
      %103 = vector.shape_cast %102 : vector<1x64x1xf32> to vector<64x1xf32>
      %104 = vector.shape_cast %101 : vector<64x1xf32> to vector<1x64x1xf32>
      tpu.vector_store %arg17[%c0_52, %c0_53, %c0_54], %104 {strides = array<i32>} : memref<1x64x1xf32, #tpu.memory_space<vmem>>, vector<1x64x1xf32>,
      %c0_55 = arith.constant 0 : index
      %c0_56 = arith.constant 0 : index
      %105 = vector.load %arg11[%c0_55, %c0_56] : memref<64x16xf32, #tpu.memory_space<vmem>>, vector<64x16xf32>
      %106 = vector.broadcast %56 : vector<64x1xf32> to vector<64x16xf32>
      %107 = arith.mulf %106, %105 : vector<64x16xf32>
      %cst_57 = arith.constant dense<0.000000e+00> : vector<16xf32>
      %108 = vector.multi_reduction <add>, %107, %cst_57 [0] : vector<64x16xf32> to vector<16xf32>
      %109 = vector.shape_cast %108 : vector<16xf32> to vector<1x16xf32>
      %c0_58 = arith.constant 0 : index
      %c0_59 = arith.constant 0 : index
      %110 = vector.load %arg12[%c0_58, %c0_59] : memref<1x16xf32, #tpu.memory_space<vmem>>, vector<1x16xf32>
      %111 = arith.addf %109, %110 : vector<1x16xf32>
      %cst_60 = arith.constant dense<0.000000e+00> : vector<1xf32>
      %112 = vector.multi_reduction <add>, %111, %cst_60 [1] : vector<1x16xf32> to vector<1xf32>
      %113 = vector.shape_cast %112 : vector<1xf32> to vector<1x1xf32>
      %cst_61 = arith.constant 1.600000e+01 : f32
      %114 = vector.broadcast %cst_61 : f32 to vector<1x1xf32>
      %115 = arith.divf %113, %114 : vector<1x1xf32>
      %116 = vector.broadcast %115 : vector<1x1xf32> to vector<1x16xf32>
      %117 = arith.subf %111, %116 : vector<1x16xf32>
      %118 = arith.mulf %117, %117 : vector<1x16xf32>
      %cst_62 = arith.constant dense<0.000000e+00> : vector<1xf32>
      %119 = vector.multi_reduction <add>, %118, %cst_62 [1] : vector<1x16xf32> to vector<1xf32>
      %120 = vector.shape_cast %119 : vector<1xf32> to vector<1x1xf32>
      %cst_63 = arith.constant 1.600000e+01 : f32
      %121 = vector.broadcast %cst_63 : f32 to vector<1x1xf32>
      %122 = arith.divf %120, %121 : vector<1x1xf32>
      %123 = vector.broadcast %115 : vector<1x1xf32> to vector<1x16xf32>
      %124 = arith.subf %111, %123 : vector<1x16xf32>
      %cst_64 = arith.constant 9.99999974E-6 : f32
      %125 = vector.broadcast %cst_64 : f32 to vector<1x1xf32>
      %126 = arith.addf %122, %125 : vector<1x1xf32>
      %127 = math.rsqrt %126 : vector<1x1xf32>
      %128 = vector.broadcast %127 : vector<1x1xf32> to vector<1x16xf32>
      %129 = arith.mulf %124, %128 : vector<1x16xf32>
      %c0_65 = arith.constant 0 : index
      %c0_66 = arith.constant 0 : index
      %130 = vector.load %arg13[%c0_65, %c0_66] : memref<1x16xf32, #tpu.memory_space<vmem>>, vector<1x16xf32>
      %131 = arith.mulf %129, %130 : vector<1x16xf32>
      %c0_67 = arith.constant 0 : index
      %c0_68 = arith.constant 0 : index
      %132 = vector.load %arg14[%c0_67, %c0_68] : memref<1x16xf32, #tpu.memory_space<vmem>>, vector<1x16xf32>
      %133 = arith.addf %131, %132 : vector<1x16xf32>
      %cst_69 = arith.constant 0.000000e+00 : f32
      %134 = vector.broadcast %cst_69 : f32 to vector<1x16xf32>
      %135 = arith.maximumf %133, %134 : vector<1x16xf32>
      %c0_70 = arith.constant 0 : index
      %c0_71 = arith.constant 0 : index
      %136 = vector.load %arg15[%c0_70, %c0_71] : memref<64x16xf32, #tpu.memory_space<vmem>>, vector<64x16xf32>
      %137 = vector.broadcast %135 : vector<1x16xf32> to vector<64x16xf32>
      %138 = arith.mulf %136, %137 : vector<64x16xf32>
      %cst_72 = arith.constant dense<0.000000e+00> : vector<64xf32>
      %139 = vector.multi_reduction <add>, %138, %cst_72 [1] : vector<64x16xf32> to vector<64xf32>
      %140 = vector.shape_cast %139 : vector<64xf32> to vector<64x1xf32>
      %c0_73 = arith.constant 0 : index
      %c0_74 = arith.constant 0 : index
      %141 = vector.load %arg16[%c0_73, %c0_74] : memref<64x1xf32, #tpu.memory_space<vmem>>, vector<64x1xf32>
      %142 = arith.addf %140, %141 : vector<64x1xf32>
      %c0_75 = arith.constant 0 : index
      %c0_76 = arith.constant 0 : index
      %c0_77 = arith.constant 0 : index
      %143 = vector.load %arg18[%c0_75, %c0_76, %c0_77] : memref<1x64x1xf32, #tpu.memory_space<vmem>>, vector<1x64x1xf32>
      %144 = vector.shape_cast %143 : vector<1x64x1xf32> to vector<64x1xf32>
      %145 = vector.shape_cast %142 : vector<64x1xf32> to vector<1x64x1xf32>
      tpu.vector_store %arg18[%c0_75, %c0_76, %c0_77], %145 {strides = array<i32>} : memref<1x64x1xf32, #tpu.memory_space<vmem>>, vector<1x64x1xf32>,
    } else {
    }
    return
  }
  func.func @transform_0(%arg0: i32, %arg1: i32) -> (i32, i32, i32) {
    %c0_i32 = arith.constant 0 : i32
    %c0_i32_0 = arith.constant 0 : i32
    return %arg0, %c0_i32, %arg1 : i32, i32, i32
  }
  func.func @transform_1(%arg0: i32, %arg1: i32) -> (i32, i32) {
    %c0_i32 = arith.constant 0 : i32
    %c0_i32_0 = arith.constant 0 : i32
    %c0_i32_1 = arith.constant 0 : i32
    return %c0_i32, %c0_i32_0 : i32, i32
  }
  func.func @transform_2(%arg0: i32, %arg1: i32) -> (i32, i32) {
    %c0_i32 = arith.constant 0 : i32
    %c0_i32_0 = arith.constant 0 : i32
    %c0_i32_1 = arith.constant 0 : i32
    return %c0_i32, %c0_i32_0 : i32, i32
  }
  func.func @transform_3(%arg0: i32, %arg1: i32) -> (i32, i32) {
    %c0_i32 = arith.constant 0 : i32
    %c0_i32_0 = arith.constant 0 : i32
    %c0_i32_1 = arith.constant 0 : i32
    return %c0_i32, %c0_i32_0 : i32, i32
  }
  func.func @transform_4(%arg0: i32, %arg1: i32) -> (i32, i32) {
    %c0_i32 = arith.constant 0 : i32
    %c0_i32_0 = arith.constant 0 : i32
    %c0_i32_1 = arith.constant 0 : i32
    return %c0_i32, %c0_i32_0 : i32, i32
  }
  func.func @transform_5(%arg0: i32, %arg1: i32) -> (i32, i32) {
    %c0_i32 = arith.constant 0 : i32
    %c0_i32_0 = arith.constant 0 : i32
    %c0_i32_1 = arith.constant 0 : i32
    return %c0_i32, %c0_i32_0 : i32, i32
  }
  func.func @transform_6(%arg0: i32, %arg1: i32) -> (i32, i32) {
    %c0_i32 = arith.constant 0 : i32
    %c0_i32_0 = arith.constant 0 : i32
    %c0_i32_1 = arith.constant 0 : i32
    return %c0_i32, %c0_i32_0 : i32, i32
  }
  func.func @transform_7(%arg0: i32, %arg1: i32) -> (i32, i32) {
    %c0_i32 = arith.constant 0 : i32
    %c0_i32_0 = arith.constant 0 : i32
    %c0_i32_1 = arith.constant 0 : i32
    return %c0_i32, %c0_i32_0 : i32, i32
  }
  func.func @transform_8(%arg0: i32, %arg1: i32) -> (i32, i32) {
    %c0_i32 = arith.constant 0 : i32
    %c0_i32_0 = arith.constant 0 : i32
    %c0_i32_1 = arith.constant 0 : i32
    return %c0_i32, %c0_i32_0 : i32, i32
  }
  func.func @transform_9(%arg0: i32, %arg1: i32) -> (i32, i32) {
    %c0_i32 = arith.constant 0 : i32
    %c0_i32_0 = arith.constant 0 : i32
    %c0_i32_1 = arith.constant 0 : i32
    return %c0_i32, %c0_i32_0 : i32, i32
  }
  func.func @transform_10(%arg0: i32, %arg1: i32) -> (i32, i32) {
    %c0_i32 = arith.constant 0 : i32
    %c0_i32_0 = arith.constant 0 : i32
    %c0_i32_1 = arith.constant 0 : i32
    return %c0_i32, %c0_i32_0 : i32, i32
  }
  func.func @transform_11(%arg0: i32, %arg1: i32) -> (i32, i32) {
    %c0_i32 = arith.constant 0 : i32
    %c0_i32_0 = arith.constant 0 : i32
    %c0_i32_1 = arith.constant 0 : i32
    return %c0_i32, %c0_i32_0 : i32, i32
  }
  func.func @transform_12(%arg0: i32, %arg1: i32) -> (i32, i32) {
    %c0_i32 = arith.constant 0 : i32
    %c0_i32_0 = arith.constant 0 : i32
    %c0_i32_1 = arith.constant 0 : i32
    return %c0_i32, %c0_i32_0 : i32, i32
  }
  func.func @transform_13(%arg0: i32, %arg1: i32) -> (i32, i32) {
    %c0_i32 = arith.constant 0 : i32
    %c0_i32_0 = arith.constant 0 : i32
    %c0_i32_1 = arith.constant 0 : i32
    return %c0_i32, %c0_i32_0 : i32, i32
  }
  func.func @transform_14(%arg0: i32, %arg1: i32) -> (i32, i32) {
    %c0_i32 = arith.constant 0 : i32
    %c0_i32_0 = arith.constant 0 : i32
    %c0_i32_1 = arith.constant 0 : i32
    return %c0_i32, %c0_i32_0 : i32, i32
  }
  func.func @transform_15(%arg0: i32, %arg1: i32) -> (i32, i32, i32) {
    %c0_i32 = arith.constant 0 : i32
    %c0_i32_0 = arith.constant 0 : i32
    %c0_i32_1 = arith.constant 0 : i32
    return %arg0, %c0_i32, %c0_i32_0 : i32, i32, i32
  }
  func.func @transform_16(%arg0: i32, %arg1: i32) -> (i32, i32, i32) {
    %c0_i32 = arith.constant 0 : i32
    %c0_i32_0 = arith.constant 0 : i32
    %c0_i32_1 = arith.constant 0 : i32
    return %arg0, %c0_i32, %c0_i32_0 : i32, i32, i32
  }
}

module attributes {stable_mosaic.version = 11 : i64} {
  func.func @_epilogue_kernel(%arg0: i32, %arg1: i32, %arg2: memref<1x64x2048xf32, #tpu.memory_space<vmem>>, %arg3: memref<1x64x1xf32, #tpu.memory_space<vmem>>, %arg4: memref<1x64x1xf32, #tpu.memory_space<vmem>>, %arg5: memref<1x64x2048xf32, #tpu.memory_space<vmem>>) attributes {dimension_semantics = [#tpu.dimension_semantics<parallel>, #tpu.dimension_semantics<parallel>], iteration_bounds = array<i64: 2, 2>, scalar_prefetch = 0 : i64, scratch_operands = 0 : i64, tpu.core_type = #tpu.core_type<tc>, window_params = [{transform_indices = @transform_0, window_bounds = array<i64: 1, 64, 2048>}, {transform_indices = @transform_1, window_bounds = array<i64: 1, 64, 1>}, {transform_indices = @transform_2, window_bounds = array<i64: 1, 64, 1>}, {transform_indices = @transform_3, window_bounds = array<i64: 1, 64, 2048>}]} {
    %c0 = arith.constant 0 : index
    %c0_0 = arith.constant 0 : index
    %c0_1 = arith.constant 0 : index
    %0 = vector.load %arg2[%c0, %c0_0, %c0_1] : memref<1x64x2048xf32, #tpu.memory_space<vmem>>, vector<1x64x2048xf32>
    %1 = vector.shape_cast %0 : vector<1x64x2048xf32> to vector<64x2048xf32>
    %c0_2 = arith.constant 0 : index
    %c0_3 = arith.constant 0 : index
    %c0_4 = arith.constant 0 : index
    %2 = vector.load %arg3[%c0_2, %c0_3, %c0_4] : memref<1x64x1xf32, #tpu.memory_space<vmem>>, vector<1x64x1xf32>
    %3 = vector.shape_cast %2 : vector<1x64x1xf32> to vector<64x1xf32>
    %4 = vector.broadcast %3 : vector<64x1xf32> to vector<64x2048xf32>
    %5 = arith.mulf %1, %4 : vector<64x2048xf32>
    %c0_5 = arith.constant 0 : index
    %c0_6 = arith.constant 0 : index
    %c0_7 = arith.constant 0 : index
    %6 = vector.load %arg4[%c0_5, %c0_6, %c0_7] : memref<1x64x1xf32, #tpu.memory_space<vmem>>, vector<1x64x1xf32>
    %7 = vector.shape_cast %6 : vector<1x64x1xf32> to vector<64x1xf32>
    %8 = vector.broadcast %7 : vector<64x1xf32> to vector<64x2048xf32>
    %9 = arith.addf %5, %8 : vector<64x2048xf32>
    %c0_8 = arith.constant 0 : index
    %c0_9 = arith.constant 0 : index
    %c0_10 = arith.constant 0 : index
    %10 = vector.load %arg5[%c0_8, %c0_9, %c0_10] : memref<1x64x2048xf32, #tpu.memory_space<vmem>>, vector<1x64x2048xf32>
    %11 = vector.shape_cast %10 : vector<1x64x2048xf32> to vector<64x2048xf32>
    %12 = vector.shape_cast %9 : vector<64x2048xf32> to vector<1x64x2048xf32>
    tpu.vector_store %arg5[%c0_8, %c0_9, %c0_10], %12 {strides = array<i32>} : memref<1x64x2048xf32, #tpu.memory_space<vmem>>, vector<1x64x2048xf32>,
    return
  }
  func.func @transform_0(%arg0: i32, %arg1: i32) -> (i32, i32, i32) {
    %c0_i32 = arith.constant 0 : i32
    %c0_i32_0 = arith.constant 0 : i32
    return %arg0, %c0_i32, %arg1 : i32, i32, i32
  }
  func.func @transform_1(%arg0: i32, %arg1: i32) -> (i32, i32, i32) {
    %c0_i32 = arith.constant 0 : i32
    %c0_i32_0 = arith.constant 0 : i32
    %c0_i32_1 = arith.constant 0 : i32
    return %arg0, %c0_i32, %c0_i32_0 : i32, i32, i32
  }
  func.func @transform_2(%arg0: i32, %arg1: i32) -> (i32, i32, i32) {
    %c0_i32 = arith.constant 0 : i32
    %c0_i32_0 = arith.constant 0 : i32
    %c0_i32_1 = arith.constant 0 : i32
    return %arg0, %c0_i32, %c0_i32_0 : i32, i32, i32
  }
  func.func @transform_3(%arg0: i32, %arg1: i32) -> (i32, i32, i32) {
    %c0_i32 = arith.constant 0 : i32
    %c0_i32_0 = arith.constant 0 : i32
    return %arg0, %c0_i32, %arg1 : i32, i32, i32
  }
}

</mosaic_0001>

<bundles_post_ra>
// kernel: cb2d_forward.3
= control target key start
LH: loop header
LB: loop body
LE: loop exit
PB: predicated region body
PF: predicated region fallthrough
CT: control target
= control target key end

     0   :  { %s4513_s0 = inlined_call_operand.vmem [shape: f32[2,64,2304], index: 0, kind: input, shape index: {}]   ;;  %s4514_s1 = inlined_call_operand.vmem [shape: f32[2,64,1], index: 1, kind: input, shape index: {}]   ;;  %s4515_s2 = inlined_call_operand.vmem [shape: f32[2,64,1], index: 2, kind: input, shape index: {}]   ;;  %s4516_s3 = inlined_call_operand.vmem [shape: f32[2,64,2304], index: 3, kind: output, shape index: {}]  }
   0x1   :  { %4521 = sst [smem:[#allocation52_spill]] %s4513_s0 }
   0x2   :  { %s2777_s12 = smov 0   ;;  %s2779_s13 = smov 0  }
   0x3   :  { %s2781_s14 = smov 0   ;;  %s2783_s15 = smov 0  }
   0x4   :  { %s2785_s16 = smov 0   ;;  %s2787_s17 = smov 0  }
   0x5   :  { %s2789_s18 = smov 0  }
   0x6 LB: > { %s22_s19 = sadd.s32 1, %s2614_s16  ;;  %s25_s20 = sadd.s32 1, %s2618_s17  ;;  %s2622_s18 = sphi %s2789_s18, %s13_s18   ;;  %s2618_s17 = sphi %s2787_s17, %s4657_s17   ;;  %s2614_s16 = sphi %s2785_s16, %s4656_s16   ;;  %s2610_s15 = sphi %s2783_s15, %s4655_s15   ;;  %s2606_s14 = sphi %s2781_s14, %s4654_s14   ;;  %s2602_s13 = sphi %s2779_s13, %s4653_s13   ;;  %s2598_s12 = sphi %s2777_s12, %s4652_s12  }
   0x7   : > { %p23_p0 = scmp.ge.s32.totalorder %s22_s19, 2  ;;  %s2042_s21 = sadd.s32 4294967295, %s2622_s18  }
   0x8   : > { %p41_p1 = scmp.ne.s32.totalorder %s2602_s13, %s2598_s12  ;;  %p42_p2 = scmp.eq.s32.totalorder %s2622_s18, 0 }
   0x9   : > { %s4659_s19 = smov (%p23_p0, %s22_s19), 0  ;;  %s4661_s20 = smov (!%p23_p0, %s25_s20), %s2618_s17 }
   0xa   : > { %4522 = sst [smem:[#allocation4_spill]] %s4659_s19  ;;  %p27_p3 = scmp.ge.s32.totalorder %s4661_s20, 2 }
   0xb   : > { %p125_p4 = scmp.eq.s32.totalorder %s2042_s21, 3  ;;  %s30_s22 = ssub.s32 %s2614_s16, %s4659_s19 }
   0xc   : > { %p43_p5 = por %p42_p2, %p41_p1  ;;  %s4663_s20 = smov (%p27_p3, %s4661_s20), 0 }
   0xd   : > { %4523 = sst [smem:[#allocation5_spill]] %s4663_s20  ;;  %p2825_p6 = por %p125_p4, %p41_p1 }
   0xe   : > { %s29_s24 = ssub.s32 %s2618_s17, %s4663_s20  ;;  %s34_s26 = sadd.s32 1, %s2602_s13 }
   0xf   : > { %s31_s25 = sor.u32 %s30_s22, %s29_s24  ;;  %p2045_p8 = scmp.ge.s32.totalorder %s2622_s18, 4 }
  0x10   : > { %p32_p7 = scmp.eq.s32.totalorder %s31_s25, 0 }
  0x11   : > { %147 = sbr.rel (%p2045_p8) target bundleno = 204 (0xcc), region = 16 }
  0x12   : > { %s2833_s27 = scalar_select %p32_p7, %s2602_s13, %s34_s26  }
  0x18   : > { %150 = sbr.rel (!%p43_p5) target bundleno = 204 (0xcc), region = 20  ;;  %s152_s28 = sand.u32 (%p43_p5), 1, %s2602_s13  }
  0x19   : > { %s2047_s29 = sshll.u32 (%p43_p5), %s2614_s16, 4  ;;  %s2046_s30 = sshll.u32 (%p43_p5), %s152_s28, 10 }
  0x1a   : > { %s156_s4 = ssub.s32 (%p43_p5), 18, %s2047_s29  ;;  %s2119_s5 = smul.u32 (%p43_p5), 144, %s2618_s17 }
  0x1b   : > { %p157_p9 = scmp.lt.s32.totalorder (%p43_p5), %s156_s4, 16  ;;  %s4525_s0 = sld [smem:[#allocation52_spill]] (%p43_p5) }
  0x1c   : > { %s162_s6 = sadd.s32 (%p43_p5), %s2119_s5, %s2047_s29  ;;  %s2846_s22 = scalar_lea.vmem (%p43_p5), [#allocation2], %s2046_s30  }
  0x1d   : > { %s2050_s8 = sshll.u32 (%p43_p5), %s162_s6, 3 }
  0x1f   : > { %s4665_s4 = smov (!%p157_p9, %s156_s4), 16 }
  0x20   : > { %s2048_s7 = sshll.u32 %s4665_s4, 10  ;;  %s2844_s21 = sshll.u32 %s4665_s4, 3 }
  0x21   : > { %s2842_s11 = scalar_lea.vmem %s4525_s0, %s2050_s8   ;;  %p2052_p10 = scmp.eq.s32.totalorder %s2048_s7, 0 }
  0x22   : > { %p169_p11 = scmp.lt.u32.totalorder (!%p2052_p10), %s2844_s21, 8 }
  0x23   : > { %168 = sbr.rel (%p2052_p10) target bundleno = 204 (0xcc), region = 24 }
  0x2a   : > { %172 = sbr.rel (%p169_p11) target bundleno = 193 (0xc1), region = 28  ;;  %s2850_s24 = sand.u32 (!%p169_p11), 7, %s2844_s21  }
  0x2b   : > { %p202_p12 = scmp.eq.s32.totalorder (!%p169_p11), %s2850_s24, 0  ;;  %p2053_p13 = scmp.ne.s32.totalorder (!%p169_p11), %s2850_s24, 0 }
  0x31   : > { %205 = sbr.rel (%p2053_p13) target bundleno = 116 (0x74), region = 43  ;;  %s206_s25 = sshrl.u32 (!%p2053_p13), %s2844_s21, 3 }
  0x32   : > { %s2857_s26 = sshrl.u32 (!%p2053_p13), %s206_s25, 3 }
  0x33   : > { %p2054_p0 = scmp.le.s32.totalorder (!%p2053_p13), %s2857_s26, 0 }
  0x38   : > { %1891 = sbr.rel (%p2054_p0) target bundleno = 96 (0x60), region = 235  ;;  %s4526_s28 = smov (!%p2054_p0), %s2846_s22 }
  0x39   : > { %s4527_s29 = smov (!%p2054_p0), %s2842_s11  ;;  %s2866_s30 = smov (!%p2054_p0), 0  }
  0x3a   : > { %s2868_s4 = smov (!%p2054_p0), 0  }
  0x3f LB: >> { %v219_v0 = vld [vmem:[%s2630_s29] sm:$0xff]  ;;  %v221_v1 = vld [vmem:[%s2630_s29 + $0x8] sm:$0xff]  ;;  %v223_v2 = vld [vmem:[%s2630_s29 + $0x10] sm:$0xff]  ;;  %s347_s5 = sadd.s32 1, %s2634_s30  ;;  %s213_s4 = sadd.s32 1, %s2638_s4   ;;  %s2638_s4 = sphi %s2868_s4, %s213_s4   ;;  %s2634_s30 = sphi %s2866_s30, %s4530_s30   ;;  %s2630_s29 = sphi %s4527_s29, %s4529_s29   ;;  %s2626_s28 = sphi %s4526_s28, %s4528_s28  }
  0x40   : >> { %220 = vst [vmem:[%s2626_s28] sm:$0xff] %v219_v0  ;;  %222 = vst [vmem:[%s2626_s28 + $0x8] sm:$0xff] %v221_v1  ;;  %v225_v3 = vld [vmem:[%s2630_s29 + $0x18] sm:$0xff]  ;;  %v227_v4 = vld [vmem:[%s2630_s29 + $0x20] sm:$0xff]  ;;  %p348_p1 = scmp.ge.s32.totalorder %s347_s5, %s2857_s26  ;;  %p212_p2 = scmp.ge.s32.totalorder %s213_s4, %s2857_s26 }
  0x41   : >> { %224 = vst [vmem:[%s2626_s28 + $0x10] sm:$0xff] %v223_v2  ;;  %v229_v5 = vld [vmem:[%s2630_s29 + $0x28] sm:$0xff]  ;;  %226 = vst [vmem:[%s2626_s28 + $0x18] sm:$0xff] %v225_v3  ;;  %v231_v6 = vld [vmem:[%s2630_s29 + $0x30] sm:$0xff] }
  0x42   : >> { %228 = vst [vmem:[%s2626_s28 + $0x20] sm:$0xff] %v227_v4  ;;  %230 = vst [vmem:[%s2626_s28 + $0x28] sm:$0xff] %v229_v5  ;;  %v233_v7 = vld [vmem:[%s2630_s29 + $0x38] sm:$0xff]  ;;  %v235_v8 = vld [vmem:[%s2630_s29 + $0x90] sm:$0xff]  ;;  %s4667_s5 = smov (%p348_p1, %s347_s5), 0 }
  0x43   : >> { %232 = vst [vmem:[%s2626_s28 + $0x30] sm:$0xff] %v231_v6  ;;  %234 = vst [vmem:[%s2626_s28 + $0x38] sm:$0xff] %v233_v7  ;;  %v237_v9 = vld [vmem:[%s2630_s29 + $0x98] sm:$0xff]  ;;  %v239_v10 = vld [vmem:[%s2630_s29 + $0xa0] sm:$0xff]  ;;  %s2055_s6 = sshll.u32 %s4667_s5, 6  ;;  %s4530_s30 = smov %s4667_s5 }
  0x44   : >> { %236 = vst [vmem:[%s2626_s28 + $0x80] sm:$0xff] %v235_v8  ;;  %v241_v11 = vld [vmem:[%s2630_s29 + $0xa8] sm:$0xff]  ;;  %238 = vst [vmem:[%s2626_s28 + $0x88] sm:$0xff] %v237_v9  ;;  %v243_v12 = vld [vmem:[%s2630_s29 + $0xb0] sm:$0xff]  ;;  %s2924_s7 = scalar_lea.vmem %s2842_s11, %s2055_s6   ;;  %s2927_s8 = scalar_lea.vmem %s2846_s22, %s2055_s6 [#allocation2]  }
  0x45   : >> { %240 = vst [vmem:[%s2626_s28 + $0x90] sm:$0xff] %v239_v10  ;;  %242 = vst [vmem:[%s2626_s28 + $0x98] sm:$0xff] %v241_v11  ;;  %v245_v13 = vld [vmem:[%s2630_s29 + $0xb8] sm:$0xff]  ;;  %v247_v14 = vld [vmem:[%s2630_s29 + $0xc0] sm:$0xff] }
  0x46   : >> { %244 = vst [vmem:[%s2626_s28 + $0xa0] sm:$0xff] %v243_v12  ;;  %246 = vst [vmem:[%s2626_s28 + $0xa8] sm:$0xff] %v245_v13  ;;  %v249_v15 = vld [vmem:[%s2630_s29 + $0xc8] sm:$0xff]  ;;  %v251_v16 = vld [vmem:[%s2630_s29 + $0x120] sm:$0xff] }
  0x47   : >> { %248 = vst [vmem:[%s2626_s28 + $0xb0] sm:$0xff] %v247_v14  ;;  %v253_v17 = vld [vmem:[%s2630_s29 + $0x128] sm:$0xff]  ;;  %250 = vst [vmem:[%s2626_s28 + $0xb8] sm:$0xff] %v249_v15  ;;  %v255_v18 = vld [vmem:[%s2630_s29 + $0x130] sm:$0xff] }
  0x48   : >> { %252 = vst [vmem:[%s2626_s28 + $0x100] sm:$0xff] %v251_v16  ;;  %254 = vst [vmem:[%s2626_s28 + $0x108] sm:$0xff] %v253_v17  ;;  %v257_v19 = vld [vmem:[%s2630_s29 + $0x138] sm:$0xff]  ;;  %v259_v20 = vld [vmem:[%s2630_s29 + $0x140] sm:$0xff] }
  0x49   : >> { %256 = vst [vmem:[%s2626_s28 + $0x110] sm:$0xff] %v255_v18  ;;  %258 = vst [vmem:[%s2626_s28 + $0x118] sm:$0xff] %v257_v19  ;;  %v261_v21 = vld [vmem:[%s2630_s29 + $0x148] sm:$0xff]  ;;  %v263_v22 = vld [vmem:[%s2630_s29 + $0x150] sm:$0xff] }
  0x4a   : >> { %260 = vst [vmem:[%s2626_s28 + $0x120] sm:$0xff] %v259_v20  ;;  %v265_v23 = vld [vmem:[%s2630_s29 + $0x158] sm:$0xff]  ;;  %262 = vst [vmem:[%s2626_s28 + $0x128] sm:$0xff] %v261_v21  ;;  %v267_v24 = vld [vmem:[%s2630_s29 + $0x1b0] sm:$0xff] }
  0x4b   : >> { %264 = vst [vmem:[%s2626_s28 + $0x130] sm:$0xff] %v263_v22  ;;  %266 = vst [vmem:[%s2626_s28 + $0x138] sm:$0xff] %v265_v23  ;;  %v269_v25 = vld [vmem:[%s2630_s29 + $0x1b8] sm:$0xff]  ;;  %v271_v26 = vld [vmem:[%s2630_s29 + $0x1c0] sm:$0xff] }
  0x4c   : >> { %268 = vst [vmem:[%s2626_s28 + $0x180] sm:$0xff] %v267_v24  ;;  %270 = vst [vmem:[%s2626_s28 + $0x188] sm:$0xff] %v269_v25  ;;  %v273_v27 = vld [vmem:[%s2630_s29 + $0x1c8] sm:$0xff]  ;;  %v275_v28 = vld [vmem:[%s2630_s29 + $0x1d0] sm:$0xff] }
  0x4d   : >> { %272 = vst [vmem:[%s2626_s28 + $0x190] sm:$0xff] %v271_v26  ;;  %v277_v29 = vld [vmem:[%s2630_s29 + $0x1d8] sm:$0xff]  ;;  %274 = vst [vmem:[%s2626_s28 + $0x198] sm:$0xff] %v273_v27  ;;  %v279_v30 = vld [vmem:[%s2630_s29 + $0x1e0] sm:$0xff] }
  0x4e   : >> { %276 = vst [vmem:[%s2626_s28 + $0x1a0] sm:$0xff] %v275_v28  ;;  %278 = vst [vmem:[%s2626_s28 + $0x1a8] sm:$0xff] %v277_v29  ;;  %v281_v31 = vld [vmem:[%s2630_s29 + $0x1e8] sm:$0xff]  ;;  %v283_v32 = vld [vmem:[%s2630_s29 + $0x240] sm:$0xff] }
  0x4f   : >> { %280 = vst [vmem:[%s2626_s28 + $0x1b0] sm:$0xff] %v279_v30  ;;  %282 = vst [vmem:[%s2626_s28 + $0x1b8] sm:$0xff] %v281_v31  ;;  %v285_v33 = vld [vmem:[%s2630_s29 + $0x248] sm:$0xff]  ;;  %v287_v34 = vld [vmem:[%s2630_s29 + $0x250] sm:$0xff] }
  0x50   : >> { %284 = vst [vmem:[%s2626_s28 + $0x200] sm:$0xff] %v283_v32  ;;  %v289_v35 = vld [vmem:[%s2630_s29 + $0x258] sm:$0xff]  ;;  %286 = vst [vmem:[%s2626_s28 + $0x208] sm:$0xff] %v285_v33  ;;  %v291_v36 = vld [vmem:[%s2630_s29 + $0x260] sm:$0xff] }
  0x51   : >> { %288 = vst [vmem:[%s2626_s28 + $0x210] sm:$0xff] %v287_v34  ;;  %290 = vst [vmem:[%s2626_s28 + $0x218] sm:$0xff] %v289_v35  ;;  %v293_v37 = vld [vmem:[%s2630_s29 + $0x268] sm:$0xff]  ;;  %v295_v38 = vld [vmem:[%s2630_s29 + $0x270] sm:$0xff] }
  0x52   : >> { %292 = vst [vmem:[%s2626_s28 + $0x220] sm:$0xff] %v291_v36  ;;  %294 = vst [vmem:[%s2626_s28 + $0x228] sm:$0xff] %v293_v37  ;;  %v297_v39 = vld [vmem:[%s2630_s29 + $0x278] sm:$0xff]  ;;  %v299_v40 = vld [vmem:[%s2630_s29 + $0x2d0] sm:$0xff] }
  0x53   : >> { %296 = vst [vmem:[%s2626_s28 + $0x230] sm:$0xff] %v295_v38  ;;  %v301_v41 = vld [vmem:[%s2630_s29 + $0x2d8] sm:$0xff]  ;;  %298 = vst [vmem:[%s2626_s28 + $0x238] sm:$0xff] %v297_v39  ;;  %v303_v42 = vld [vmem:[%s2630_s29 + $0x2e0] sm:$0xff] }
  0x54   : >> { %300 = vst [vmem:[%s2626_s28 + $0x280] sm:$0xff] %v299_v40  ;;  %302 = vst [vmem:[%s2626_s28 + $0x288] sm:$0xff] %v301_v41  ;;  %v305_v43 = vld [vmem:[%s2630_s29 + $0x2e8] sm:$0xff]  ;;  %v307_v44 = vld [vmem:[%s2630_s29 + $0x2f0] sm:$0xff] }
  0x55   : >> { %304 = vst [vmem:[%s2626_s28 + $0x290] sm:$0xff] %v303_v42  ;;  %306 = vst [vmem:[%s2626_s28 + $0x298] sm:$0xff] %v305_v43  ;;  %v309_v45 = vld [vmem:[%s2630_s29 + $0x2f8] sm:$0xff]  ;;  %v311_v46 = vld [vmem:[%s2630_s29 + $0x300] sm:$0xff] }
  0x56   : >> { %308 = vst [vmem:[%s2626_s28 + $0x2a0] sm:$0xff] %v307_v44  ;;  %v313_v47 = vld [vmem:[%s2630_s29 + $0x308] sm:$0xff]  ;;  %310 = vst [vmem:[%s2626_s28 + $0x2a8] sm:$0xff] %v309_v45  ;;  %v315_v48 = vld [vmem:[%s2630_s29 + $0x360] sm:$0xff] }
  0x57   : >> { %312 = vst [vmem:[%s2626_s28 + $0x2b0] sm:$0xff] %v311_v46  ;;  %314 = vst [vmem:[%s2626_s28 + $0x2b8] sm:$0xff] %v313_v47  ;;  %v317_v49 = vld [vmem:[%s2630_s29 + $0x368] sm:$0xff]  ;;  %v319_v50 = vld [vmem:[%s2630_s29 + $0x370] sm:$0xff] }
  0x58   : >> { %316 = vst [vmem:[%s2626_s28 + $0x300] sm:$0xff] %v315_v48  ;;  %318 = vst [vmem:[%s2626_s28 + $0x308] sm:$0xff] %v317_v49  ;;  %v321_v51 = vld [vmem:[%s2630_s29 + $0x378] sm:$0xff]  ;;  %v323_v52 = vld [vmem:[%s2630_s29 + $0x380] sm:$0xff] }
  0x59   : >> { %320 = vst [vmem:[%s2626_s28 + $0x310] sm:$0xff] %v319_v50  ;;  %v325_v53 = vld [vmem:[%s2630_s29 + $0x388] sm:$0xff]  ;;  %322 = vst [vmem:[%s2626_s28 + $0x318] sm:$0xff] %v321_v51  ;;  %v327_v54 = vld [vmem:[%s2630_s29 + $0x390] sm:$0xff]  ;;  %215 = sbr.rel (!%p212_p2) target bundleno = 63 (0x3f), region = 241 }
  0x5a   : >> { %324 = vst [vmem:[%s2626_s28 + $0x320] sm:$0xff] %v323_v52  ;;  %326 = vst [vmem:[%s2626_s28 + $0x328] sm:$0xff] %v325_v53  ;;  %v329_v55 = vld [vmem:[%s2630_s29 + $0x398] sm:$0xff]  ;;  %v331_v56 = vld [vmem:[%s2630_s29 + $0x3f0] sm:$0xff] }
  0x5b   : >> { %328 = vst [vmem:[%s2626_s28 + $0x330] sm:$0xff] %v327_v54  ;;  %330 = vst [vmem:[%s2626_s28 + $0x338] sm:$0xff] %v329_v55  ;;  %v333_v57 = vld [vmem:[%s2630_s29 + $0x3f8] sm:$0xff]  ;;  %v335_v58 = vld [vmem:[%s2630_s29 + $0x400] sm:$0xff] }
  0x5c   : >> { %332 = vst [vmem:[%s2626_s28 + $0x380] sm:$0xff] %v331_v56  ;;  %v337_v59 = vld [vmem:[%s2630_s29 + $0x408] sm:$0xff]  ;;  %334 = vst [vmem:[%s2626_s28 + $0x388] sm:$0xff] %v333_v57  ;;  %v339_v60 = vld [vmem:[%s2630_s29 + $0x410] sm:$0xff] }
  0x5d   : >> { %336 = vst [vmem:[%s2626_s28 + $0x390] sm:$0xff] %v335_v58  ;;  %338 = vst [vmem:[%s2626_s28 + $0x398] sm:$0xff] %v337_v59  ;;  %v341_v61 = vld [vmem:[%s2630_s29 + $0x418] sm:$0xff]  ;;  %v343_v62 = vld [vmem:[%s2630_s29 + $0x420] sm:$0xff] }
  0x5e   : >> { %340 = vst [vmem:[%s2626_s28 + $0x3a0] sm:$0xff] %v339_v60  ;;  %342 = vst [vmem:[%s2626_s28 + $0x3a8] sm:$0xff] %v341_v61  ;;  %v345_v63 = vld [vmem:[%s2630_s29 + $0x428] sm:$0xff]  ;;  %s4529_s29 = smov %s2924_s7 }
  0x5f   : >> { %344 = vst [vmem:[%s2626_s28 + $0x3b0] sm:$0xff] %v343_v62  ;;  %346 = vst [vmem:[%s2626_s28 + $0x3b8] sm:$0xff] %v345_v63  ;;  %s4528_s28 = smov %s2927_s8 }
  0x60 PF: > { %s3033_s9 = sand.u32 7, %s206_s25   ;;  %s2109_s10 = sshll.u32 %s2857_s26, 10 }
  0x61   : > { %s358_s6 = sshra.s32 %s2109_s10, 4  ;;  %p2060_p3 = scmp.le.s32.totalorder %s3033_s9, 0 }
  0x62   : > { %s3037_s0 = scalar_lea.vmem %s2842_s11, %s358_s6   ;;  %s3040_s8 = scalar_lea.vmem %s2846_s22, %s358_s6 [#allocation2]  }
  0x63   : > { %1905 = sbr.rel (%p2060_p3) target bundleno = 116 (0x74), region = 246  ;;  %s4531_s28 = smov (!%p2060_p3), %s3040_s8 }
  0x64   : > { %s4532_s29 = smov (!%p2060_p3), %s3037_s0  ;;  %s3049_s30 = smov (!%p2060_p3), 0  }
  0x65   : > { %s3051_s4 = smov (!%p2060_p3), 0  }
  0x6a LB: >> { %v374_v0 = vld [vmem:[%s2646_s29] sm:$0xff]  ;;  %v376_v1 = vld [vmem:[%s2646_s29 + $0x90] sm:$0xff]  ;;  %s390_s25 = sadd.s32 1, %s2650_s30  ;;  %s368_s4 = sadd.s32 1, %s2654_s4   ;;  %s2654_s4 = sphi %s3051_s4, %s368_s4   ;;  %s2650_s30 = sphi %s3049_s30, %s4533_s30   ;;  %s2646_s29 = sphi %s4532_s29, %s395_s29   ;;  %s2642_s28 = sphi %s4531_s28, %s396_s28  }
  0x6b   : >> { %v378_v2 = vld [vmem:[%s2646_s29 + $0x120] sm:$0xff]  ;;  %375 = vst [vmem:[%s2642_s28] sm:$0xff] %v374_v0  ;;  %377 = vst [vmem:[%s2642_s28 + $0x80] sm:$0xff] %v376_v1  ;;  %v380_v3 = vld [vmem:[%s2646_s29 + $0x1b0] sm:$0xff]  ;;  %p391_p4 = scmp.ge.s32.totalorder %s390_s25, %s3033_s9  ;;  %p367_p5 = scmp.ge.s32.totalorder %s368_s4, %s3033_s9 }
  0x6c   : >> { %379 = vst [vmem:[%s2642_s28 + $0x100] sm:$0xff] %v378_v2  ;;  %v382_v4 = vld [vmem:[%s2646_s29 + $0x240] sm:$0xff]  ;;  %v384_v5 = vld [vmem:[%s2646_s29 + $0x2d0] sm:$0xff]  ;;  %381 = vst [vmem:[%s2642_s28 + $0x180] sm:$0xff] %v380_v3 }
  0x6d   : >> { %383 = vst [vmem:[%s2642_s28 + $0x200] sm:$0xff] %v382_v4  ;;  %385 = vst [vmem:[%s2642_s28 + $0x280] sm:$0xff] %v384_v5  ;;  %v386_v6 = vld [vmem:[%s2646_s29 + $0x360] sm:$0xff]  ;;  %v388_v7 = vld [vmem:[%s2646_s29 + $0x3f0] sm:$0xff]  ;;  %s4669_s25 = smov (%p391_p4, %s390_s25), 0  ;;  %370 = sbr.rel (!%p367_p5) target bundleno = 106 (0x6a), region = 252 }
  0x6e   : >> { %387 = vst [vmem:[%s2642_s28 + $0x300] sm:$0xff] %v386_v6  ;;  %389 = vst [vmem:[%s2642_s28 + $0x380] sm:$0xff] %v388_v7  ;;  %s2061_s26 = sshll.u32 %s4669_s25, 3  ;;  %s4533_s30 = smov %s4669_s25 }
  0x6f   : >> { %s395_s29 = scalar_lea.vmem %s3037_s0, %s2061_s26   ;;  %s396_s28 = scalar_lea.vmem %s3040_s8, %s2061_s26 [#allocation2]  }
  0x74 PF: > { %399 = sbr.rel (%p202_p12) target bundleno = 193 (0xc1), region = 61  ;;  %s401_s5 = ssub.s32 (!%p202_p12), %s2844_s21, %s2850_s24 }
  0x75   : > { %s405_s7 = sshrl.u32 (!%p202_p12), %s2844_s21, 3  ;;  %s3075_s10 = scalar_lea.vmem (!%p202_p12), %s2842_s11, %s401_s5 }
  0x76   : > { %s3078_s6 = scalar_lea.vmem (!%p202_p12), %s2846_s22, %s401_s5 [#allocation2]  ;;  %s3082_s4 = sshrl.u32 (!%p202_p12), %s405_s7, 3 }
  0x77   : > { %p2063_p7 = scmp.le.s32.totalorder (!%p202_p12), %s3082_s4, 0 }
  0x7b   : > { %1919 = sbr.rel (%p2063_p7) target bundleno = 163 (0xa3), region = 257  ;;  %s4534_s0 = smov (!%p2063_p7), %s2846_s22 }
  0x7c   : > { %s4535_s9 = smov (!%p2063_p7), %s2842_s11  ;;  %s3091_s8 = smov (!%p2063_p7), 0  }
  0x7d   : > { %s3093_s28 = smov (!%p2063_p7), 0  }
  0x82 LB: >> { %v418_v8 = vld [vmem:[%s2662_s9] sm:$0xff]  ;;  %v420_v9 = vld [vmem:[%s2662_s9 + $0x8] sm:$0xff]  ;;  %v422_v10 = vld [vmem:[%s2662_s9 + $0x10] sm:$0xff]  ;;  %s546_s29 = sadd.s32 1, %s2666_s8  ;;  %s412_s28 = sadd.s32 1, %s2670_s28   ;;  %s2670_s28 = sphi %s3093_s28, %s412_s28   ;;  %s2666_s8 = sphi %s3091_s8, %s4538_s8   ;;  %s2662_s9 = sphi %s4535_s9, %s4537_s9   ;;  %s2658_s0 = sphi %s4534_s0, %s4536_s0  }
  0x83   : >> { %419 = vst [vmem:[%s2658_s0] sm:$0xff] %v418_v8  ;;  %421 = vst [vmem:[%s2658_s0 + $0x8] sm:$0xff] %v420_v9  ;;  %v424_v11 = vld [vmem:[%s2662_s9 + $0x18] sm:$0xff]  ;;  %v426_v12 = vld [vmem:[%s2662_s9 + $0x20] sm:$0xff]  ;;  %p547_p8 = scmp.ge.s32.totalorder %s546_s29, %s3082_s4  ;;  %p411_p9 = scmp.ge.s32.totalorder %s412_s28, %s3082_s4 }
  0x84   : >> { %423 = vst [vmem:[%s2658_s0 + $0x10] sm:$0xff] %v422_v10  ;;  %v428_v13 = vld [vmem:[%s2662_s9 + $0x28] sm:$0xff]  ;;  %425 = vst [vmem:[%s2658_s0 + $0x18] sm:$0xff] %v424_v11  ;;  %v430_v14 = vld [vmem:[%s2662_s9 + $0x30] sm:$0xff] }
  0x85   : >> { %427 = vst [vmem:[%s2658_s0 + $0x20] sm:$0xff] %v426_v12  ;;  %429 = vst [vmem:[%s2658_s0 + $0x28] sm:$0xff] %v428_v13  ;;  %v432_v15 = vld [vmem:[%s2662_s9 + $0x38] sm:$0xff]  ;;  %v434_v16 = vld [vmem:[%s2662_s9 + $0x90] sm:$0xff]  ;;  %s4671_s29 = smov (%p547_p8, %s546_s29), 0 }
  0x86   : >> { %431 = vst [vmem:[%s2658_s0 + $0x30] sm:$0xff] %v430_v14  ;;  %433 = vst [vmem:[%s2658_s0 + $0x38] sm:$0xff] %v432_v15  ;;  %v436_v17 = vld [vmem:[%s2662_s9 + $0x98] sm:$0xff]  ;;  %v438_v18 = vld [vmem:[%s2662_s9 + $0xa0] sm:$0xff]  ;;  %s2064_s30 = sshll.u32 %s4671_s29, 6  ;;  %s4538_s8 = smov %s4671_s29 }
  0x87   : >> { %435 = vst [vmem:[%s2658_s0 + $0x80] sm:$0xff] %v434_v16  ;;  %v440_v19 = vld [vmem:[%s2662_s9 + $0xa8] sm:$0xff]  ;;  %437 = vst [vmem:[%s2658_s0 + $0x88] sm:$0xff] %v436_v17  ;;  %v442_v20 = vld [vmem:[%s2662_s9 + $0xb0] sm:$0xff]  ;;  %s3149_s25 = scalar_lea.vmem %s2842_s11, %s2064_s30   ;;  %s3152_s26 = scalar_lea.vmem %s2846_s22, %s2064_s30 [#allocation2]  }
  0x88   : >> { %439 = vst [vmem:[%s2658_s0 + $0x90] sm:$0xff] %v438_v18  ;;  %441 = vst [vmem:[%s2658_s0 + $0x98] sm:$0xff] %v440_v19  ;;  %v444_v21 = vld [vmem:[%s2662_s9 + $0xb8] sm:$0xff]  ;;  %v446_v22 = vld [vmem:[%s2662_s9 + $0xc0] sm:$0xff] }
  0x89   : >> { %443 = vst [vmem:[%s2658_s0 + $0xa0] sm:$0xff] %v442_v20  ;;  %445 = vst [vmem:[%s2658_s0 + $0xa8] sm:$0xff] %v444_v21  ;;  %v448_v23 = vld [vmem:[%s2662_s9 + $0xc8] sm:$0xff]  ;;  %v450_v24 = vld [vmem:[%s2662_s9 + $0x120] sm:$0xff] }
  0x8a   : >> { %447 = vst [vmem:[%s2658_s0 + $0xb0] sm:$0xff] %v446_v22  ;;  %v452_v25 = vld [vmem:[%s2662_s9 + $0x128] sm:$0xff]  ;;  %449 = vst [vmem:[%s2658_s0 + $0xb8] sm:$0xff] %v448_v23  ;;  %v454_v26 = vld [vmem:[%s2662_s9 + $0x130] sm:$0xff] }
  0x8b   : >> { %451 = vst [vmem:[%s2658_s0 + $0x100] sm:$0xff] %v450_v24  ;;  %453 = vst [vmem:[%s2658_s0 + $0x108] sm:$0xff] %v452_v25  ;;  %v456_v27 = vld [vmem:[%s2662_s9 + $0x138] sm:$0xff]  ;;  %v458_v28 = vld [vmem:[%s2662_s9 + $0x140] sm:$0xff] }
  0x8c   : >> { %455 = vst [vmem:[%s2658_s0 + $0x110] sm:$0xff] %v454_v26  ;;  %457 = vst [vmem:[%s2658_s0 + $0x118] sm:$0xff] %v456_v27  ;;  %v460_v29 = vld [vmem:[%s2662_s9 + $0x148] sm:$0xff]  ;;  %v462_v30 = vld [vmem:[%s2662_s9 + $0x150] sm:$0xff] }
  0x8d   : >> { %459 = vst [vmem:[%s2658_s0 + $0x120] sm:$0xff] %v458_v28  ;;  %v464_v31 = vld [vmem:[%s2662_s9 + $0x158] sm:$0xff]  ;;  %461 = vst [vmem:[%s2658_s0 + $0x128] sm:$0xff] %v460_v29  ;;  %v466_v32 = vld [vmem:[%s2662_s9 + $0x1b0] sm:$0xff] }
  0x8e   : >> { %463 = vst [vmem:[%s2658_s0 + $0x130] sm:$0xff] %v462_v30  ;;  %465 = vst [vmem:[%s2658_s0 + $0x138] sm:$0xff] %v464_v31  ;;  %v468_v33 = vld [vmem:[%s2662_s9 + $0x1b8] sm:$0xff]  ;;  %v470_v34 = vld [vmem:[%s2662_s9 + $0x1c0] sm:$0xff] }
  0x8f   : >> { %467 = vst [vmem:[%s2658_s0 + $0x180] sm:$0xff] %v466_v32  ;;  %469 = vst [vmem:[%s2658_s0 + $0x188] sm:$0xff] %v468_v33  ;;  %v472_v35 = vld [vmem:[%s2662_s9 + $0x1c8] sm:$0xff]  ;;  %v474_v36 = vld [vmem:[%s2662_s9 + $0x1d0] sm:$0xff] }
  0x90   : >> { %471 = vst [vmem:[%s2658_s0 + $0x190] sm:$0xff] %v470_v34  ;;  %v476_v37 = vld [vmem:[%s2662_s9 + $0x1d8] sm:$0xff]  ;;  %473 = vst [vmem:[%s2658_s0 + $0x198] sm:$0xff] %v472_v35  ;;  %v478_v38 = vld [vmem:[%s2662_s9 + $0x1e0] sm:$0xff] }
  0x91   : >> { %475 = vst [vmem:[%s2658_s0 + $0x1a0] sm:$0xff] %v474_v36  ;;  %477 = vst [vmem:[%s2658_s0 + $0x1a8] sm:$0xff] %v476_v37  ;;  %v480_v39 = vld [vmem:[%s2662_s9 + $0x1e8] sm:$0xff]  ;;  %v482_v40 = vld [vmem:[%s2662_s9 + $0x240] sm:$0xff] }
  0x92   : >> { %479 = vst [vmem:[%s2658_s0 + $0x1b0] sm:$0xff] %v478_v38  ;;  %481 = vst [vmem:[%s2658_s0 + $0x1b8] sm:$0xff] %v480_v39  ;;  %v484_v41 = vld [vmem:[%s2662_s9 + $0x248] sm:$0xff]  ;;  %v486_v42 = vld [vmem:[%s2662_s9 + $0x250] sm:$0xff] }
  0x93   : >> { %483 = vst [vmem:[%s2658_s0 + $0x200] sm:$0xff] %v482_v40  ;;  %v488_v43 = vld [vmem:[%s2662_s9 + $0x258] sm:$0xff]  ;;  %485 = vst [vmem:[%s2658_s0 + $0x208] sm:$0xff] %v484_v41  ;;  %v490_v44 = vld [vmem:[%s2662_s9 + $0x260] sm:$0xff] }
  0x94   : >> { %487 = vst [vmem:[%s2658_s0 + $0x210] sm:$0xff] %v486_v42  ;;  %489 = vst [vmem:[%s2658_s0 + $0x218] sm:$0xff] %v488_v43  ;;  %v492_v45 = vld [vmem:[%s2662_s9 + $0x268] sm:$0xff]  ;;  %v494_v46 = vld [vmem:[%s2662_s9 + $0x270] sm:$0xff] }
  0x95   : >> { %491 = vst [vmem:[%s2658_s0 + $0x220] sm:$0xff] %v490_v44  ;;  %493 = vst [vmem:[%s2658_s0 + $0x228] sm:$0xff] %v492_v45  ;;  %v496_v47 = vld [vmem:[%s2662_s9 + $0x278] sm:$0xff]  ;;  %v498_v48 = vld [vmem:[%s2662_s9 + $0x2d0] sm:$0xff] }
  0x96   : >> { %495 = vst [vmem:[%s2658_s0 + $0x230] sm:$0xff] %v494_v46  ;;  %v500_v49 = vld [vmem:[%s2662_s9 + $0x2d8] sm:$0xff]  ;;  %497 = vst [vmem:[%s2658_s0 + $0x238] sm:$0xff] %v496_v47  ;;  %v502_v50 = vld [vmem:[%s2662_s9 + $0x2e0] sm:$0xff] }
  0x97   : >> { %499 = vst [vmem:[%s2658_s0 + $0x280] sm:$0xff] %v498_v48  ;;  %501 = vst [vmem:[%s2658_s0 + $0x288] sm:$0xff] %v500_v49  ;;  %v504_v51 = vld [vmem:[%s2662_s9 + $0x2e8] sm:$0xff]  ;;  %v506_v52 = vld [vmem:[%s2662_s9 + $0x2f0] sm:$0xff] }
  0x98   : >> { %503 = vst [vmem:[%s2658_s0 + $0x290] sm:$0xff] %v502_v50  ;;  %505 = vst [vmem:[%s2658_s0 + $0x298] sm:$0xff] %v504_v51  ;;  %v508_v53 = vld [vmem:[%s2662_s9 + $0x2f8] sm:$0xff]  ;;  %v510_v54 = vld [vmem:[%s2662_s9 + $0x300] sm:$0xff] }
  0x99   : >> { %507 = vst [vmem:[%s2658_s0 + $0x2a0] sm:$0xff] %v506_v52  ;;  %v512_v55 = vld [vmem:[%s2662_s9 + $0x308] sm:$0xff]  ;;  %509 = vst [vmem:[%s2658_s0 + $0x2a8] sm:$0xff] %v508_v53  ;;  %v514_v56 = vld [vmem:[%s2662_s9 + $0x360] sm:$0xff] }
  0x9a   : >> { %511 = vst [vmem:[%s2658_s0 + $0x2b0] sm:$0xff] %v510_v54  ;;  %513 = vst [vmem:[%s2658_s0 + $0x2b8] sm:$0xff] %v512_v55  ;;  %v516_v57 = vld [vmem:[%s2662_s9 + $0x368] sm:$0xff]  ;;  %v518_v58 = vld [vmem:[%s2662_s9 + $0x370] sm:$0xff] }
  0x9b   : >> { %515 = vst [vmem:[%s2658_s0 + $0x300] sm:$0xff] %v514_v56  ;;  %517 = vst [vmem:[%s2658_s0 + $0x308] sm:$0xff] %v516_v57  ;;  %v520_v59 = vld [vmem:[%s2662_s9 + $0x378] sm:$0xff]  ;;  %v522_v60 = vld [vmem:[%s2662_s9 + $0x380] sm:$0xff] }
  0x9c   : >> { %519 = vst [vmem:[%s2658_s0 + $0x310] sm:$0xff] %v518_v58  ;;  %v524_v61 = vld [vmem:[%s2662_s9 + $0x388] sm:$0xff]  ;;  %521 = vst [vmem:[%s2658_s0 + $0x318] sm:$0xff] %v520_v59  ;;  %v526_v62 = vld [vmem:[%s2662_s9 + $0x390] sm:$0xff]  ;;  %414 = sbr.rel (!%p411_p9) target bundleno = 130 (0x82), region = 263 }
  0x9d   : >> { %523 = vst [vmem:[%s2658_s0 + $0x320] sm:$0xff] %v522_v60  ;;  %525 = vst [vmem:[%s2658_s0 + $0x328] sm:$0xff] %v524_v61  ;;  %v528_v63 = vld [vmem:[%s2662_s9 + $0x398] sm:$0xff]  ;;  %v530_v0 = vld [vmem:[%s2662_s9 + $0x3f0] sm:$0xff] }
  0x9e   : >> { %527 = vst [vmem:[%s2658_s0 + $0x330] sm:$0xff] %v526_v62  ;;  %529 = vst [vmem:[%s2658_s0 + $0x338] sm:$0xff] %v528_v63  ;;  %v532_v1 = vld [vmem:[%s2662_s9 + $0x3f8] sm:$0xff]  ;;  %v534_v2 = vld [vmem:[%s2662_s9 + $0x400] sm:$0xff] }
  0x9f   : >> { %531 = vst [vmem:[%s2658_s0 + $0x380] sm:$0xff] %v530_v0  ;;  %v536_v3 = vld [vmem:[%s2662_s9 + $0x408] sm:$0xff]  ;;  %533 = vst [vmem:[%s2658_s0 + $0x388] sm:$0xff] %v532_v1  ;;  %v538_v4 = vld [vmem:[%s2662_s9 + $0x410] sm:$0xff] }
  0xa0   : >> { %535 = vst [vmem:[%s2658_s0 + $0x390] sm:$0xff] %v534_v2  ;;  %537 = vst [vmem:[%s2658_s0 + $0x398] sm:$0xff] %v536_v3  ;;  %v540_v5 = vld [vmem:[%s2662_s9 + $0x418] sm:$0xff]  ;;  %v542_v6 = vld [vmem:[%s2662_s9 + $0x420] sm:$0xff] }
  0xa1   : >> { %539 = vst [vmem:[%s2658_s0 + $0x3a0] sm:$0xff] %v538_v4  ;;  %541 = vst [vmem:[%s2658_s0 + $0x3a8] sm:$0xff] %v540_v5  ;;  %v544_v7 = vld [vmem:[%s2662_s9 + $0x428] sm:$0xff]  ;;  %s4537_s9 = smov %s3149_s25 }
  0xa2   : >> { %543 = vst [vmem:[%s2658_s0 + $0x3b0] sm:$0xff] %v542_v6  ;;  %545 = vst [vmem:[%s2658_s0 + $0x3b8] sm:$0xff] %v544_v7  ;;  %s4536_s0 = smov %s3152_s26 }
  0xa3 PF: > { %s3258_s5 = sand.u32 7, %s405_s7   ;;  %s2111_s30 = sshll.u32 %s3082_s4, 10 }
  0xa4   : > { %s557_s20 = sshra.s32 %s2111_s30, 4  ;;  %p2069_p10 = scmp.le.s32.totalorder %s3258_s5, 0 }
  0xa5   : > { %s3262_s19 = scalar_lea.vmem %s2842_s11, %s557_s20   ;;  %s3265_s26 = scalar_lea.vmem %s2846_s22, %s557_s20 [#allocation2]  }
  0xa6   : > { %1933 = sbr.rel (%p2069_p10) target bundleno = 183 (0xb7), region = 268  ;;  %s4539_s0 = smov (!%p2069_p10), %s3265_s26 }
  0xa7   : > { %s4540_s9 = smov (!%p2069_p10), %s3262_s19  ;;  %s3274_s8 = smov (!%p2069_p10), 0  }
  0xa8   : > { %s3276_s28 = smov (!%p2069_p10), 0  }
  0xad LB: >> { %v573_v8 = vld [vmem:[%s2678_s9] sm:$0xff]  ;;  %v575_v9 = vld [vmem:[%s2678_s9 + $0x90] sm:$0xff]  ;;  %s589_s20 = sadd.s32 1, %s2682_s8  ;;  %s567_s28 = sadd.s32 1, %s2686_s28   ;;  %s2686_s28 = sphi %s3276_s28, %s567_s28   ;;  %s2682_s8 = sphi %s3274_s8, %s4541_s8   ;;  %s2678_s9 = sphi %s4540_s9, %s594_s9   ;;  %s2674_s0 = sphi %s4539_s0, %s595_s0  }
  0xae   : >> { %v577_v10 = vld [vmem:[%s2678_s9 + $0x120] sm:$0xff]  ;;  %574 = vst [vmem:[%s2674_s0] sm:$0xff] %v573_v8  ;;  %576 = vst [vmem:[%s2674_s0 + $0x80] sm:$0xff] %v575_v9  ;;  %v579_v11 = vld [vmem:[%s2678_s9 + $0x1b0] sm:$0xff]  ;;  %p590_p11 = scmp.ge.s32.totalorder %s589_s20, %s3258_s5  ;;  %p566_p12 = scmp.ge.s32.totalorder %s567_s28, %s3258_s5 }
  0xaf   : >> { %578 = vst [vmem:[%s2674_s0 + $0x100] sm:$0xff] %v577_v10  ;;  %v581_v12 = vld [vmem:[%s2678_s9 + $0x240] sm:$0xff]  ;;  %v583_v13 = vld [vmem:[%s2678_s9 + $0x2d0] sm:$0xff]  ;;  %580 = vst [vmem:[%s2674_s0 + $0x180] sm:$0xff] %v579_v11 }
  0xb0   : >> { %582 = vst [vmem:[%s2674_s0 + $0x200] sm:$0xff] %v581_v12  ;;  %584 = vst [vmem:[%s2674_s0 + $0x280] sm:$0xff] %v583_v13  ;;  %v585_v14 = vld [vmem:[%s2678_s9 + $0x360] sm:$0xff]  ;;  %v587_v15 = vld [vmem:[%s2678_s9 + $0x3f0] sm:$0xff]  ;;  %s4673_s20 = smov (%p590_p11, %s589_s20), 0  ;;  %569 = sbr.rel (!%p566_p12) target bundleno = 173 (0xad), region = 274 }
  0xb1   : >> { %586 = vst [vmem:[%s2674_s0 + $0x300] sm:$0xff] %v585_v14  ;;  %588 = vst [vmem:[%s2674_s0 + $0x380] sm:$0xff] %v587_v15  ;;  %s2070_s7 = sshll.u32 %s4673_s20, 3  ;;  %s4541_s8 = smov %s4673_s20 }
  0xb2   : >> { %s594_s9 = scalar_lea.vmem %s3262_s19, %s2070_s7   ;;  %s595_s0 = scalar_lea.vmem %s3265_s26, %s2070_s7 [#allocation2]  }
  0xb7 PF: > { %s2752_s4 = smov 0  }
  0xb8   : > { %s596_s29 = sshllo.u32 %s2752_s4, %s2850_s24 }
  0xb9   : > { %v605_v16 = vld [vmem:[%s3075_s10] sm:%s596_s29]  ;;  %v607_v17 = vld [vmem:[%s3075_s10 + $0x90] sm:%s596_s29] }
  0xba   : > { %606 = vst [vmem:[%s3078_s6] sm:%s596_s29] %v605_v16  ;;  %608 = vst [vmem:[%s3078_s6 + $0x80] sm:%s596_s29] %v607_v17 }
  0xbb   : > { %v609_v18 = vld [vmem:[%s3075_s10 + $0x120] sm:%s596_s29]  ;;  %v611_v19 = vld [vmem:[%s3075_s10 + $0x1b0] sm:%s596_s29] }
  0xbc   : > { %610 = vst [vmem:[%s3078_s6 + $0x100] sm:%s596_s29] %v609_v18  ;;  %612 = vst [vmem:[%s3078_s6 + $0x180] sm:%s596_s29] %v611_v19 }
  0xbd   : > { %v613_v20 = vld [vmem:[%s3075_s10 + $0x240] sm:%s596_s29]  ;;  %v615_v21 = vld [vmem:[%s3075_s10 + $0x2d0] sm:%s596_s29] }
  0xbe   : > { %614 = vst [vmem:[%s3078_s6 + $0x200] sm:%s596_s29] %v613_v20  ;;  %616 = vst [vmem:[%s3078_s6 + $0x280] sm:%s596_s29] %v615_v21 }
  0xbf   : > { %v617_v22 = vld [vmem:[%s3075_s10 + $0x360] sm:%s596_s29]  ;;  %v619_v23 = vld [vmem:[%s3075_s10 + $0x3f0] sm:%s596_s29] }
  0xc0   : > { %618 = vst [vmem:[%s3078_s6 + $0x300] sm:%s596_s29] %v617_v22  ;;  %620 = vst [vmem:[%s3078_s6 + $0x380] sm:%s596_s29] %v619_v23 }
  0xc1 PF: > { %p2072_p13 = scmp.ge.u32.totalorder %s2844_s21, 8 }
  0xc2   : > { %s2753_s19 = smov (!%p2072_p13), 0  }
  0xc3   : > { %175 = sbr.rel (%p2072_p13) target bundleno = 204 (0xcc), region = 32  ;;  %s176_s24 = sshllo.u32 (!%p2072_p13), %s2753_s19, %s2844_s21 }
  0xc4   : > { %v185_v24 = vld [vmem:[%s2842_s11] sm:%s176_s24] (!%p2072_p13)  ;;  %v187_v25 = vld [vmem:[%s2842_s11 + $0x90] sm:%s176_s24] (!%p2072_p13) }
  0xc5   : > { %186 = vst [vmem:[%s2846_s22] sm:%s176_s24] (!%p2072_p13), %v185_v24  ;;  %188 = vst [vmem:[%s2846_s22 + $0x80] sm:%s176_s24] (!%p2072_p13), %v187_v25 }
  0xc6   : > { %v189_v26 = vld [vmem:[%s2842_s11 + $0x120] sm:%s176_s24] (!%p2072_p13)  ;;  %v191_v27 = vld [vmem:[%s2842_s11 + $0x1b0] sm:%s176_s24] (!%p2072_p13) }
  0xc7   : > { %190 = vst [vmem:[%s2846_s22 + $0x100] sm:%s176_s24] (!%p2072_p13), %v189_v26  ;;  %192 = vst [vmem:[%s2846_s22 + $0x180] sm:%s176_s24] (!%p2072_p13), %v191_v27 }
  0xc8   : > { %v193_v28 = vld [vmem:[%s2842_s11 + $0x240] sm:%s176_s24] (!%p2072_p13)  ;;  %v195_v29 = vld [vmem:[%s2842_s11 + $0x2d0] sm:%s176_s24] (!%p2072_p13) }
  0xc9   : > { %194 = vst [vmem:[%s2846_s22 + $0x200] sm:%s176_s24] (!%p2072_p13), %v193_v28  ;;  %196 = vst [vmem:[%s2846_s22 + $0x280] sm:%s176_s24] (!%p2072_p13), %v195_v29 }
  0xca   : > { %v197_v30 = vld [vmem:[%s2842_s11 + $0x360] sm:%s176_s24]  ;;  %v199_v31 = vld [vmem:[%s2842_s11 + $0x3f0] sm:%s176_s24] }
  0xcb   : > { %198 = vst [vmem:[%s2846_s22 + $0x300] sm:%s176_s24] %v197_v30  ;;  %200 = vst [vmem:[%s2846_s22 + $0x380] sm:%s176_s24] %v199_v31 }
  0xcc PF: > { %p2073_p0 = scmp.ge.s32.totalorder %s2622_s18, 1  ;;  %p639_p1 = scmp.lt.s32.totalorder %s2622_s18, 5 }
  0xce   : > { %p640_p2 = pnand %p2073_p0, %p639_p1 }
  0xd0   : > { %643 = sbr.rel (%p640_p2) target bundleno = 621 (0x26d), region = 94 }
  0xd7   : > { %p683_p3 = scmp.lt.s32.totalorder %s2610_s15, 1  ;;  %v2754_v32 = vmov 0   ;;  %s646_s26 = sand.u32 1, %s2598_s12  }
  0xd8   : > { %2439 = vset.pattern.permute.xlu1 %v2754_v32  ;;  %2438 = vset.pattern.permute.xlu0 %v2754_v32  ;;  %s3340_s0 = sshll.u32 %s646_s26, 10  ;;  %s2081_s8 = sshll.u32 (%p2825_p6), %s2606_s14, 4 }
  0xd9   : > { %s684_s21 = scalar_select %p683_p3, %s2610_s15, 1 }
  0xda   : > { %s3343_s9 = scalar_lea.vmem [#allocation2], %s3340_s0  ;;  %s3722_s12 = scalar_lea.vmem [#allocation3], %s3340_s0  }
  0xdb   : > { %s2113_s11 = sshll.u32 %s684_s21, 6  ;;  %v730_v49 = vld [vmem:[%s3343_s9 + $0x100] sm:$0xff]  ;;  %v731_v50 = vld [vmem:[%s3343_s9 + $0x108] sm:$0xff]  ;;  %v732_v51 = vld [vmem:[%s3343_s9 + $0x110] sm:$0xff]  ;;  %s2120_s28 = smul.u32 (%p2825_p6), 144, %s2610_s15 }
  0xdc   : > { %s687_s6 = scalar_lea.vmem %s4514_s1, %s2113_s11  ;;  %s692_s30 = scalar_lea.vmem %s4515_s2, %s2113_s11  ;;  %v733_v52 = vld [vmem:[%s3343_s9 + $0x118] sm:$0xff]  ;;  %v734_v53 = vld [vmem:[%s3343_s9 + $0x120] sm:$0xff]  ;;  %v735_v54 = vld [vmem:[%s3343_s9 + $0x128] sm:$0xff] }
  0xdd   : > { %v828_v33 = vld [vmem:[%s687_s6 + $0x10] sm:$0xff]  ;;  %v826_v34 = vld [vmem:[%s687_s6] sm:$0xff]  ;;  %v829_v35 = vld [vmem:[%s687_s6 + $0x18] sm:$0xff]  ;;  %s1314_s20 = ssub.s32 (%p2825_p6), 18, %s2081_s8  ;;  %s1320_s7 = sadd.s32 (%p2825_p6), %s2120_s28, %s2081_s8 }
  0xde   : > { %846 = vperm.xlu1 %2439, %v828_v33   ;;  %836 = vperm.xlu0 %2438, %v826_v34   ;;  %v827_v36 = vld [vmem:[%s687_s6 + $0x8] sm:$0xff]  ;;  %v830_v38 = vld [vmem:[%s687_s6 + $0x20] sm:$0xff]  ;;  %v833_v39 = vld [vmem:[%s687_s6 + $0x38] sm:$0xff]  ;;  %p1315_p4 = scmp.lt.s32.totalorder (%p2825_p6), %s1314_s20, 16  ;;  %s2084_s4 = sshll.u32 (%p2825_p6), %s1320_s7, 3 }
  0xdf   : > { %v831_v37 = vld [vmem:[%s687_s6 + $0x28] sm:$0xff]  ;;  %v832_v40 = vld [vmem:[%s687_s6 + $0x30] sm:$0xff]  ;;  %v1002_v42 = vld [vmem:[%s692_s30] sm:$0xff]  ;;  %s4007_s24 = scalar_lea.vmem (%p2825_p6), %s4516_s3, %s2084_s4  }
  0xe0   : > { %v1003_v41 = vld [vmem:[%s692_s30 + $0x8] sm:$0xff]  ;;  %v1005_v43 = vld [vmem:[%s692_s30 + $0x18] sm:$0xff]  ;;  %v1004_v44 = vld [vmem:[%s692_s30 + $0x10] sm:$0xff] }
  0xe1   : > { %v1007_v45 = vld [vmem:[%s692_s30 + $0x28] sm:$0xff]  ;;  %v1006_v46 = vld [vmem:[%s692_s30 + $0x20] sm:$0xff]  ;;  %v1009_v47 = vld [vmem:[%s692_s30 + $0x38] sm:$0xff] }
  0xe2   : > { %851 = vperm.xlu1 %2439, %v829_v35   ;;  %841 = vperm.xlu0 %2438, %v827_v36   ;;  %v1008_v48 = vld [vmem:[%s692_s30 + $0x30] sm:$0xff]  ;;  %v737_v56 = vld [vmem:[%s3343_s9 + $0x138] sm:$0xff]  ;;  %v738_v57 = vld [vmem:[%s3343_s9 + $0x140] sm:$0xff] }
  0xe3   : > { %v736_v55 = vld [vmem:[%s3343_s9 + $0x130] sm:$0xff]  ;;  %v739_v58 = vld [vmem:[%s3343_s9 + $0x148] sm:$0xff]  ;;  %v741_v60 = vld [vmem:[%s3343_s9 + $0x158] sm:$0xff] }
  0xe4   : > { %v740_v59 = vld [vmem:[%s3343_s9 + $0x150] sm:$0xff]  ;;  %v742_v61 = vld [vmem:[%s3343_s9 + $0x160] sm:$0xff]  ;;  %v743_v62 = vld [vmem:[%s3343_s9 + $0x168] sm:$0xff] }
  0xe5   : > { %v744_v63 = vld [vmem:[%s3343_s9 + $0x170] sm:$0xff]  ;;  %v745_v0 = vld [vmem:[%s3343_s9 + $0x178] sm:$0xff]  ;;  %v698_v2 = vld [vmem:[%s3343_s9] sm:$0xff] }
  0xe6   : > { %861 = vperm.xlu1 %2439, %v831_v37   ;;  %856 = vperm.xlu0 %2438, %v830_v38   ;;  %v699_v3 = vld [vmem:[%s3343_s9 + $0x8] sm:$0xff]  ;;  %v700_v4 = vld [vmem:[%s3343_s9 + $0x10] sm:$0xff]  ;;  %v701_v5 = vld [vmem:[%s3343_s9 + $0x18] sm:$0xff] }
  0xe7   : > { %v702_v10 = vld [vmem:[%s3343_s9 + $0x20] sm:$0xff]  ;;  %v703_v11 = vld [vmem:[%s3343_s9 + $0x28] sm:$0xff]  ;;  %v704_v12 = vld [vmem:[%s3343_s9 + $0x30] sm:$0xff] }
  0xe8   : > { %v705_v13 = vld [vmem:[%s3343_s9 + $0x38] sm:$0xff]  ;;  %v706_v19 = vld [vmem:[%s3343_s9 + $0x40] sm:$0xff]  ;;  %v707_v20 = vld [vmem:[%s3343_s9 + $0x48] sm:$0xff] }
  0xe9   : > { %v708_v21 = vld [vmem:[%s3343_s9 + $0x50] sm:$0xff]  ;;  %v709_v22 = vld [vmem:[%s3343_s9 + $0x58] sm:$0xff]  ;;  %v710_v27 = vld [vmem:[%s3343_s9 + $0x60] sm:$0xff] }
  0xea   : > { %871 = vperm.xlu1 %2439, %v833_v39   ;;  %866 = vperm.xlu0 %2438, %v832_v40   ;;  %v711_v28 = vld [vmem:[%s3343_s9 + $0x68] sm:$0xff]  ;;  %v712_v29 = vld [vmem:[%s3343_s9 + $0x70] sm:$0xff]  ;;  %v713_v30 = vld [vmem:[%s3343_s9 + $0x78] sm:$0xff] }
  0xeb   : > { %v746_v36 = vld [vmem:[%s3343_s9 + $0x180] sm:$0xff]  ;;  %v747_v37 = vld [vmem:[%s3343_s9 + $0x188] sm:$0xff]  ;;  %v748_v38 = vld [vmem:[%s3343_s9 + $0x190] sm:$0xff] }
  0xec   : > { %v749_v39 = vld [vmem:[%s3343_s9 + $0x198] sm:$0xff] }
  0xee   : > { %1017 = vperm.xlu1 %2439, %v1003_v41   ;;  %1012 = vperm.xlu0 %2438, %v1002_v42  }
  0xf2   : > { %1027 = vperm.xlu1 %2439, %v1005_v43   ;;  %1022 = vperm.xlu0 %2438, %v1004_v44   ;;  %v750_v44 = vld [vmem:[%s3343_s9 + $0x1a0] sm:$0xff] }
  0xf6   : > { %1037 = vperm.xlu1 %2439, %v1007_v45   ;;  %1032 = vperm.xlu0 %2438, %v1006_v46   ;;  %v751_v45 = vld [vmem:[%s3343_s9 + $0x1a8] sm:$0xff]  ;;  %v752_v46 = vld [vmem:[%s3343_s9 + $0x1b0] sm:$0xff] }
  0xfa   : > { %1047 = vperm.xlu1 %2439, %v1009_v47   ;;  %1042 = vperm.xlu0 %2438, %v1008_v48   ;;  %v753_v47 = vld [vmem:[%s3343_s9 + $0x1b8] sm:$0xff] }
 0x15d   : > { %v847_v1 = vpop.permute.xlu1 %846  ;;  %v837_v18 = vpop.permute.xlu0 %836 }
 0x15e   : > { %v3365_v6 = vmul.f32 %v847_v1, %v730_v49  ;;  %v3367_v7 = vmul.f32 %v847_v1, %v731_v50  ;;  %v3369_v8 = vmul.f32 %v847_v1, %v732_v51  ;;  %v3371_v9 = vmul.f32 %v847_v1, %v733_v52  ;;  %v754_v52 = vld [vmem:[%s3343_s9 + $0x1c0] sm:$0xff] }
 0x15f   : > { %v3377_v14 = vmul.f32 %v847_v1, %v734_v53  ;;  %v3379_v15 = vmul.f32 %v847_v1, %v735_v54  ;;  %v3381_v16 = vmul.f32 %v847_v1, %v736_v55  ;;  %v3383_v17 = vmul.f32 %v847_v1, %v737_v56  ;;  %v755_v53 = vld [vmem:[%s3343_s9 + $0x1c8] sm:$0xff]  ;;  %v756_v54 = vld [vmem:[%s3343_s9 + $0x1d0] sm:$0xff]  ;;  %v757_v55 = vld [vmem:[%s3343_s9 + $0x1d8] sm:$0xff] }
 0x160   : > { %4542 = vst [vmem:[#allocation6_spill] sm:$0xff] %v3365_v6  ;;  %4543 = vst [vmem:[#allocation7_spill] sm:$0xff] %v3367_v7  ;;  %v3389_v23 = vmul.f32 %v847_v1, %v738_v57  ;;  %v3391_v24 = vmul.f32 %v847_v1, %v739_v58  ;;  %v3393_v25 = vmul.f32 %v847_v1, %v740_v59  ;;  %v787_v6 = vld [vmem:[%s3343_s9 + $0x2c8] sm:$0xff] }
 0x161   : > { %4544 = vst [vmem:[#allocation8_spill] sm:$0xff] %v3369_v8  ;;  %4545 = vst [vmem:[#allocation9_spill] sm:$0xff] %v3371_v9  ;;  %v3395_v26 = vmul.f32 %v847_v1, %v741_v60  ;;  %v3401_v31 = vmul.f32 %v847_v1, %v742_v61  ;;  %v3403_v32 = vmul.f32 %v847_v1, %v743_v62  ;;  %v3409_v35 = vpop.permute.xlu1 %851  ;;  %v758_v60 = vld [vmem:[%s3343_s9 + $0x1e0] sm:$0xff]  ;;  %v759_v61 = vld [vmem:[%s3343_s9 + $0x1e8] sm:$0xff] }
 0x162   : > { %4546 = vst [vmem:[#allocation10_spill] sm:$0xff] %v3377_v14  ;;  %4547 = vst [vmem:[#allocation11_spill] sm:$0xff] %v3379_v15  ;;  %v3405_v33 = vmul.f32 %v847_v1, %v744_v63  ;;  %v3407_v34 = vmul.f32 %v847_v1, %v745_v0  ;;  %v3415_v40 = vmul.f32 %v837_v18, %v698_v2  ;;  %v760_v62 = vld [vmem:[%s3343_s9 + $0x1f0] sm:$0xff]  ;;  %v761_v63 = vld [vmem:[%s3343_s9 + $0x1f8] sm:$0xff] }
 0x163   : > { %4548 = vst [vmem:[#allocation12_spill] sm:$0xff] %v3381_v16  ;;  %4549 = vst [vmem:[#allocation13_spill] sm:$0xff] %v3383_v17  ;;  %v3417_v41 = vmul.f32 %v837_v18, %v699_v3  ;;  %v3419_v42 = vmul.f32 %v837_v18, %v700_v4  ;;  %v3421_v43 = vmul.f32 %v837_v18, %v701_v5  ;;  %v3459_v4 = vpop.permute.xlu0 %841  ;;  %v714_v5 = vld [vmem:[%s3343_s9 + $0x80] sm:$0xff]  ;;  %v779_v17 = vld [vmem:[%s3343_s9 + $0x288] sm:$0xff] }
 0x164   : > { %4550 = vst [vmem:[#allocation14_spill] sm:$0xff] %v3389_v23  ;;  %4551 = vst [vmem:[#allocation15_spill] sm:$0xff] %v3391_v24  ;;  %v3427_v48 = vmul.f32 %v837_v18, %v702_v10  ;;  %v3429_v49 = vmul.f32 %v837_v18, %v703_v11  ;;  %v3431_v50 = vmul.f32 %v837_v18, %v704_v12  ;;  %v715_v10 = vld [vmem:[%s3343_s9 + $0x88] sm:$0xff]  ;;  %v716_v11 = vld [vmem:[%s3343_s9 + $0x90] sm:$0xff] }
 0x165   : > { %4552 = vst [vmem:[#allocation16_spill] sm:$0xff] %v3393_v25  ;;  %4553 = vst [vmem:[#allocation17_spill] sm:$0xff] %v3395_v26  ;;  %v3433_v51 = vmul.f32 %v837_v18, %v705_v13  ;;  %v3439_v56 = vmul.f32 %v837_v18, %v706_v19  ;;  %v3441_v57 = vmul.f32 %v837_v18, %v707_v20  ;;  %v717_v12 = vld [vmem:[%s3343_s9 + $0x98] sm:$0xff]  ;;  %v727_v26 = vld [vmem:[%s3343_s9 + $0xe8] sm:$0xff] }
 0x166   : > { %4554 = vst [vmem:[#allocation18_spill] sm:$0xff] %v3401_v31  ;;  %4555 = vst [vmem:[#allocation19_spill] sm:$0xff] %v3403_v32  ;;  %v3443_v58 = vmul.f32 %v837_v18, %v708_v21  ;;  %v3445_v59 = vmul.f32 %v837_v18, %v709_v22  ;;  %v3451_v0 = vmul.f32 %v837_v18, %v710_v27  ;;  %v718_v21 = vld [vmem:[%s3343_s9 + $0xa0] sm:$0xff]  ;;  %v719_v22 = vld [vmem:[%s3343_s9 + $0xa8] sm:$0xff]  ;;  %v3497_v32 = vpop.permute.xlu1 %861 }
 0x167   : > { %4556 = vst [vmem:[#allocation20_spill] sm:$0xff] %v3405_v33  ;;  %4557 = vst [vmem:[#allocation21_spill] sm:$0xff] %v3407_v34  ;;  %v3453_v1 = vmul.f32 %v837_v18, %v711_v28  ;;  %v3455_v2 = vmul.f32 %v837_v18, %v712_v29  ;;  %v3457_v3 = vmul.f32 %v837_v18, %v713_v30  ;;  %v720_v27 = vld [vmem:[%s3343_s9 + $0xb0] sm:$0xff]  ;;  %v721_v28 = vld [vmem:[%s3343_s9 + $0xb8] sm:$0xff] }
 0x168   : > { %v3466_v13 = vmul.f32 %v3409_v35, %v746_v36  ;;  %v3469_v19 = vmul.f32 %v3409_v35, %v747_v37  ;;  %v3472_v20 = vmul.f32 %v3409_v35, %v748_v38  ;;  %v3475_v18 = vmul.f32 %v3409_v35, %v749_v39  ;;  %v722_v38 = vld [vmem:[%s3343_s9 + $0xc0] sm:$0xff]  ;;  %v723_v39 = vld [vmem:[%s3343_s9 + $0xc8] sm:$0xff]  ;;  %v724_v34 = vld [vmem:[%s3343_s9 + $0xd0] sm:$0xff] }
 0x169   : > { %v3482_v29 = vmul.f32 %v3409_v35, %v750_v44  ;;  %v3485_v30 = vmul.f32 %v3409_v35, %v751_v45  ;;  %v3488_v36 = vmul.f32 %v3409_v35, %v752_v46  ;;  %v3491_v37 = vmul.f32 %v3409_v35, %v753_v47  ;;  %v725_v33 = vld [vmem:[%s3343_s9 + $0xd8] sm:$0xff]  ;;  %v726_v31 = vld [vmem:[%s3343_s9 + $0xe0] sm:$0xff]  ;;  %v728_v25 = vld [vmem:[%s3343_s9 + $0xf0] sm:$0xff] }
 0x16a   : > { %v3500_v44 = vmul.f32 %v3409_v35, %v754_v52  ;;  %v3503_v45 = vmul.f32 %v3409_v35, %v755_v53  ;;  %v3506_v46 = vmul.f32 %v3409_v35, %v756_v54  ;;  %v3509_v47 = vmul.f32 %v3409_v35, %v757_v55  ;;  %v729_v24 = vld [vmem:[%s3343_s9 + $0xf8] sm:$0xff]  ;;  %v778_v23 = vld [vmem:[%s3343_s9 + $0x280] sm:$0xff]  ;;  %v780_v16 = vld [vmem:[%s3343_s9 + $0x290] sm:$0xff] }
 0x16b   : > { %4558 = vst [vmem:[#allocation22_spill] sm:$0xff] %v3485_v30  ;;  %4559 = vst [vmem:[#allocation23_spill] sm:$0xff] %v3488_v36  ;;  %v3516_v52 = vmul.f32 %v3409_v35, %v758_v60  ;;  %v3519_v53 = vmul.f32 %v3409_v35, %v759_v61  ;;  %v3522_v54 = vmul.f32 %v3409_v35, %v760_v62  ;;  %v781_v15 = vld [vmem:[%s3343_s9 + $0x298] sm:$0xff]  ;;  %v784_v9 = vld [vmem:[%s3343_s9 + $0x2b0] sm:$0xff] }
 0x16c   : > { %4560 = vst [vmem:[#allocation24_spill] sm:$0xff] %v3491_v37  ;;  %4561 = vst [vmem:[#allocation25_spill] sm:$0xff] %v3500_v44  ;;  %v3525_v55 = vmul.f32 %v3409_v35, %v761_v63  ;;  %v3532_v14 = vmul.f32 %v3459_v4, %v714_v5  ;;  %v3535_v60 = vmul.f32 %v3459_v4, %v715_v10  ;;  %v782_v35 = vld [vmem:[%s3343_s9 + $0x2a0] sm:$0xff]  ;;  %v783_v63 = vld [vmem:[%s3343_s9 + $0x2a8] sm:$0xff]  ;;  %v3594_v37 = vpop.permute.xlu1 %871 }
 0x16d   : > { %4562 = vst [vmem:[#allocation26_spill] sm:$0xff] %v3503_v45  ;;  %4563 = vst [vmem:[#allocation27_spill] sm:$0xff] %v3506_v46  ;;  %v3538_v61 = vmul.f32 %v3459_v4, %v716_v11  ;;  %v3541_v62 = vmul.f32 %v3459_v4, %v717_v12  ;;  %v785_v8 = vld [vmem:[%s3343_s9 + $0x2b8] sm:$0xff]  ;;  %v3548_v7 = vmul.f32 %v3459_v4, %v718_v21  ;;  %v786_v12 = vld [vmem:[%s3343_s9 + $0x2c0] sm:$0xff] }
 0x16e   : > { %4564 = vst [vmem:[#allocation28_spill] sm:$0xff] %v3509_v47  ;;  %4565 = vst [vmem:[#allocation29_spill] sm:$0xff] %v3516_v52  ;;  %v3551_v5 = vmul.f32 %v3459_v4, %v719_v22  ;;  %v3554_v10 = vmul.f32 %v3459_v4, %v720_v27  ;;  %v3557_v11 = vmul.f32 %v3459_v4, %v721_v28  ;;  %v790_v52 = vld [vmem:[%s3343_s9 + $0x2e0] sm:$0xff]  ;;  %v791_v47 = vld [vmem:[%s3343_s9 + $0x2e8] sm:$0xff] }
 0x16f   : > { %4566 = vst [vmem:[#allocation30_spill] sm:$0xff] %v3519_v53  ;;  %4567 = vst [vmem:[#allocation31_spill] sm:$0xff] %v3522_v54  ;;  %v3562_v54 = vpop.permute.xlu0 %856  ;;  %v3565_v21 = vmul.f32 %v3459_v4, %v722_v38  ;;  %v3568_v22 = vmul.f32 %v3459_v4, %v723_v39  ;;  %v3571_v27 = vmul.f32 %v3459_v4, %v724_v34  ;;  %v789_v53 = vld [vmem:[%s3343_s9 + $0x2d8] sm:$0xff]  ;;  %v762_v44 = vld [vmem:[%s3343_s9 + $0x200] sm:$0xff] }
 0x170   : > { %4568 = vst [vmem:[#allocation32_spill] sm:$0xff] %v3525_v55  ;;  %v788_v55 = vld [vmem:[%s3343_s9 + $0x2d0] sm:$0xff]  ;;  %v3574_v28 = vmul.f32 %v3459_v4, %v725_v33  ;;  %v3580_v46 = vmul.f32 %v3459_v4, %v726_v31  ;;  %v3583_v38 = vmul.f32 %v3459_v4, %v727_v26  ;;  %v3586_v39 = vmul.f32 %v3459_v4, %v728_v25  ;;  %v793_v45 = vld [vmem:[%s3343_s9 + $0x2f8] sm:$0xff] }
 0x171   : > { %v3589_v34 = vmul.f32 %v3459_v4, %v729_v24  ;;  %v792_v33 = vld [vmem:[%s3343_s9 + $0x2f0] sm:$0xff]  ;;  %4569 = vst [vmem:[#allocation33_spill] sm:$0xff] %v3594_v37  ;;  %v3597_v31 = vmul.f32 %v3497_v32, %v778_v23  ;;  %v3600_v26 = vmul.f32 %v3497_v32, %v779_v17  ;;  %v3603_v25 = vmul.f32 %v3497_v32, %v780_v16  ;;  %v763_v4 = vld [vmem:[%s3343_s9 + $0x208] sm:$0xff]  ;;  %v765_v30 = vld [vmem:[%s3343_s9 + $0x218] sm:$0xff] }
 0x172   : > { %v3606_v24 = vmul.f32 %v3497_v32, %v781_v15  ;;  %v764_v36 = vld [vmem:[%s3343_s9 + $0x210] sm:$0xff]  ;;  %v3612_v37 = vmul.f32 %v3497_v32, %v782_v35  ;;  %v3615_v23 = vmul.f32 %v3497_v32, %v783_v63  ;;  %v3618_v17 = vmul.f32 %v3497_v32, %v784_v9  ;;  %v766_v15 = vld [vmem:[%s3343_s9 + $0x220] sm:$0xff]  ;;  %v769_v63 = vld [vmem:[%s3343_s9 + $0x238] sm:$0xff] }
 0x173   : > { %4570 = vst [vmem:[#allocation34_spill] sm:$0xff] %v3597_v31  ;;  %4571 = vst [vmem:[#allocation35_spill] sm:$0xff] %v3600_v26  ;;  %v3621_v16 = vmul.f32 %v3497_v32, %v785_v8  ;;  %v3627_v26 = vmul.f32 %v3497_v32, %v786_v12  ;;  %v3630_v35 = vmul.f32 %v3497_v32, %v787_v6  ;;  %v777_v31 = vld [vmem:[%s3343_s9 + $0x278] sm:$0xff] }
 0x174   : > { %4572 = vst [vmem:[#allocation36_spill] sm:$0xff] %v3603_v25  ;;  %4573 = vst [vmem:[#allocation37_spill] sm:$0xff] %v3606_v24  ;;  %v767_v24 = vld [vmem:[%s3343_s9 + $0x228] sm:$0xff]  ;;  %v768_v25 = vld [vmem:[%s3343_s9 + $0x230] sm:$0xff]  ;;  %v3633_v9 = vmul.f32 %v3497_v32, %v788_v55  ;;  %v3636_v8 = vmul.f32 %v3497_v32, %v789_v53  ;;  %v3645_v12 = vmul.f32 %v3497_v32, %v791_v47  ;;  %v3656_v53 = vpop.permute.xlu0 %866 }
 0x175   : > { %4574 = vst [vmem:[#allocation38_spill] sm:$0xff] %v3612_v37  ;;  %4575 = vst [vmem:[#allocation39_spill] sm:$0xff] %v3615_v23  ;;  %v3642_v23 = vmul.f32 %v3497_v32, %v790_v52  ;;  %v3651_v6 = vmul.f32 %v3497_v32, %v793_v45  ;;  %v772_v55 = vld [vmem:[%s3343_s9 + $0x250] sm:$0xff]  ;;  %v3662_v52 = vmul.f32 %v3562_v54, %v762_v44 }
 0x176   : > { %4576 = vst [vmem:[#allocation40_spill] sm:$0xff] %v3618_v17  ;;  %4577 = vst [vmem:[#allocation41_spill] sm:$0xff] %v3621_v16  ;;  %v770_v16 = vld [vmem:[%s3343_s9 + $0x240] sm:$0xff]  ;;  %v771_v17 = vld [vmem:[%s3343_s9 + $0x248] sm:$0xff]  ;;  %v3665_v47 = vmul.f32 %v3562_v54, %v763_v4  ;;  %v3674_v45 = vmul.f32 %v3562_v54, %v766_v15  ;;  %v3683_v44 = vmul.f32 %v3562_v54, %v769_v63  ;;  %v1018_v4 = vpop.permute.xlu1 %1017 }
 0x177   : > { %4578 = vst [vmem:[#allocation42_spill] sm:$0xff] %v3627_v26  ;;  %4579 = vst [vmem:[#allocation43_spill] sm:$0xff] %v3630_v35  ;;  %v3648_v26 = vmul.f32 %v3497_v32, %v792_v33  ;;  %v774_v35 = vld [vmem:[%s3343_s9 + $0x260] sm:$0xff]  ;;  %v776_v37 = vld [vmem:[%s3343_s9 + $0x270] sm:$0xff]  ;;  %v3668_v33 = vmul.f32 %v3562_v54, %v764_v36  ;;  %v3671_v32 = vmul.f32 %v3562_v54, %v765_v30 }
 0x178   : > { %4580 = vst [vmem:[#allocation44_spill] sm:$0xff] %v3633_v9  ;;  %4581 = vst [vmem:[#allocation45_spill] sm:$0xff] %v3636_v8  ;;  %v773_v9 = vld [vmem:[%s3343_s9 + $0x258] sm:$0xff]  ;;  %v775_v8 = vld [vmem:[%s3343_s9 + $0x268] sm:$0xff]  ;;  %v3689_v36 = vmul.f32 %v3562_v54, %v771_v17  ;;  %v3692_v30 = vmul.f32 %v3562_v54, %v772_v55  ;;  %v3704_v63 = vmul.f32 %v3562_v54, %v776_v37 }
 0x179   : > { %4582 = vst [vmem:[#allocation46_spill] sm:$0xff] %v3651_v6  ;;  %4583 = vst [vmem:[#allocation47_spill] sm:$0xff] %v3656_v53  ;;  %v3677_v53 = vmul.f32 %v3562_v54, %v767_v24  ;;  %v3680_v6 = vmul.f32 %v3562_v54, %v768_v25  ;;  %v3695_v15 = vmul.f32 %v3562_v54, %v773_v9 }
 0x17a   : > { %4584 = vst [vmem:[#allocation48_spill] sm:$0xff] %v3665_v47  ;;  %v3686_v47 = vmul.f32 %v3562_v54, %v770_v16  ;;  %v3698_v24 = vmul.f32 %v3562_v54, %v774_v35  ;;  %v3701_v25 = vmul.f32 %v3562_v54, %v775_v8  ;;  %4587 = vst [vmem:[#allocation51_spill] sm:$0xff] %v3704_v63  ;;  %v1013_v63 = vpop.permute.xlu0 %1012 }
 0x17b   : > { %4585 = vst [vmem:[#allocation49_spill] sm:$0xff] %v3695_v15  ;;  %v3707_v16 = vmul.f32 %v3562_v54, %v777_v31  ;;  %v1066_v17 = vadd.f32 %v1018_v4, %v3532_v14  ;;  %v1067_v55 = vadd.f32 %v1018_v4, %v3535_v60  ;;  %v1068_v9 = vadd.f32 %v1018_v4, %v3538_v61 }
 0x17c   : > { %4586 = vst [vmem:[#allocation50_spill] sm:$0xff] %v3701_v25  ;;  %v1069_v15 = vadd.f32 %v1018_v4, %v3541_v62  ;;  %v1070_v35 = vadd.f32 %v1018_v4, %v3548_v7  ;;  %v1071_v8 = vadd.f32 %v1018_v4, %v3551_v5  ;;  %v1072_v25 = vadd.f32 %v1018_v4, %v3554_v10 }
 0x17d   : > { %v1073_v37 = vadd.f32 %v1018_v4, %v3557_v11  ;;  %v1074_v54 = vadd.f32 %v1018_v4, %v3565_v21  ;;  %v1075_v31 = vadd.f32 %v1018_v4, %v3568_v22  ;;  %v1076_v14 = vadd.f32 %v1018_v4, %v3571_v27  ;;  %1194 = vst [vmem:[%s3722_s12 + $0x80] sm:$0xff] %v1066_v17 }
 0x17e   : > { %v1077_v60 = vadd.f32 %v1018_v4, %v3574_v28  ;;  %1195 = vst [vmem:[%s3722_s12 + $0x88] sm:$0xff] %v1067_v55  ;;  %1196 = vst [vmem:[%s3722_s12 + $0x90] sm:$0xff] %v1068_v9  ;;  %v1078_v7 = vadd.f32 %v1018_v4, %v3580_v46  ;;  %v1079_v61 = vadd.f32 %v1018_v4, %v3583_v38  ;;  %v4595_v9 = vld [vmem:[#allocation29_spill] sm:$0xff] }
 0x17f   : > { %1197 = vst [vmem:[%s3722_s12 + $0x98] sm:$0xff] %v1069_v15  ;;  %v1080_v62 = vadd.f32 %v1018_v4, %v3586_v39  ;;  %v1081_v5 = vadd.f32 %v1018_v4, %v3589_v34  ;;  %1198 = vst [vmem:[%s3722_s12 + $0xa0] sm:$0xff] %v1070_v35  ;;  %v1050_v46 = vadd.f32 %v1013_v63, %v3415_v40  ;;  %v4589_v39 = vld [vmem:[#allocation23_spill] sm:$0xff]  ;;  %v4591_v4 = vld [vmem:[#allocation25_spill] sm:$0xff] }
 0x180   : > { %1199 = vst [vmem:[%s3722_s12 + $0xa8] sm:$0xff] %v1071_v8  ;;  %1200 = vst [vmem:[%s3722_s12 + $0xb0] sm:$0xff] %v1072_v25  ;;  %v1051_v10 = vadd.f32 %v1013_v63, %v3417_v41  ;;  %v1052_v11 = vadd.f32 %v1013_v63, %v3419_v42  ;;  %v1053_v21 = vadd.f32 %v1013_v63, %v3421_v43  ;;  %v1028_v42 = vpop.permute.xlu1 %1027  ;;  %v4592_v15 = vld [vmem:[#allocation26_spill] sm:$0xff] }
 0x181   : > { %1201 = vst [vmem:[%s3722_s12 + $0xb8] sm:$0xff] %v1073_v37  ;;  %1202 = vst [vmem:[%s3722_s12 + $0xc0] sm:$0xff] %v1074_v54  ;;  %v1054_v22 = vadd.f32 %v1013_v63, %v3427_v48  ;;  %v1055_v27 = vadd.f32 %v1013_v63, %v3429_v49  ;;  %v1056_v40 = vadd.f32 %v1013_v63, %v3431_v50  ;;  %v4596_v8 = vld [vmem:[#allocation30_spill] sm:$0xff]  ;;  %v4597_v54 = vld [vmem:[#allocation31_spill] sm:$0xff] }
 0x182   : > { %1203 = vst [vmem:[%s3722_s12 + $0xc8] sm:$0xff] %v1075_v31  ;;  %1204 = vst [vmem:[%s3722_s12 + $0xd0] sm:$0xff] %v1076_v14  ;;  %v1057_v41 = vadd.f32 %v1013_v63, %v3433_v51  ;;  %v1058_v43 = vadd.f32 %v1013_v63, %v3439_v56  ;;  %v1059_v28 = vadd.f32 %v1013_v63, %v3441_v57  ;;  %v4598_v14 = vld [vmem:[#allocation32_spill] sm:$0xff] }
 0x183   : > { %1205 = vst [vmem:[%s3722_s12 + $0xd8] sm:$0xff] %v1077_v60  ;;  %1206 = vst [vmem:[%s3722_s12 + $0xe0] sm:$0xff] %v1078_v7  ;;  %v1060_v38 = vadd.f32 %v1013_v63, %v3443_v58  ;;  %v1061_v48 = vadd.f32 %v1013_v63, %v3445_v59  ;;  %v1062_v49 = vadd.f32 %v1013_v63, %v3451_v0  ;;  %v4599_v7 = vld [vmem:[#allocation6_spill] sm:$0xff] }
 0x184   : > { %1207 = vst [vmem:[%s3722_s12 + $0xe8] sm:$0xff] %v1079_v61  ;;  %1208 = vst [vmem:[%s3722_s12 + $0xf0] sm:$0xff] %v1080_v62  ;;  %v1063_v50 = vadd.f32 %v1013_v63, %v3453_v1  ;;  %v1064_v51 = vadd.f32 %v1013_v63, %v3455_v2  ;;  %v1065_v56 = vadd.f32 %v1013_v63, %v3457_v3  ;;  %v4588_v2 = vld [vmem:[#allocation22_spill] sm:$0xff]  ;;  %v4593_v63 = vld [vmem:[#allocation27_spill] sm:$0xff] }
 0x185   : > { %1209 = vst [vmem:[%s3722_s12 + $0xf8] sm:$0xff] %v1081_v5  ;;  %1178 = vst [vmem:[%s3722_s12] sm:$0xff] %v1050_v46  ;;  %v1098_v57 = vadd.f32 %v1028_v42, %v3466_v13  ;;  %v1099_v58 = vadd.f32 %v1028_v42, %v3469_v19  ;;  %v1100_v59 = vadd.f32 %v1028_v42, %v3472_v20  ;;  %v4590_v19 = vld [vmem:[#allocation24_spill] sm:$0xff]  ;;  %v1023_v20 = vpop.permute.xlu0 %1022  ;;  %v4600_v62 = vld [vmem:[#allocation7_spill] sm:$0xff] }
 0x186   : > { %1179 = vst [vmem:[%s3722_s12 + $0x8] sm:$0xff] %v1051_v10  ;;  %1180 = vst [vmem:[%s3722_s12 + $0x10] sm:$0xff] %v1052_v11  ;;  %v1101_v0 = vadd.f32 %v1028_v42, %v3475_v18  ;;  %v1102_v1 = vadd.f32 %v1028_v42, %v3482_v29  ;;  %v1103_v3 = vadd.f32 %v1028_v42, %v4588_v2  ;;  %v4594_v29 = vld [vmem:[#allocation28_spill] sm:$0xff]  ;;  %v4602_v11 = vld [vmem:[#allocation9_spill] sm:$0xff] }
 0x187   : > { %1181 = vst [vmem:[%s3722_s12 + $0x18] sm:$0xff] %v1053_v21  ;;  %1182 = vst [vmem:[%s3722_s12 + $0x20] sm:$0xff] %v1054_v22  ;;  %v1104_v13 = vadd.f32 %v1028_v42, %v4589_v39  ;;  %v1105_v34 = vadd.f32 %v1028_v42, %v4590_v19  ;;  %v1106_v18 = vadd.f32 %v1028_v42, %v4591_v4  ;;  %v4601_v46 = vld [vmem:[#allocation8_spill] sm:$0xff]  ;;  %v4603_v22 = vld [vmem:[#allocation10_spill] sm:$0xff] }
 0x188   : > { %1183 = vst [vmem:[%s3722_s12 + $0x28] sm:$0xff] %v1055_v27  ;;  %1184 = vst [vmem:[%s3722_s12 + $0x30] sm:$0xff] %v1056_v40  ;;  %v1107_v25 = vadd.f32 %v1028_v42, %v4592_v15  ;;  %v1108_v17 = vadd.f32 %v1028_v42, %v4593_v63  ;;  %v1109_v55 = vadd.f32 %v1028_v42, %v4594_v29  ;;  %v4604_v40 = vld [vmem:[#allocation11_spill] sm:$0xff] }
 0x189   : > { %1185 = vst [vmem:[%s3722_s12 + $0x38] sm:$0xff] %v1057_v41  ;;  %1186 = vst [vmem:[%s3722_s12 + $0x40] sm:$0xff] %v1058_v43  ;;  %v1110_v35 = vadd.f32 %v1028_v42, %v4595_v9  ;;  %v1111_v37 = vadd.f32 %v1028_v42, %v4596_v8  ;;  %v1112_v31 = vadd.f32 %v1028_v42, %v4597_v54  ;;  %v4620_v8 = vld [vmem:[#allocation39_spill] sm:$0xff]  ;;  %v4621_v54 = vld [vmem:[#allocation40_spill] sm:$0xff] }
 0x18a   : > { %1187 = vst [vmem:[%s3722_s12 + $0x48] sm:$0xff] %v1059_v28  ;;  %1188 = vst [vmem:[%s3722_s12 + $0x50] sm:$0xff] %v1060_v38  ;;  %v1113_v60 = vadd.f32 %v1028_v42, %v4598_v14  ;;  %v1082_v61 = vadd.f32 %v1023_v20, %v4599_v7  ;;  %v1083_v5 = vadd.f32 %v1023_v20, %v4600_v62  ;;  %v4605_v42 = vld [vmem:[#allocation12_spill] sm:$0xff]  ;;  %v4606_v28 = vld [vmem:[#allocation13_spill] sm:$0xff]  ;;  %v1033_v7 = vpop.permute.xlu0 %1032 }
 0x18b   : > { %1189 = vst [vmem:[%s3722_s12 + $0x58] sm:$0xff] %v1061_v48  ;;  %1190 = vst [vmem:[%s3722_s12 + $0x60] sm:$0xff] %v1062_v49  ;;  %v1084_v10 = vadd.f32 %v1023_v20, %v4601_v46  ;;  %v1085_v21 = vadd.f32 %v1023_v20, %v4602_v11  ;;  %v1086_v27 = vadd.f32 %v1023_v20, %v4603_v22  ;;  %v1038_v48 = vpop.permute.xlu1 %1037  ;;  %v4607_v49 = vld [vmem:[#allocation14_spill] sm:$0xff]  ;;  %v4622_v14 = vld [vmem:[#allocation41_spill] sm:$0xff] }
 0x18c   : > { %1191 = vst [vmem:[%s3722_s12 + $0x68] sm:$0xff] %v1063_v50  ;;  %1192 = vst [vmem:[%s3722_s12 + $0x70] sm:$0xff] %v1064_v51  ;;  %v1087_v41 = vadd.f32 %v1023_v20, %v4604_v40  ;;  %v1088_v43 = vadd.f32 %v1023_v20, %v4605_v42  ;;  %v1089_v38 = vadd.f32 %v1023_v20, %v4606_v28  ;;  %v4608_v51 = vld [vmem:[#allocation15_spill] sm:$0xff]  ;;  %v4627_v42 = vld [vmem:[#allocation46_spill] sm:$0xff] }
 0x18d   : > { %1193 = vst [vmem:[%s3722_s12 + $0x78] sm:$0xff] %v1065_v56  ;;  %1226 = vst [vmem:[%s3722_s12 + $0x180] sm:$0xff] %v1098_v57  ;;  %v1090_v50 = vadd.f32 %v1023_v20, %v4607_v49  ;;  %v1091_v56 = vadd.f32 %v1023_v20, %v4608_v51  ;;  %v4609_v57 = vld [vmem:[#allocation16_spill] sm:$0xff]  ;;  %v1143_v40 = vadd.f32 %v1038_v48, %v3645_v12  ;;  %v810_v28 = vld [vmem:[%s3343_s9 + $0x380] sm:$0xff] }
 0x18e   : > { %1227 = vst [vmem:[%s3722_s12 + $0x188] sm:$0xff] %v1099_v58  ;;  %1228 = vst [vmem:[%s3722_s12 + $0x190] sm:$0xff] %v1100_v59  ;;  %v1092_v58 = vadd.f32 %v1023_v20, %v4609_v57  ;;  %v4610_v59 = vld [vmem:[#allocation17_spill] sm:$0xff]  ;;  %v811_v49 = vld [vmem:[%s3343_s9 + $0x388] sm:$0xff] }
 0x18f   : > { %1229 = vst [vmem:[%s3722_s12 + $0x198] sm:$0xff] %v1101_v0  ;;  %1230 = vst [vmem:[%s3722_s12 + $0x1a0] sm:$0xff] %v1102_v1  ;;  %v1093_v0 = vadd.f32 %v1023_v20, %v4610_v59  ;;  %v4611_v1 = vld [vmem:[#allocation18_spill] sm:$0xff]  ;;  %v813_v51 = vld [vmem:[%s3343_s9 + $0x398] sm:$0xff] }
 0x190   : > { %1231 = vst [vmem:[%s3722_s12 + $0x1a8] sm:$0xff] %v1103_v3  ;;  %1232 = vst [vmem:[%s3722_s12 + $0x1b0] sm:$0xff] %v1104_v13  ;;  %v1094_v2 = vadd.f32 %v1023_v20, %v4611_v1  ;;  %v4612_v3 = vld [vmem:[#allocation19_spill] sm:$0xff]  ;;  %v4613_v13 = vld [vmem:[#allocation20_spill] sm:$0xff]  ;;  %v1123_v1 = vadd.f32 %v1033_v7, %v3689_v36  ;;  %v1126_v36 = vadd.f32 %v1033_v7, %v3698_v24 }
 0x191   : > { %1233 = vst [vmem:[%s3722_s12 + $0x1b8] sm:$0xff] %v1105_v34  ;;  %1234 = vst [vmem:[%s3722_s12 + $0x1c0] sm:$0xff] %v1106_v18  ;;  %v1095_v39 = vadd.f32 %v1023_v20, %v4612_v3  ;;  %v1096_v19 = vadd.f32 %v1023_v20, %v4613_v13  ;;  %v4614_v34 = vld [vmem:[#allocation21_spill] sm:$0xff]  ;;  %v4615_v18 = vld [vmem:[#allocation34_spill] sm:$0xff] }
 0x192   : > { %1235 = vst [vmem:[%s3722_s12 + $0x1c8] sm:$0xff] %v1107_v25  ;;  %1236 = vst [vmem:[%s3722_s12 + $0x1d0] sm:$0xff] %v1108_v17  ;;  %v1097_v4 = vadd.f32 %v1023_v20, %v4614_v34  ;;  %v1130_v15 = vadd.f32 %v1038_v48, %v4615_v18  ;;  %v4616_v25 = vld [vmem:[#allocation35_spill] sm:$0xff]  ;;  %v4617_v17 = vld [vmem:[#allocation36_spill] sm:$0xff] }
 0x193   : > { %1237 = vst [vmem:[%s3722_s12 + $0x1d8] sm:$0xff] %v1109_v55  ;;  %1238 = vst [vmem:[%s3722_s12 + $0x1e0] sm:$0xff] %v1110_v35  ;;  %v1131_v63 = vadd.f32 %v1038_v48, %v4616_v25  ;;  %v1132_v29 = vadd.f32 %v1038_v48, %v4617_v17  ;;  %v4618_v55 = vld [vmem:[#allocation37_spill] sm:$0xff]  ;;  %v4619_v20 = vld [vmem:[#allocation38_spill] sm:$0xff] }
 0x194   : > { %1239 = vst [vmem:[%s3722_s12 + $0x1e8] sm:$0xff] %v1111_v37  ;;  %1240 = vst [vmem:[%s3722_s12 + $0x1f0] sm:$0xff] %v1112_v31  ;;  %v1133_v9 = vadd.f32 %v1038_v48, %v4618_v55  ;;  %v1134_v35 = vadd.f32 %v1038_v48, %v4619_v20  ;;  %v1135_v37 = vadd.f32 %v1038_v48, %v4620_v8  ;;  %v814_v57 = vld [vmem:[%s3343_s9 + $0x3a0] sm:$0xff]  ;;  %v816_v59 = vld [vmem:[%s3343_s9 + $0x3b0] sm:$0xff] }
 0x195   : > { %1241 = vst [vmem:[%s3722_s12 + $0x1f8] sm:$0xff] %v1113_v60  ;;  %1210 = vst [vmem:[%s3722_s12 + $0x100] sm:$0xff] %v1082_v61  ;;  %v1136_v31 = vadd.f32 %v1038_v48, %v4621_v54  ;;  %v1137_v60 = vadd.f32 %v1038_v48, %v4622_v14  ;;  %v4623_v61 = vld [vmem:[#allocation42_spill] sm:$0xff]  ;;  %v820_v34 = vld [vmem:[%s3343_s9 + $0x3d0] sm:$0xff] }
 0x196   : > { %1211 = vst [vmem:[%s3722_s12 + $0x108] sm:$0xff] %v1083_v5  ;;  %1212 = vst [vmem:[%s3722_s12 + $0x110] sm:$0xff] %v1084_v10  ;;  %v1138_v62 = vadd.f32 %v1038_v48, %v4623_v61  ;;  %v4624_v5 = vld [vmem:[#allocation43_spill] sm:$0xff]  ;;  %v4625_v10 = vld [vmem:[#allocation44_spill] sm:$0xff] }
 0x197   : > { %1213 = vst [vmem:[%s3722_s12 + $0x118] sm:$0xff] %v1085_v21  ;;  %1214 = vst [vmem:[%s3722_s12 + $0x120] sm:$0xff] %v1086_v27  ;;  %v1139_v46 = vadd.f32 %v1038_v48, %v4624_v5  ;;  %v1140_v11 = vadd.f32 %v1038_v48, %v4625_v10  ;;  %v4626_v21 = vld [vmem:[#allocation45_spill] sm:$0xff]  ;;  %v1142_v27 = vadd.f32 %v1038_v48, %v3642_v23  ;;  %v4628_v23 = vld [vmem:[#allocation48_spill] sm:$0xff] }
 0x198   : > { %1215 = vst [vmem:[%s3722_s12 + $0x128] sm:$0xff] %v1087_v41  ;;  %1216 = vst [vmem:[%s3722_s12 + $0x130] sm:$0xff] %v1088_v43  ;;  %v1141_v22 = vadd.f32 %v1038_v48, %v4626_v21  ;;  %v1144_v41 = vadd.f32 %v1038_v48, %v3648_v26  ;;  %v1145_v43 = vadd.f32 %v1038_v48, %v4627_v42  ;;  %v822_v18 = vld [vmem:[%s3343_s9 + $0x3e0] sm:$0xff]  ;;  %v823_v24 = vld [vmem:[%s3343_s9 + $0x3e8] sm:$0xff] }
 0x199   : > { %1217 = vst [vmem:[%s3722_s12 + $0x138] sm:$0xff] %v1089_v38  ;;  %1218 = vst [vmem:[%s3722_s12 + $0x140] sm:$0xff] %v1090_v50  ;;  %v1114_v26 = vadd.f32 %v1033_v7, %v3662_v52  ;;  %v1115_v12 = vadd.f32 %v1033_v7, %v4628_v23  ;;  %v1116_v38 = vadd.f32 %v1033_v7, %v3668_v33  ;;  %v812_v50 = vld [vmem:[%s3343_s9 + $0x390] sm:$0xff]  ;;  %v825_v25 = vld [vmem:[%s3343_s9 + $0x3f8] sm:$0xff] }
 0x19a   : > { %1219 = vst [vmem:[%s3722_s12 + $0x148] sm:$0xff] %v1091_v56  ;;  %1220 = vst [vmem:[%s3722_s12 + $0x150] sm:$0xff] %v1092_v58  ;;  %v1117_v48 = vadd.f32 %v1033_v7, %v3671_v32  ;;  %v1118_v52 = vadd.f32 %v1033_v7, %v3674_v45  ;;  %v1119_v56 = vadd.f32 %v1033_v7, %v3677_v53  ;;  %v815_v58 = vld [vmem:[%s3343_s9 + $0x3a8] sm:$0xff]  ;;  %v798_v23 = vld [vmem:[%s3343_s9 + $0x320] sm:$0xff] }
 0x19b   : > { %1221 = vst [vmem:[%s3722_s12 + $0x158] sm:$0xff] %v1093_v0  ;;  %1222 = vst [vmem:[%s3722_s12 + $0x160] sm:$0xff] %v1094_v2  ;;  %v1120_v33 = vadd.f32 %v1033_v7, %v3680_v6  ;;  %v1121_v32 = vadd.f32 %v1033_v7, %v3683_v44  ;;  %v1122_v0 = vadd.f32 %v1033_v7, %v3686_v47  ;;  %v4629_v2 = vld [vmem:[#allocation49_spill] sm:$0xff]  ;;  %v818_v47 = vld [vmem:[%s3343_s9 + $0x3c0] sm:$0xff] }
 0x19c   : > { %1223 = vst [vmem:[%s3722_s12 + $0x168] sm:$0xff] %v1095_v39  ;;  %1224 = vst [vmem:[%s3722_s12 + $0x170] sm:$0xff] %v1096_v19  ;;  %v1124_v45 = vadd.f32 %v1033_v7, %v3692_v30  ;;  %v1125_v53 = vadd.f32 %v1033_v7, %v4629_v2  ;;  %v817_v6 = vld [vmem:[%s3343_s9 + $0x3b8] sm:$0xff]  ;;  %v819_v44 = vld [vmem:[%s3343_s9 + $0x3c8] sm:$0xff]  ;;  %v1129_v19 = vadd.f32 %v1033_v7, %v3707_v16 }
 0x19d   : > { %1225 = vst [vmem:[%s3722_s12 + $0x178] sm:$0xff] %v1097_v4  ;;  %1258 = vst [vmem:[%s3722_s12 + $0x280] sm:$0xff] %v1130_v15  ;;  %v4630_v30 = vld [vmem:[#allocation50_spill] sm:$0xff]  ;;  %v4631_v39 = vld [vmem:[#allocation51_spill] sm:$0xff] }
 0x19e   : > { %1259 = vst [vmem:[%s3722_s12 + $0x288] sm:$0xff] %v1131_v63  ;;  %1260 = vst [vmem:[%s3722_s12 + $0x290] sm:$0xff] %v1132_v29  ;;  %v1127_v3 = vadd.f32 %v1033_v7, %v4630_v30  ;;  %v1128_v13 = vadd.f32 %v1033_v7, %v4631_v39  ;;  %v821_v4 = vld [vmem:[%s3343_s9 + $0x3d8] sm:$0xff]  ;;  %v824_v15 = vld [vmem:[%s3343_s9 + $0x3f0] sm:$0xff]  ;;  %v1043_v39 = vpop.permute.xlu0 %1042 }
 0x19f   : > { %1261 = vst [vmem:[%s3722_s12 + $0x298] sm:$0xff] %v1133_v9  ;;  %1262 = vst [vmem:[%s3722_s12 + $0x2a0] sm:$0xff] %v1134_v35  ;;  %v4632_v63 = vld [vmem:[#allocation33_spill] sm:$0xff]  ;;  %v1048_v9 = vpop.permute.xlu1 %1047  ;;  %v807_v2 = vld [vmem:[%s3343_s9 + $0x368] sm:$0xff] }
 0x1a0   : > { %1263 = vst [vmem:[%s3722_s12 + $0x2a8] sm:$0xff] %v1135_v37  ;;  %1264 = vst [vmem:[%s3722_s12 + $0x2b0] sm:$0xff] %v1136_v31  ;;  %v986_v16 = vmul.f32 %v4632_v63, %v810_v28  ;;  %v987_v17 = vmul.f32 %v4632_v63, %v811_v49  ;;  %v988_v29 = vmul.f32 %v4632_v63, %v812_v50 }
 0x1a1   : > { %1265 = vst [vmem:[%s3722_s12 + $0x2b8] sm:$0xff] %v1137_v60  ;;  %1266 = vst [vmem:[%s3722_s12 + $0x2c0] sm:$0xff] %v1138_v62  ;;  %v989_v55 = vmul.f32 %v4632_v63, %v813_v51  ;;  %v990_v20 = vmul.f32 %v4632_v63, %v814_v57  ;;  %v991_v35 = vmul.f32 %v4632_v63, %v815_v58 }
 0x1a2   : > { %1267 = vst [vmem:[%s3722_s12 + $0x2c8] sm:$0xff] %v1139_v46  ;;  %1268 = vst [vmem:[%s3722_s12 + $0x2d0] sm:$0xff] %v1140_v11  ;;  %v992_v8 = vmul.f32 %v4632_v63, %v816_v59  ;;  %v993_v37 = vmul.f32 %v4632_v63, %v817_v6  ;;  %v994_v54 = vmul.f32 %v4632_v63, %v818_v47  ;;  %v794_v46 = vld [vmem:[%s3343_s9 + $0x300] sm:$0xff]  ;;  %v809_v6 = vld [vmem:[%s3343_s9 + $0x378] sm:$0xff] }
 0x1a3   : > { %1269 = vst [vmem:[%s3722_s12 + $0x2d8] sm:$0xff] %v1141_v22  ;;  %1270 = vst [vmem:[%s3722_s12 + $0x2e0] sm:$0xff] %v1142_v27  ;;  %v995_v31 = vmul.f32 %v4632_v63, %v819_v44  ;;  %v996_v14 = vmul.f32 %v4632_v63, %v820_v34  ;;  %v997_v60 = vmul.f32 %v4632_v63, %v821_v4  ;;  %v795_v27 = vld [vmem:[%s3343_s9 + $0x308] sm:$0xff] }
 0x1a4   : > { %1271 = vst [vmem:[%s3722_s12 + $0x2e8] sm:$0xff] %v1143_v40  ;;  %1272 = vst [vmem:[%s3722_s12 + $0x2f0] sm:$0xff] %v1144_v41  ;;  %v998_v7 = vmul.f32 %v4632_v63, %v822_v18  ;;  %v999_v61 = vmul.f32 %v4632_v63, %v823_v24  ;;  %v1000_v62 = vmul.f32 %v4632_v63, %v824_v15  ;;  %v796_v40 = vld [vmem:[%s3343_s9 + $0x310] sm:$0xff]  ;;  %v797_v41 = vld [vmem:[%s3343_s9 + $0x318] sm:$0xff] }
 0x1a5   : > { %1273 = vst [vmem:[%s3722_s12 + $0x2f8] sm:$0xff] %v1145_v43  ;;  %1242 = vst [vmem:[%s3722_s12 + $0x200] sm:$0xff] %v1114_v26  ;;  %v1001_v5 = vmul.f32 %v4632_v63, %v825_v25  ;;  %v1162_v10 = vadd.f32 %v1048_v9, %v986_v16  ;;  %v1163_v11 = vadd.f32 %v1048_v9, %v987_v17  ;;  %v4633_v47 = vld [vmem:[#allocation47_spill] sm:$0xff] }
 0x1a6   : > { %1243 = vst [vmem:[%s3722_s12 + $0x208] sm:$0xff] %v1115_v12  ;;  %1244 = vst [vmem:[%s3722_s12 + $0x210] sm:$0xff] %v1116_v38  ;;  %v1164_v21 = vadd.f32 %v1048_v9, %v988_v29  ;;  %v1165_v22 = vadd.f32 %v1048_v9, %v989_v55  ;;  %v1166_v42 = vadd.f32 %v1048_v9, %v990_v20  ;;  %v799_v12 = vld [vmem:[%s3343_s9 + $0x328] sm:$0xff]  ;;  %v800_v38 = vld [vmem:[%s3343_s9 + $0x330] sm:$0xff] }
 0x1a7   : > { %1245 = vst [vmem:[%s3722_s12 + $0x218] sm:$0xff] %v1117_v48  ;;  %1246 = vst [vmem:[%s3722_s12 + $0x220] sm:$0xff] %v1118_v52  ;;  %v1167_v43 = vadd.f32 %v1048_v9, %v991_v35  ;;  %v1168_v28 = vadd.f32 %v1048_v9, %v992_v8  ;;  %v1169_v26 = vadd.f32 %v1048_v9, %v993_v37  ;;  %v801_v52 = vld [vmem:[%s3343_s9 + $0x338] sm:$0xff] }
 0x1a8   : > { %1247 = vst [vmem:[%s3722_s12 + $0x228] sm:$0xff] %v1119_v56  ;;  %1248 = vst [vmem:[%s3722_s12 + $0x230] sm:$0xff] %v1120_v33  ;;  %v1170_v48 = vadd.f32 %v1048_v9, %v994_v54  ;;  %v1171_v49 = vadd.f32 %v1048_v9, %v995_v31  ;;  %v1172_v50 = vadd.f32 %v1048_v9, %v996_v14  ;;  %v802_v56 = vld [vmem:[%s3343_s9 + $0x340] sm:$0xff]  ;;  %v803_v33 = vld [vmem:[%s3343_s9 + $0x348] sm:$0xff] }
 0x1a9   : > { %1249 = vst [vmem:[%s3722_s12 + $0x238] sm:$0xff] %v1121_v32  ;;  %1250 = vst [vmem:[%s3722_s12 + $0x240] sm:$0xff] %v1122_v0  ;;  %v1173_v51 = vadd.f32 %v1048_v9, %v997_v60  ;;  %v1174_v32 = vadd.f32 %v1048_v9, %v998_v7  ;;  %v1175_v57 = vadd.f32 %v1048_v9, %v999_v61  ;;  %v804_v0 = vld [vmem:[%s3343_s9 + $0x350] sm:$0xff] }
 0x1aa   : > { %1251 = vst [vmem:[%s3722_s12 + $0x248] sm:$0xff] %v1123_v1  ;;  %1252 = vst [vmem:[%s3722_s12 + $0x250] sm:$0xff] %v1124_v45  ;;  %v1176_v58 = vadd.f32 %v1048_v9, %v1000_v62  ;;  %v1177_v59 = vadd.f32 %v1048_v9, %v1001_v5  ;;  %v805_v1 = vld [vmem:[%s3343_s9 + $0x358] sm:$0xff]  ;;  %v806_v45 = vld [vmem:[%s3343_s9 + $0x360] sm:$0xff]  ;;  %v970_v44 = vmul.f32 %v4633_v47, %v794_v46 }
 0x1ab   : > { %1253 = vst [vmem:[%s3722_s12 + $0x258] sm:$0xff] %v1125_v53  ;;  %1254 = vst [vmem:[%s3722_s12 + $0x260] sm:$0xff] %v1126_v36  ;;  %v808_v53 = vld [vmem:[%s3343_s9 + $0x370] sm:$0xff]  ;;  %v971_v36 = vmul.f32 %v4633_v47, %v795_v27  ;;  %v972_v30 = vmul.f32 %v4633_v47, %v796_v40  ;;  %v976_v34 = vmul.f32 %v4633_v47, %v800_v38 }
 0x1ac   : > { %1255 = vst [vmem:[%s3722_s12 + $0x268] sm:$0xff] %v1127_v3  ;;  %1256 = vst [vmem:[%s3722_s12 + $0x270] sm:$0xff] %v1128_v13  ;;  %v973_v3 = vmul.f32 %v4633_v47, %v797_v41  ;;  %v974_v13 = vmul.f32 %v4633_v47, %v798_v23  ;;  %v977_v4 = vmul.f32 %v4633_v47, %v801_v52 }
 0x1ad   : > { %1257 = vst [vmem:[%s3722_s12 + $0x278] sm:$0xff] %v1129_v19  ;;  %1290 = vst [vmem:[%s3722_s12 + $0x380] sm:$0xff] %v1162_v10  ;;  %v975_v19 = vmul.f32 %v4633_v47, %v799_v12  ;;  %v978_v18 = vmul.f32 %v4633_v47, %v802_v56  ;;  %v979_v24 = vmul.f32 %v4633_v47, %v803_v33 }
 0x1ae   : > { %1291 = vst [vmem:[%s3722_s12 + $0x388] sm:$0xff] %v1163_v11  ;;  %1292 = vst [vmem:[%s3722_s12 + $0x390] sm:$0xff] %v1164_v21  ;;  %v980_v15 = vmul.f32 %v4633_v47, %v804_v0  ;;  %v981_v25 = vmul.f32 %v4633_v47, %v805_v1  ;;  %v982_v63 = vmul.f32 %v4633_v47, %v806_v45 }
 0x1af   : > { %1293 = vst [vmem:[%s3722_s12 + $0x398] sm:$0xff] %v1165_v22  ;;  %1294 = vst [vmem:[%s3722_s12 + $0x3a0] sm:$0xff] %v1166_v42  ;;  %v983_v16 = vmul.f32 %v4633_v47, %v807_v2  ;;  %v984_v17 = vmul.f32 %v4633_v47, %v808_v53  ;;  %v985_v29 = vmul.f32 %v4633_v47, %v809_v6 }
 0x1b0   : > { %1295 = vst [vmem:[%s3722_s12 + $0x3a8] sm:$0xff] %v1167_v43  ;;  %1296 = vst [vmem:[%s3722_s12 + $0x3b0] sm:$0xff] %v1168_v28  ;;  %v1146_v55 = vadd.f32 %v1043_v39, %v970_v44  ;;  %v1147_v9 = vadd.f32 %v1043_v39, %v971_v36  ;;  %v1148_v20 = vadd.f32 %v1043_v39, %v972_v30 }
 0x1b1   : > { %1297 = vst [vmem:[%s3722_s12 + $0x3b8] sm:$0xff] %v1169_v26  ;;  %1298 = vst [vmem:[%s3722_s12 + $0x3c0] sm:$0xff] %v1170_v48  ;;  %v1149_v35 = vadd.f32 %v1043_v39, %v973_v3  ;;  %v1150_v8 = vadd.f32 %v1043_v39, %v974_v13  ;;  %v1151_v37 = vadd.f32 %v1043_v39, %v975_v19 }
 0x1b2   : > { %1299 = vst [vmem:[%s3722_s12 + $0x3c8] sm:$0xff] %v1171_v49  ;;  %1300 = vst [vmem:[%s3722_s12 + $0x3d0] sm:$0xff] %v1172_v50  ;;  %v1152_v54 = vadd.f32 %v1043_v39, %v976_v34  ;;  %v1153_v31 = vadd.f32 %v1043_v39, %v977_v4  ;;  %v1154_v14 = vadd.f32 %v1043_v39, %v978_v18 }
 0x1b3   : > { %1301 = vst [vmem:[%s3722_s12 + $0x3d8] sm:$0xff] %v1173_v51  ;;  %1302 = vst [vmem:[%s3722_s12 + $0x3e0] sm:$0xff] %v1174_v32  ;;  %v1155_v60 = vadd.f32 %v1043_v39, %v979_v24  ;;  %v1156_v7 = vadd.f32 %v1043_v39, %v980_v15  ;;  %v1157_v61 = vadd.f32 %v1043_v39, %v981_v25 }
 0x1b4   : > { %1303 = vst [vmem:[%s3722_s12 + $0x3e8] sm:$0xff] %v1175_v57  ;;  %1304 = vst [vmem:[%s3722_s12 + $0x3f0] sm:$0xff] %v1176_v58  ;;  %v1158_v62 = vadd.f32 %v1043_v39, %v982_v63  ;;  %v1159_v5 = vadd.f32 %v1043_v39, %v983_v16  ;;  %v1160_v46 = vadd.f32 %v1043_v39, %v984_v17 }
 0x1b5   : > { %1305 = vst [vmem:[%s3722_s12 + $0x3f8] sm:$0xff] %v1177_v59  ;;  %1274 = vst [vmem:[%s3722_s12 + $0x300] sm:$0xff] %v1146_v55  ;;  %v1161_v10 = vadd.f32 %v1043_v39, %v985_v29 }
 0x1b6   : > { %1275 = vst [vmem:[%s3722_s12 + $0x308] sm:$0xff] %v1147_v9  ;;  %1276 = vst [vmem:[%s3722_s12 + $0x310] sm:$0xff] %v1148_v20 }
 0x1b7   : > { %1277 = vst [vmem:[%s3722_s12 + $0x318] sm:$0xff] %v1149_v35  ;;  %1278 = vst [vmem:[%s3722_s12 + $0x320] sm:$0xff] %v1150_v8  ;;  %1312 = sbr.rel (!%p2825_p6) target bundleno = 621 (0x26d), region = 102 }
 0x1b8   : > { %1279 = vst [vmem:[%s3722_s12 + $0x328] sm:$0xff] %v1151_v37  ;;  %1280 = vst [vmem:[%s3722_s12 + $0x330] sm:$0xff] %v1152_v54 }
 0x1b9   : > { %1281 = vst [vmem:[%s3722_s12 + $0x338] sm:$0xff] %v1153_v31  ;;  %1282 = vst [vmem:[%s3722_s12 + $0x340] sm:$0xff] %v1154_v14 }
 0x1ba   : > { %1283 = vst [vmem:[%s3722_s12 + $0x348] sm:$0xff] %v1155_v60  ;;  %1284 = vst [vmem:[%s3722_s12 + $0x350] sm:$0xff] %v1156_v7 }
 0x1bb   : > { %1285 = vst [vmem:[%s3722_s12 + $0x358] sm:$0xff] %v1157_v61  ;;  %1286 = vst [vmem:[%s3722_s12 + $0x360] sm:$0xff] %v1158_v62 }
 0x1bc   : > { %1287 = vst [vmem:[%s3722_s12 + $0x368] sm:$0xff] %v1159_v5  ;;  %1288 = vst [vmem:[%s3722_s12 + $0x370] sm:$0xff] %v1160_v46 }
 0x1bd   : > { %1289 = vst [vmem:[%s3722_s12 + $0x378] sm:$0xff] %v1161_v10 }
 0x1be   : > { %s4675_s20 = smov (!%p1315_p4, %s1314_s20), 16 }
 0x1bf   : > { %s2082_s21 = sshll.u32 %s4675_s20, 10  ;;  %s4009_s11 = sshll.u32 %s4675_s20, 3 }
 0x1c0   : > { %p2086_p5 = scmp.eq.s32.totalorder %s2082_s21, 0 }
 0x1c1   : > { %p1327_p6 = scmp.lt.u32.totalorder (!%p2086_p5), %s4009_s11, 8 }
 0x1c2   : > { %1326 = sbr.rel (%p2086_p5) target bundleno = 621 (0x26d), region = 106 }
 0x1c9   : > { %1330 = sbr.rel (%p1327_p6) target bundleno = 609 (0x261), region = 110  ;;  %s4013_s14 = sand.u32 (!%p1327_p6), 7, %s4009_s11  }
 0x1ca   : > { %p1360_p7 = scmp.eq.s32.totalorder (!%p1327_p6), %s4013_s14, 0  ;;  %p2087_p8 = scmp.ne.s32.totalorder (!%p1327_p6), %s4013_s14, 0 }
 0x1d0   : > { %1363 = sbr.rel (%p2087_p8) target bundleno = 531 (0x213), region = 125  ;;  %s1364_s15 = sshrl.u32 (!%p2087_p8), %s4009_s11, 3 }
 0x1d1   : > { %s4020_s23 = sshrl.u32 (!%p2087_p8), %s1364_s15, 3 }
 0x1d2   : > { %p2088_p9 = scmp.le.s32.totalorder (!%p2087_p8), %s4020_s23, 0 }
 0x1d7   : > { %1947 = sbr.rel (%p2088_p9) target bundleno = 511 (0x1ff), region = 279  ;;  %s4634_s10 = smov (!%p2088_p9), %s4007_s24 }
 0x1d8   : > { %s4635_s22 = smov (!%p2088_p9), %s3722_s12  ;;  %s4029_s6 = smov (!%p2088_p9), 0  }
 0x1d9   : > { %s4031_s25 = smov (!%p2088_p9), 0  }
 0x1de LB: >> { %v1377_v11 = vld [vmem:[%s2694_s22] sm:$0xff]  ;;  %v1379_v21 = vld [vmem:[%s2694_s22 + $0x8] sm:$0xff]  ;;  %v1381_v22 = vld [vmem:[%s2694_s22 + $0x10] sm:$0xff]  ;;  %s1505_s5 = sadd.s32 1, %s2698_s6  ;;  %s1371_s25 = sadd.s32 1, %s2702_s25   ;;  %s2702_s25 = sphi %s4031_s25, %s1371_s25   ;;  %s2698_s6 = sphi %s4029_s6, %s4638_s6   ;;  %s2694_s22 = sphi %s4635_s22, %s4637_s22   ;;  %s2690_s10 = sphi %s4634_s10, %s4636_s10  }
 0x1df   : >> { %1378 = vst [vmem:[%s2690_s10] sm:$0xff] %v1377_v11  ;;  %1380 = vst [vmem:[%s2690_s10 + $0x8] sm:$0xff] %v1379_v21  ;;  %v1383_v27 = vld [vmem:[%s2694_s22 + $0x18] sm:$0xff]  ;;  %v1385_v40 = vld [vmem:[%s2694_s22 + $0x20] sm:$0xff]  ;;  %p1506_p10 = scmp.ge.s32.totalorder %s1505_s5, %s4020_s23  ;;  %p1370_p11 = scmp.ge.s32.totalorder %s1371_s25, %s4020_s23 }
 0x1e0   : >> { %1382 = vst [vmem:[%s2690_s10 + $0x10] sm:$0xff] %v1381_v22  ;;  %v1387_v41 = vld [vmem:[%s2694_s22 + $0x28] sm:$0xff]  ;;  %1384 = vst [vmem:[%s2690_s10 + $0x18] sm:$0xff] %v1383_v27  ;;  %v1389_v42 = vld [vmem:[%s2694_s22 + $0x30] sm:$0xff] }
 0x1e1   : >> { %1386 = vst [vmem:[%s2690_s10 + $0x20] sm:$0xff] %v1385_v40  ;;  %1388 = vst [vmem:[%s2690_s10 + $0x28] sm:$0xff] %v1387_v41  ;;  %v1391_v43 = vld [vmem:[%s2694_s22 + $0x38] sm:$0xff]  ;;  %v1393_v28 = vld [vmem:[%s2694_s22 + $0x80] sm:$0xff]  ;;  %s4677_s5 = smov (%p1506_p10, %s1505_s5), 0 }
 0x1e2   : >> { %1390 = vst [vmem:[%s2690_s10 + $0x30] sm:$0xff] %v1389_v42  ;;  %1392 = vst [vmem:[%s2690_s10 + $0x38] sm:$0xff] %v1391_v43  ;;  %v1395_v26 = vld [vmem:[%s2694_s22 + $0x88] sm:$0xff]  ;;  %v1397_v23 = vld [vmem:[%s2694_s22 + $0x90] sm:$0xff]  ;;  %s2089_s30 = sshll.u32 %s4677_s5, 6  ;;  %s4638_s6 = smov %s4677_s5 }
 0x1e3   : >> { %1394 = vst [vmem:[%s2690_s10 + $0x90] sm:$0xff] %v1393_v28  ;;  %v1399_v12 = vld [vmem:[%s2694_s22 + $0x98] sm:$0xff]  ;;  %1396 = vst [vmem:[%s2690_s10 + $0x98] sm:$0xff] %v1395_v26  ;;  %v1401_v38 = vld [vmem:[%s2694_s22 + $0xa0] sm:$0xff]  ;;  %s4087_s26 = scalar_lea.vmem %s3722_s12, %s2089_s30 [#allocation3]   ;;  %s4090_s0 = scalar_lea.vmem %s4007_s24, %s2089_s30  }
 0x1e4   : >> { %1398 = vst [vmem:[%s2690_s10 + $0xa0] sm:$0xff] %v1397_v23  ;;  %1400 = vst [vmem:[%s2690_s10 + $0xa8] sm:$0xff] %v1399_v12  ;;  %v1403_v48 = vld [vmem:[%s2694_s22 + $0xa8] sm:$0xff]  ;;  %v1405_v49 = vld [vmem:[%s2694_s22 + $0xb0] sm:$0xff] }
 0x1e5   : >> { %1402 = vst [vmem:[%s2690_s10 + $0xb0] sm:$0xff] %v1401_v38  ;;  %1404 = vst [vmem:[%s2690_s10 + $0xb8] sm:$0xff] %v1403_v48  ;;  %v1407_v50 = vld [vmem:[%s2694_s22 + $0xb8] sm:$0xff]  ;;  %v1409_v51 = vld [vmem:[%s2694_s22 + $0x100] sm:$0xff] }
 0x1e6   : >> { %1406 = vst [vmem:[%s2690_s10 + $0xc0] sm:$0xff] %v1405_v49  ;;  %v1411_v52 = vld [vmem:[%s2694_s22 + $0x108] sm:$0xff]  ;;  %1408 = vst [vmem:[%s2690_s10 + $0xc8] sm:$0xff] %v1407_v50  ;;  %v1413_v56 = vld [vmem:[%s2694_s22 + $0x110] sm:$0xff] }
 0x1e7   : >> { %1410 = vst [vmem:[%s2690_s10 + $0x120] sm:$0xff] %v1409_v51  ;;  %1412 = vst [vmem:[%s2690_s10 + $0x128] sm:$0xff] %v1411_v52  ;;  %v1415_v33 = vld [vmem:[%s2694_s22 + $0x118] sm:$0xff]  ;;  %v1417_v32 = vld [vmem:[%s2694_s22 + $0x120] sm:$0xff] }
 0x1e8   : >> { %1414 = vst [vmem:[%s2690_s10 + $0x130] sm:$0xff] %v1413_v56  ;;  %1416 = vst [vmem:[%s2690_s10 + $0x138] sm:$0xff] %v1415_v33  ;;  %v1419_v57 = vld [vmem:[%s2694_s22 + $0x128] sm:$0xff]  ;;  %v1421_v58 = vld [vmem:[%s2694_s22 + $0x130] sm:$0xff] }
 0x1e9   : >> { %1418 = vst [vmem:[%s2690_s10 + $0x140] sm:$0xff] %v1417_v32  ;;  %v1423_v59 = vld [vmem:[%s2694_s22 + $0x138] sm:$0xff]  ;;  %1420 = vst [vmem:[%s2690_s10 + $0x148] sm:$0xff] %v1419_v57  ;;  %v1425_v0 = vld [vmem:[%s2694_s22 + $0x180] sm:$0xff] }
 0x1ea   : >> { %1422 = vst [vmem:[%s2690_s10 + $0x150] sm:$0xff] %v1421_v58  ;;  %1424 = vst [vmem:[%s2690_s10 + $0x158] sm:$0xff] %v1423_v59  ;;  %v1427_v1 = vld [vmem:[%s2694_s22 + $0x188] sm:$0xff]  ;;  %v1429_v45 = vld [vmem:[%s2694_s22 + $0x190] sm:$0xff] }
 0x1eb   : >> { %1426 = vst [vmem:[%s2690_s10 + $0x1b0] sm:$0xff] %v1425_v0  ;;  %1428 = vst [vmem:[%s2690_s10 + $0x1b8] sm:$0xff] %v1427_v1  ;;  %v1431_v2 = vld [vmem:[%s2694_s22 + $0x198] sm:$0xff]  ;;  %v1433_v53 = vld [vmem:[%s2694_s22 + $0x1a0] sm:$0xff] }
 0x1ec   : >> { %1430 = vst [vmem:[%s2690_s10 + $0x1c0] sm:$0xff] %v1429_v45  ;;  %v1435_v6 = vld [vmem:[%s2694_s22 + $0x1a8] sm:$0xff]  ;;  %1432 = vst [vmem:[%s2690_s10 + $0x1c8] sm:$0xff] %v1431_v2  ;;  %v1437_v47 = vld [vmem:[%s2694_s22 + $0x1b0] sm:$0xff] }
 0x1ed   : >> { %1434 = vst [vmem:[%s2690_s10 + $0x1d0] sm:$0xff] %v1433_v53  ;;  %1436 = vst [vmem:[%s2690_s10 + $0x1d8] sm:$0xff] %v1435_v6  ;;  %v1439_v44 = vld [vmem:[%s2694_s22 + $0x1b8] sm:$0xff]  ;;  %v1441_v36 = vld [vmem:[%s2694_s22 + $0x200] sm:$0xff] }
 0x1ee   : >> { %1438 = vst [vmem:[%s2690_s10 + $0x1e0] sm:$0xff] %v1437_v47  ;;  %1440 = vst [vmem:[%s2690_s10 + $0x1e8] sm:$0xff] %v1439_v44  ;;  %v1443_v30 = vld [vmem:[%s2694_s22 + $0x208] sm:$0xff]  ;;  %v1445_v3 = vld [vmem:[%s2694_s22 + $0x210] sm:$0xff] }
 0x1ef   : >> { %1442 = vst [vmem:[%s2690_s10 + $0x240] sm:$0xff] %v1441_v36  ;;  %v1447_v39 = vld [vmem:[%s2694_s22 + $0x218] sm:$0xff]  ;;  %1444 = vst [vmem:[%s2690_s10 + $0x248] sm:$0xff] %v1443_v30  ;;  %v1449_v13 = vld [vmem:[%s2694_s22 + $0x220] sm:$0xff] }
 0x1f0   : >> { %1446 = vst [vmem:[%s2690_s10 + $0x250] sm:$0xff] %v1445_v3  ;;  %1448 = vst [vmem:[%s2690_s10 + $0x258] sm:$0xff] %v1447_v39  ;;  %v1451_v19 = vld [vmem:[%s2694_s22 + $0x228] sm:$0xff]  ;;  %v1453_v34 = vld [vmem:[%s2694_s22 + $0x230] sm:$0xff] }
 0x1f1   : >> { %1450 = vst [vmem:[%s2690_s10 + $0x260] sm:$0xff] %v1449_v13  ;;  %1452 = vst [vmem:[%s2690_s10 + $0x268] sm:$0xff] %v1451_v19  ;;  %v1455_v4 = vld [vmem:[%s2694_s22 + $0x238] sm:$0xff]  ;;  %v1457_v18 = vld [vmem:[%s2694_s22 + $0x280] sm:$0xff] }
 0x1f2   : >> { %1454 = vst [vmem:[%s2690_s10 + $0x270] sm:$0xff] %v1453_v34  ;;  %v1459_v24 = vld [vmem:[%s2694_s22 + $0x288] sm:$0xff]  ;;  %1456 = vst [vmem:[%s2690_s10 + $0x278] sm:$0xff] %v1455_v4  ;;  %v1461_v15 = vld [vmem:[%s2694_s22 + $0x290] sm:$0xff] }
 0x1f3   : >> { %1458 = vst [vmem:[%s2690_s10 + $0x2d0] sm:$0xff] %v1457_v18  ;;  %1460 = vst [vmem:[%s2690_s10 + $0x2d8] sm:$0xff] %v1459_v24  ;;  %v1463_v25 = vld [vmem:[%s2694_s22 + $0x298] sm:$0xff]  ;;  %v1465_v63 = vld [vmem:[%s2694_s22 + $0x2a0] sm:$0xff] }
 0x1f4   : >> { %1462 = vst [vmem:[%s2690_s10 + $0x2e0] sm:$0xff] %v1461_v15  ;;  %1464 = vst [vmem:[%s2690_s10 + $0x2e8] sm:$0xff] %v1463_v25  ;;  %v1467_v16 = vld [vmem:[%s2694_s22 + $0x2a8] sm:$0xff]  ;;  %v1469_v17 = vld [vmem:[%s2694_s22 + $0x2b0] sm:$0xff] }
 0x1f5   : >> { %1466 = vst [vmem:[%s2690_s10 + $0x2f0] sm:$0xff] %v1465_v63  ;;  %v1471_v29 = vld [vmem:[%s2694_s22 + $0x2b8] sm:$0xff]  ;;  %1468 = vst [vmem:[%s2690_s10 + $0x2f8] sm:$0xff] %v1467_v16  ;;  %v1473_v55 = vld [vmem:[%s2694_s22 + $0x300] sm:$0xff] }
 0x1f6   : >> { %1470 = vst [vmem:[%s2690_s10 + $0x300] sm:$0xff] %v1469_v17  ;;  %1472 = vst [vmem:[%s2690_s10 + $0x308] sm:$0xff] %v1471_v29  ;;  %v1475_v9 = vld [vmem:[%s2694_s22 + $0x308] sm:$0xff]  ;;  %v1477_v20 = vld [vmem:[%s2694_s22 + $0x310] sm:$0xff] }
 0x1f7   : >> { %1474 = vst [vmem:[%s2690_s10 + $0x360] sm:$0xff] %v1473_v55  ;;  %1476 = vst [vmem:[%s2690_s10 + $0x368] sm:$0xff] %v1475_v9  ;;  %v1479_v35 = vld [vmem:[%s2694_s22 + $0x318] sm:$0xff]  ;;  %v1481_v8 = vld [vmem:[%s2694_s22 + $0x320] sm:$0xff] }
 0x1f8   : >> { %1478 = vst [vmem:[%s2690_s10 + $0x370] sm:$0xff] %v1477_v20  ;;  %v1483_v37 = vld [vmem:[%s2694_s22 + $0x328] sm:$0xff]  ;;  %1480 = vst [vmem:[%s2690_s10 + $0x378] sm:$0xff] %v1479_v35  ;;  %v1485_v54 = vld [vmem:[%s2694_s22 + $0x330] sm:$0xff]  ;;  %1373 = sbr.rel (!%p1370_p11) target bundleno = 478 (0x1de), region = 285 }
 0x1f9   : >> { %1482 = vst [vmem:[%s2690_s10 + $0x380] sm:$0xff] %v1481_v8  ;;  %1484 = vst [vmem:[%s2690_s10 + $0x388] sm:$0xff] %v1483_v37  ;;  %v1487_v31 = vld [vmem:[%s2694_s22 + $0x338] sm:$0xff]  ;;  %v1489_v14 = vld [vmem:[%s2694_s22 + $0x380] sm:$0xff] }
 0x1fa   : >> { %1486 = vst [vmem:[%s2690_s10 + $0x390] sm:$0xff] %v1485_v54  ;;  %1488 = vst [vmem:[%s2690_s10 + $0x398] sm:$0xff] %v1487_v31  ;;  %v1491_v60 = vld [vmem:[%s2694_s22 + $0x388] sm:$0xff]  ;;  %v1493_v7 = vld [vmem:[%s2694_s22 + $0x390] sm:$0xff] }
 0x1fb   : >> { %1490 = vst [vmem:[%s2690_s10 + $0x3f0] sm:$0xff] %v1489_v14  ;;  %v1495_v61 = vld [vmem:[%s2694_s22 + $0x398] sm:$0xff]  ;;  %1492 = vst [vmem:[%s2690_s10 + $0x3f8] sm:$0xff] %v1491_v60  ;;  %v1497_v62 = vld [vmem:[%s2694_s22 + $0x3a0] sm:$0xff] }
 0x1fc   : >> { %1494 = vst [vmem:[%s2690_s10 + $0x400] sm:$0xff] %v1493_v7  ;;  %1496 = vst [vmem:[%s2690_s10 + $0x408] sm:$0xff] %v1495_v61  ;;  %v1499_v5 = vld [vmem:[%s2694_s22 + $0x3a8] sm:$0xff]  ;;  %v1501_v46 = vld [vmem:[%s2694_s22 + $0x3b0] sm:$0xff] }
 0x1fd   : >> { %1498 = vst [vmem:[%s2690_s10 + $0x410] sm:$0xff] %v1497_v62  ;;  %1500 = vst [vmem:[%s2690_s10 + $0x418] sm:$0xff] %v1499_v5  ;;  %v1503_v10 = vld [vmem:[%s2694_s22 + $0x3b8] sm:$0xff]  ;;  %s4637_s22 = smov %s4087_s26 }
 0x1fe   : >> { %1502 = vst [vmem:[%s2690_s10 + $0x420] sm:$0xff] %v1501_v46  ;;  %1504 = vst [vmem:[%s2690_s10 + $0x428] sm:$0xff] %v1503_v10  ;;  %s4636_s10 = smov %s4090_s0 }
 0x1ff PF: > { %s4196_s9 = sand.u32 7, %s1364_s15   ;;  %s2115_s8 = sshll.u32 %s4020_s23, 10 }
 0x200   : > { %s1516_s28 = sshra.s32 %s2115_s8, 4  ;;  %p2094_p12 = scmp.le.s32.totalorder %s4196_s9, 0 }
 0x201   : > { %s4200_s20 = scalar_lea.vmem %s3722_s12, %s1516_s28 [#allocation3]   ;;  %s4203_s7 = scalar_lea.vmem %s4007_s24, %s1516_s28  }
 0x202   : > { %1961 = sbr.rel (%p2094_p12) target bundleno = 531 (0x213), region = 290  ;;  %s4639_s4 = smov (!%p2094_p12), %s4203_s7 }
 0x203   : > { %s4640_s29 = smov (!%p2094_p12), %s4200_s20  ;;  %s4212_s19 = smov (!%p2094_p12), 0  }
 0x204   : > { %s4214_s21 = smov (!%p2094_p12), 0  }
 0x209 LB: >> { %v1532_v11 = vld [vmem:[%s2710_s29] sm:$0xff]  ;;  %s1548_s15 = sadd.s32 1, %s2714_s19  ;;  %s1526_s21 = sadd.s32 1, %s2718_s21   ;;  %s2718_s21 = sphi %s4214_s21, %s1526_s21   ;;  %s2714_s19 = sphi %s4212_s19, %s4641_s19   ;;  %s2710_s29 = sphi %s4640_s29, %s1553_s29   ;;  %s2706_s4 = sphi %s4639_s4, %s1554_s4  }
 0x20a   : >> { %v1534_v21 = vld [vmem:[%s2710_s29 + $0x80] sm:$0xff]  ;;  %1533 = vst [vmem:[%s2706_s4] sm:$0xff] %v1532_v11  ;;  %p1549_p13 = scmp.ge.s32.totalorder %s1548_s15, %s4196_s9  ;;  %p1525_p0 = scmp.ge.s32.totalorder %s1526_s21, %s4196_s9 }
 0x20b   : >> { %v1536_v22 = vld [vmem:[%s2710_s29 + $0x100] sm:$0xff]  ;;  %1535 = vst [vmem:[%s2706_s4 + $0x90] sm:$0xff] %v1534_v21 }
 0x20c   : >> { %1537 = vst [vmem:[%s2706_s4 + $0x120] sm:$0xff] %v1536_v22  ;;  %v1538_v27 = vld [vmem:[%s2710_s29 + $0x180] sm:$0xff]  ;;  %s4679_s15 = smov (%p1549_p13, %s1548_s15), 0  ;;  %1528 = sbr.rel (!%p1525_p0) target bundleno = 521 (0x209), region = 296 }
 0x20d   : >> { %v1540_v40 = vld [vmem:[%s2710_s29 + $0x200] sm:$0xff]  ;;  %1539 = vst [vmem:[%s2706_s4 + $0x1b0] sm:$0xff] %v1538_v27  ;;  %s2095_s23 = sshll.u32 %s4679_s15, 3  ;;  %s4641_s19 = smov %s4679_s15 }
 0x20e   : >> { %v1542_v41 = vld [vmem:[%s2710_s29 + $0x280] sm:$0xff]  ;;  %1541 = vst [vmem:[%s2706_s4 + $0x240] sm:$0xff] %v1540_v40 }
 0x20f   : >> { %1543 = vst [vmem:[%s2706_s4 + $0x2d0] sm:$0xff] %v1542_v41  ;;  %v1544_v42 = vld [vmem:[%s2710_s29 + $0x300] sm:$0xff] }
 0x210   : >> { %v1546_v43 = vld [vmem:[%s2710_s29 + $0x380] sm:$0xff]  ;;  %1545 = vst [vmem:[%s2706_s4 + $0x360] sm:$0xff] %v1544_v42  ;;  %s1553_s29 = scalar_lea.vmem %s4200_s20, %s2095_s23 [#allocation3]  }
 0x211   : >> { %1547 = vst [vmem:[%s2706_s4 + $0x3f0] sm:$0xff] %v1546_v43  ;;  %s1554_s4 = scalar_lea.vmem %s4203_s7, %s2095_s23  }
 0x213 PF: > { %1557 = sbr.rel (%p1360_p7) target bundleno = 609 (0x261), region = 143  ;;  %s1559_s10 = ssub.s32 (!%p1360_p7), %s4009_s11, %s4013_s14 }
 0x214   : > { %s1563_s22 = sshrl.u32 (!%p1360_p7), %s4009_s11, 3  ;;  %s4238_s6 = scalar_lea.vmem (!%p1360_p7), %s3722_s12, %s1559_s10 [#allocation3] }
 0x215   : > { %s4241_s25 = scalar_lea.vmem (!%p1360_p7), %s4007_s24, %s1559_s10  ;;  %s4245_s5 = sshrl.u32 (!%p1360_p7), %s1563_s22, 3 }
 0x216   : > { %p2097_p1 = scmp.le.s32.totalorder (!%p1360_p7), %s4245_s5, 0 }
 0x21a   : > { %1975 = sbr.rel (%p2097_p1) target bundleno = 578 (0x242), region = 301  ;;  %s4642_s30 = smov (!%p2097_p1), %s4007_s24 }
 0x21b   : > { %s4643_s26 = smov (!%p2097_p1), %s3722_s12  ;;  %s4254_s0 = smov (!%p2097_p1), 0  }
 0x21c   : > { %s4256_s9 = smov (!%p2097_p1), 0  }
 0x221 LB: >> { %v1576_v28 = vld [vmem:[%s2726_s26] sm:$0xff]  ;;  %v1578_v26 = vld [vmem:[%s2726_s26 + $0x8] sm:$0xff]  ;;  %v1580_v23 = vld [vmem:[%s2726_s26 + $0x10] sm:$0xff]  ;;  %s1704_s8 = sadd.s32 1, %s2730_s0  ;;  %s1570_s9 = sadd.s32 1, %s2734_s9   ;;  %s2734_s9 = sphi %s4256_s9, %s1570_s9   ;;  %s2730_s0 = sphi %s4254_s0, %s4646_s0   ;;  %s2726_s26 = sphi %s4643_s26, %s4645_s26   ;;  %s2722_s30 = sphi %s4642_s30, %s4644_s30  }
 0x222   : >> { %1577 = vst [vmem:[%s2722_s30] sm:$0xff] %v1576_v28  ;;  %1579 = vst [vmem:[%s2722_s30 + $0x8] sm:$0xff] %v1578_v26  ;;  %v1582_v12 = vld [vmem:[%s2726_s26 + $0x18] sm:$0xff]  ;;  %v1584_v38 = vld [vmem:[%s2726_s26 + $0x20] sm:$0xff]  ;;  %p1705_p2 = scmp.ge.s32.totalorder %s1704_s8, %s4245_s5  ;;  %p1569_p3 = scmp.ge.s32.totalorder %s1570_s9, %s4245_s5 }
 0x223   : >> { %1581 = vst [vmem:[%s2722_s30 + $0x10] sm:$0xff] %v1580_v23  ;;  %v1586_v48 = vld [vmem:[%s2726_s26 + $0x28] sm:$0xff]  ;;  %1583 = vst [vmem:[%s2722_s30 + $0x18] sm:$0xff] %v1582_v12  ;;  %v1588_v49 = vld [vmem:[%s2726_s26 + $0x30] sm:$0xff] }
 0x224   : >> { %1585 = vst [vmem:[%s2722_s30 + $0x20] sm:$0xff] %v1584_v38  ;;  %1587 = vst [vmem:[%s2722_s30 + $0x28] sm:$0xff] %v1586_v48  ;;  %v1590_v50 = vld [vmem:[%s2726_s26 + $0x38] sm:$0xff]  ;;  %v1592_v51 = vld [vmem:[%s2726_s26 + $0x80] sm:$0xff]  ;;  %s4681_s8 = smov (%p1705_p2, %s1704_s8), 0 }
 0x225   : >> { %1589 = vst [vmem:[%s2722_s30 + $0x30] sm:$0xff] %v1588_v49  ;;  %1591 = vst [vmem:[%s2722_s30 + $0x38] sm:$0xff] %v1590_v50  ;;  %v1594_v52 = vld [vmem:[%s2726_s26 + $0x88] sm:$0xff]  ;;  %v1596_v56 = vld [vmem:[%s2726_s26 + $0x90] sm:$0xff]  ;;  %s2098_s28 = sshll.u32 %s4681_s8, 6  ;;  %s4646_s0 = smov %s4681_s8 }
 0x226   : >> { %1593 = vst [vmem:[%s2722_s30 + $0x90] sm:$0xff] %v1592_v51  ;;  %v1598_v33 = vld [vmem:[%s2726_s26 + $0x98] sm:$0xff]  ;;  %1595 = vst [vmem:[%s2722_s30 + $0x98] sm:$0xff] %v1594_v52  ;;  %v1600_v32 = vld [vmem:[%s2726_s26 + $0xa0] sm:$0xff]  ;;  %s4312_s20 = scalar_lea.vmem %s3722_s12, %s2098_s28 [#allocation3]   ;;  %s4315_s7 = scalar_lea.vmem %s4007_s24, %s2098_s28  }
 0x227   : >> { %1597 = vst [vmem:[%s2722_s30 + $0xa0] sm:$0xff] %v1596_v56  ;;  %1599 = vst [vmem:[%s2722_s30 + $0xa8] sm:$0xff] %v1598_v33  ;;  %v1602_v57 = vld [vmem:[%s2726_s26 + $0xa8] sm:$0xff]  ;;  %v1604_v58 = vld [vmem:[%s2726_s26 + $0xb0] sm:$0xff] }
 0x228   : >> { %1601 = vst [vmem:[%s2722_s30 + $0xb0] sm:$0xff] %v1600_v32  ;;  %1603 = vst [vmem:[%s2722_s30 + $0xb8] sm:$0xff] %v1602_v57  ;;  %v1606_v59 = vld [vmem:[%s2726_s26 + $0xb8] sm:$0xff]  ;;  %v1608_v0 = vld [vmem:[%s2726_s26 + $0x100] sm:$0xff] }
 0x229   : >> { %1605 = vst [vmem:[%s2722_s30 + $0xc0] sm:$0xff] %v1604_v58  ;;  %v1610_v1 = vld [vmem:[%s2726_s26 + $0x108] sm:$0xff]  ;;  %1607 = vst [vmem:[%s2722_s30 + $0xc8] sm:$0xff] %v1606_v59  ;;  %v1612_v45 = vld [vmem:[%s2726_s26 + $0x110] sm:$0xff] }
 0x22a   : >> { %1609 = vst [vmem:[%s2722_s30 + $0x120] sm:$0xff] %v1608_v0  ;;  %1611 = vst [vmem:[%s2722_s30 + $0x128] sm:$0xff] %v1610_v1  ;;  %v1614_v2 = vld [vmem:[%s2726_s26 + $0x118] sm:$0xff]  ;;  %v1616_v53 = vld [vmem:[%s2726_s26 + $0x120] sm:$0xff] }
 0x22b   : >> { %1613 = vst [vmem:[%s2722_s30 + $0x130] sm:$0xff] %v1612_v45  ;;  %1615 = vst [vmem:[%s2722_s30 + $0x138] sm:$0xff] %v1614_v2  ;;  %v1618_v6 = vld [vmem:[%s2726_s26 + $0x128] sm:$0xff]  ;;  %v1620_v47 = vld [vmem:[%s2726_s26 + $0x130] sm:$0xff] }
 0x22c   : >> { %1617 = vst [vmem:[%s2722_s30 + $0x140] sm:$0xff] %v1616_v53  ;;  %v1622_v44 = vld [vmem:[%s2726_s26 + $0x138] sm:$0xff]  ;;  %1619 = vst [vmem:[%s2722_s30 + $0x148] sm:$0xff] %v1618_v6  ;;  %v1624_v36 = vld [vmem:[%s2726_s26 + $0x180] sm:$0xff] }
 0x22d   : >> { %1621 = vst [vmem:[%s2722_s30 + $0x150] sm:$0xff] %v1620_v47  ;;  %1623 = vst [vmem:[%s2722_s30 + $0x158] sm:$0xff] %v1622_v44  ;;  %v1626_v30 = vld [vmem:[%s2726_s26 + $0x188] sm:$0xff]  ;;  %v1628_v3 = vld [vmem:[%s2726_s26 + $0x190] sm:$0xff] }
 0x22e   : >> { %1625 = vst [vmem:[%s2722_s30 + $0x1b0] sm:$0xff] %v1624_v36  ;;  %1627 = vst [vmem:[%s2722_s30 + $0x1b8] sm:$0xff] %v1626_v30  ;;  %v1630_v39 = vld [vmem:[%s2726_s26 + $0x198] sm:$0xff]  ;;  %v1632_v13 = vld [vmem:[%s2726_s26 + $0x1a0] sm:$0xff] }
 0x22f   : >> { %1629 = vst [vmem:[%s2722_s30 + $0x1c0] sm:$0xff] %v1628_v3  ;;  %v1634_v19 = vld [vmem:[%s2726_s26 + $0x1a8] sm:$0xff]  ;;  %1631 = vst [vmem:[%s2722_s30 + $0x1c8] sm:$0xff] %v1630_v39  ;;  %v1636_v34 = vld [vmem:[%s2726_s26 + $0x1b0] sm:$0xff] }
 0x230   : >> { %1633 = vst [vmem:[%s2722_s30 + $0x1d0] sm:$0xff] %v1632_v13  ;;  %1635 = vst [vmem:[%s2722_s30 + $0x1d8] sm:$0xff] %v1634_v19  ;;  %v1638_v4 = vld [vmem:[%s2726_s26 + $0x1b8] sm:$0xff]  ;;  %v1640_v18 = vld [vmem:[%s2726_s26 + $0x200] sm:$0xff] }
 0x231   : >> { %1637 = vst [vmem:[%s2722_s30 + $0x1e0] sm:$0xff] %v1636_v34  ;;  %1639 = vst [vmem:[%s2722_s30 + $0x1e8] sm:$0xff] %v1638_v4  ;;  %v1642_v24 = vld [vmem:[%s2726_s26 + $0x208] sm:$0xff]  ;;  %v1644_v15 = vld [vmem:[%s2726_s26 + $0x210] sm:$0xff] }
 0x232   : >> { %1641 = vst [vmem:[%s2722_s30 + $0x240] sm:$0xff] %v1640_v18  ;;  %v1646_v25 = vld [vmem:[%s2726_s26 + $0x218] sm:$0xff]  ;;  %1643 = vst [vmem:[%s2722_s30 + $0x248] sm:$0xff] %v1642_v24  ;;  %v1648_v63 = vld [vmem:[%s2726_s26 + $0x220] sm:$0xff] }
 0x233   : >> { %1645 = vst [vmem:[%s2722_s30 + $0x250] sm:$0xff] %v1644_v15  ;;  %1647 = vst [vmem:[%s2722_s30 + $0x258] sm:$0xff] %v1646_v25  ;;  %v1650_v16 = vld [vmem:[%s2726_s26 + $0x228] sm:$0xff]  ;;  %v1652_v17 = vld [vmem:[%s2726_s26 + $0x230] sm:$0xff] }
 0x234   : >> { %1649 = vst [vmem:[%s2722_s30 + $0x260] sm:$0xff] %v1648_v63  ;;  %1651 = vst [vmem:[%s2722_s30 + $0x268] sm:$0xff] %v1650_v16  ;;  %v1654_v29 = vld [vmem:[%s2726_s26 + $0x238] sm:$0xff]  ;;  %v1656_v55 = vld [vmem:[%s2726_s26 + $0x280] sm:$0xff] }
 0x235   : >> { %1653 = vst [vmem:[%s2722_s30 + $0x270] sm:$0xff] %v1652_v17  ;;  %v1658_v9 = vld [vmem:[%s2726_s26 + $0x288] sm:$0xff]  ;;  %1655 = vst [vmem:[%s2722_s30 + $0x278] sm:$0xff] %v1654_v29  ;;  %v1660_v20 = vld [vmem:[%s2726_s26 + $0x290] sm:$0xff] }
 0x236   : >> { %1657 = vst [vmem:[%s2722_s30 + $0x2d0] sm:$0xff] %v1656_v55  ;;  %1659 = vst [vmem:[%s2722_s30 + $0x2d8] sm:$0xff] %v1658_v9  ;;  %v1662_v35 = vld [vmem:[%s2726_s26 + $0x298] sm:$0xff]  ;;  %v1664_v8 = vld [vmem:[%s2726_s26 + $0x2a0] sm:$0xff] }
 0x237   : >> { %1661 = vst [vmem:[%s2722_s30 + $0x2e0] sm:$0xff] %v1660_v20  ;;  %1663 = vst [vmem:[%s2722_s30 + $0x2e8] sm:$0xff] %v1662_v35  ;;  %v1666_v37 = vld [vmem:[%s2726_s26 + $0x2a8] sm:$0xff]  ;;  %v1668_v54 = vld [vmem:[%s2726_s26 + $0x2b0] sm:$0xff] }
 0x238   : >> { %1665 = vst [vmem:[%s2722_s30 + $0x2f0] sm:$0xff] %v1664_v8  ;;  %v1670_v31 = vld [vmem:[%s2726_s26 + $0x2b8] sm:$0xff]  ;;  %1667 = vst [vmem:[%s2722_s30 + $0x2f8] sm:$0xff] %v1666_v37  ;;  %v1672_v14 = vld [vmem:[%s2726_s26 + $0x300] sm:$0xff] }
 0x239   : >> { %1669 = vst [vmem:[%s2722_s30 + $0x300] sm:$0xff] %v1668_v54  ;;  %1671 = vst [vmem:[%s2722_s30 + $0x308] sm:$0xff] %v1670_v31  ;;  %v1674_v60 = vld [vmem:[%s2726_s26 + $0x308] sm:$0xff]  ;;  %v1676_v7 = vld [vmem:[%s2726_s26 + $0x310] sm:$0xff] }
 0x23a   : >> { %1673 = vst [vmem:[%s2722_s30 + $0x360] sm:$0xff] %v1672_v14  ;;  %1675 = vst [vmem:[%s2722_s30 + $0x368] sm:$0xff] %v1674_v60  ;;  %v1678_v61 = vld [vmem:[%s2726_s26 + $0x318] sm:$0xff]  ;;  %v1680_v62 = vld [vmem:[%s2726_s26 + $0x320] sm:$0xff] }
 0x23b   : >> { %1677 = vst [vmem:[%s2722_s30 + $0x370] sm:$0xff] %v1676_v7  ;;  %v1682_v5 = vld [vmem:[%s2726_s26 + $0x328] sm:$0xff]  ;;  %1679 = vst [vmem:[%s2722_s30 + $0x378] sm:$0xff] %v1678_v61  ;;  %v1684_v46 = vld [vmem:[%s2726_s26 + $0x330] sm:$0xff]  ;;  %1572 = sbr.rel (!%p1569_p3) target bundleno = 545 (0x221), region = 307 }
 0x23c   : >> { %1681 = vst [vmem:[%s2722_s30 + $0x380] sm:$0xff] %v1680_v62  ;;  %1683 = vst [vmem:[%s2722_s30 + $0x388] sm:$0xff] %v1682_v5  ;;  %v1686_v10 = vld [vmem:[%s2726_s26 + $0x338] sm:$0xff]  ;;  %v1688_v11 = vld [vmem:[%s2726_s26 + $0x380] sm:$0xff] }
 0x23d   : >> { %1685 = vst [vmem:[%s2722_s30 + $0x390] sm:$0xff] %v1684_v46  ;;  %1687 = vst [vmem:[%s2722_s30 + $0x398] sm:$0xff] %v1686_v10  ;;  %v1690_v21 = vld [vmem:[%s2726_s26 + $0x388] sm:$0xff]  ;;  %v1692_v22 = vld [vmem:[%s2726_s26 + $0x390] sm:$0xff] }
 0x23e   : >> { %1689 = vst [vmem:[%s2722_s30 + $0x3f0] sm:$0xff] %v1688_v11  ;;  %v1694_v27 = vld [vmem:[%s2726_s26 + $0x398] sm:$0xff]  ;;  %1691 = vst [vmem:[%s2722_s30 + $0x3f8] sm:$0xff] %v1690_v21  ;;  %v1696_v40 = vld [vmem:[%s2726_s26 + $0x3a0] sm:$0xff] }
 0x23f   : >> { %1693 = vst [vmem:[%s2722_s30 + $0x400] sm:$0xff] %v1692_v22  ;;  %1695 = vst [vmem:[%s2722_s30 + $0x408] sm:$0xff] %v1694_v27  ;;  %v1698_v41 = vld [vmem:[%s2726_s26 + $0x3a8] sm:$0xff]  ;;  %v1700_v42 = vld [vmem:[%s2726_s26 + $0x3b0] sm:$0xff] }
 0x240   : >> { %1697 = vst [vmem:[%s2722_s30 + $0x410] sm:$0xff] %v1696_v40  ;;  %1699 = vst [vmem:[%s2722_s30 + $0x418] sm:$0xff] %v1698_v41  ;;  %v1702_v43 = vld [vmem:[%s2726_s26 + $0x3b8] sm:$0xff]  ;;  %s4645_s26 = smov %s4312_s20 }
 0x241   : >> { %1701 = vst [vmem:[%s2722_s30 + $0x420] sm:$0xff] %v1700_v42  ;;  %1703 = vst [vmem:[%s2722_s30 + $0x428] sm:$0xff] %v1702_v43  ;;  %s4644_s30 = smov %s4315_s7 }
 0x242 PF: > { %s4421_s4 = sand.u32 7, %s1563_s22   ;;  %s2117_s29 = sshll.u32 %s4245_s5, 10 }
 0x243   : > { %s1715_s19 = sshra.s32 %s2117_s29, 4  ;;  %p2103_p4 = scmp.le.s32.totalorder %s4421_s4, 0 }
 0x244   : > { %s4425_s21 = scalar_lea.vmem %s3722_s12, %s1715_s19 [#allocation3]   ;;  %s4428_s15 = scalar_lea.vmem %s4007_s24, %s1715_s19  }
 0x245   : > { %1989 = sbr.rel (%p2103_p4) target bundleno = 598 (0x256), region = 312  ;;  %s4647_s23 = smov (!%p2103_p4), %s4428_s15 }
 0x246   : > { %s4648_s10 = smov (!%p2103_p4), %s4425_s21  ;;  %s4437_s30 = smov (!%p2103_p4), 0  }
 0x247   : > { %s4439_s26 = smov (!%p2103_p4), 0  }
 0x24c LB: >> { %v1731_v28 = vld [vmem:[%s2742_s10] sm:$0xff]  ;;  %s1747_s22 = sadd.s32 1, %s2746_s30  ;;  %s1725_s26 = sadd.s32 1, %s2750_s26   ;;  %s2750_s26 = sphi %s4439_s26, %s1725_s26   ;;  %s2746_s30 = sphi %s4437_s30, %s4649_s30   ;;  %s2742_s10 = sphi %s4648_s10, %s1752_s10   ;;  %s2738_s23 = sphi %s4647_s23, %s1753_s23  }
 0x24d   : >> { %v1733_v26 = vld [vmem:[%s2742_s10 + $0x80] sm:$0xff]  ;;  %1732 = vst [vmem:[%s2738_s23] sm:$0xff] %v1731_v28  ;;  %p1748_p5 = scmp.ge.s32.totalorder %s1747_s22, %s4421_s4  ;;  %p1724_p6 = scmp.ge.s32.totalorder %s1725_s26, %s4421_s4 }
 0x24e   : >> { %v1735_v23 = vld [vmem:[%s2742_s10 + $0x100] sm:$0xff]  ;;  %1734 = vst [vmem:[%s2738_s23 + $0x90] sm:$0xff] %v1733_v26 }
 0x24f   : >> { %1736 = vst [vmem:[%s2738_s23 + $0x120] sm:$0xff] %v1735_v23  ;;  %v1737_v12 = vld [vmem:[%s2742_s10 + $0x180] sm:$0xff]  ;;  %s4683_s22 = smov (%p1748_p5, %s1747_s22), 0  ;;  %1727 = sbr.rel (!%p1724_p6) target bundleno = 588 (0x24c), region = 318 }
 0x250   : >> { %v1739_v38 = vld [vmem:[%s2742_s10 + $0x200] sm:$0xff]  ;;  %1738 = vst [vmem:[%s2738_s23 + $0x1b0] sm:$0xff] %v1737_v12  ;;  %s2104_s5 = sshll.u32 %s4683_s22, 3  ;;  %s4649_s30 = smov %s4683_s22 }
 0x251   : >> { %v1741_v48 = vld [vmem:[%s2742_s10 + $0x280] sm:$0xff]  ;;  %1740 = vst [vmem:[%s2738_s23 + $0x240] sm:$0xff] %v1739_v38 }
 0x252   : >> { %1742 = vst [vmem:[%s2738_s23 + $0x2d0] sm:$0xff] %v1741_v48  ;;  %v1743_v49 = vld [vmem:[%s2742_s10 + $0x300] sm:$0xff] }
 0x253   : >> { %v1745_v50 = vld [vmem:[%s2742_s10 + $0x380] sm:$0xff]  ;;  %1744 = vst [vmem:[%s2738_s23 + $0x360] sm:$0xff] %v1743_v49  ;;  %s1752_s10 = scalar_lea.vmem %s4425_s21, %s2104_s5 [#allocation3]  }
 0x254   : >> { %1746 = vst [vmem:[%s2738_s23 + $0x3f0] sm:$0xff] %v1745_v50  ;;  %s1753_s23 = scalar_lea.vmem %s4428_s15, %s2104_s5  }
 0x256 PF: > { %s2755_s0 = smov 0  }
 0x257   : > { %s1754_s9 = sshllo.u32 %s2755_s0, %s4013_s14 }
 0x258   : > { %v1763_v51 = vld [vmem:[%s4238_s6] sm:%s1754_s9] }
 0x259   : > { %v1765_v52 = vld [vmem:[%s4238_s6 + $0x80] sm:%s1754_s9]  ;;  %1764 = vst [vmem:[%s4241_s25] sm:%s1754_s9] %v1763_v51 }
 0x25a   : > { %1766 = vst [vmem:[%s4241_s25 + $0x90] sm:%s1754_s9] %v1765_v52  ;;  %v1767_v56 = vld [vmem:[%s4238_s6 + $0x100] sm:%s1754_s9] }
 0x25b   : > { %v1769_v33 = vld [vmem:[%s4238_s6 + $0x180] sm:%s1754_s9]  ;;  %1768 = vst [vmem:[%s4241_s25 + $0x120] sm:%s1754_s9] %v1767_v56 }
 0x25c   : > { %1770 = vst [vmem:[%s4241_s25 + $0x1b0] sm:%s1754_s9] %v1769_v33  ;;  %v1771_v32 = vld [vmem:[%s4238_s6 + $0x200] sm:%s1754_s9] }
 0x25d   : > { %v1773_v57 = vld [vmem:[%s4238_s6 + $0x280] sm:%s1754_s9]  ;;  %1772 = vst [vmem:[%s4241_s25 + $0x240] sm:%s1754_s9] %v1771_v32 }
 0x25e   : > { %1774 = vst [vmem:[%s4241_s25 + $0x2d0] sm:%s1754_s9] %v1773_v57  ;;  %v1775_v58 = vld [vmem:[%s4238_s6 + $0x300] sm:%s1754_s9] }
 0x25f   : > { %v1777_v59 = vld [vmem:[%s4238_s6 + $0x380] sm:%s1754_s9]  ;;  %1776 = vst [vmem:[%s4241_s25 + $0x360] sm:%s1754_s9] %v1775_v58 }
 0x260   : > { %1778 = vst [vmem:[%s4241_s25 + $0x3f0] sm:%s1754_s9] %v1777_v59 }
 0x261 PF: > { %p2106_p7 = scmp.ge.u32.totalorder %s4009_s11, 8 }
 0x262   : > { %s2756_s14 = smov (!%p2106_p7), 0  }
 0x263   : > { %1333 = sbr.rel (%p2106_p7) target bundleno = 621 (0x26d), region = 114  ;;  %s1334_s6 = sshllo.u32 (!%p2106_p7), %s2756_s14, %s4009_s11 }
 0x264   : > { %v1343_v0 = vld [vmem:[%s3722_s12] sm:%s1334_s6] (!%p2106_p7) }
 0x265   : > { %v1345_v1 = vld [vmem:[%s3722_s12 + $0x80] sm:%s1334_s6] (!%p2106_p7)  ;;  %1344 = vst [vmem:[%s4007_s24] sm:%s1334_s6] (!%p2106_p7), %v1343_v0 }
 0x266   : > { %1346 = vst [vmem:[%s4007_s24 + $0x90] sm:%s1334_s6] (!%p2106_p7), %v1345_v1  ;;  %v1347_v45 = vld [vmem:[%s3722_s12 + $0x100] sm:%s1334_s6] (!%p2106_p7) }
 0x267   : > { %v1349_v2 = vld [vmem:[%s3722_s12 + $0x180] sm:%s1334_s6] (!%p2106_p7)  ;;  %1348 = vst [vmem:[%s4007_s24 + $0x120] sm:%s1334_s6] (!%p2106_p7), %v1347_v45 }
 0x268   : > { %1350 = vst [vmem:[%s4007_s24 + $0x1b0] sm:%s1334_s6] (!%p2106_p7), %v1349_v2  ;;  %v1351_v53 = vld [vmem:[%s3722_s12 + $0x200] sm:%s1334_s6] (!%p2106_p7) }
 0x269   : > { %v1353_v6 = vld [vmem:[%s3722_s12 + $0x280] sm:%s1334_s6] (!%p2106_p7)  ;;  %1352 = vst [vmem:[%s4007_s24 + $0x240] sm:%s1334_s6] (!%p2106_p7), %v1351_v53 }
 0x26a   : > { %1354 = vst [vmem:[%s4007_s24 + $0x2d0] sm:%s1334_s6] %v1353_v6  ;;  %v1355_v47 = vld [vmem:[%s3722_s12 + $0x300] sm:%s1334_s6] }
 0x26b   : > { %v1357_v44 = vld [vmem:[%s3722_s12 + $0x380] sm:%s1334_s6]  ;;  %1356 = vst [vmem:[%s4007_s24 + $0x360] sm:%s1334_s6] %v1355_v47 }
 0x26c   : > { %1358 = vst [vmem:[%s4007_s24 + $0x3f0] sm:%s1334_s6] %v1357_v44 }
 0x26d PF: > { %s13_s18 = sadd.s32 1, %s2622_s18   ;;  %s4650_s11 = sld [smem:[#allocation4_spill]] }
 0x26e   : > { %p10_p8 = scmp.ge.s32.totalorder %s13_s18, 6   ;;  %s4651_s25 = sld [smem:[#allocation5_spill]] }
 0x26f   : > { %s4652_s12 = smov %s2602_s13  ;;  %s4653_s13 = smov %s2833_s27 }
 0x270   : > { %s4654_s14 = smov %s2614_s16  ;;  %s4655_s15 = smov %s2618_s17 }
 0x271   :  { %12 = sbr.rel (!%p10_p8) target bundleno = 6 (0x6), region = 329 }
 0x273   : > { %s4656_s16 = smov %s4650_s11 }
 0x274   : > { %s4657_s17 = smov %s4651_s25 }

// kernel: cb2d_forward.2
= control target key start
LH: loop header
LB: loop body
LE: loop exit
PB: predicated region body
PF: predicated region fallthrough
CT: control target
= control target key end

     0   :  { %s6074_s0 = inlined_call_operand.vmem [shape: f32[2,64,2304], index: 0, kind: input, shape index: {}]   ;;  %s6075_s1 = inlined_call_operand.vmem [shape: f32[64,1], index: 1, kind: input, shape index: {}]   ;;  %s6076_s2 = inlined_call_operand.<no memory space> [shape: f32[1,1], index: 2, kind: input, shape index: {}]   ;;  %s6077_s3 = inlined_call_operand.vmem [shape: f32[64,16], index: 3, kind: input, shape index: {}]   ;;  %s6078_s4 = inlined_call_operand.vmem [shape: f32[1,16], index: 4, kind: input, shape index: {}]   ;;  %s6079_s5 = inlined_call_operand.vmem [shape: f32[1,16], index: 5, kind: input, shape index: {}]   ;;  %s6080_s6 = inlined_call_operand.vmem [shape: f32[1,16], index: 6, kind: input, shape index: {}]   ;;  %s6081_s7 = inlined_call_operand.vmem [shape: f32[64,16], index: 7, kind: input, shape index: {}]   ;;  %s6082_s8 = inlined_call_operand.vmem [shape: f32[64,1], index: 8, kind: input, shape index: {}]   ;;  %s6083_s9 = inlined_call_operand.vmem [shape: f32[64,16], index: 9, kind: input, shape index: {}]   ;;  %s6084_s10 = inlined_call_operand.vmem [shape: f32[1,16], index: 10, kind: input, shape index: {}]   ;;  %s6085_s11 = inlined_call_operand.vmem [shape: f32[1,16], index: 11, kind: input, shape index: {}]   ;;  %s6086_s12 = inlined_call_operand.vmem [shape: f32[1,16], index: 12, kind: input, shape index: {}]   ;;  %s6087_s13 = inlined_call_operand.vmem [shape: f32[64,16], index: 13, kind: input, shape index: {}]   ;;  %s6088_s14 = inlined_call_operand.vmem [shape: f32[64,1], index: 14, kind: input, shape index: {}]   ;;  %s6089_s15 = inlined_call_operand.vmem [shape: f32[2,64,1], index: 15, kind: output, shape index: {0}]   ;;  %s6090_s16 = inlined_call_operand.vmem [shape: f32[2,64,1], index: 16, kind: output, shape index: {1}]  }
   0x1   :  { %6153 = sst [smem:[#allocation121_spill]] %s6074_s0  ;;  %v22_v0 = vstv %s6076_s2 }
   0x2   :  { %6154 = sst [smem:[#allocation122_spill]] %s6080_s6  ;;  %23 = vst [vmem:[#allocation5] sm:$0x1] %v22_v0 }
   0x3   :  { %6155 = sst [smem:[#allocation123_spill]] %s6081_s7 }
   0x4   :  { %6156 = sst [smem:[#allocation124_spill]] %s6082_s8 }
   0x5   :  { %6157 = sst [smem:[#allocation125_spill]] %s6085_s11 }
   0x6   :  { %6158 = sst [smem:[#allocation126_spill]] %s6086_s12 }
   0x7   :  { %6159 = sst [smem:[#allocation127_spill]] %s6087_s13 }
   0x8   :  { %6160 = sst [smem:[#allocation128_spill]] %s6088_s14 }
   0x9   :  { %s3468_s23 = smov 0   ;;  %s3470_s24 = smov 0  }
   0xa   :  { %s3472_s25 = smov 0   ;;  %s3474_s26 = smov 0  }
   0xb   :  { %s3476_s27 = smov 0   ;;  %s3478_s28 = smov 0  }
   0xc   :  { %s3480_s29 = smov 0  }
   0xd LB: > { %6161 = sst [smem:[#allocation7_spill]] %s3288_s24  ;;  %s38_s2 = sadd.s32 1, %s3300_s27  ;;  %s3308_s29 = sphi %s3480_s29, %s29_s29   ;;  %s3304_s28 = sphi %s3478_s28, %s6576_s28   ;;  %s3300_s27 = sphi %s3476_s27, %s6575_s27   ;;  %s3296_s26 = sphi %s3474_s26, %s6574_s26   ;;  %s3292_s25 = sphi %s3472_s25, %s6573_s25   ;;  %s3288_s24 = sphi %s3470_s24, %s6572_s24   ;;  %s3284_s23 = sphi %s3468_s23, %s6571_s23  }
   0xe   : > { %6162 = sst [smem:[#allocation8_spill]] %s3300_s27  ;;  %p39_p0 = scmp.ge.s32.totalorder %s38_s2, 2 }
   0xf   : > { %6163 = sst [smem:[#allocation9_spill]] %s3304_s28  ;;  %s41_s30 = sadd.s32 1, %s3304_s28 }
  0x10   : > { %p57_p1 = scmp.ne.s32.totalorder %s3288_s24, %s3284_s23  ;;  %p58_p2 = scmp.eq.s32.totalorder %s3308_s29, 0 }
  0x11   : > { %s6578_s2 = smov (%p39_p0, %s38_s2), 0  ;;  %s6580_s30 = smov (!%p39_p0, %s41_s30), %s3304_s28 }
  0x12   : > { %6164 = sst [smem:[#allocation10_spill]] %s6578_s2  ;;  %p59_p3 = por %p58_p2, %p57_p1 }
  0x13   : > { %p43_p4 = scmp.ge.s32.totalorder %s6580_s30, 2  ;;  %s46_s0 = ssub.s32 %s3300_s27, %s6578_s2 }
  0x14   : > { %s50_s19 = sadd.s32 1, %s3288_s24  ;;  %p2771_p6 = scmp.ge.s32.totalorder %s3308_s29, 4 }
  0x15   : > { %s6582_s30 = smov (%p43_p4, %s6580_s30), 0 }
  0x16   : > { %6165 = sst [smem:[#allocation11_spill]] %s6582_s30  ;;  %s45_s17 = ssub.s32 %s3304_s28, %s6582_s30 }
  0x17   : > { %s47_s18 = sor.u32 %s46_s0, %s45_s17  ;;  %471 = sbr.rel (%p2771_p6) target bundleno = 210 (0xd2), region = 72 }
  0x18   : > { %p48_p5 = scmp.eq.s32.totalorder %s47_s18, 0 }
  0x1a   : > { %s3519_s20 = scalar_select %p48_p5, %s3288_s24, %s50_s19  }
  0x1c   : > { %6166 = sst [smem:[#allocation12_spill]] %s3519_s20 }
  0x1e   : > { %474 = sbr.rel (!%p59_p3) target bundleno = 210 (0xd2), region = 76  ;;  %s476_s21 = sand.u32 (%p59_p3), 1, %s3288_s24  }
  0x1f   : > { %s2773_s22 = sshll.u32 (%p59_p3), %s3300_s27, 4  ;;  %s2772_s14 = sshll.u32 (%p59_p3), %s476_s21, 10 }
  0x20   : > { %s480_s2 = ssub.s32 (%p59_p3), 18, %s2773_s22  ;;  %s2817_s8 = smul.u32 (%p59_p3), 144, %s3304_s28 }
  0x21   : > { %p481_p7 = scmp.lt.s32.totalorder (%p59_p3), %s480_s2, 16  ;;  %s6167_s20 = sld [smem:[#allocation121_spill]] (%p59_p3) }
  0x22   : > { %s486_s30 = sadd.s32 (%p59_p3), %s2817_s8, %s2773_s22  ;;  %s3532_s7 = scalar_lea.vmem (%p59_p3), [#allocation6], %s2772_s14  }
  0x23   : > { %s2776_s17 = sshll.u32 (%p59_p3), %s486_s30, 3 }
  0x25   : > { %s6584_s2 = smov (!%p481_p7, %s480_s2), 16 }
  0x26   : > { %s2774_s0 = sshll.u32 %s6584_s2, 10  ;;  %s3530_s12 = sshll.u32 %s6584_s2, 3 }
  0x27   : > { %s3528_s13 = scalar_lea.vmem %s6167_s20, %s2776_s17   ;;  %p2778_p8 = scmp.eq.s32.totalorder %s2774_s0, 0 }
  0x28   : > { %p493_p9 = scmp.lt.u32.totalorder (!%p2778_p8), %s3530_s12, 8 }
  0x29   : > { %492 = sbr.rel (%p2778_p8) target bundleno = 210 (0xd2), region = 80 }
  0x30   : > { %496 = sbr.rel (%p493_p9) target bundleno = 199 (0xc7), region = 84  ;;  %s3536_s21 = sand.u32 (!%p493_p9), 7, %s3530_s12  }
  0x31   : > { %p526_p10 = scmp.eq.s32.totalorder (!%p493_p9), %s3536_s21, 0  ;;  %p2779_p11 = scmp.ne.s32.totalorder (!%p493_p9), %s3536_s21, 0 }
  0x37   : > { %529 = sbr.rel (%p2779_p11) target bundleno = 122 (0x7a), region = 99  ;;  %s530_s8 = sshrl.u32 (!%p2779_p11), %s3530_s12, 3 }
  0x38   : > { %s3543_s2 = sshrl.u32 (!%p2779_p11), %s530_s8, 3 }
  0x39   : > { %p2780_p12 = scmp.le.s32.totalorder (!%p2779_p11), %s3543_s2, 0 }
  0x3e   : > { %2677 = sbr.rel (%p2780_p12) target bundleno = 102 (0x66), region = 213  ;;  %s6168_s14 = smov (!%p2780_p12), %s3532_s7 }
  0x3f   : > { %s6169_s30 = smov (!%p2780_p12), %s3528_s13  ;;  %s3552_s20 = smov (!%p2780_p12), 0  }
  0x40   : > { %s3554_s22 = smov (!%p2780_p12), 0  }
  0x45 LB: >> { %v543_v1 = vld [vmem:[%s3316_s30] sm:$0xff]  ;;  %v545_v2 = vld [vmem:[%s3316_s30 + $0x8] sm:$0xff]  ;;  %v547_v3 = vld [vmem:[%s3316_s30 + $0x10] sm:$0xff]  ;;  %s671_s0 = sadd.s32 1, %s3320_s20  ;;  %s537_s22 = sadd.s32 1, %s3324_s22   ;;  %s3324_s22 = sphi %s3554_s22, %s537_s22   ;;  %s3320_s20 = sphi %s3552_s20, %s6172_s20   ;;  %s3316_s30 = sphi %s6169_s30, %s6171_s30   ;;  %s3312_s14 = sphi %s6168_s14, %s6170_s14  }
  0x46   : >> { %544 = vst [vmem:[%s3312_s14] sm:$0xff] %v543_v1  ;;  %546 = vst [vmem:[%s3312_s14 + $0x8] sm:$0xff] %v545_v2  ;;  %v549_v4 = vld [vmem:[%s3316_s30 + $0x18] sm:$0xff]  ;;  %v551_v5 = vld [vmem:[%s3316_s30 + $0x20] sm:$0xff]  ;;  %p672_p13 = scmp.ge.s32.totalorder %s671_s0, %s3543_s2  ;;  %p536_p0 = scmp.ge.s32.totalorder %s537_s22, %s3543_s2 }
  0x47   : >> { %548 = vst [vmem:[%s3312_s14 + $0x10] sm:$0xff] %v547_v3  ;;  %v553_v6 = vld [vmem:[%s3316_s30 + $0x28] sm:$0xff]  ;;  %550 = vst [vmem:[%s3312_s14 + $0x18] sm:$0xff] %v549_v4  ;;  %v555_v7 = vld [vmem:[%s3316_s30 + $0x30] sm:$0xff] }
  0x48   : >> { %552 = vst [vmem:[%s3312_s14 + $0x20] sm:$0xff] %v551_v5  ;;  %554 = vst [vmem:[%s3312_s14 + $0x28] sm:$0xff] %v553_v6  ;;  %v557_v8 = vld [vmem:[%s3316_s30 + $0x38] sm:$0xff]  ;;  %v559_v9 = vld [vmem:[%s3316_s30 + $0x90] sm:$0xff]  ;;  %s6586_s0 = smov (%p672_p13, %s671_s0), 0 }
  0x49   : >> { %556 = vst [vmem:[%s3312_s14 + $0x30] sm:$0xff] %v555_v7  ;;  %558 = vst [vmem:[%s3312_s14 + $0x38] sm:$0xff] %v557_v8  ;;  %v561_v10 = vld [vmem:[%s3316_s30 + $0x98] sm:$0xff]  ;;  %v563_v11 = vld [vmem:[%s3316_s30 + $0xa0] sm:$0xff]  ;;  %s2781_s17 = sshll.u32 %s6586_s0, 6  ;;  %s6172_s20 = smov %s6586_s0 }
  0x4a   : >> { %560 = vst [vmem:[%s3312_s14 + $0x80] sm:$0xff] %v559_v9  ;;  %v565_v12 = vld [vmem:[%s3316_s30 + $0xa8] sm:$0xff]  ;;  %562 = vst [vmem:[%s3312_s14 + $0x88] sm:$0xff] %v561_v10  ;;  %v567_v13 = vld [vmem:[%s3316_s30 + $0xb0] sm:$0xff]  ;;  %s3610_s18 = scalar_lea.vmem %s3528_s13, %s2781_s17   ;;  %s3613_s19 = scalar_lea.vmem %s3532_s7, %s2781_s17 [#allocation6]  }
  0x4b   : >> { %564 = vst [vmem:[%s3312_s14 + $0x90] sm:$0xff] %v563_v11  ;;  %566 = vst [vmem:[%s3312_s14 + $0x98] sm:$0xff] %v565_v12  ;;  %v569_v14 = vld [vmem:[%s3316_s30 + $0xb8] sm:$0xff]  ;;  %v571_v15 = vld [vmem:[%s3316_s30 + $0xc0] sm:$0xff] }
  0x4c   : >> { %568 = vst [vmem:[%s3312_s14 + $0xa0] sm:$0xff] %v567_v13  ;;  %570 = vst [vmem:[%s3312_s14 + $0xa8] sm:$0xff] %v569_v14  ;;  %v573_v16 = vld [vmem:[%s3316_s30 + $0xc8] sm:$0xff]  ;;  %v575_v17 = vld [vmem:[%s3316_s30 + $0x120] sm:$0xff] }
  0x4d   : >> { %572 = vst [vmem:[%s3312_s14 + $0xb0] sm:$0xff] %v571_v15  ;;  %v577_v18 = vld [vmem:[%s3316_s30 + $0x128] sm:$0xff]  ;;  %574 = vst [vmem:[%s3312_s14 + $0xb8] sm:$0xff] %v573_v16  ;;  %v579_v19 = vld [vmem:[%s3316_s30 + $0x130] sm:$0xff] }
  0x4e   : >> { %576 = vst [vmem:[%s3312_s14 + $0x100] sm:$0xff] %v575_v17  ;;  %578 = vst [vmem:[%s3312_s14 + $0x108] sm:$0xff] %v577_v18  ;;  %v581_v20 = vld [vmem:[%s3316_s30 + $0x138] sm:$0xff]  ;;  %v583_v21 = vld [vmem:[%s3316_s30 + $0x140] sm:$0xff] }
  0x4f   : >> { %580 = vst [vmem:[%s3312_s14 + $0x110] sm:$0xff] %v579_v19  ;;  %582 = vst [vmem:[%s3312_s14 + $0x118] sm:$0xff] %v581_v20  ;;  %v585_v22 = vld [vmem:[%s3316_s30 + $0x148] sm:$0xff]  ;;  %v587_v23 = vld [vmem:[%s3316_s30 + $0x150] sm:$0xff] }
  0x50   : >> { %584 = vst [vmem:[%s3312_s14 + $0x120] sm:$0xff] %v583_v21  ;;  %v589_v24 = vld [vmem:[%s3316_s30 + $0x158] sm:$0xff]  ;;  %586 = vst [vmem:[%s3312_s14 + $0x128] sm:$0xff] %v585_v22  ;;  %v591_v25 = vld [vmem:[%s3316_s30 + $0x1b0] sm:$0xff] }
  0x51   : >> { %588 = vst [vmem:[%s3312_s14 + $0x130] sm:$0xff] %v587_v23  ;;  %590 = vst [vmem:[%s3312_s14 + $0x138] sm:$0xff] %v589_v24  ;;  %v593_v26 = vld [vmem:[%s3316_s30 + $0x1b8] sm:$0xff]  ;;  %v595_v27 = vld [vmem:[%s3316_s30 + $0x1c0] sm:$0xff] }
  0x52   : >> { %592 = vst [vmem:[%s3312_s14 + $0x180] sm:$0xff] %v591_v25  ;;  %594 = vst [vmem:[%s3312_s14 + $0x188] sm:$0xff] %v593_v26  ;;  %v597_v28 = vld [vmem:[%s3316_s30 + $0x1c8] sm:$0xff]  ;;  %v599_v29 = vld [vmem:[%s3316_s30 + $0x1d0] sm:$0xff] }
  0x53   : >> { %596 = vst [vmem:[%s3312_s14 + $0x190] sm:$0xff] %v595_v27  ;;  %v601_v30 = vld [vmem:[%s3316_s30 + $0x1d8] sm:$0xff]  ;;  %598 = vst [vmem:[%s3312_s14 + $0x198] sm:$0xff] %v597_v28  ;;  %v603_v31 = vld [vmem:[%s3316_s30 + $0x1e0] sm:$0xff] }
  0x54   : >> { %600 = vst [vmem:[%s3312_s14 + $0x1a0] sm:$0xff] %v599_v29  ;;  %602 = vst [vmem:[%s3312_s14 + $0x1a8] sm:$0xff] %v601_v30  ;;  %v605_v32 = vld [vmem:[%s3316_s30 + $0x1e8] sm:$0xff]  ;;  %v607_v33 = vld [vmem:[%s3316_s30 + $0x240] sm:$0xff] }
  0x55   : >> { %604 = vst [vmem:[%s3312_s14 + $0x1b0] sm:$0xff] %v603_v31  ;;  %606 = vst [vmem:[%s3312_s14 + $0x1b8] sm:$0xff] %v605_v32  ;;  %v609_v34 = vld [vmem:[%s3316_s30 + $0x248] sm:$0xff]  ;;  %v611_v35 = vld [vmem:[%s3316_s30 + $0x250] sm:$0xff] }
  0x56   : >> { %608 = vst [vmem:[%s3312_s14 + $0x200] sm:$0xff] %v607_v33  ;;  %v613_v36 = vld [vmem:[%s3316_s30 + $0x258] sm:$0xff]  ;;  %610 = vst [vmem:[%s3312_s14 + $0x208] sm:$0xff] %v609_v34  ;;  %v615_v37 = vld [vmem:[%s3316_s30 + $0x260] sm:$0xff] }
  0x57   : >> { %612 = vst [vmem:[%s3312_s14 + $0x210] sm:$0xff] %v611_v35  ;;  %614 = vst [vmem:[%s3312_s14 + $0x218] sm:$0xff] %v613_v36  ;;  %v617_v38 = vld [vmem:[%s3316_s30 + $0x268] sm:$0xff]  ;;  %v619_v39 = vld [vmem:[%s3316_s30 + $0x270] sm:$0xff] }
  0x58   : >> { %616 = vst [vmem:[%s3312_s14 + $0x220] sm:$0xff] %v615_v37  ;;  %618 = vst [vmem:[%s3312_s14 + $0x228] sm:$0xff] %v617_v38  ;;  %v621_v40 = vld [vmem:[%s3316_s30 + $0x278] sm:$0xff]  ;;  %v623_v41 = vld [vmem:[%s3316_s30 + $0x2d0] sm:$0xff] }
  0x59   : >> { %620 = vst [vmem:[%s3312_s14 + $0x230] sm:$0xff] %v619_v39  ;;  %v625_v42 = vld [vmem:[%s3316_s30 + $0x2d8] sm:$0xff]  ;;  %622 = vst [vmem:[%s3312_s14 + $0x238] sm:$0xff] %v621_v40  ;;  %v627_v43 = vld [vmem:[%s3316_s30 + $0x2e0] sm:$0xff] }
  0x5a   : >> { %624 = vst [vmem:[%s3312_s14 + $0x280] sm:$0xff] %v623_v41  ;;  %626 = vst [vmem:[%s3312_s14 + $0x288] sm:$0xff] %v625_v42  ;;  %v629_v44 = vld [vmem:[%s3316_s30 + $0x2e8] sm:$0xff]  ;;  %v631_v45 = vld [vmem:[%s3316_s30 + $0x2f0] sm:$0xff] }
  0x5b   : >> { %628 = vst [vmem:[%s3312_s14 + $0x290] sm:$0xff] %v627_v43  ;;  %630 = vst [vmem:[%s3312_s14 + $0x298] sm:$0xff] %v629_v44  ;;  %v633_v46 = vld [vmem:[%s3316_s30 + $0x2f8] sm:$0xff]  ;;  %v635_v47 = vld [vmem:[%s3316_s30 + $0x300] sm:$0xff] }
  0x5c   : >> { %632 = vst [vmem:[%s3312_s14 + $0x2a0] sm:$0xff] %v631_v45  ;;  %v637_v48 = vld [vmem:[%s3316_s30 + $0x308] sm:$0xff]  ;;  %634 = vst [vmem:[%s3312_s14 + $0x2a8] sm:$0xff] %v633_v46  ;;  %v639_v49 = vld [vmem:[%s3316_s30 + $0x360] sm:$0xff] }
  0x5d   : >> { %636 = vst [vmem:[%s3312_s14 + $0x2b0] sm:$0xff] %v635_v47  ;;  %638 = vst [vmem:[%s3312_s14 + $0x2b8] sm:$0xff] %v637_v48  ;;  %v641_v50 = vld [vmem:[%s3316_s30 + $0x368] sm:$0xff]  ;;  %v643_v51 = vld [vmem:[%s3316_s30 + $0x370] sm:$0xff] }
  0x5e   : >> { %640 = vst [vmem:[%s3312_s14 + $0x300] sm:$0xff] %v639_v49  ;;  %642 = vst [vmem:[%s3312_s14 + $0x308] sm:$0xff] %v641_v50  ;;  %v645_v52 = vld [vmem:[%s3316_s30 + $0x378] sm:$0xff]  ;;  %v647_v53 = vld [vmem:[%s3316_s30 + $0x380] sm:$0xff] }
  0x5f   : >> { %644 = vst [vmem:[%s3312_s14 + $0x310] sm:$0xff] %v643_v51  ;;  %v649_v54 = vld [vmem:[%s3316_s30 + $0x388] sm:$0xff]  ;;  %646 = vst [vmem:[%s3312_s14 + $0x318] sm:$0xff] %v645_v52  ;;  %v651_v55 = vld [vmem:[%s3316_s30 + $0x390] sm:$0xff]  ;;  %539 = sbr.rel (!%p536_p0) target bundleno = 69 (0x45), region = 219 }
  0x60   : >> { %648 = vst [vmem:[%s3312_s14 + $0x320] sm:$0xff] %v647_v53  ;;  %650 = vst [vmem:[%s3312_s14 + $0x328] sm:$0xff] %v649_v54  ;;  %v653_v56 = vld [vmem:[%s3316_s30 + $0x398] sm:$0xff]  ;;  %v655_v57 = vld [vmem:[%s3316_s30 + $0x3f0] sm:$0xff] }
  0x61   : >> { %652 = vst [vmem:[%s3312_s14 + $0x330] sm:$0xff] %v651_v55  ;;  %654 = vst [vmem:[%s3312_s14 + $0x338] sm:$0xff] %v653_v56  ;;  %v657_v58 = vld [vmem:[%s3316_s30 + $0x3f8] sm:$0xff]  ;;  %v659_v59 = vld [vmem:[%s3316_s30 + $0x400] sm:$0xff] }
  0x62   : >> { %656 = vst [vmem:[%s3312_s14 + $0x380] sm:$0xff] %v655_v57  ;;  %v661_v60 = vld [vmem:[%s3316_s30 + $0x408] sm:$0xff]  ;;  %658 = vst [vmem:[%s3312_s14 + $0x388] sm:$0xff] %v657_v58  ;;  %v663_v61 = vld [vmem:[%s3316_s30 + $0x410] sm:$0xff] }
  0x63   : >> { %660 = vst [vmem:[%s3312_s14 + $0x390] sm:$0xff] %v659_v59  ;;  %662 = vst [vmem:[%s3312_s14 + $0x398] sm:$0xff] %v661_v60  ;;  %v665_v62 = vld [vmem:[%s3316_s30 + $0x418] sm:$0xff]  ;;  %v667_v63 = vld [vmem:[%s3316_s30 + $0x420] sm:$0xff] }
  0x64   : >> { %664 = vst [vmem:[%s3312_s14 + $0x3a0] sm:$0xff] %v663_v61  ;;  %666 = vst [vmem:[%s3312_s14 + $0x3a8] sm:$0xff] %v665_v62  ;;  %v669_v0 = vld [vmem:[%s3316_s30 + $0x428] sm:$0xff]  ;;  %s6171_s30 = smov %s3610_s18 }
  0x65   : >> { %668 = vst [vmem:[%s3312_s14 + $0x3b0] sm:$0xff] %v667_v63  ;;  %670 = vst [vmem:[%s3312_s14 + $0x3b8] sm:$0xff] %v669_v0  ;;  %s6170_s14 = smov %s3613_s19 }
  0x66 PF: > { %s3719_s17 = sand.u32 7, %s530_s8   ;;  %s2811_s28 = sshll.u32 %s3543_s2, 10 }
  0x67   : > { %s682_s27 = sshra.s32 %s2811_s28, 4  ;;  %p2786_p1 = scmp.le.s32.totalorder %s3719_s17, 0 }
  0x68   : > { %s3723_s24 = scalar_lea.vmem %s3528_s13, %s682_s27   ;;  %s3726_s19 = scalar_lea.vmem %s3532_s7, %s682_s27 [#allocation6]  }
  0x69   : > { %2691 = sbr.rel (%p2786_p1) target bundleno = 122 (0x7a), region = 224  ;;  %s6173_s14 = smov (!%p2786_p1), %s3726_s19 }
  0x6a   : > { %s6174_s30 = smov (!%p2786_p1), %s3723_s24  ;;  %s3735_s20 = smov (!%p2786_p1), 0  }
  0x6b   : > { %s3737_s22 = smov (!%p2786_p1), 0  }
  0x70 LB: >> { %v698_v1 = vld [vmem:[%s3332_s30] sm:$0xff]  ;;  %v700_v2 = vld [vmem:[%s3332_s30 + $0x90] sm:$0xff]  ;;  %s714_s27 = sadd.s32 1, %s3336_s20  ;;  %s692_s22 = sadd.s32 1, %s3340_s22   ;;  %s3340_s22 = sphi %s3737_s22, %s692_s22   ;;  %s3336_s20 = sphi %s3735_s20, %s6175_s20   ;;  %s3332_s30 = sphi %s6174_s30, %s719_s30   ;;  %s3328_s14 = sphi %s6173_s14, %s720_s14  }
  0x71   : >> { %v702_v3 = vld [vmem:[%s3332_s30 + $0x120] sm:$0xff]  ;;  %699 = vst [vmem:[%s3328_s14] sm:$0xff] %v698_v1  ;;  %701 = vst [vmem:[%s3328_s14 + $0x80] sm:$0xff] %v700_v2  ;;  %v704_v4 = vld [vmem:[%s3332_s30 + $0x1b0] sm:$0xff]  ;;  %p715_p2 = scmp.ge.s32.totalorder %s714_s27, %s3719_s17  ;;  %p691_p3 = scmp.ge.s32.totalorder %s692_s22, %s3719_s17 }
  0x72   : >> { %703 = vst [vmem:[%s3328_s14 + $0x100] sm:$0xff] %v702_v3  ;;  %v706_v5 = vld [vmem:[%s3332_s30 + $0x240] sm:$0xff]  ;;  %v708_v6 = vld [vmem:[%s3332_s30 + $0x2d0] sm:$0xff]  ;;  %705 = vst [vmem:[%s3328_s14 + $0x180] sm:$0xff] %v704_v4 }
  0x73   : >> { %707 = vst [vmem:[%s3328_s14 + $0x200] sm:$0xff] %v706_v5  ;;  %709 = vst [vmem:[%s3328_s14 + $0x280] sm:$0xff] %v708_v6  ;;  %v710_v7 = vld [vmem:[%s3332_s30 + $0x360] sm:$0xff]  ;;  %v712_v8 = vld [vmem:[%s3332_s30 + $0x3f0] sm:$0xff]  ;;  %s6588_s27 = smov (%p715_p2, %s714_s27), 0  ;;  %694 = sbr.rel (!%p691_p3) target bundleno = 112 (0x70), region = 230 }
  0x74   : >> { %711 = vst [vmem:[%s3328_s14 + $0x300] sm:$0xff] %v710_v7  ;;  %713 = vst [vmem:[%s3328_s14 + $0x380] sm:$0xff] %v712_v8  ;;  %s2787_s28 = sshll.u32 %s6588_s27, 3  ;;  %s6175_s20 = smov %s6588_s27 }
  0x75   : >> { %s719_s30 = scalar_lea.vmem %s3723_s24, %s2787_s28   ;;  %s720_s14 = scalar_lea.vmem %s3726_s19, %s2787_s28 [#allocation6]  }
  0x7a PF: > { %723 = sbr.rel (%p526_p10) target bundleno = 199 (0xc7), region = 117  ;;  %s725_s8 = ssub.s32 (!%p526_p10), %s3530_s12, %s3536_s21 }
  0x7b   : > { %s729_s2 = sshrl.u32 (!%p526_p10), %s3530_s12, 3  ;;  %s3761_s0 = scalar_lea.vmem (!%p526_p10), %s3528_s13, %s725_s8 }
  0x7c   : > { %s3764_s18 = scalar_lea.vmem (!%p526_p10), %s3532_s7, %s725_s8 [#allocation6]  ;;  %s3768_s22 = sshrl.u32 (!%p526_p10), %s729_s2, 3 }
  0x7d   : > { %p2789_p4 = scmp.le.s32.totalorder (!%p526_p10), %s3768_s22, 0 }
  0x81   : > { %2705 = sbr.rel (%p2789_p4) target bundleno = 169 (0xa9), region = 235  ;;  %s6176_s24 = smov (!%p2789_p4), %s3532_s7 }
  0x82   : > { %s6177_s17 = smov (!%p2789_p4), %s3528_s13  ;;  %s3777_s19 = smov (!%p2789_p4), 0  }
  0x83   : > { %s3779_s14 = smov (!%p2789_p4), 0  }
  0x88 LB: >> { %v742_v9 = vld [vmem:[%s3348_s17] sm:$0xff]  ;;  %v744_v10 = vld [vmem:[%s3348_s17 + $0x8] sm:$0xff]  ;;  %v746_v11 = vld [vmem:[%s3348_s17 + $0x10] sm:$0xff]  ;;  %s870_s30 = sadd.s32 1, %s3352_s19  ;;  %s736_s14 = sadd.s32 1, %s3356_s14   ;;  %s3356_s14 = sphi %s3779_s14, %s736_s14   ;;  %s3352_s19 = sphi %s3777_s19, %s6180_s19   ;;  %s3348_s17 = sphi %s6177_s17, %s6179_s17   ;;  %s3344_s24 = sphi %s6176_s24, %s6178_s24  }
  0x89   : >> { %743 = vst [vmem:[%s3344_s24] sm:$0xff] %v742_v9  ;;  %745 = vst [vmem:[%s3344_s24 + $0x8] sm:$0xff] %v744_v10  ;;  %v748_v12 = vld [vmem:[%s3348_s17 + $0x18] sm:$0xff]  ;;  %v750_v13 = vld [vmem:[%s3348_s17 + $0x20] sm:$0xff]  ;;  %p871_p5 = scmp.ge.s32.totalorder %s870_s30, %s3768_s22  ;;  %p735_p6 = scmp.ge.s32.totalorder %s736_s14, %s3768_s22 }
  0x8a   : >> { %747 = vst [vmem:[%s3344_s24 + $0x10] sm:$0xff] %v746_v11  ;;  %v752_v14 = vld [vmem:[%s3348_s17 + $0x28] sm:$0xff]  ;;  %749 = vst [vmem:[%s3344_s24 + $0x18] sm:$0xff] %v748_v12  ;;  %v754_v15 = vld [vmem:[%s3348_s17 + $0x30] sm:$0xff] }
  0x8b   : >> { %751 = vst [vmem:[%s3344_s24 + $0x20] sm:$0xff] %v750_v13  ;;  %753 = vst [vmem:[%s3344_s24 + $0x28] sm:$0xff] %v752_v14  ;;  %v756_v16 = vld [vmem:[%s3348_s17 + $0x38] sm:$0xff]  ;;  %v758_v17 = vld [vmem:[%s3348_s17 + $0x90] sm:$0xff]  ;;  %s6590_s30 = smov (%p871_p5, %s870_s30), 0 }
  0x8c   : >> { %755 = vst [vmem:[%s3344_s24 + $0x30] sm:$0xff] %v754_v15  ;;  %757 = vst [vmem:[%s3344_s24 + $0x38] sm:$0xff] %v756_v16  ;;  %v760_v18 = vld [vmem:[%s3348_s17 + $0x98] sm:$0xff]  ;;  %v762_v19 = vld [vmem:[%s3348_s17 + $0xa0] sm:$0xff]  ;;  %s2790_s20 = sshll.u32 %s6590_s30, 6  ;;  %s6180_s19 = smov %s6590_s30 }
  0x8d   : >> { %759 = vst [vmem:[%s3344_s24 + $0x80] sm:$0xff] %v758_v17  ;;  %v764_v20 = vld [vmem:[%s3348_s17 + $0xa8] sm:$0xff]  ;;  %761 = vst [vmem:[%s3344_s24 + $0x88] sm:$0xff] %v760_v18  ;;  %v766_v21 = vld [vmem:[%s3348_s17 + $0xb0] sm:$0xff]  ;;  %s3835_s27 = scalar_lea.vmem %s3528_s13, %s2790_s20   ;;  %s3838_s28 = scalar_lea.vmem %s3532_s7, %s2790_s20 [#allocation6]  }
  0x8e   : >> { %763 = vst [vmem:[%s3344_s24 + $0x90] sm:$0xff] %v762_v19  ;;  %765 = vst [vmem:[%s3344_s24 + $0x98] sm:$0xff] %v764_v20  ;;  %v768_v22 = vld [vmem:[%s3348_s17 + $0xb8] sm:$0xff]  ;;  %v770_v23 = vld [vmem:[%s3348_s17 + $0xc0] sm:$0xff] }
  0x8f   : >> { %767 = vst [vmem:[%s3344_s24 + $0xa0] sm:$0xff] %v766_v21  ;;  %769 = vst [vmem:[%s3344_s24 + $0xa8] sm:$0xff] %v768_v22  ;;  %v772_v24 = vld [vmem:[%s3348_s17 + $0xc8] sm:$0xff]  ;;  %v774_v25 = vld [vmem:[%s3348_s17 + $0x120] sm:$0xff] }
  0x90   : >> { %771 = vst [vmem:[%s3344_s24 + $0xb0] sm:$0xff] %v770_v23  ;;  %v776_v26 = vld [vmem:[%s3348_s17 + $0x128] sm:$0xff]  ;;  %773 = vst [vmem:[%s3344_s24 + $0xb8] sm:$0xff] %v772_v24  ;;  %v778_v27 = vld [vmem:[%s3348_s17 + $0x130] sm:$0xff] }
  0x91   : >> { %775 = vst [vmem:[%s3344_s24 + $0x100] sm:$0xff] %v774_v25  ;;  %777 = vst [vmem:[%s3344_s24 + $0x108] sm:$0xff] %v776_v26  ;;  %v780_v28 = vld [vmem:[%s3348_s17 + $0x138] sm:$0xff]  ;;  %v782_v29 = vld [vmem:[%s3348_s17 + $0x140] sm:$0xff] }
  0x92   : >> { %779 = vst [vmem:[%s3344_s24 + $0x110] sm:$0xff] %v778_v27  ;;  %781 = vst [vmem:[%s3344_s24 + $0x118] sm:$0xff] %v780_v28  ;;  %v784_v30 = vld [vmem:[%s3348_s17 + $0x148] sm:$0xff]  ;;  %v786_v31 = vld [vmem:[%s3348_s17 + $0x150] sm:$0xff] }
  0x93   : >> { %783 = vst [vmem:[%s3344_s24 + $0x120] sm:$0xff] %v782_v29  ;;  %v788_v32 = vld [vmem:[%s3348_s17 + $0x158] sm:$0xff]  ;;  %785 = vst [vmem:[%s3344_s24 + $0x128] sm:$0xff] %v784_v30  ;;  %v790_v33 = vld [vmem:[%s3348_s17 + $0x1b0] sm:$0xff] }
  0x94   : >> { %787 = vst [vmem:[%s3344_s24 + $0x130] sm:$0xff] %v786_v31  ;;  %789 = vst [vmem:[%s3344_s24 + $0x138] sm:$0xff] %v788_v32  ;;  %v792_v34 = vld [vmem:[%s3348_s17 + $0x1b8] sm:$0xff]  ;;  %v794_v35 = vld [vmem:[%s3348_s17 + $0x1c0] sm:$0xff] }
  0x95   : >> { %791 = vst [vmem:[%s3344_s24 + $0x180] sm:$0xff] %v790_v33  ;;  %793 = vst [vmem:[%s3344_s24 + $0x188] sm:$0xff] %v792_v34  ;;  %v796_v36 = vld [vmem:[%s3348_s17 + $0x1c8] sm:$0xff]  ;;  %v798_v37 = vld [vmem:[%s3348_s17 + $0x1d0] sm:$0xff] }
  0x96   : >> { %795 = vst [vmem:[%s3344_s24 + $0x190] sm:$0xff] %v794_v35  ;;  %v800_v38 = vld [vmem:[%s3348_s17 + $0x1d8] sm:$0xff]  ;;  %797 = vst [vmem:[%s3344_s24 + $0x198] sm:$0xff] %v796_v36  ;;  %v802_v39 = vld [vmem:[%s3348_s17 + $0x1e0] sm:$0xff] }
  0x97   : >> { %799 = vst [vmem:[%s3344_s24 + $0x1a0] sm:$0xff] %v798_v37  ;;  %801 = vst [vmem:[%s3344_s24 + $0x1a8] sm:$0xff] %v800_v38  ;;  %v804_v40 = vld [vmem:[%s3348_s17 + $0x1e8] sm:$0xff]  ;;  %v806_v41 = vld [vmem:[%s3348_s17 + $0x240] sm:$0xff] }
  0x98   : >> { %803 = vst [vmem:[%s3344_s24 + $0x1b0] sm:$0xff] %v802_v39  ;;  %805 = vst [vmem:[%s3344_s24 + $0x1b8] sm:$0xff] %v804_v40  ;;  %v808_v42 = vld [vmem:[%s3348_s17 + $0x248] sm:$0xff]  ;;  %v810_v43 = vld [vmem:[%s3348_s17 + $0x250] sm:$0xff] }
  0x99   : >> { %807 = vst [vmem:[%s3344_s24 + $0x200] sm:$0xff] %v806_v41  ;;  %v812_v44 = vld [vmem:[%s3348_s17 + $0x258] sm:$0xff]  ;;  %809 = vst [vmem:[%s3344_s24 + $0x208] sm:$0xff] %v808_v42  ;;  %v814_v45 = vld [vmem:[%s3348_s17 + $0x260] sm:$0xff] }
  0x9a   : >> { %811 = vst [vmem:[%s3344_s24 + $0x210] sm:$0xff] %v810_v43  ;;  %813 = vst [vmem:[%s3344_s24 + $0x218] sm:$0xff] %v812_v44  ;;  %v816_v46 = vld [vmem:[%s3348_s17 + $0x268] sm:$0xff]  ;;  %v818_v47 = vld [vmem:[%s3348_s17 + $0x270] sm:$0xff] }
  0x9b   : >> { %815 = vst [vmem:[%s3344_s24 + $0x220] sm:$0xff] %v814_v45  ;;  %817 = vst [vmem:[%s3344_s24 + $0x228] sm:$0xff] %v816_v46  ;;  %v820_v48 = vld [vmem:[%s3348_s17 + $0x278] sm:$0xff]  ;;  %v822_v49 = vld [vmem:[%s3348_s17 + $0x2d0] sm:$0xff] }
  0x9c   : >> { %819 = vst [vmem:[%s3344_s24 + $0x230] sm:$0xff] %v818_v47  ;;  %v824_v50 = vld [vmem:[%s3348_s17 + $0x2d8] sm:$0xff]  ;;  %821 = vst [vmem:[%s3344_s24 + $0x238] sm:$0xff] %v820_v48  ;;  %v826_v51 = vld [vmem:[%s3348_s17 + $0x2e0] sm:$0xff] }
  0x9d   : >> { %823 = vst [vmem:[%s3344_s24 + $0x280] sm:$0xff] %v822_v49  ;;  %825 = vst [vmem:[%s3344_s24 + $0x288] sm:$0xff] %v824_v50  ;;  %v828_v52 = vld [vmem:[%s3348_s17 + $0x2e8] sm:$0xff]  ;;  %v830_v53 = vld [vmem:[%s3348_s17 + $0x2f0] sm:$0xff] }
  0x9e   : >> { %827 = vst [vmem:[%s3344_s24 + $0x290] sm:$0xff] %v826_v51  ;;  %829 = vst [vmem:[%s3344_s24 + $0x298] sm:$0xff] %v828_v52  ;;  %v832_v54 = vld [vmem:[%s3348_s17 + $0x2f8] sm:$0xff]  ;;  %v834_v55 = vld [vmem:[%s3348_s17 + $0x300] sm:$0xff] }
  0x9f   : >> { %831 = vst [vmem:[%s3344_s24 + $0x2a0] sm:$0xff] %v830_v53  ;;  %v836_v56 = vld [vmem:[%s3348_s17 + $0x308] sm:$0xff]  ;;  %833 = vst [vmem:[%s3344_s24 + $0x2a8] sm:$0xff] %v832_v54  ;;  %v838_v57 = vld [vmem:[%s3348_s17 + $0x360] sm:$0xff] }
  0xa0   : >> { %835 = vst [vmem:[%s3344_s24 + $0x2b0] sm:$0xff] %v834_v55  ;;  %837 = vst [vmem:[%s3344_s24 + $0x2b8] sm:$0xff] %v836_v56  ;;  %v840_v58 = vld [vmem:[%s3348_s17 + $0x368] sm:$0xff]  ;;  %v842_v59 = vld [vmem:[%s3348_s17 + $0x370] sm:$0xff] }
  0xa1   : >> { %839 = vst [vmem:[%s3344_s24 + $0x300] sm:$0xff] %v838_v57  ;;  %841 = vst [vmem:[%s3344_s24 + $0x308] sm:$0xff] %v840_v58  ;;  %v844_v60 = vld [vmem:[%s3348_s17 + $0x378] sm:$0xff]  ;;  %v846_v61 = vld [vmem:[%s3348_s17 + $0x380] sm:$0xff] }
  0xa2   : >> { %843 = vst [vmem:[%s3344_s24 + $0x310] sm:$0xff] %v842_v59  ;;  %v848_v62 = vld [vmem:[%s3348_s17 + $0x388] sm:$0xff]  ;;  %845 = vst [vmem:[%s3344_s24 + $0x318] sm:$0xff] %v844_v60  ;;  %v850_v63 = vld [vmem:[%s3348_s17 + $0x390] sm:$0xff]  ;;  %738 = sbr.rel (!%p735_p6) target bundleno = 136 (0x88), region = 241 }
  0xa3   : >> { %847 = vst [vmem:[%s3344_s24 + $0x320] sm:$0xff] %v846_v61  ;;  %849 = vst [vmem:[%s3344_s24 + $0x328] sm:$0xff] %v848_v62  ;;  %v852_v0 = vld [vmem:[%s3348_s17 + $0x398] sm:$0xff]  ;;  %v854_v1 = vld [vmem:[%s3348_s17 + $0x3f0] sm:$0xff] }
  0xa4   : >> { %851 = vst [vmem:[%s3344_s24 + $0x330] sm:$0xff] %v850_v63  ;;  %853 = vst [vmem:[%s3344_s24 + $0x338] sm:$0xff] %v852_v0  ;;  %v856_v2 = vld [vmem:[%s3348_s17 + $0x3f8] sm:$0xff]  ;;  %v858_v3 = vld [vmem:[%s3348_s17 + $0x400] sm:$0xff] }
  0xa5   : >> { %855 = vst [vmem:[%s3344_s24 + $0x380] sm:$0xff] %v854_v1  ;;  %v860_v4 = vld [vmem:[%s3348_s17 + $0x408] sm:$0xff]  ;;  %857 = vst [vmem:[%s3344_s24 + $0x388] sm:$0xff] %v856_v2  ;;  %v862_v5 = vld [vmem:[%s3348_s17 + $0x410] sm:$0xff] }
  0xa6   : >> { %859 = vst [vmem:[%s3344_s24 + $0x390] sm:$0xff] %v858_v3  ;;  %861 = vst [vmem:[%s3344_s24 + $0x398] sm:$0xff] %v860_v4  ;;  %v864_v6 = vld [vmem:[%s3348_s17 + $0x418] sm:$0xff]  ;;  %v866_v7 = vld [vmem:[%s3348_s17 + $0x420] sm:$0xff] }
  0xa7   : >> { %863 = vst [vmem:[%s3344_s24 + $0x3a0] sm:$0xff] %v862_v5  ;;  %865 = vst [vmem:[%s3344_s24 + $0x3a8] sm:$0xff] %v864_v6  ;;  %v868_v8 = vld [vmem:[%s3348_s17 + $0x428] sm:$0xff]  ;;  %s6179_s17 = smov %s3835_s27 }
  0xa8   : >> { %867 = vst [vmem:[%s3344_s24 + $0x3b0] sm:$0xff] %v866_v7  ;;  %869 = vst [vmem:[%s3344_s24 + $0x3b8] sm:$0xff] %v868_v8  ;;  %s6178_s24 = smov %s3838_s28 }
  0xa9 PF: > { %s3944_s8 = sand.u32 7, %s729_s2   ;;  %s2813_s20 = sshll.u32 %s3768_s22, 10 }
  0xaa   : > { %s881_s11 = sshra.s32 %s2813_s20, 4  ;;  %p2795_p7 = scmp.le.s32.totalorder %s3944_s8, 0 }
  0xab   : > { %s3948_s6 = scalar_lea.vmem %s3528_s13, %s881_s11   ;;  %s3951_s28 = scalar_lea.vmem %s3532_s7, %s881_s11 [#allocation6]  }
  0xac   : > { %2719 = sbr.rel (%p2795_p7) target bundleno = 189 (0xbd), region = 246  ;;  %s6181_s24 = smov (!%p2795_p7), %s3951_s28 }
  0xad   : > { %s6182_s17 = smov (!%p2795_p7), %s3948_s6  ;;  %s3960_s19 = smov (!%p2795_p7), 0  }
  0xae   : > { %s3962_s14 = smov (!%p2795_p7), 0  }
  0xb3 LB: >> { %v897_v9 = vld [vmem:[%s3364_s17] sm:$0xff]  ;;  %v899_v10 = vld [vmem:[%s3364_s17 + $0x90] sm:$0xff]  ;;  %s913_s11 = sadd.s32 1, %s3368_s19  ;;  %s891_s14 = sadd.s32 1, %s3372_s14   ;;  %s3372_s14 = sphi %s3962_s14, %s891_s14   ;;  %s3368_s19 = sphi %s3960_s19, %s6183_s19   ;;  %s3364_s17 = sphi %s6182_s17, %s918_s17   ;;  %s3360_s24 = sphi %s6181_s24, %s919_s24  }
  0xb4   : >> { %v901_v11 = vld [vmem:[%s3364_s17 + $0x120] sm:$0xff]  ;;  %898 = vst [vmem:[%s3360_s24] sm:$0xff] %v897_v9  ;;  %900 = vst [vmem:[%s3360_s24 + $0x80] sm:$0xff] %v899_v10  ;;  %v903_v12 = vld [vmem:[%s3364_s17 + $0x1b0] sm:$0xff]  ;;  %p914_p8 = scmp.ge.s32.totalorder %s913_s11, %s3944_s8  ;;  %p890_p9 = scmp.ge.s32.totalorder %s891_s14, %s3944_s8 }
  0xb5   : >> { %902 = vst [vmem:[%s3360_s24 + $0x100] sm:$0xff] %v901_v11  ;;  %v905_v13 = vld [vmem:[%s3364_s17 + $0x240] sm:$0xff]  ;;  %v907_v14 = vld [vmem:[%s3364_s17 + $0x2d0] sm:$0xff]  ;;  %904 = vst [vmem:[%s3360_s24 + $0x180] sm:$0xff] %v903_v12 }
  0xb6   : >> { %906 = vst [vmem:[%s3360_s24 + $0x200] sm:$0xff] %v905_v13  ;;  %908 = vst [vmem:[%s3360_s24 + $0x280] sm:$0xff] %v907_v14  ;;  %v909_v15 = vld [vmem:[%s3364_s17 + $0x360] sm:$0xff]  ;;  %v911_v16 = vld [vmem:[%s3364_s17 + $0x3f0] sm:$0xff]  ;;  %s6592_s11 = smov (%p914_p8, %s913_s11), 0  ;;  %893 = sbr.rel (!%p890_p9) target bundleno = 179 (0xb3), region = 252 }
  0xb7   : >> { %910 = vst [vmem:[%s3360_s24 + $0x300] sm:$0xff] %v909_v15  ;;  %912 = vst [vmem:[%s3360_s24 + $0x380] sm:$0xff] %v911_v16  ;;  %s2796_s2 = sshll.u32 %s6592_s11, 3  ;;  %s6183_s19 = smov %s6592_s11 }
  0xb8   : >> { %s918_s17 = scalar_lea.vmem %s3948_s6, %s2796_s2   ;;  %s919_s24 = scalar_lea.vmem %s3951_s28, %s2796_s2 [#allocation6]  }
  0xbd PF: > { %s3374_s22 = smov 0  }
  0xbe   : > { %s920_s30 = sshllo.u32 %s3374_s22, %s3536_s21 }
  0xbf   : > { %v929_v17 = vld [vmem:[%s3761_s0] sm:%s920_s30]  ;;  %v931_v18 = vld [vmem:[%s3761_s0 + $0x90] sm:%s920_s30] }
  0xc0   : > { %930 = vst [vmem:[%s3764_s18] sm:%s920_s30] %v929_v17  ;;  %932 = vst [vmem:[%s3764_s18 + $0x80] sm:%s920_s30] %v931_v18 }
  0xc1   : > { %v933_v19 = vld [vmem:[%s3761_s0 + $0x120] sm:%s920_s30]  ;;  %v935_v20 = vld [vmem:[%s3761_s0 + $0x1b0] sm:%s920_s30] }
  0xc2   : > { %934 = vst [vmem:[%s3764_s18 + $0x100] sm:%s920_s30] %v933_v19  ;;  %936 = vst [vmem:[%s3764_s18 + $0x180] sm:%s920_s30] %v935_v20 }
  0xc3   : > { %v937_v21 = vld [vmem:[%s3761_s0 + $0x240] sm:%s920_s30]  ;;  %v939_v22 = vld [vmem:[%s3761_s0 + $0x2d0] sm:%s920_s30] }
  0xc4   : > { %938 = vst [vmem:[%s3764_s18 + $0x200] sm:%s920_s30] %v937_v21  ;;  %940 = vst [vmem:[%s3764_s18 + $0x280] sm:%s920_s30] %v939_v22 }
  0xc5   : > { %v941_v23 = vld [vmem:[%s3761_s0 + $0x360] sm:%s920_s30]  ;;  %v943_v24 = vld [vmem:[%s3761_s0 + $0x3f0] sm:%s920_s30] }
  0xc6   : > { %942 = vst [vmem:[%s3764_s18 + $0x300] sm:%s920_s30] %v941_v23  ;;  %944 = vst [vmem:[%s3764_s18 + $0x380] sm:%s920_s30] %v943_v24 }
  0xc7 PF: > { %p2798_p10 = scmp.ge.u32.totalorder %s3530_s12, 8 }
  0xc8   : > { %s3375_s6 = smov (!%p2798_p10), 0  }
  0xc9   : > { %499 = sbr.rel (%p2798_p10) target bundleno = 210 (0xd2), region = 88  ;;  %s500_s21 = sshllo.u32 (!%p2798_p10), %s3375_s6, %s3530_s12 }
  0xca   : > { %v509_v25 = vld [vmem:[%s3528_s13] sm:%s500_s21] (!%p2798_p10)  ;;  %v511_v26 = vld [vmem:[%s3528_s13 + $0x90] sm:%s500_s21] (!%p2798_p10) }
  0xcb   : > { %510 = vst [vmem:[%s3532_s7] sm:%s500_s21] (!%p2798_p10), %v509_v25  ;;  %512 = vst [vmem:[%s3532_s7 + $0x80] sm:%s500_s21] (!%p2798_p10), %v511_v26 }
  0xcc   : > { %v513_v27 = vld [vmem:[%s3528_s13 + $0x120] sm:%s500_s21] (!%p2798_p10)  ;;  %v515_v28 = vld [vmem:[%s3528_s13 + $0x1b0] sm:%s500_s21] (!%p2798_p10) }
  0xcd   : > { %514 = vst [vmem:[%s3532_s7 + $0x100] sm:%s500_s21] (!%p2798_p10), %v513_v27  ;;  %516 = vst [vmem:[%s3532_s7 + $0x180] sm:%s500_s21] (!%p2798_p10), %v515_v28 }
  0xce   : > { %v517_v29 = vld [vmem:[%s3528_s13 + $0x240] sm:%s500_s21] (!%p2798_p10)  ;;  %v519_v30 = vld [vmem:[%s3528_s13 + $0x2d0] sm:%s500_s21] (!%p2798_p10) }
  0xcf   : > { %518 = vst [vmem:[%s3532_s7 + $0x200] sm:%s500_s21] (!%p2798_p10), %v517_v29  ;;  %520 = vst [vmem:[%s3532_s7 + $0x280] sm:%s500_s21] (!%p2798_p10), %v519_v30 }
  0xd0   : > { %v521_v31 = vld [vmem:[%s3528_s13 + $0x360] sm:%s500_s21]  ;;  %v523_v32 = vld [vmem:[%s3528_s13 + $0x3f0] sm:%s500_s21] }
  0xd1   : > { %522 = vst [vmem:[%s3532_s7 + $0x300] sm:%s500_s21] %v521_v31  ;;  %524 = vst [vmem:[%s3532_s7 + $0x380] sm:%s500_s21] %v523_v32 }
  0xd2 PF: > { %p2799_p11 = scmp.ge.s32.totalorder %s3308_s29, 1  ;;  %p947_p12 = scmp.lt.s32.totalorder %s3308_s29, 5 }
  0xd4   : > { %p948_p13 = pnand %p2799_p11, %p947_p12 }
  0xd6   : > { %951 = sbr.rel (%p948_p13) target bundleno = 1677 (0x68d), region = 142 }
  0xdd   : > { %s954_s12 = sand.u32 1, %s3284_s23   ;;  %p1013_p0 = scmp.lt.s32.totalorder %s3296_s26, 1 }
  0xde   : > { %s2800_s0 = sshll.u32 %s954_s12, 10  ;;  %p2805_p1 = scmp.ne.s32.totalorder %s3292_s25, 0 }
  0xdf   : > { %s6594_s26 = smov (!%p1013_p0, %s3296_s26), 1  ;;  %s4030_s24 = scalar_lea.vmem [#allocation6], %s2800_s0  ;;  %vm1027_vm0 = vcmask (!%p2805_p1), 0   ;;  %vm1030_vm1 = vcmask (!%p2805_p1), 7168   ;;  %v3376_v33 = vmov (!%p2805_p1), -inf   ;;  %v3377_v34 = vmov (!%p2805_p1), 0.0  }
  0xe0   : > { %s2815_s13 = sshll.u32 %s6594_s26, 6  ;;  %1026 = sbr.rel (%p2805_p1) target bundleno = 231 (0xe7), region = 150  ;;  %1028 = vst.msk [vmem:[#allocation2] sm:$0x1] (!%p2805_p1), %vm1027_vm0, %v3376_v33  ;;  %1029 = vst.msk [vmem:[#allocation3] sm:$0x1] (!%p2805_p1), %vm1027_vm0, %v3377_v34 }
  0xe1   : > { %s4023_s27 = scalar_lea.vmem %s6089_s15, %s2815_s13  ;;  %s4028_s28 = scalar_lea.vmem %s6090_s16, %s2815_s13  ;;  %1031 = vst.msk [vmem:[#allocation4] sm:$0xff] (!%p2805_p1), %vm1030_vm1, %v3377_v34  ;;  %1032 = vst.msk [vmem:[#allocation4 + $0x8] sm:$0xff] (!%p2805_p1), %vm1030_vm1, %v3377_v34 }
  0xe2   : > { %1033 = vst.msk [vmem:[#allocation4 + $0x10] sm:$0xff] (!%p2805_p1), %vm1030_vm1, %v3377_v34  ;;  %1034 = vst.msk [vmem:[#allocation4 + $0x18] sm:$0xff] (!%p2805_p1), %vm1030_vm1, %v3377_v34 }
  0xe3   : > { %1035 = vst.msk [vmem:[#allocation4 + $0x20] sm:$0xff] (!%p2805_p1), %vm1030_vm1, %v3377_v34  ;;  %1036 = vst.msk [vmem:[#allocation4 + $0x28] sm:$0xff] (!%p2805_p1), %vm1030_vm1, %v3377_v34 }
  0xe4   : > { %1037 = vst.msk [vmem:[#allocation4 + $0x30] sm:$0xff] (!%p2805_p1), %vm1030_vm1, %v3377_v34  ;;  %1038 = vst.msk [vmem:[#allocation4 + $0x38] sm:$0xff] (!%p2805_p1), %vm1030_vm1, %v3377_v34 }
  0xe7 PF: > { %v1169_v35 = vld [vmem:[%s6075_s1 + $0x10] sm:$0xff]  ;;  %v1167_v36 = vld [vmem:[%s6075_s1] sm:$0xff]  ;;  %v3378_v37 = vmov 0   ;;  %v1170_v38 = vld [vmem:[%s6075_s1 + $0x18] sm:$0xff]  ;;  %v1557_v45 = vlaneseq  ;;  %s2806_s8 = sshll.u32 %s3292_s25, 11  ;;  %p2807_p2 = scmp.ne.s32.totalorder %s3292_s25, 1 }
  0xe8   : > { %3009 = vset.pattern.permute.xlu1 %v3378_v37  ;;  %3008 = vset.pattern.permute.xlu0 %v3378_v37  ;;  %v1168_v39 = vld [vmem:[%s6075_s1 + $0x8] sm:$0xff]  ;;  %v1171_v41 = vld [vmem:[%s6075_s1 + $0x20] sm:$0xff]  ;;  %v1174_v42 = vld [vmem:[%s6075_s1 + $0x38] sm:$0xff]  ;;  %v1595_v56 = vstv %s2806_s8  ;;  %s6561_s25 = sld [smem:[#allocation122_spill]] (!%p2807_p2)  ;;  %s6562_s23 = sld [smem:[#allocation125_spill]] (!%p2807_p2) }
  0xe9   : > { %1187 = vperm.xlu1 %3009, %v1169_v35   ;;  %1177 = vperm.xlu0 %3008, %v1167_v36   ;;  %v1172_v40 = vld [vmem:[%s6075_s1 + $0x28] sm:$0xff]  ;;  %v1173_v43 = vld [vmem:[%s6075_s1 + $0x30] sm:$0xff]  ;;  %v1551_v44 = vld [vmem:[#allocation5] sm:$0x1]  ;;  %v1558_v46 = vshrl.u32 %v1557_v45, 7  ;;  %v1578_v47 = vand.u32 127, %v1557_v45 }
  0xea   : > { %v1039_v61 = vld [vmem:[%s4030_s24] sm:$0xff]  ;;  %v1040_v62 = vld [vmem:[%s4030_s24 + $0x8] sm:$0xff]  ;;  %v1041_v63 = vld [vmem:[%s4030_s24 + $0x10] sm:$0xff]  ;;  %s6563_s19 = sld [smem:[#allocation123_spill]] (!%p2807_p2)  ;;  %s6565_s30 = sld [smem:[#allocation126_spill]] (!%p2807_p2) }
  0xeb   : > { %v4058_v48 = vsub.s32 0, %v1558_v46  ;;  %v1579_v49 = vadd.s32 128, %v1578_v47  ;;  %v1580_v50 = vadd.s32 256, %v1578_v47  ;;  %v1581_v51 = vadd.s32 384, %v1578_v47  ;;  %v1042_v0 = vld [vmem:[%s4030_s24 + $0x18] sm:$0xff]  ;;  %v1043_v5 = vld [vmem:[%s4030_s24 + $0x20] sm:$0xff] }
  0xec   : > { %v1582_v52 = vadd.s32 512, %v1578_v47  ;;  %v1583_v53 = vadd.s32 640, %v1578_v47  ;;  %v1584_v54 = vadd.s32 768, %v1578_v47  ;;  %v1585_v55 = vadd.s32 896, %v1578_v47  ;;  %v1044_v6 = vld [vmem:[%s4030_s24 + $0x28] sm:$0xff]  ;;  %v1045_v7 = vld [vmem:[%s4030_s24 + $0x30] sm:$0xff] }
  0xed   : > { %1192 = vperm.xlu1 %3009, %v1170_v38   ;;  %1182 = vperm.xlu0 %3008, %v1168_v39   ;;  %6184 = vst [vmem:[#allocation13_spill] sm:$0xff] %v4058_v48  ;;  %v1586_v57 = vadd.s32 1024, %v1578_v47  ;;  %v1587_v58 = vadd.s32 1152, %v1578_v47  ;;  %v1588_v59 = vadd.s32 1280, %v1578_v47  ;;  %v1589_v60 = vadd.s32 1408, %v1578_v47  ;;  %v1046_v8 = vld [vmem:[%s4030_s24 + $0x38] sm:$0xff] }
  0xee   : > { %v1590_v1 = vadd.s32 1536, %v1578_v47  ;;  %v1591_v2 = vadd.s32 1664, %v1578_v47  ;;  %v1592_v3 = vadd.s32 1792, %v1578_v47  ;;  %v1593_v4 = vadd.s32 1920, %v1578_v47  ;;  %v1047_v13 = vld [vmem:[%s4030_s24 + $0x40] sm:$0xff]  ;;  %v1048_v14 = vld [vmem:[%s4030_s24 + $0x48] sm:$0xff] }
  0xef   : > { %v4068_v9 = vadd.s32 %v1595_v56, %v1578_v47  ;;  %v4070_v10 = vadd.s32 %v1595_v56, %v1579_v49  ;;  %v4072_v11 = vadd.s32 %v1595_v56, %v1580_v50  ;;  %v4074_v12 = vadd.s32 %v1595_v56, %v1581_v51  ;;  %v1049_v15 = vld [vmem:[%s4030_s24 + $0x50] sm:$0xff]  ;;  %v1050_v16 = vld [vmem:[%s4030_s24 + $0x58] sm:$0xff]  ;;  %v1051_v22 = vld [vmem:[%s4030_s24 + $0x60] sm:$0xff]  ;;  %s6566_s14 = sld [smem:[#allocation127_spill]] (!%p2807_p2)  ;;  %s6567_s26 = sld [smem:[#allocation124_spill]] (!%p2807_p2) }
  0xf0   : > { %v4080_v17 = vadd.s32 %v1595_v56, %v1582_v52  ;;  %v4082_v18 = vadd.s32 %v1595_v56, %v1583_v53  ;;  %v4084_v19 = vadd.s32 %v1595_v56, %v1584_v54  ;;  %v4086_v20 = vadd.s32 %v1595_v56, %v1585_v55  ;;  %v1052_v23 = vld [vmem:[%s4030_s24 + $0x68] sm:$0xff]  ;;  %v1053_v24 = vld [vmem:[%s4030_s24 + $0x70] sm:$0xff]  ;;  %v1054_v25 = vld [vmem:[%s4030_s24 + $0x78] sm:$0xff] }
  0xf1   : > { %1202 = vperm.xlu1 %3009, %v1172_v40   ;;  %1197 = vperm.xlu0 %3008, %v1171_v41   ;;  %6185 = vst [vmem:[#allocation14_spill] sm:$0xff] %v4068_v9  ;;  %6186 = vst [vmem:[#allocation15_spill] sm:$0xff] %v4070_v10  ;;  %v4092_v26 = vadd.s32 %v1595_v56, %v1586_v57  ;;  %v4094_v27 = vadd.s32 %v1595_v56, %v1587_v58  ;;  %v1055_v30 = vld [vmem:[%s4030_s24 + $0x80] sm:$0xff]  ;;  %v1056_v31 = vld [vmem:[%s4030_s24 + $0x88] sm:$0xff] }
  0xf2   : > { %6187 = vst [vmem:[#allocation16_spill] sm:$0xff] %v4072_v11  ;;  %6188 = vst [vmem:[#allocation17_spill] sm:$0xff] %v4074_v12  ;;  %v4096_v28 = vadd.s32 %v1595_v56, %v1588_v59  ;;  %v4098_v29 = vadd.s32 %v1595_v56, %v1589_v60  ;;  %v1057_v32 = vld [vmem:[%s4030_s24 + $0x90] sm:$0xff]  ;;  %v1058_v33 = vld [vmem:[%s4030_s24 + $0x98] sm:$0xff]  ;;  %v4104_v34 = vadd.s32 %v1595_v56, %v1590_v1 }
  0xf3   : > { %6189 = vst [vmem:[#allocation18_spill] sm:$0xff] %v4080_v17  ;;  %6190 = vst [vmem:[#allocation19_spill] sm:$0xff] %v4082_v18  ;;  %v4106_v35 = vadd.s32 %v1595_v56, %v1591_v2  ;;  %v4108_v36 = vadd.s32 %v1595_v56, %v1592_v3  ;;  %v4110_v37 = vadd.s32 %v1595_v56, %v1593_v4  ;;  %v1059_v38 = vld [vmem:[%s4030_s24 + $0xa0] sm:$0xff]  ;;  %v1060_v39 = vld [vmem:[%s4030_s24 + $0xa8] sm:$0xff] }
  0xf4   : > { %6191 = vst [vmem:[#allocation20_spill] sm:$0xff] %v4084_v19  ;;  %6192 = vst [vmem:[#allocation21_spill] sm:$0xff] %v4086_v20  ;;  %v1061_v40 = vld [vmem:[%s4030_s24 + $0xb0] sm:$0xff]  ;;  %v1062_v41 = vld [vmem:[%s4030_s24 + $0xb8] sm:$0xff] }
  0xf5   : > { %1212 = vperm.xlu1 %3009, %v1174_v42   ;;  %1207 = vperm.xlu0 %3008, %v1173_v43   ;;  %6193 = vst [vmem:[#allocation22_spill] sm:$0xff] %v4092_v26  ;;  %6194 = vst [vmem:[#allocation23_spill] sm:$0xff] %v4094_v27  ;;  %v1063_v46 = vld [vmem:[%s4030_s24 + $0xc0] sm:$0xff]  ;;  %v1064_v47 = vld [vmem:[%s4030_s24 + $0xc8] sm:$0xff]  ;;  %s6568_s17 = smov (!%p2807_p2), %s6567_s26 }
  0xf6   : > { %6195 = vst [vmem:[#allocation24_spill] sm:$0xff] %v4096_v28  ;;  %6196 = vst [vmem:[#allocation25_spill] sm:$0xff] %v4098_v29  ;;  %v1065_v49 = vld [vmem:[%s4030_s24 + $0xd0] sm:$0xff]  ;;  %v1066_v50 = vld [vmem:[%s4030_s24 + $0xd8] sm:$0xff] }
  0xf7   : > { %6197 = vst [vmem:[#allocation26_spill] sm:$0xff] %v4104_v34  ;;  %6198 = vst [vmem:[#allocation27_spill] sm:$0xff] %v4106_v35  ;;  %v1067_v56 = vld [vmem:[%s4030_s24 + $0xe0] sm:$0xff]  ;;  %v1068_v57 = vld [vmem:[%s4030_s24 + $0xe8] sm:$0xff] }
  0xf8   : > { %6199 = vst [vmem:[#allocation28_spill] sm:$0xff] %v4108_v36  ;;  %6200 = vst [vmem:[#allocation29_spill] sm:$0xff] %v4110_v37  ;;  %v1069_v58 = vld [vmem:[%s4030_s24 + $0xf0] sm:$0xff]  ;;  %v1070_v59 = vld [vmem:[%s4030_s24 + $0xf8] sm:$0xff] }
  0xf9   : > { %1554 = vperm.xlu0 %3008, %v1551_v44   ;;  %v1071_v1 = vld [vmem:[%s4030_s24 + $0x100] sm:$0xff]  ;;  %v1072_v2 = vld [vmem:[%s4030_s24 + $0x108] sm:$0xff]  ;;  %v1073_v3 = vld [vmem:[%s4030_s24 + $0x110] sm:$0xff] }
  0xfa   : > { %v1074_v4 = vld [vmem:[%s4030_s24 + $0x118] sm:$0xff]  ;;  %v1080_v35 = vld [vmem:[%s4030_s24 + $0x148] sm:$0xff]  ;;  %v1085_v27 = vld [vmem:[%s4030_s24 + $0x170] sm:$0xff] }
  0xfb   : > { %v1084_v28 = vld [vmem:[%s4030_s24 + $0x168] sm:$0xff]  ;;  %v1086_v26 = vld [vmem:[%s4030_s24 + $0x178] sm:$0xff]  ;;  %v1089_v12 = vld [vmem:[%s4030_s24 + $0x190] sm:$0xff] }
  0xfc   : > { %v1088_v19 = vld [vmem:[%s4030_s24 + $0x188] sm:$0xff]  ;;  %v1090_v18 = vld [vmem:[%s4030_s24 + $0x198] sm:$0xff] }
  0xfd   : > { %v1092_v10 = vld [vmem:[%s4030_s24 + $0x1a8] sm:$0xff]  ;;  %v1094_v9 = vld [vmem:[%s4030_s24 + $0x1b8] sm:$0xff] }
 0x168   : > { %v1178_v21 = vpop.permute.xlu0 %1177 }
 0x169   : > { %v4116_v42 = vmul.f32 %v1178_v21, %v1039_v61  ;;  %v4118_v43 = vmul.f32 %v1178_v21, %v1040_v62  ;;  %v4120_v44 = vmul.f32 %v1178_v21, %v1041_v63  ;;  %v4122_v45 = vmul.f32 %v1178_v21, %v1042_v0  ;;  %v4148_v0 = vpop.permute.xlu1 %1187 }
 0x16a   : > { %v4128_v51 = vmul.f32 %v1178_v21, %v1043_v5  ;;  %v4130_v52 = vmul.f32 %v1178_v21, %v1044_v6  ;;  %v4132_v53 = vmul.f32 %v1178_v21, %v1045_v7  ;;  %v4134_v54 = vmul.f32 %v1178_v21, %v1046_v8 }
 0x16b   : > { %v4140_v60 = vmul.f32 %v1178_v21, %v1047_v13  ;;  %v4142_v61 = vmul.f32 %v1178_v21, %v1048_v14  ;;  %v4144_v62 = vmul.f32 %v1178_v21, %v1049_v15  ;;  %v4146_v63 = vmul.f32 %v1178_v21, %v1050_v16  ;;  %v1075_v13 = vld [vmem:[%s4030_s24 + $0x120] sm:$0xff]  ;;  %v1076_v14 = vld [vmem:[%s4030_s24 + $0x128] sm:$0xff]  ;;  %v1077_v15 = vld [vmem:[%s4030_s24 + $0x130] sm:$0xff] }
 0x16c   : > { %v1183_v55 = vpop.permute.xlu0 %1182  ;;  %v4154_v5 = vmul.f32 %v1178_v21, %v1051_v22  ;;  %v4156_v6 = vmul.f32 %v1178_v21, %v1052_v23  ;;  %v4158_v7 = vmul.f32 %v1178_v21, %v1053_v24  ;;  %v4160_v8 = vmul.f32 %v1178_v21, %v1054_v25  ;;  %v1078_v16 = vld [vmem:[%s4030_s24 + $0x138] sm:$0xff]  ;;  %v1079_v24 = vld [vmem:[%s4030_s24 + $0x140] sm:$0xff]  ;;  %v1081_v21 = vld [vmem:[%s4030_s24 + $0x150] sm:$0xff] }
 0x16d   : > { %6201 = vst [vmem:[#allocation30_spill] sm:$0xff] %v4140_v60  ;;  %6202 = vst [vmem:[#allocation31_spill] sm:$0xff] %v4142_v61  ;;  %v4166_v37 = vmul.f32 %v1183_v55, %v1055_v30  ;;  %v4168_v36 = vmul.f32 %v1183_v55, %v1056_v31  ;;  %v4170_v22 = vmul.f32 %v1183_v55, %v1057_v32  ;;  %v1082_v25 = vld [vmem:[%s4030_s24 + $0x158] sm:$0xff]  ;;  %v1117_v60 = vld [vmem:[%s4030_s24 + $0x270] sm:$0xff] }
 0x16e   : > { %6203 = vst [vmem:[#allocation32_spill] sm:$0xff] %v4144_v62  ;;  %6204 = vst [vmem:[#allocation33_spill] sm:$0xff] %v4146_v63  ;;  %v4172_v23 = vmul.f32 %v1183_v55, %v1058_v33  ;;  %v4178_v34 = vmul.f32 %v1183_v55, %v1059_v38  ;;  %v4180_v29 = vmul.f32 %v1183_v55, %v1060_v39  ;;  %v1083_v33 = vld [vmem:[%s4030_s24 + $0x160] sm:$0xff]  ;;  %v1105_v62 = vld [vmem:[%s4030_s24 + $0x210] sm:$0xff] }
 0x16f   : > { %6205 = vst [vmem:[#allocation34_spill] sm:$0xff] %v4154_v5  ;;  %6206 = vst [vmem:[#allocation35_spill] sm:$0xff] %v4156_v6  ;;  %v4182_v30 = vmul.f32 %v1183_v55, %v1061_v40  ;;  %v4184_v31 = vmul.f32 %v1183_v55, %v1062_v41  ;;  %v4192_v20 = vmul.f32 %v1183_v55, %v1063_v46  ;;  %v1087_v41 = vld [vmem:[%s4030_s24 + $0x180] sm:$0xff]  ;;  %v1101_v5 = vld [vmem:[%s4030_s24 + $0x1f0] sm:$0xff] }
 0x170   : > { %6207 = vst [vmem:[#allocation36_spill] sm:$0xff] %v4158_v7  ;;  %6208 = vst [vmem:[#allocation37_spill] sm:$0xff] %v4160_v8  ;;  %v4186_v32 = vpop.permute.xlu0 %1197  ;;  %v4194_v38 = vmul.f32 %v1183_v55, %v1064_v47  ;;  %v4196_v39 = vmul.f32 %v1183_v55, %v1065_v49  ;;  %v4198_v40 = vmul.f32 %v1183_v55, %v1066_v50  ;;  %v1091_v49 = vld [vmem:[%s4030_s24 + $0x1a0] sm:$0xff]  ;;  %v1093_v50 = vld [vmem:[%s4030_s24 + $0x1b0] sm:$0xff] }
 0x171   : > { %6209 = vst [vmem:[#allocation38_spill] sm:$0xff] %v4192_v20  ;;  %v4204_v17 = vmul.f32 %v1183_v55, %v1067_v56  ;;  %v4206_v11 = vmul.f32 %v1183_v55, %v1068_v57  ;;  %v4208_v46 = vmul.f32 %v1183_v55, %v1069_v58  ;;  %v4210_v47 = vmul.f32 %v1183_v55, %v1070_v59  ;;  %v1193_v58 = vpop.permute.xlu1 %1192  ;;  %v1095_v59 = vld [vmem:[%s4030_s24 + $0x1c0] sm:$0xff]  ;;  %v1098_v7 = vld [vmem:[%s4030_s24 + $0x1d8] sm:$0xff]  ;;  %v1116_v20 = vld [vmem:[%s4030_s24 + $0x268] sm:$0xff] }
 0x172   : > { %6210 = vst [vmem:[#allocation39_spill] sm:$0xff] %v4194_v38  ;;  %6211 = vst [vmem:[#allocation40_spill] sm:$0xff] %v4196_v39  ;;  %v4217_v8 = vmul.f32 %v4148_v0, %v1071_v1  ;;  %v4220_v56 = vmul.f32 %v4148_v0, %v1072_v2  ;;  %v4223_v57 = vmul.f32 %v4148_v0, %v1073_v3  ;;  %v1099_v6 = vld [vmem:[%s4030_s24 + $0x1e0] sm:$0xff]  ;;  %v4266_v39 = vld [vmem:[%s4030_s24 + $0x208] sm:$0xff] }
 0x173   : > { %6212 = vst [vmem:[#allocation41_spill] sm:$0xff] %v4198_v40  ;;  %6213 = vst [vmem:[#allocation42_spill] sm:$0xff] %v4204_v17  ;;  %v4226_v55 = vmul.f32 %v4148_v0, %v1074_v4  ;;  %v4233_v1 = vmul.f32 %v4148_v0, %v1075_v13  ;;  %v4236_v2 = vmul.f32 %v4148_v0, %v1076_v14  ;;  %v1100_v17 = vld [vmem:[%s4030_s24 + $0x1e8] sm:$0xff]  ;;  %v1102_v13 = vld [vmem:[%s4030_s24 + $0x1f8] sm:$0xff] }
 0x174   : > { %6214 = vst [vmem:[#allocation43_spill] sm:$0xff] %v4206_v11  ;;  %6215 = vst [vmem:[#allocation44_spill] sm:$0xff] %v4208_v46  ;;  %v1097_v46 = vld [vmem:[%s4030_s24 + $0x1d0] sm:$0xff]  ;;  %v4239_v3 = vmul.f32 %v4148_v0, %v1077_v15  ;;  %v4242_v4 = vmul.f32 %v4148_v0, %v1078_v16  ;;  %v4244_v11 = vpop.permute.xlu0 %1207  ;;  %v4251_v40 = vmul.f32 %v4148_v0, %v1079_v24  ;;  %v4263_v63 = vld [vmem:[%s4030_s24 + $0x200] sm:$0xff] }
 0x175   : > { %6216 = vst [vmem:[#allocation45_spill] sm:$0xff] %v4210_v47  ;;  %v1096_v47 = vld [vmem:[%s4030_s24 + $0x1c8] sm:$0xff]  ;;  %v4254_v14 = vmul.f32 %v4148_v0, %v1080_v35  ;;  %v4257_v15 = vmul.f32 %v4148_v0, %v1081_v21  ;;  %v4260_v16 = vmul.f32 %v4148_v0, %v1082_v25  ;;  %6221 = vst [vmem:[#allocation50_spill] sm:$0xff] %v4263_v63  ;;  %v1114_v61 = vld [vmem:[%s4030_s24 + $0x258] sm:$0xff] }
 0x176   : > { %6217 = vst [vmem:[#allocation46_spill] sm:$0xff] %v4251_v40  ;;  %6222 = vst [vmem:[#allocation51_spill] sm:$0xff] %v4266_v39  ;;  %v4270_v24 = vmul.f32 %v4148_v0, %v1083_v33  ;;  %v4273_v35 = vmul.f32 %v4148_v0, %v1084_v28  ;;  %v4276_v21 = vmul.f32 %v4148_v0, %v1085_v27  ;;  %v1109_v40 = vld [vmem:[%s4030_s24 + $0x230] sm:$0xff]  ;;  %v1110_v27 = vld [vmem:[%s4030_s24 + $0x238] sm:$0xff] }
 0x177   : > { %6218 = vst [vmem:[#allocation47_spill] sm:$0xff] %v4254_v14  ;;  %6219 = vst [vmem:[#allocation48_spill] sm:$0xff] %v4257_v15  ;;  %v4279_v25 = vmul.f32 %v4148_v0, %v1086_v26  ;;  %v1107_v15 = vld [vmem:[%s4030_s24 + $0x220] sm:$0xff]  ;;  %v1108_v14 = vld [vmem:[%s4030_s24 + $0x228] sm:$0xff]  ;;  %v4285_v38 = vmul.f32 %v1193_v58, %v1087_v41  ;;  %v4287_v33 = vmul.f32 %v1193_v58, %v1088_v19 }
 0x178   : > { %6220 = vst [vmem:[#allocation49_spill] sm:$0xff] %v4260_v16  ;;  %6223 = vst [vmem:[#allocation52_spill] sm:$0xff] %v4270_v24  ;;  %v1106_v16 = vld [vmem:[%s4030_s24 + $0x218] sm:$0xff]  ;;  %v4289_v28 = vmul.f32 %v1193_v58, %v1089_v12  ;;  %v1112_v26 = vld [vmem:[%s4030_s24 + $0x248] sm:$0xff]  ;;  %v4299_v24 = vmul.f32 %v1193_v58, %v1092_v10  ;;  %v4301_v41 = vmul.f32 %v1193_v58, %v1093_v50  ;;  %v1555_v12 = vpop.permute.xlu0 %1554 }
 0x179   : > { %6224 = vst [vmem:[#allocation53_spill] sm:$0xff] %v4273_v35  ;;  %6225 = vst [vmem:[#allocation54_spill] sm:$0xff] %v4276_v21  ;;  %v4291_v35 = vmul.f32 %v1193_v58, %v1090_v18  ;;  %v1111_v21 = vld [vmem:[%s4030_s24 + $0x240] sm:$0xff]  ;;  %v1113_v0 = vld [vmem:[%s4030_s24 + $0x250] sm:$0xff]  ;;  %v4303_v19 = vmul.f32 %v1193_v58, %v1094_v9  ;;  %v4315_v10 = vmul.f32 %v1193_v58, %v1098_v7 }
 0x17a   : > { %6226 = vst [vmem:[#allocation55_spill] sm:$0xff] %v4279_v25  ;;  %v4297_v25 = vmul.f32 %v1193_v58, %v1091_v49  ;;  %6229 = vst [vmem:[#allocation58_spill] sm:$0xff] %v4299_v24  ;;  %v1115_v18 = vld [vmem:[%s4030_s24 + $0x260] sm:$0xff]  ;;  %v4311_v49 = vmul.f32 %v1193_v58, %v1096_v47  ;;  %v1118_v50 = vld [vmem:[%s4030_s24 + $0x278] sm:$0xff]  ;;  %v4327_v24 = vmul.f32 %v1193_v58, %v1099_v6 }
 0x17b   : > { %6227 = vst [vmem:[#allocation56_spill] sm:$0xff] %v4291_v35  ;;  %6230 = vst [vmem:[#allocation59_spill] sm:$0xff] %v4301_v41  ;;  %v4309_v35 = vmul.f32 %v1193_v58, %v1095_v59  ;;  %v4319_v9 = vld [vmem:[%s4030_s24 + $0x280] sm:$0xff]  ;;  %v4325_v41 = vld [vmem:[%s4030_s24 + $0x290] sm:$0xff]  ;;  %v4329_v59 = vmul.f32 %v1193_v58, %v1100_v17  ;;  %v4331_v47 = vmul.f32 %v1193_v58, %v1101_v5 }
 0x17c   : > { %6228 = vst [vmem:[#allocation57_spill] sm:$0xff] %v4297_v25  ;;  %6231 = vst [vmem:[#allocation60_spill] sm:$0xff] %v4303_v19  ;;  %v4313_v25 = vmul.f32 %v1193_v58, %v1097_v46  ;;  %v4322_v19 = vld [vmem:[%s4030_s24 + $0x288] sm:$0xff]  ;;  %v4333_v46 = vmul.f32 %v1193_v58, %v1102_v13  ;;  %v4336_v7 = vrot.slane %v1555_v12, %v4058_v48  ;;  %v4348_v6 = vld [vmem:[%s4030_s24 + $0x2b0] sm:$0xff]  ;;  %v1203_v13 = vpop.permute.xlu1 %1202 }
 0x17d   : > { %6232 = vst [vmem:[#allocation61_spill] sm:$0xff] %v4309_v35  ;;  %6233 = vst [vmem:[#allocation62_spill] sm:$0xff] %v4311_v49  ;;  %v4345_v49 = vld [vmem:[%s4030_s24 + $0x2a8] sm:$0xff]  ;;  %v4352_v17 = vmul.f32 %v4186_v32, %v4263_v63  ;;  %v4356_v5 = vmul.f32 %v4186_v32, %v4266_v39  ;;  %v4359_v58 = vmul.f32 %v4186_v32, %v1105_v62  ;;  %v4362_v12 = vld [vmem:[%s4030_s24 + $0x2b8] sm:$0xff] }
 0x17e   : > { %6234 = vst [vmem:[#allocation63_spill] sm:$0xff] %v4313_v25  ;;  %6235 = vst [vmem:[#allocation64_spill] sm:$0xff] %v4315_v10  ;;  %v4339_v10 = vld [vmem:[%s4030_s24 + $0x298] sm:$0xff]  ;;  %v4342_v25 = vld [vmem:[%s4030_s24 + $0x2a0] sm:$0xff]  ;;  %v4374_v63 = vmul.f32 %v4186_v32, %v1106_v16  ;;  %v4377_v39 = vmul.f32 %v4186_v32, %v1107_v15  ;;  %v4380_v62 = vmul.f32 %v4186_v32, %v1108_v14 }
 0x17f   : > { %6236 = vst [vmem:[#allocation65_spill] sm:$0xff] %v4319_v9  ;;  %6237 = vst [vmem:[#allocation66_spill] sm:$0xff] %v4322_v19  ;;  %v4365_v48 = vld [vmem:[%s4030_s24 + $0x2c0] sm:$0xff]  ;;  %v1132_v35 = vld [vmem:[%s4030_s24 + $0x2e8] sm:$0xff]  ;;  %v4393_v16 = vmul.f32 %v4186_v32, %v1111_v21  ;;  %v4396_v15 = vmul.f32 %v4186_v32, %v1112_v26  ;;  %v4399_v14 = vmul.f32 %v4186_v32, %v1113_v0 }
 0x180   : > { %6238 = vst [vmem:[#allocation67_spill] sm:$0xff] %v4325_v41  ;;  %6239 = vst [vmem:[#allocation68_spill] sm:$0xff] %v4327_v24  ;;  %v1131_v24 = vld [vmem:[%s4030_s24 + $0x2e0] sm:$0xff]  ;;  %v4415_v21 = vmul.f32 %v4186_v32, %v1115_v18  ;;  %v4418_v26 = vmul.f32 %v4186_v32, %v1116_v20  ;;  %v4421_v0 = vmul.f32 %v4186_v32, %v1117_v60  ;;  %v1141_v60 = vld [vmem:[%s4030_s24 + $0x330] sm:$0xff] }
 0x181   : > { %6240 = vst [vmem:[#allocation69_spill] sm:$0xff] %v4329_v59  ;;  %6241 = vst [vmem:[#allocation70_spill] sm:$0xff] %v4331_v47  ;;  %v4383_v47 = vmul.f32 %v4186_v32, %v1109_v40  ;;  %v1130_v59 = vld [vmem:[%s4030_s24 + $0x2d8] sm:$0xff]  ;;  %v4435_v18 = vmul.f32 %v1203_v13, %v4322_v19  ;;  %v4438_v20 = vmul.f32 %v1203_v13, %v4325_v41  ;;  %v1144_v41 = vld [vmem:[%s4030_s24 + $0x348] sm:$0xff] }
 0x182   : > { %6242 = vst [vmem:[#allocation71_spill] sm:$0xff] %v4333_v46  ;;  %6243 = vst [vmem:[#allocation72_spill] sm:$0xff] %v4336_v7  ;;  %v4368_v7 = vld [vmem:[%s4030_s24 + $0x2c8] sm:$0xff]  ;;  %v4371_v46 = vld [vmem:[%s4030_s24 + $0x2d0] sm:$0xff]  ;;  %v4453_v19 = vmul.f32 %v1203_v13, %v4348_v6 }
 0x183   : > { %6244 = vst [vmem:[#allocation73_spill] sm:$0xff] %v4339_v10  ;;  %6245 = vst [vmem:[#allocation74_spill] sm:$0xff] %v4342_v25  ;;  %v1134_v40 = vld [vmem:[%s4030_s24 + $0x2f8] sm:$0xff] }
 0x184   : > { %6246 = vst [vmem:[#allocation75_spill] sm:$0xff] %v4345_v49  ;;  %6247 = vst [vmem:[#allocation76_spill] sm:$0xff] %v4348_v6  ;;  %v1147_v6 = vld [vmem:[%s4030_s24 + $0x360] sm:$0xff] }
 0x185   : > { %6248 = vst [vmem:[#allocation77_spill] sm:$0xff] %v4356_v5  ;;  %6249 = vst [vmem:[#allocation78_spill] sm:$0xff] %v4359_v58  ;;  %v1133_v58 = vld [vmem:[%s4030_s24 + $0x2f0] sm:$0xff]  ;;  %v4390_v5 = vmul.f32 %v4186_v32, %v1110_v27  ;;  %v4412_v27 = vmul.f32 %v4186_v32, %v1114_v61  ;;  %v4432_v61 = vmul.f32 %v1203_v13, %v4319_v9 }
 0x186   : > { %6250 = vst [vmem:[#allocation79_spill] sm:$0xff] %v4362_v12  ;;  %6251 = vst [vmem:[#allocation80_spill] sm:$0xff] %v4365_v48  ;;  %v1145_v9 = vld [vmem:[%s4030_s24 + $0x350] sm:$0xff] }
 0x187   : > { %6252 = vst [vmem:[#allocation81_spill] sm:$0xff] %v4368_v7  ;;  %6253 = vst [vmem:[#allocation82_spill] sm:$0xff] %v4371_v46 }
 0x188   : > { %6254 = vst [vmem:[#allocation83_spill] sm:$0xff] %v4377_v39  ;;  %6255 = vst [vmem:[#allocation84_spill] sm:$0xff] %v4380_v62  ;;  %v4406_v62 = vld [vmem:[%s4030_s24 + $0x308] sm:$0xff]  ;;  %v4409_v39 = vld [vmem:[%s4030_s24 + $0x310] sm:$0xff] }
 0x189   : > { %6256 = vst [vmem:[#allocation85_spill] sm:$0xff] %v4383_v47  ;;  %6257 = vst [vmem:[#allocation86_spill] sm:$0xff] %v4390_v5  ;;  %v4403_v47 = vld [vmem:[%s4030_s24 + $0x300] sm:$0xff]  ;;  %v4429_v5 = vmul.f32 %v4186_v32, %v1118_v50  ;;  %v4447_v32 = vmul.f32 %v1203_v13, %v4342_v25  ;;  %v4450_v50 = vmul.f32 %v1203_v13, %v4345_v49 }
 0x18a   : > { %6258 = vst [vmem:[#allocation87_spill] sm:$0xff] %v4393_v16  ;;  %6259 = vst [vmem:[#allocation88_spill] sm:$0xff] %v4396_v15  ;;  %v1139_v15 = vld [vmem:[%s4030_s24 + $0x320] sm:$0xff]  ;;  %v1140_v16 = vld [vmem:[%s4030_s24 + $0x328] sm:$0xff]  ;;  %v4465_v25 = vmul.f32 %v1203_v13, %v4368_v7  ;;  %v4468_v49 = vmul.f32 %v1203_v13, %v4371_v46 }
 0x18b   : > { %6260 = vst [vmem:[#allocation89_spill] sm:$0xff] %v4399_v14  ;;  %6261 = vst [vmem:[#allocation90_spill] sm:$0xff] %v4403_v47  ;;  %v4424_v14 = vld [vmem:[%s4030_s24 + $0x318] sm:$0xff]  ;;  %v4486_v46 = vld [vmem:[%s4030_s24 + $0x388] sm:$0xff] }
 0x18c   : > { %6262 = vst [vmem:[#allocation91_spill] sm:$0xff] %v4406_v62  ;;  %6263 = vst [vmem:[#allocation92_spill] sm:$0xff] %v4409_v39  ;;  %v1150_v7 = vld [vmem:[%s4030_s24 + $0x378] sm:$0xff] }
 0x18d   : > { %6264 = vst [vmem:[#allocation93_spill] sm:$0xff] %v4412_v27  ;;  %6265 = vst [vmem:[#allocation94_spill] sm:$0xff] %v4415_v21  ;;  %v4444_v21 = vmul.f32 %v1203_v13, %v4339_v10  ;;  %v4459_v27 = vmul.f32 %v1203_v13, %v4362_v12  ;;  %v4462_v10 = vmul.f32 %v1203_v13, %v4365_v48 }
 0x18e   : > { %6266 = vst [vmem:[#allocation95_spill] sm:$0xff] %v4418_v26  ;;  %6267 = vst [vmem:[#allocation96_spill] sm:$0xff] %v4421_v0  ;;  %v1142_v0 = vld [vmem:[%s4030_s24 + $0x338] sm:$0xff]  ;;  %v1143_v26 = vld [vmem:[%s4030_s24 + $0x340] sm:$0xff]  ;;  %v4477_v12 = vmul.f32 %v1203_v13, %v1132_v35  ;;  %v4479_v48 = vmul.f32 %v1203_v13, %v1133_v58  ;;  %v4500_v35 = vmul.f32 %v4244_v11, %v4409_v39  ;;  %v4502_v58 = vpop.permute.xlu1 %1212 }
 0x18f   : > { %6268 = vst [vmem:[#allocation97_spill] sm:$0xff] %v4424_v14  ;;  %6269 = vst [vmem:[#allocation98_spill] sm:$0xff] %v4429_v5  ;;  %v1146_v5 = vld [vmem:[%s4030_s24 + $0x358] sm:$0xff]  ;;  %v4521_v39 = vmul.f32 %v4244_v11, %v1140_v16  ;;  %v1159_v16 = vld [vmem:[%s4030_s24 + $0x3c0] sm:$0xff] }
 0x190   : > { %6270 = vst [vmem:[#allocation99_spill] sm:$0xff] %v4444_v21  ;;  %6271 = vst [vmem:[#allocation100_spill] sm:$0xff] %v4447_v32  ;;  %v4473_v32 = vmul.f32 %v1203_v13, %v1130_v59  ;;  %v4475_v21 = vmul.f32 %v1203_v13, %v1131_v24  ;;  %v4492_v59 = vmul.f32 %v4244_v11, %v4403_v47 }
 0x191   : > { %6272 = vst [vmem:[#allocation101_spill] sm:$0xff] %v4450_v50  ;;  %6273 = vst [vmem:[#allocation102_spill] sm:$0xff] %v4453_v19  ;;  %v1148_v19 = vld [vmem:[%s4030_s24 + $0x368] sm:$0xff]  ;;  %v1149_v50 = vld [vmem:[%s4030_s24 + $0x370] sm:$0xff]  ;;  %v4496_v24 = vmul.f32 %v4244_v11, %v4406_v62  ;;  %v4515_v47 = vmul.f32 %v4244_v11, %v4424_v14  ;;  %v4518_v62 = vmul.f32 %v4244_v11, %v1139_v15 }
 0x192   : > { %6274 = vst [vmem:[#allocation103_spill] sm:$0xff] %v4459_v27  ;;  %6275 = vst [vmem:[#allocation104_spill] sm:$0xff] %v4462_v10  ;;  %v4530_v10 = vmul.f32 %v4244_v11, %v1142_v0  ;;  %v4533_v27 = vmul.f32 %v4244_v11, %v1143_v26  ;;  %v4536_v14 = vmul.f32 %v4244_v11, %v1144_v41  ;;  %v1162_v41 = vld [vmem:[%s4030_s24 + $0x3d8] sm:$0xff] }
 0x193   : > { %6276 = vst [vmem:[#allocation105_spill] sm:$0xff] %v4465_v25  ;;  %6277 = vst [vmem:[#allocation106_spill] sm:$0xff] %v4468_v49  ;;  %v4483_v25 = vld [vmem:[%s4030_s24 + $0x380] sm:$0xff]  ;;  %v4488_v49 = vmul.f32 %v1203_v13, %v1134_v40  ;;  %v4508_v13 = vld [vmem:[%s4030_s24 + $0x398] sm:$0xff]  ;;  %v4539_v15 = vmul.f32 %v4244_v11, %v1145_v9  ;;  %v4551_v0 = vmul.f32 %v4244_v11, %v1148_v19 }
 0x194   : > { %6278 = vst [vmem:[#allocation107_spill] sm:$0xff] %v4473_v32  ;;  %6279 = vst [vmem:[#allocation108_spill] sm:$0xff] %v4475_v21  ;;  %v4511_v40 = vld [vmem:[%s4030_s24 + $0x3a0] sm:$0xff]  ;;  %v1157_v21 = vld [vmem:[%s4030_s24 + $0x3b0] sm:$0xff]  ;;  %v4554_v26 = vmul.f32 %v4244_v11, %v1149_v50  ;;  %v1327_v9 = vmul.f32 %v4502_v58, %v4483_v25  ;;  %v1330_v19 = vmul.f32 %v4502_v58, %v4508_v13 }
 0x195   : > { %6280 = vst [vmem:[#allocation109_spill] sm:$0xff] %v4477_v12  ;;  %6281 = vst [vmem:[#allocation110_spill] sm:$0xff] %v4479_v48  ;;  %v4505_v48 = vld [vmem:[%s4030_s24 + $0x390] sm:$0xff]  ;;  %v1156_v12 = vld [vmem:[%s4030_s24 + $0x3a8] sm:$0xff]  ;;  %v1331_v50 = vmul.f32 %v4502_v58, %v4511_v40 }
 0x196   : > { %6282 = vst [vmem:[#allocation111_spill] sm:$0xff] %v4483_v25  ;;  %6283 = vst [vmem:[#allocation112_spill] sm:$0xff] %v4486_v46  ;;  %v1158_v32 = vld [vmem:[%s4030_s24 + $0x3b8] sm:$0xff]  ;;  %v4576_v25 = vmul.f32 %v4502_v58, %v1159_v16  ;;  %v1382_v16 = vadd.f32 %v4172_v23, %v4122_v45 }
 0x197   : > { %6284 = vst [vmem:[#allocation113_spill] sm:$0xff] %v4488_v49  ;;  %6285 = vst [vmem:[#allocation114_spill] sm:$0xff] %v4505_v48  ;;  %v4524_v49 = vmul.f32 %v4244_v11, %v1141_v60  ;;  %v4545_v60 = vmul.f32 %v4244_v11, %v1146_v5  ;;  %v1328_v5 = vmul.f32 %v4502_v58, %v4486_v46 }
 0x198   : > { %6286 = vst [vmem:[#allocation115_spill] sm:$0xff] %v4508_v13  ;;  %6287 = vst [vmem:[#allocation116_spill] sm:$0xff] %v4518_v62  ;;  %v1161_v62 = vld [vmem:[%s4030_s24 + $0x3d0] sm:$0xff]  ;;  %v4585_v13 = vmul.f32 %v4502_v58, %v1162_v41  ;;  %v1421_v41 = vadd.f32 %v4182_v30, %v4132_v53  ;;  %v6293_v30 = vld [vmem:[#allocation57_spill] sm:$0xff] }
 0x199   : > { %6288 = vst [vmem:[#allocation117_spill] sm:$0xff] %v4521_v39  ;;  %6289 = vst [vmem:[#allocation118_spill] sm:$0xff] %v4524_v49  ;;  %v1160_v39 = vld [vmem:[%s4030_s24 + $0x3c8] sm:$0xff]  ;;  %v4548_v49 = vmul.f32 %v4244_v11, %v1147_v6  ;;  %v1329_v6 = vmul.f32 %v4502_v58, %v4505_v48  ;;  %v4582_v48 = vmul.f32 %v4502_v58, %v1161_v62 }
 0x19a   : > { %6290 = vst [vmem:[#allocation119_spill] sm:$0xff] %v4536_v14  ;;  %6291 = vst [vmem:[#allocation120_spill] sm:$0xff] %v4554_v26  ;;  %v4558_v14 = vmul.f32 %v4244_v11, %v1150_v7  ;;  %v1332_v26 = vmul.f32 %v4502_v58, %v1156_v12  ;;  %v1333_v11 = vmul.f32 %v4502_v58, %v1157_v21 }
 0x19b   : > { %v4573_v7 = vmul.f32 %v4502_v58, %v1158_v32  ;;  %v4579_v46 = vmul.f32 %v4502_v58, %v1160_v39  ;;  %v1343_v12 = vadd.f32 %v4166_v37, %v4116_v42  ;;  %v1356_v21 = vadd.f32 %v4168_v36, %v4118_v43 }
 0x19c   : > { %v1369_v32 = vadd.f32 %v4170_v22, %v4120_v44  ;;  %v1395_v39 = vadd.f32 %v4178_v34, %v4128_v51  ;;  %v1408_v62 = vadd.f32 %v4180_v29, %v4130_v52  ;;  %v1434_v43 = vadd.f32 %v4184_v31, %v4134_v54  ;;  %v6292_v22 = vld [vmem:[#allocation56_spill] sm:$0xff]  ;;  %v6294_v31 = vld [vmem:[#allocation58_spill] sm:$0xff] }
 0x19d   : > { %v1344_v37 = vadd.f32 %v1343_v12, %v4217_v8  ;;  %v1357_v42 = vadd.f32 %v1356_v21, %v4220_v56  ;;  %v1383_v44 = vadd.f32 %v1382_v16, %v4226_v55  ;;  %v1422_v29 = vadd.f32 %v1421_v41, %v4239_v3  ;;  %v6297_v12 = vld [vmem:[#allocation78_spill] sm:$0xff]  ;;  %v6298_v21 = vld [vmem:[#allocation60_spill] sm:$0xff] }
 0x19e   : > { %v1370_v36 = vadd.f32 %v1369_v32, %v4223_v57  ;;  %v1396_v45 = vadd.f32 %v1395_v39, %v4233_v1  ;;  %v1409_v34 = vadd.f32 %v1408_v62, %v4236_v2  ;;  %v1435_v8 = vadd.f32 %v1434_v43, %v4242_v4  ;;  %v6295_v57 = vld [vmem:[#allocation59_spill] sm:$0xff]  ;;  %v6296_v2 = vld [vmem:[#allocation77_spill] sm:$0xff]  ;;  %v6300_v16 = vld [vmem:[#allocation84_spill] sm:$0xff] }
 0x19f   : > { %v1345_v51 = vadd.f32 %v1344_v37, %v4285_v38  ;;  %v1358_v52 = vadd.f32 %v1357_v42, %v4287_v33  ;;  %v1384_v23 = vadd.f32 %v1383_v44, %v6292_v22  ;;  %v1423_v55 = vadd.f32 %v1422_v29, %v6295_v57  ;;  %v6299_v32 = vld [vmem:[#allocation83_spill] sm:$0xff]  ;;  %v6301_v62 = vld [vmem:[#allocation85_spill] sm:$0xff] }
 0x1a0   : > { %v1371_v53 = vadd.f32 %v1370_v36, %v4289_v28  ;;  %v1397_v54 = vadd.f32 %v1396_v45, %v6293_v30  ;;  %v1410_v56 = vadd.f32 %v1409_v34, %v6294_v31  ;;  %v1436_v33 = vadd.f32 %v1435_v8, %v6298_v21  ;;  %v6302_v36 = vld [vmem:[#allocation86_spill] sm:$0xff]  ;;  %v6303_v44 = vld [vmem:[#allocation99_spill] sm:$0xff]  ;;  %v6304_v34 = vld [vmem:[#allocation100_spill] sm:$0xff] }
 0x1a1   : > { %v1346_v1 = vadd.f32 %v1345_v51, %v4352_v17  ;;  %v1359_v3 = vadd.f32 %v1358_v52, %v6296_v2  ;;  %v1385_v28 = vadd.f32 %v1384_v23, %v4374_v63  ;;  %v1424_v41 = vadd.f32 %v1423_v55, %v6301_v62  ;;  %v6305_v51 = vld [vmem:[#allocation101_spill] sm:$0xff]  ;;  %v6306_v52 = vld [vmem:[#allocation102_spill] sm:$0xff]  ;;  %v6307_v23 = vld [vmem:[#allocation103_spill] sm:$0xff] }
 0x1a2   : > { %v1372_v38 = vadd.f32 %v1371_v53, %v6297_v12  ;;  %v1398_v4 = vadd.f32 %v1397_v54, %v6299_v32  ;;  %v1411_v39 = vadd.f32 %v1410_v56, %v6300_v16  ;;  %v1437_v43 = vadd.f32 %v1436_v33, %v6302_v36  ;;  %v6308_v30 = vld [vmem:[#allocation116_spill] sm:$0xff]  ;;  %v6309_v31 = vld [vmem:[#allocation117_spill] sm:$0xff]  ;;  %v6310_v57 = vld [vmem:[#allocation118_spill] sm:$0xff] }
 0x1a3   : > { %v1347_v37 = vadd.f32 %v1346_v1, %v4432_v61  ;;  %v1360_v42 = vadd.f32 %v1359_v3, %v4435_v18  ;;  %v1386_v45 = vadd.f32 %v1385_v28, %v6303_v44  ;;  %v1425_v53 = vadd.f32 %v1424_v41, %v6306_v52  ;;  %v1163_v44 = vld [vmem:[%s4030_s24 + $0x3e0] sm:$0xff] }
 0x1a4   : > { %v1373_v17 = vadd.f32 %v1372_v38, %v4438_v20  ;;  %v1399_v29 = vadd.f32 %v1398_v4, %v6304_v34  ;;  %v1412_v63 = vadd.f32 %v1411_v39, %v6305_v51  ;;  %v1438_v18 = vadd.f32 %v1437_v43, %v6307_v23  ;;  %v1165_v34 = vld [vmem:[%s4030_s24 + $0x3f0] sm:$0xff] }
 0x1a5   : > { %v1348_v8 = vadd.f32 %v1347_v37, %v4492_v59  ;;  %v1361_v22 = vadd.f32 %v1360_v42, %v4496_v24  ;;  %v1387_v20 = vadd.f32 %v1386_v45, %v4515_v47  ;;  %v1426_v55 = vadd.f32 %v1425_v53, %v6310_v57  ;;  %v1164_v45 = vld [vmem:[%s4030_s24 + $0x3e8] sm:$0xff]  ;;  %v1166_v53 = vld [vmem:[%s4030_s24 + $0x3f8] sm:$0xff] }
 0x1a6   : > { %v1374_v61 = vadd.f32 %v1373_v17, %v4500_v35  ;;  %v1400_v54 = vadd.f32 %v1399_v29, %v6308_v30  ;;  %v1413_v56 = vadd.f32 %v1412_v63, %v6309_v31  ;;  %v1439_v12 = vadd.f32 %v1438_v18, %v4530_v10 }
 0x1a7   : > { %v1349_v1 = vadd.f32 %v1348_v8, %v1327_v9  ;;  %v1362_v2 = vadd.f32 %v1361_v22, %v1328_v5  ;;  %v1388_v59 = vadd.f32 %v1387_v20, %v1330_v19  ;;  %v1427_v21 = vadd.f32 %v1426_v55, %v1333_v11 }
 0x1a8   : > { %v1375_v3 = vadd.f32 %v1374_v61, %v1329_v6  ;;  %v1401_v38 = vadd.f32 %v1400_v54, %v1331_v50  ;;  %v1414_v24 = vadd.f32 %v1413_v56, %v1332_v26  ;;  %v1440_v47 = vadd.f32 %v1439_v12, %v4573_v7 }
 0x1a9   : > { %v1350_v35 = vrot.slane %v1349_v1, 4  ;;  %v1363_v33 = vrot.slane %v1362_v2, 4  ;;  %v1389_v32 = vrot.slane %v1388_v59, 4  ;;  %v1428_v39 = vrot.slane %v1427_v21, 4 }
 0x1aa   : > { %v1376_v28 = vrot.slane %v1375_v3, 4  ;;  %v1402_v4 = vrot.slane %v1401_v38, 4  ;;  %v1415_v16 = vrot.slane %v1414_v24, 4  ;;  %v1441_v10 = vrot.slane %v1440_v47, 4 }
 0x1ab   : > { %v1351_v62 = vadd.f32 %v1350_v35, %v1349_v1  ;;  %v1364_v9 = vadd.f32 %v1363_v33, %v1362_v2  ;;  %v1390_v6 = vadd.f32 %v1389_v32, %v1388_v59  ;;  %v1429_v50 = vadd.f32 %v1428_v39, %v1427_v21  ;;  %v6311_v33 = vld [vmem:[#allocation30_spill] sm:$0xff]  ;;  %v6314_v32 = vld [vmem:[#allocation39_spill] sm:$0xff]  ;;  %v6316_v39 = vld [vmem:[#allocation40_spill] sm:$0xff] }
 0x1ac   : > { %v1377_v5 = vadd.f32 %v1376_v28, %v1375_v3  ;;  %v1403_v19 = vadd.f32 %v1402_v4, %v1401_v38  ;;  %v1416_v26 = vadd.f32 %v1415_v16, %v1414_v24  ;;  %v1442_v7 = vadd.f32 %v1441_v10, %v1440_v47  ;;  %v6312_v28 = vld [vmem:[#allocation38_spill] sm:$0xff]  ;;  %v6313_v47 = vld [vmem:[#allocation31_spill] sm:$0xff]  ;;  %v6315_v16 = vld [vmem:[#allocation32_spill] sm:$0xff] }
 0x1ad   : > { %v1352_v11 = vrot.slane %v1351_v62, 2  ;;  %v1365_v41 = vrot.slane %v1364_v9, 2  ;;  %v1391_v42 = vrot.slane %v1390_v6, 2  ;;  %v1430_v43 = vrot.slane %v1429_v50, 2 }
 0x1ae   : > { %v1378_v37 = vrot.slane %v1377_v5, 2  ;;  %v1404_v17 = vrot.slane %v1403_v19, 2  ;;  %v1417_v36 = vrot.slane %v1416_v26, 2  ;;  %v1443_v52 = vrot.slane %v1442_v7, 2 }
 0x1af   : > { %v1353_v29 = vadd.f32 %v1352_v11, %v1351_v62  ;;  %v1366_v51 = vadd.f32 %v1365_v41, %v1364_v9  ;;  %v4648_v8 = vadd.f32 %v1391_v42, %v1390_v6  ;;  %v4652_v23 = vadd.f32 %v1430_v43, %v1429_v50  ;;  %v6317_v9 = vld [vmem:[#allocation33_spill] sm:$0xff]  ;;  %v6319_v6 = vld [vmem:[#allocation34_spill] sm:$0xff]  ;;  %v6321_v50 = vld [vmem:[#allocation35_spill] sm:$0xff] }
 0x1b0   : > { %v1379_v63 = vadd.f32 %v1378_v37, %v1377_v5  ;;  %v1405_v22 = vadd.f32 %v1404_v17, %v1403_v19  ;;  %v4650_v61 = vadd.f32 %v1417_v36, %v1416_v26  ;;  %v4654_v54 = vadd.f32 %v1443_v52, %v1442_v7  ;;  %v6318_v5 = vld [vmem:[#allocation41_spill] sm:$0xff]  ;;  %v6320_v19 = vld [vmem:[#allocation42_spill] sm:$0xff]  ;;  %v6322_v11 = vld [vmem:[#allocation43_spill] sm:$0xff] }
 0x1b1   : > { %v1354_v18 = vrot.slane %v1353_v29, 1  ;;  %v1367_v20 = vrot.slane %v1366_v51, 1  ;;  %v4657_v31 = vmul.f32 %v4502_v58, %v1163_v44  ;;  %v4660_v56 = vmul.f32 %v4502_v58, %v1164_v45  ;;  %v6323_v37 = vld [vmem:[#allocation36_spill] sm:$0xff]  ;;  %v6325_v17 = vld [vmem:[#allocation46_spill] sm:$0xff]  ;;  %v6326_v43 = vld [vmem:[#allocation47_spill] sm:$0xff] }
 0x1b2   : > { %v1380_v30 = vrot.slane %v1379_v63, 1  ;;  %v4663_v57 = vmul.f32 %v4502_v58, %v1165_v34  ;;  %v1406_v55 = vrot.slane %v1405_v22, 1  ;;  %v4666_v1 = vmul.f32 %v4502_v58, %v1166_v53  ;;  %v6324_v7 = vld [vmem:[#allocation44_spill] sm:$0xff]  ;;  %v6330_v52 = vld [vmem:[#allocation49_spill] sm:$0xff] }
 0x1b3   : > { %v1393_v2 = vrot.slane %v4648_v8, 1  ;;  %v1419_v3 = vrot.slane %v4650_v61, 1  ;;  %v1432_v12 = vrot.slane %v4652_v23, 1  ;;  %v4671_v59 = vadd.f32 %v1354_v18, %v1353_v29  ;;  %v6327_v45 = vld [vmem:[#allocation48_spill] sm:$0xff]  ;;  %v6328_v29 = vld [vmem:[#allocation37_spill] sm:$0xff] }
 0x1b4   : > { %v4673_v38 = vadd.f32 %v1367_v20, %v1366_v51  ;;  %v4675_v24 = vadd.f32 %v1380_v30, %v1379_v63  ;;  %v1445_v21 = vrot.slane %v4654_v54, 1  ;;  %v4678_v35 = vadd.f32 %v1406_v55, %v1405_v22  ;;  %v6329_v51 = vld [vmem:[#allocation45_spill] sm:$0xff]  ;;  %v6331_v22 = vld [vmem:[#allocation52_spill] sm:$0xff]  ;;  %v6333_v55 = vld [vmem:[#allocation54_spill] sm:$0xff] }
 0x1b5   : > { %v1447_v58 = vadd.f32 %v6312_v28, %v6311_v33  ;;  %v1460_v4 = vadd.f32 %v6314_v32, %v6313_v47  ;;  %v1473_v62 = vadd.f32 %v6316_v39, %v6315_v16  ;;  %v1486_v10 = vadd.f32 %v6318_v5, %v6317_v9  ;;  %v6332_v20 = vld [vmem:[#allocation53_spill] sm:$0xff]  ;;  %v6335_v32 = vld [vmem:[#allocation62_spill] sm:$0xff] }
 0x1b6   : > { %v1499_v26 = vadd.f32 %v6320_v19, %v6319_v6  ;;  %v1512_v41 = vadd.f32 %v6322_v11, %v6321_v50  ;;  %v1525_v42 = vadd.f32 %v6324_v7, %v6323_v37  ;;  %v1538_v63 = vadd.f32 %v6329_v51, %v6328_v29  ;;  %v6334_v28 = vld [vmem:[#allocation61_spill] sm:$0xff]  ;;  %v6339_v6 = vld [vmem:[#allocation68_spill] sm:$0xff]  ;;  %v6341_v11 = vld [vmem:[#allocation70_spill] sm:$0xff] }
 0x1b7   : > { %v1448_v36 = vadd.f32 %v1447_v58, %v6325_v17  ;;  %v1461_v44 = vadd.f32 %v1460_v4, %v6326_v43  ;;  %v1474_v34 = vadd.f32 %v1473_v62, %v6327_v45  ;;  %v1487_v53 = vadd.f32 %v1486_v10, %v6330_v52  ;;  %v6336_v58 = vld [vmem:[#allocation63_spill] sm:$0xff]  ;;  %v6338_v62 = vld [vmem:[#allocation64_spill] sm:$0xff]  ;;  %v6340_v50 = vld [vmem:[#allocation69_spill] sm:$0xff] }
 0x1b8   : > { %v1500_v18 = vadd.f32 %v1499_v26, %v6331_v22  ;;  %v1513_v30 = vadd.f32 %v1512_v41, %v6332_v20  ;;  %v1526_v33 = vadd.f32 %v1525_v42, %v6333_v55  ;;  %v6337_v4 = vld [vmem:[#allocation55_spill] sm:$0xff]  ;;  %v6343_v7 = vld [vmem:[#allocation88_spill] sm:$0xff]  ;;  %v6344_v17 = vld [vmem:[#allocation89_spill] sm:$0xff] }
 0x1b9   : > { %v1449_v47 = vadd.f32 %v1448_v36, %v6334_v28  ;;  %v1462_v16 = vadd.f32 %v1461_v44, %v6335_v32  ;;  %v1475_v39 = vadd.f32 %v1474_v34, %v6336_v58  ;;  %v1539_v9 = vadd.f32 %v1538_v63, %v6337_v4  ;;  %v6342_v37 = vld [vmem:[#allocation87_spill] sm:$0xff]  ;;  %v6346_v45 = vld [vmem:[#allocation93_spill] sm:$0xff]  ;;  %v6347_v29 = vld [vmem:[#allocation94_spill] sm:$0xff] }
 0x1ba   : > { %v1488_v5 = vadd.f32 %v1487_v53, %v6338_v62  ;;  %v1501_v19 = vadd.f32 %v1500_v18, %v6339_v6  ;;  %v1514_v10 = vadd.f32 %v1513_v30, %v6340_v50  ;;  %v1527_v26 = vadd.f32 %v1526_v33, %v6341_v11  ;;  %v6345_v43 = vld [vmem:[#allocation71_spill] sm:$0xff]  ;;  %v6349_v53 = vld [vmem:[#allocation96_spill] sm:$0xff]  ;;  %v6351_v30 = vld [vmem:[#allocation105_spill] sm:$0xff] }
 0x1bb   : > { %v1450_v41 = vadd.f32 %v1449_v47, %v6342_v37  ;;  %v1463_v42 = vadd.f32 %v1462_v16, %v6343_v7  ;;  %v1476_v36 = vadd.f32 %v1475_v39, %v6344_v17  ;;  %v1540_v44 = vadd.f32 %v1539_v9, %v6345_v43  ;;  %v6348_v63 = vld [vmem:[#allocation95_spill] sm:$0xff]  ;;  %v6350_v18 = vld [vmem:[#allocation104_spill] sm:$0xff]  ;;  %v6352_v33 = vld [vmem:[#allocation106_spill] sm:$0xff] }
 0x1bc   : > { %v1489_v34 = vadd.f32 %v1488_v5, %v6346_v45  ;;  %v1502_v51 = vadd.f32 %v1501_v19, %v6347_v29  ;;  %v1515_v52 = vadd.f32 %v1514_v10, %v6348_v63  ;;  %v1528_v22 = vadd.f32 %v1527_v26, %v6349_v53  ;;  %v6353_v47 = vld [vmem:[#allocation98_spill] sm:$0xff]  ;;  %v6354_v16 = vld [vmem:[#allocation107_spill] sm:$0xff]  ;;  %v6355_v39 = vld [vmem:[#allocation108_spill] sm:$0xff] }
 0x1bd   : > { %v1451_v20 = vadd.f32 %v1450_v41, %v6350_v18  ;;  %v1464_v55 = vadd.f32 %v1463_v42, %v6351_v30  ;;  %v1477_v28 = vadd.f32 %v1476_v36, %v6352_v33  ;;  %v1541_v32 = vadd.f32 %v1540_v44, %v6353_v47  ;;  %v6356_v9 = vld [vmem:[#allocation109_spill] sm:$0xff]  ;;  %v6357_v5 = vld [vmem:[#allocation110_spill] sm:$0xff]  ;;  %v6358_v50 = vld [vmem:[#allocation119_spill] sm:$0xff] }
 0x1be   : > { %v1490_v58 = vadd.f32 %v1489_v34, %v6354_v16  ;;  %v1503_v4 = vadd.f32 %v1502_v51, %v6355_v39  ;;  %v1516_v62 = vadd.f32 %v1515_v52, %v6356_v9  ;;  %v1529_v6 = vadd.f32 %v1528_v22, %v6357_v5  ;;  %v6359_v26 = vld [vmem:[#allocation113_spill] sm:$0xff]  ;;  %v6360_v17 = vld [vmem:[#allocation120_spill] sm:$0xff]  ;;  %v6361_v16 = vld [vmem:[#allocation14_spill] sm:$0xff] }
 0x1bf   : > { %v1452_v19 = vadd.f32 %v1451_v20, %v4533_v27  ;;  %v1465_v10 = vadd.f32 %v1464_v55, %v6358_v50  ;;  %v1478_v11 = vadd.f32 %v1477_v28, %v4539_v15  ;;  %v1542_v37 = vadd.f32 %v1541_v32, %v6359_v26  ;;  %v6363_v5 = vld [vmem:[#allocation16_spill] sm:$0xff] }
 0x1c0   : > { %v1491_v41 = vadd.f32 %v1490_v58, %v4545_v60  ;;  %v1504_v7 = vadd.f32 %v1503_v4, %v4548_v49  ;;  %v1517_v42 = vadd.f32 %v1516_v62, %v4551_v0  ;;  %v1530_v36 = vadd.f32 %v1529_v6, %v6360_v17  ;;  %v6362_v58 = vld [vmem:[#allocation15_spill] sm:$0xff]  ;;  %v6364_v6 = vld [vmem:[#allocation18_spill] sm:$0xff] }
 0x1c1   : > { %v1453_v43 = vadd.f32 %v1452_v19, %v4576_v25  ;;  %v1466_v44 = vadd.f32 %v1465_v10, %v4579_v46  ;;  %v1479_v27 = vadd.f32 %v1478_v11, %v4582_v48  ;;  %v1543_v45 = vadd.f32 %v1542_v37, %v4558_v14  ;;  %v6365_v19 = vld [vmem:[#allocation19_spill] sm:$0xff]  ;;  %v6366_v37 = vld [vmem:[#allocation17_spill] sm:$0xff] }
 0x1c2   : > { %v1492_v15 = vadd.f32 %v1491_v41, %v4585_v13  ;;  %v1505_v34 = vadd.f32 %v1504_v7, %v4657_v31  ;;  %v1518_v60 = vadd.f32 %v1517_v42, %v4660_v56  ;;  %v1531_v49 = vadd.f32 %v1530_v36, %v4663_v57  ;;  %v6367_v41 = vld [vmem:[#allocation20_spill] sm:$0xff]  ;;  %v6368_v7 = vld [vmem:[#allocation21_spill] sm:$0xff] }
 0x1c3   : > { %v1454_v29 = vrot.slane %v1453_v43, 4  ;;  %v1467_v0 = vrot.slane %v1466_v44, 4  ;;  %v1480_v51 = vrot.slane %v1479_v27, 4  ;;  %v1544_v63 = vadd.f32 %v1543_v45, %v4666_v1 }
 0x1c4   : > { %v1493_v25 = vrot.slane %v1492_v15, 4  ;;  %v1506_v52 = vrot.slane %v1505_v34, 4  ;;  %v1519_v46 = vrot.slane %v1518_v60, 4  ;;  %v1532_v53 = vrot.slane %v1531_v49, 4 }
 0x1c5   : > { %v1455_v48 = vadd.f32 %v1454_v29, %v1453_v43  ;;  %v1468_v22 = vadd.f32 %v1467_v0, %v1466_v44  ;;  %v1481_v14 = vadd.f32 %v1480_v51, %v1479_v27  ;;  %v1545_v18 = vrot.slane %v1544_v63, 4 }
 0x1c6   : > { %v1494_v13 = vadd.f32 %v1493_v25, %v1492_v15  ;;  %v1507_v20 = vadd.f32 %v1506_v52, %v1505_v34  ;;  %v1520_v31 = vadd.f32 %v1519_v46, %v1518_v60  ;;  %v1533_v30 = vadd.f32 %v1532_v53, %v1531_v49  ;;  %v6369_v34 = vld [vmem:[#allocation22_spill] sm:$0xff]  ;;  %v6370_v60 = vld [vmem:[#allocation23_spill] sm:$0xff]  ;;  %v6372_v46 = vld [vmem:[#allocation25_spill] sm:$0xff] }
 0x1c7   : > { %v1456_v56 = vrot.slane %v1455_v48, 2  ;;  %v1469_v55 = vrot.slane %v1468_v22, 2  ;;  %v1482_v57 = vrot.slane %v1481_v14, 2  ;;  %v1546_v33 = vadd.f32 %v1545_v18, %v1544_v63  ;;  %v6373_v53 = vld [vmem:[#allocation26_spill] sm:$0xff] }
 0x1c8   : > { %v1495_v28 = vrot.slane %v1494_v13, 2  ;;  %v1508_v47 = vrot.slane %v1507_v20, 2  ;;  %v1521_v32 = vrot.slane %v1520_v31, 2  ;;  %v1534_v1 = vrot.slane %v1533_v30, 2 }
 0x1c9   : > { %vm1612_vm2 = vcmp.lt.s32.totalorder %v6361_v16, 2304  ;;  %vm1613_vm3 = vcmp.lt.s32.totalorder %v6362_v58, 2304  ;;  %v1457_v39 = vadd.f32 %v1456_v56, %v1455_v48  ;;  %v1470_v4 = vadd.f32 %v1469_v55, %v1468_v22 }
 0x1ca   : > { %v1483_v9 = vadd.f32 %v1482_v57, %v1481_v14  ;;  %v1547_v62 = vrot.slane %v1546_v33, 2  ;;  %vm1614_vm4 = vcmp.lt.s32.totalorder %v6363_v5, 2304  ;;  %vm1616_vm5 = vcmp.lt.s32.totalorder %v6364_v6, 2304  ;;  %v3111_v5 = vld [vmem:[%s4030_s24 + $0x228] sm:$0xff] }
 0x1cb   : > { %vm1617_vm6 = vcmp.lt.s32.totalorder %v6365_v19, 2304  ;;  %v1496_v50 = vadd.f32 %v1495_v28, %v1494_v13  ;;  %v1509_v10 = vadd.f32 %v1508_v47, %v1507_v20  ;;  %v1522_v11 = vadd.f32 %v1521_v32, %v1520_v31 }
 0x1cc   : > { %v1535_v26 = vadd.f32 %v1534_v1, %v1533_v30  ;;  %vm1615_vm7 = vcmp.lt.s32.totalorder %v6366_v37, 2304  ;;  %vm1618_vm8 = vcmp.lt.s32.totalorder %v6367_v41, 2304  ;;  %vm1619_vm9 = vcmp.lt.s32.totalorder %v6368_v7, 2304 }
 0x1cd   : > { %v1458_v42 = vrot.slane %v1457_v39, 1  ;;  %v1471_v17 = vrot.slane %v1470_v4, 1  ;;  %v1484_v36 = vrot.slane %v1483_v9, 1  ;;  %v1548_v43 = vadd.f32 %v1547_v62, %v1546_v33 }
 0x1ce   : > { %v1420_v44 = vadd.f32 %v1419_v3, %v4650_v61  ;;  %v1497_v27 = vrot.slane %v1496_v50, 1  ;;  %v1510_v45 = vrot.slane %v1509_v10, 1  ;;  %v1523_v15 = vrot.slane %v1522_v11, 1  ;;  %v6371_v3 = vld [vmem:[#allocation24_spill] sm:$0xff] }
 0x1cf   : > { %vm1620_vm10 = vcmp.lt.s32.totalorder %v6369_v34, 2304  ;;  %vm1621_vm11 = vcmp.lt.s32.totalorder %v6370_v60, 2304  ;;  %v1394_v49 = vadd.f32 %v1393_v2, %v4648_v8  ;;  %v1433_v29 = vadd.f32 %v1432_v12, %v4652_v23  ;;  %v6374_v8 = vld [vmem:[#allocation27_spill] sm:$0xff]  ;;  %v6375_v23 = vld [vmem:[#allocation72_spill] sm:$0xff] }
 0x1d0   : > { %v1446_v0 = vadd.f32 %v1445_v21, %v4654_v54  ;;  %v1536_v61 = vrot.slane %v1535_v26, 1  ;;  %vm1622_vm12 = vcmp.lt.s32.totalorder %v6371_v3, 2304  ;;  %v1459_v51 = vadd.f32 %v1458_v42, %v1457_v39 }
 0x1d1   : > { %v1472_v63 = vadd.f32 %v1471_v17, %v1470_v4  ;;  %v1485_v25 = vadd.f32 %v1484_v36, %v1483_v9  ;;  %v1549_v52 = vrot.slane %v1548_v43, 1  ;;  %vm1623_vm13 = vcmp.lt.s32.totalorder %v6372_v46, 2304 }
 0x1d2   : > { %vm1624_vm14 = vcmp.lt.s32.totalorder %v6373_v53, 2304  ;;  %vm1625_vm15 = vcmp.lt.s32.totalorder %v6374_v8, 2304  ;;  %v1498_v2 = vadd.f32 %v1497_v27, %v1496_v50  ;;  %v1511_v48 = vadd.f32 %v1510_v45, %v1509_v10  ;;  %v6376_v10 = vld [vmem:[#allocation28_spill] sm:$0xff] }
 0x1d3   : > { %v1561_v12 = vadd.f32 %v6375_v23, %v4671_v59  ;;  %v1562_v54 = vadd.f32 %v6375_v23, %v4673_v38  ;;  %v1524_v21 = vadd.f32 %v1523_v15, %v1522_v11  ;;  %v1563_v22 = vadd.f32 %v6375_v23, %v4675_v24  ;;  %v6377_v11 = vld [vmem:[#allocation29_spill] sm:$0xff] }
 0x1d4   : > { %v1565_v14 = vadd.f32 %v6375_v23, %v4678_v35  ;;  %v1566_v18 = vadd.f32 %v6375_v23, %v1420_v44  ;;  %v1537_v13 = vadd.f32 %v1536_v61, %v1535_v26  ;;  %v1564_v20 = vadd.f32 %v6375_v23, %v1394_v49 }
 0x1d5   : > { %v1567_v31 = vadd.f32 %v6375_v23, %v1433_v29  ;;  %v1568_v30 = vadd.f32 %v6375_v23, %v1446_v0  ;;  %v1550_v59 = vadd.f32 %v1549_v52, %v1548_v43  ;;  %v1569_v56 = vadd.f32 %v6375_v23, %v1459_v51 }
 0x1d6   : > { %v1570_v38 = vadd.f32 %v6375_v23, %v1472_v63  ;;  %v1571_v55 = vadd.f32 %v6375_v23, %v1485_v25  ;;  %v1572_v24 = vadd.f32 %v6375_v23, %v1498_v2  ;;  %v1573_v35 = vadd.f32 %v6375_v23, %v1511_v48 }
 0x1d7   : > { %v4789_v57 = vsel %vm1612_vm2, %v1561_v12, -1e+30  ;;  %v4793_v33 = vsel %vm1613_vm3, %v1562_v54, -1e+30  ;;  %v1574_v28 = vadd.f32 %v6375_v23, %v1524_v21  ;;  %v4798_v47 = vsel %vm1614_vm4, %v1563_v22, -1e+30 }
 0x1d8   : > { %v4802_v32 = vsel %vm1616_vm5, %v1565_v14, -1e+30  ;;  %v4806_v1 = vsel %vm1617_vm6, %v1566_v18, -1e+30  ;;  %v4810_v39 = vsel %vm1615_vm7, %v1564_v20, -1e+30  ;;  %v1575_v50 = vadd.f32 %v6375_v23, %v1537_v13 }
 0x1d9   : > { %v4814_v4 = vsel %vm1618_vm8, %v1567_v31, -1e+30  ;;  %v4818_v9 = vsel %vm1619_vm9, %v1568_v30, -1e+30  ;;  %v1805_v62 = vmax.f32 %v4789_v57, %v4802_v32  ;;  %vm6141_vm0 = vcmp.lt.s32.totalorder %v6376_v10, 2304  ;;  %v6380_v20 = vld [vmem:[#allocation50_spill] sm:$0xff] }
 0x1da   : > { %vm1627_vm1 = vcmp.lt.s32.totalorder %v6377_v11, 2304  ;;  %v1806_v26 = vmax.f32 %v4793_v33, %v4806_v1  ;;  %v1576_v42 = vadd.f32 %v6375_v23, %v1550_v59  ;;  %v4830_v17 = vsel %vm1620_vm10, %v1569_v56, -1e+30  ;;  %v4872_v22 = vld [vmem:[#allocation2] sm:$0x1]  ;;  %v6382_v30 = vld [vmem:[#allocation51_spill] sm:$0xff] }
 0x1db   : > { %v4834_v36 = vsel %vm1621_vm11, %v1570_v38, -1e+30  ;;  %v1807_v43 = vmax.f32 %v4798_v47, %v4814_v4  ;;  %v4840_v44 = vsel %vm1622_vm12, %v1571_v55, -1e+30  ;;  %v1808_v27 = vmax.f32 %v4810_v39, %v4818_v9  ;;  %6378 = vst [vmem:[#allocation56_spill] sm:$0xff] %v4872_v22  ;;  %v6384_v56 = vld [vmem:[#allocation65_spill] sm:$0xff] }
 0x1dc   : > { %v1809_v45 = vmax.f32 %v1805_v62, %v4830_v17  ;;  %v1810_v15 = vmax.f32 %v1806_v26, %v4834_v36  ;;  %v4848_v49 = vsel %vm1623_vm13, %v1572_v24, -1e+30  ;;  %v4852_v29 = vsel %vm1624_vm14, %v1573_v35, -1e+30  ;;  %v6386_v55 = vld [vmem:[#allocation66_spill] sm:$0xff]  ;;  %v6388_v35 = vld [vmem:[#allocation67_spill] sm:$0xff] }
 0x1dd   : > { %v4856_v0 = vsel %vm1625_vm15, %v1574_v28, -1e+30  ;;  %v1811_v61 = vmax.f32 %v1807_v43, %v4840_v44  ;;  %v4861_v51 = vsel %vm6141_vm0, %v1575_v50, -1e+30  ;;  %v1812_v63 = vmax.f32 %v1808_v27, %v4848_v49  ;;  %v6390_v62 = vld [vmem:[#allocation90_spill] sm:$0xff]  ;;  %v6392_v26 = vld [vmem:[#allocation91_spill] sm:$0xff] }
 0x1de   : > { %v1813_v25 = vmax.f32 %v1809_v45, %v4852_v29  ;;  %v1814_v52 = vmax.f32 %v1810_v15, %v4856_v0  ;;  %v4868_v2 = vsel %vm1627_vm1, %v1576_v42, -1e+30  ;;  %vm6144_vm0 = vcmask 0   ;;  %v6394_v43 = vld [vmem:[#allocation92_spill] sm:$0xff]  ;;  %v6396_v45 = vld [vmem:[#allocation97_spill] sm:$0xff] }
 0x1df   : > { %v1815_v48 = vmax.f32 %v1811_v61, %v4861_v51  ;;  %v1816_v23 = vmax.f32 %v1812_v63, %v4868_v2  ;;  %v4885_v31 = vsel %vm1612_vm2, %v6380_v20, 0.0  ;;  %v4890_v59 = vsel %vm1613_vm3, %v6382_v30, 0.0  ;;  %v6398_v61 = vld [vmem:[#allocation111_spill] sm:$0xff]  ;;  %v3045_v30 = vld [vmem:[%s4030_s24 + $0x8] sm:$0xff] }
 0x1e0   : > { %v1817_v12 = vmax.f32 %v1813_v25, %v1814_v52  ;;  %6381 = vst [vmem:[#allocation58_spill] sm:$0xff] %v4885_v31  ;;  %6383 = vst [vmem:[#allocation59_spill] sm:$0xff] %v4890_v59  ;;  %v4895_v38 = vsel %vm1612_vm2, %v6384_v56, 0.0  ;;  %v4900_v24 = vsel %vm1613_vm3, %v6386_v55, 0.0  ;;  %v4905_v28 = vsel %vm1614_vm4, %v6388_v35, 0.0  ;;  %v6400_v25 = vld [vmem:[#allocation112_spill] sm:$0xff] }
 0x1e1   : > { %v1818_v54 = vmax.f32 %v1815_v48, %v1816_v23  ;;  %6385 = vst [vmem:[#allocation77_spill] sm:$0xff] %v4895_v38  ;;  %6387 = vst [vmem:[#allocation78_spill] sm:$0xff] %v4900_v24  ;;  %v4910_v50 = vsel %vm1612_vm2, %v6390_v62, 0.0  ;;  %v4915_v42 = vsel %vm1613_vm3, %v6392_v26, 0.0  ;;  %v4920_v27 = vsel %vm1614_vm4, %v6394_v43, 0.0  ;;  %v6402_v48 = vld [vmem:[#allocation114_spill] sm:$0xff] }
 0x1e2   : > { %6389 = vst [vmem:[#allocation60_spill] sm:$0xff] %v4905_v28  ;;  %6391 = vst [vmem:[#allocation83_spill] sm:$0xff] %v4910_v50  ;;  %v4925_v15 = vsel %vm1615_vm7, %v6396_v45, 0.0  ;;  %v4930_v63 = vsel %vm1612_vm2, %v6398_v61, 0.0  ;;  %v4935_v52 = vsel %vm1613_vm3, %v6400_v25, 0.0  ;;  %v4940_v23 = vsel %vm1614_vm4, %v6402_v48, 0.0 }
 0x1e3   : > { %v1819_v21 = vmax.f32 %v1817_v12, %v1818_v54  ;;  %6393 = vst [vmem:[#allocation84_spill] sm:$0xff] %v4915_v42  ;;  %6395 = vst [vmem:[#allocation85_spill] sm:$0xff] %v4920_v27  ;;  %v6404_v12 = vld [vmem:[#allocation115_spill] sm:$0xff]  ;;  %v4960_v56 = vsel %vm1613_vm3, %v3045_v30, 0.0  ;;  %v3048_v26 = vld [vmem:[%s4030_s24 + $0x20] sm:$0xff] }
 0x1e4   : > { %6397 = vst [vmem:[#allocation86_spill] sm:$0xff] %v4925_v15  ;;  %6399 = vst [vmem:[#allocation99_spill] sm:$0xff] %v4930_v63  ;;  %v4945_v54 = vsel %vm1615_vm7, %v6404_v12, 0.0  ;;  %v3046_v55 = vld [vmem:[%s4030_s24 + $0x10] sm:$0xff]  ;;  %v4975_v43 = vsel %vm1616_vm5, %v3048_v26, 0.0  ;;  %v3049_v45 = vld [vmem:[%s4030_s24 + $0x28] sm:$0xff] }
 0x1e5   : > { %1820 = vmax.xlane.f32.xlu1 %v1819_v21  ;;  %6401 = vst [vmem:[#allocation100_spill] sm:$0xff] %v4935_v52  ;;  %6403 = vst [vmem:[#allocation101_spill] sm:$0xff] %v4940_v23  ;;  %v4950_v21 = vsel %vm1616_vm5, %v4511_v40, 0.0  ;;  %v4965_v35 = vsel %vm1614_vm4, %v3046_v55, 0.0  ;;  %v3047_v40 = vld [vmem:[%s4030_s24 + $0x18] sm:$0xff]  ;;  %v4980_v61 = vsel %vm1617_vm6, %v3049_v45, 0.0 }
 0x1e6   : > { %6405 = vst [vmem:[#allocation102_spill] sm:$0xff] %v4945_v54  ;;  %6406 = vst [vmem:[#allocation103_spill] sm:$0xff] %v4950_v21  ;;  %v4970_v62 = vsel %vm1615_vm7, %v3047_v40, 0.0  ;;  %v3050_v25 = vld [vmem:[%s4030_s24 + $0x30] sm:$0xff]  ;;  %v3051_v12 = vld [vmem:[%s4030_s24 + $0x38] sm:$0xff] }
 0x1e7   : > { %v4985_v48 = vsel %vm1618_vm8, %v3050_v25, 0.0  ;;  %v3052_v30 = vld [vmem:[%s4030_s24 + $0x40] sm:$0xff]  ;;  %v3053_v40 = vld [vmem:[%s4030_s24 + $0x48] sm:$0xff]  ;;  %v3054_v45 = vld [vmem:[%s4030_s24 + $0x50] sm:$0xff] }
 0x1e8   : > { %v4995_v55 = vsel %vm1620_vm10, %v3052_v30, 0.0  ;;  %v5000_v26 = vsel %vm1621_vm11, %v3053_v40, 0.0  ;;  %v5005_v25 = vsel %vm1622_vm12, %v3054_v45, 0.0  ;;  %v3056_v30 = vld [vmem:[%s4030_s24 + $0x60] sm:$0xff]  ;;  %v3057_v40 = vld [vmem:[%s4030_s24 + $0x68] sm:$0xff]  ;;  %v3058_v45 = vld [vmem:[%s4030_s24 + $0x70] sm:$0xff] }
 0x1e9   : > { %6407 = vst [vmem:[#allocation116_spill] sm:$0xff] %v5005_v25  ;;  %v3083_v25 = vld [vmem:[%s4030_s24 + $0x138] sm:$0xff] }
 0x272   : > { %v1821_v14 = vpop.xlane.xlu1 %1820 }
 0x273   : > { %v4875_v18 = vmax.f32 %v4872_v22, %v1821_v14  ;;  %v3044_v14 = vld [vmem:[%s4030_s24] sm:$0xff]  ;;  %v5020_v22 = vsel %vm1625_vm15, %v3057_v40, 0.0  ;;  %v3061_v40 = vld [vmem:[%s4030_s24 + $0x88] sm:$0xff] }
 0x274   : > { %v4955_v20 = vsel %vm1612_vm2, %v3044_v14, 0.0  ;;  %v4990_v14 = vsel %vm1619_vm9, %v3051_v12, 0.0  ;;  %v3055_v12 = vld [vmem:[%s4030_s24 + $0x58] sm:$0xff]  ;;  %6410 = vst [vmem:[#allocation30_spill] sm:$0xff] %v5020_v22  ;;  %v5040_v52 = vsel %vm1613_vm3, %v3061_v40, 0.0  ;;  %v3065_v40 = vld [vmem:[%s4030_s24 + $0xa8] sm:$0xff] }
 0x275   : > { %6379 = vst [vmem:[#allocation57_spill] sm:$0xff] %v4875_v18  ;;  %2208 = vst.msk [vmem:[#allocation2] sm:$0x1] %vm6144_vm0, %v4875_v18  ;;  %1828 = vperm.xlu0 %3008, %v4875_v18   ;;  %v5010_v13 = vsel %vm1623_vm13, %v3055_v12, 0.0  ;;  %v5015_v18 = vsel %vm1624_vm14, %v3056_v30, 0.0  ;;  %vm6411_vm0 = vcmp.lt.s32.totalorder %v6376_v10, 2304 }
 0x276   : > { %6408 = vst [vmem:[#allocation117_spill] sm:$0xff] %v5010_v13  ;;  %6409 = vst [vmem:[#allocation118_spill] sm:$0xff] %v5015_v18  ;;  %v5025_v21 = vsel %vm6411_vm0, %v3058_v45, 0.0  ;;  %v3059_v12 = vld [vmem:[%s4030_s24 + $0x78] sm:$0xff]  ;;  %v3060_v30 = vld [vmem:[%s4030_s24 + $0x80] sm:$0xff]  ;;  %v5060_v42 = vsel %vm1617_vm6, %v3065_v40, 0.0 }
 0x277   : > { %6412 = vst [vmem:[#allocation38_spill] sm:$0xff] %v5025_v21  ;;  %v5030_v54 = vsel %vm1627_vm1, %v3059_v12, 0.0  ;;  %v5035_v23 = vsel %vm1612_vm2, %v3060_v30, 0.0  ;;  %v3062_v45 = vld [vmem:[%s4030_s24 + $0x90] sm:$0xff]  ;;  %v3063_v12 = vld [vmem:[%s4030_s24 + $0x98] sm:$0xff]  ;;  %v3064_v30 = vld [vmem:[%s4030_s24 + $0xa0] sm:$0xff] }
 0x278   : > { %6413 = vst [vmem:[#allocation31_spill] sm:$0xff] %v5030_v54  ;;  %v5045_v63 = vsel %vm1614_vm4, %v3062_v45, 0.0  ;;  %v5050_v15 = vsel %vm1615_vm7, %v3063_v12, 0.0  ;;  %v5055_v27 = vsel %vm1616_vm5, %v3064_v30, 0.0  ;;  %v3066_v45 = vld [vmem:[%s4030_s24 + $0xb0] sm:$0xff]  ;;  %v3067_v12 = vld [vmem:[%s4030_s24 + $0xb8] sm:$0xff] }
 0x279   : > { %v5065_v50 = vsel %vm1618_vm8, %v3066_v45, 0.0  ;;  %v5070_v28 = vsel %vm1619_vm9, %v3067_v12, 0.0  ;;  %v3068_v30 = vld [vmem:[%s4030_s24 + $0xc0] sm:$0xff]  ;;  %v3069_v40 = vld [vmem:[%s4030_s24 + $0xc8] sm:$0xff]  ;;  %v3070_v45 = vld [vmem:[%s4030_s24 + $0xd0] sm:$0xff] }
 0x27a   : > { %v5075_v24 = vsel %vm1620_vm10, %v3068_v30, 0.0  ;;  %v5080_v38 = vsel %vm1621_vm11, %v3069_v40, 0.0  ;;  %v5085_v59 = vsel %vm1622_vm12, %v3070_v45, 0.0  ;;  %v3071_v12 = vld [vmem:[%s4030_s24 + $0xd8] sm:$0xff]  ;;  %v3072_v30 = vld [vmem:[%s4030_s24 + $0xe0] sm:$0xff]  ;;  %v3073_v40 = vld [vmem:[%s4030_s24 + $0xe8] sm:$0xff] }
 0x27b   : > { %6414 = vst [vmem:[#allocation39_spill] sm:$0xff] %v5080_v38  ;;  %6415 = vst [vmem:[#allocation32_spill] sm:$0xff] %v5085_v59  ;;  %v5090_v31 = vsel %vm1623_vm13, %v3071_v12, 0.0  ;;  %v5095_v54 = vsel %vm1624_vm14, %v3072_v30, 0.0  ;;  %v5100_v21 = vsel %vm1625_vm15, %v3073_v40, 0.0  ;;  %v3074_v45 = vld [vmem:[%s4030_s24 + $0xf0] sm:$0xff] }
 0x27c   : > { %6416 = vst [vmem:[#allocation40_spill] sm:$0xff] %v5090_v31  ;;  %6417 = vst [vmem:[#allocation33_spill] sm:$0xff] %v5095_v54  ;;  %v5105_v22 = vsel %vm6411_vm0, %v3074_v45, 0.0  ;;  %v3075_v12 = vld [vmem:[%s4030_s24 + $0xf8] sm:$0xff]  ;;  %v3076_v30 = vld [vmem:[%s4030_s24 + $0x100] sm:$0xff] }
 0x27d   : > { %6418 = vst [vmem:[#allocation41_spill] sm:$0xff] %v5100_v21  ;;  %6419 = vst [vmem:[#allocation34_spill] sm:$0xff] %v5105_v22  ;;  %v5110_v31 = vsel %vm1627_vm1, %v3075_v12, 0.0  ;;  %v5115_v54 = vsel %vm1612_vm2, %v3076_v30, 0.0  ;;  %v3077_v40 = vld [vmem:[%s4030_s24 + $0x108] sm:$0xff]  ;;  %v3078_v45 = vld [vmem:[%s4030_s24 + $0x110] sm:$0xff] }
 0x27e   : > { %6420 = vst [vmem:[#allocation42_spill] sm:$0xff] %v5110_v31  ;;  %v5120_v21 = vsel %vm1613_vm3, %v3077_v40, 0.0  ;;  %v5125_v22 = vsel %vm1614_vm4, %v3078_v45, 0.0  ;;  %v3079_v31 = vld [vmem:[%s4030_s24 + $0x118] sm:$0xff]  ;;  %v3080_v30 = vld [vmem:[%s4030_s24 + $0x120] sm:$0xff]  ;;  %v3081_v40 = vld [vmem:[%s4030_s24 + $0x128] sm:$0xff] }
 0x27f   : > { %v5130_v18 = vsel %vm1615_vm7, %v3079_v31, 0.0  ;;  %v5135_v13 = vsel %vm1616_vm5, %v3080_v30, 0.0  ;;  %v5140_v59 = vsel %vm1617_vm6, %v3081_v40, 0.0  ;;  %v3082_v45 = vld [vmem:[%s4030_s24 + $0x130] sm:$0xff]  ;;  %v6425_v31 = vld [vmem:[#allocation13_spill] sm:$0xff]  ;;  %v5153_v30 = vsel %vm1619_vm9, %v3083_v25, 0.0 }
 0x280   : > { %6421 = vst [vmem:[#allocation35_spill] sm:$0xff] %v5130_v18  ;;  %6422 = vst [vmem:[#allocation43_spill] sm:$0xff] %v5135_v13  ;;  %v5145_v38 = vsel %vm1618_vm8, %v3082_v45, 0.0  ;;  %v3084_v13 = vld [vmem:[%s4030_s24 + $0x140] sm:$0xff]  ;;  %v3087_v25 = vld [vmem:[%s4030_s24 + $0x158] sm:$0xff] }
 0x281   : > { %6423 = vst [vmem:[#allocation36_spill] sm:$0xff] %v5140_v59  ;;  %6424 = vst [vmem:[#allocation44_spill] sm:$0xff] %v5145_v38  ;;  %v5158_v40 = vsel %vm1620_vm10, %v3084_v13, 0.0  ;;  %v3085_v59 = vld [vmem:[%s4030_s24 + $0x148] sm:$0xff]  ;;  %v3086_v38 = vld [vmem:[%s4030_s24 + $0x150] sm:$0xff] }
 0x282   : > { %6426 = vst [vmem:[#allocation46_spill] sm:$0xff] %v5153_v30  ;;  %6427 = vst [vmem:[#allocation47_spill] sm:$0xff] %v5158_v40  ;;  %v5163_v45 = vsel %vm1621_vm11, %v3085_v59, 0.0  ;;  %v3088_v13 = vld [vmem:[%s4030_s24 + $0x160] sm:$0xff]  ;;  %v3089_v59 = vld [vmem:[%s4030_s24 + $0x168] sm:$0xff] }
 0x283   : > { %6428 = vst [vmem:[#allocation48_spill] sm:$0xff] %v5163_v45  ;;  %v5178_v40 = vsel %vm1624_vm14, %v3088_v13, 0.0  ;;  %v5183_v45 = vsel %vm1625_vm15, %v3089_v59, 0.0  ;;  %v3095_v30 = vld [vmem:[%s4030_s24 + $0x198] sm:$0xff] }
 0x284   : > { %6431 = vst [vmem:[#allocation49_spill] sm:$0xff] %v5178_v40  ;;  %6432 = vst [vmem:[#allocation52_spill] sm:$0xff] %v5183_v45  ;;  %v3091_v45 = vld [vmem:[%s4030_s24 + $0x178] sm:$0xff]  ;;  %v3093_v40 = vld [vmem:[%s4030_s24 + $0x188] sm:$0xff] }
 0x2f4   : > { %v1829_v12 = vpop.permute.xlu0 %1828 }
 0x2f5   : > { %v5148_v18 = vrot.slane %v1829_v12, %v6425_v31  ;;  %v5168_v12 = vsel %vm1622_vm12, %v3086_v38, 0.0  ;;  %v5173_v31 = vsel %vm1623_vm13, %v3087_v25, 0.0 }
 0x2f6   : > { %6429 = vst [vmem:[#allocation37_spill] sm:$0xff] %v5168_v12  ;;  %6430 = vst [vmem:[#allocation45_spill] sm:$0xff] %v5173_v31  ;;  %v3090_v12 = vld [vmem:[%s4030_s24 + $0x170] sm:$0xff] }
 0x2f7   : > { %v1835_v38 = vsub.f32 %v4789_v57, %v5148_v18  ;;  %v1836_v25 = vsub.f32 %v4793_v33, %v5148_v18  ;;  %v1837_v31 = vsub.f32 %v4798_v47, %v5148_v18  ;;  %v5194_v13 = vsel %vm6411_vm0, %v3090_v12, 0.0  ;;  %v3092_v33 = vld [vmem:[%s4030_s24 + $0x180] sm:$0xff] }
 0x2f8   : > { %6433 = vst [vmem:[#allocation53_spill] sm:$0xff] %v5194_v13  ;;  %v1838_v59 = vsub.f32 %v4810_v39, %v5148_v18  ;;  %v5201_v57 = vsel %vm1627_vm1, %v3091_v45, 0.0  ;;  %v5206_v47 = vsel %vm1612_vm2, %v3092_v33, 0.0  ;;  %v5211_v12 = vsel %vm1613_vm3, %v3093_v40, 0.0  ;;  %v3094_v13 = vld [vmem:[%s4030_s24 + $0x190] sm:$0xff]  ;;  %v3097_v33 = vld [vmem:[%s4030_s24 + $0x1a8] sm:$0xff]  ;;  %vm6445_vm2 = vmmov %vm6411_vm0 }
 0x2f9   : > { %6434 = vst [vmem:[#allocation54_spill] sm:$0xff] %v5201_v57  ;;  %6435 = vst [vmem:[#allocation61_spill] sm:$0xff] %v5206_v47  ;;  %v5216_v39 = vsel %vm1614_vm4, %v3094_v13, 0.0  ;;  %v5221_v45 = vsel %vm1615_vm7, %v3095_v30, 0.0  ;;  %v3096_v57 = vld [vmem:[%s4030_s24 + $0x1a0] sm:$0xff]  ;;  %v5231_v58 = vsel %vm1617_vm6, %v3097_v33, 0.0  ;;  %v1839_v40 = vsub.f32 %v4802_v32, %v5148_v18 }
 0x2fa   : > { %6436 = vst [vmem:[#allocation62_spill] sm:$0xff] %v5211_v12  ;;  %6437 = vst [vmem:[#allocation63_spill] sm:$0xff] %v5216_v39  ;;  %v5226_v16 = vsel %vm1616_vm5, %v3096_v57, 0.0  ;;  %v3098_v13 = vld [vmem:[%s4030_s24 + $0x1b0] sm:$0xff]  ;;  %v1853_v32 = vmul.f32 1.442695, %v1836_v25  ;;  %v1840_v12 = vsub.f32 %v4806_v1, %v5148_v18  ;;  %v1848_v60 = vsub.f32 %v4856_v0, %v5148_v18 }
 0x2fb   : > { %6438 = vst [vmem:[#allocation55_spill] sm:$0xff] %v5221_v45  ;;  %6439 = vst [vmem:[#allocation64_spill] sm:$0xff] %v5226_v16  ;;  %v5238_v30 = vsel %vm1618_vm8, %v3098_v13, 0.0  ;;  %v3099_v45 = vld [vmem:[%s4030_s24 + $0x1b8] sm:$0xff]  ;;  %v3100_v16 = vld [vmem:[%s4030_s24 + $0x1c0] sm:$0xff] }
 0x2fc   : > { %6440 = vst [vmem:[#allocation68_spill] sm:$0xff] %v5231_v58  ;;  %6441 = vst [vmem:[#allocation69_spill] sm:$0xff] %v5238_v30  ;;  %v5243_v57 = vsel %vm1619_vm9, %v3099_v45, 0.0  ;;  %v5248_v33 = vsel %vm1620_vm10, %v3100_v16, 0.0  ;;  %v1851_v58 = vmul.f32 1.442695, %v1835_v38 }
 0x2fd   : > { %6442 = vst [vmem:[#allocation70_spill] sm:$0xff] %v5243_v57  ;;  %v1855_v39 = vmul.f32 1.442695, %v1837_v31  ;;  %v1857_v13 = vmul.f32 1.442695, %v1838_v59  ;;  %v3101_v30 = vld [vmem:[%s4030_s24 + $0x1c8] sm:$0xff]  ;;  %vm6456_vm3 = vmmov %vm6411_vm0 }
 0x2fe   : > { %v5255_v47 = vsel %vm1621_vm11, %v3101_v30, 0.0  ;;  %v3102_v45 = vld [vmem:[%s4030_s24 + $0x1d0] sm:$0xff]  ;;  %3010 = vpow2.f32 %v1851_v58  ;;  %v3103_v38 = vld [vmem:[%s4030_s24 + $0x1d8] sm:$0xff]  ;;  %v3104_v31 = vld [vmem:[%s4030_s24 + $0x1e0] sm:$0xff]  ;;  %v1841_v58 = vsub.f32 %v4814_v4, %v5148_v18  ;;  %v1859_v30 = vmul.f32 1.442695, %v1839_v40 }
 0x2ff   : > { %v5260_v57 = vsel %vm1622_vm12, %v3102_v45, 0.0  ;;  %v5265_v1 = vsel %vm1623_vm13, %v3103_v38, 0.0  ;;  %v5270_v25 = vsel %vm1624_vm14, %v3104_v31, 0.0  ;;  %v3105_v59 = vld [vmem:[%s4030_s24 + $0x1e8] sm:$0xff]  ;;  %3012 = vpow2.f32 %v1853_v32  ;;  %v3106_v45 = vld [vmem:[%s4030_s24 + $0x1f0] sm:$0xff]  ;;  %v3107_v31 = vld [vmem:[%s4030_s24 + $0x1f8] sm:$0xff] }
 0x300   : > { %6443 = vst [vmem:[#allocation87_spill] sm:$0xff] %v5270_v25  ;;  %v5275_v16 = vsel %vm1625_vm15, %v3105_v59, 0.0  ;;  %v5282_v38 = vsel %vm6445_vm2, %v3106_v45, 0.0  ;;  %3014 = vpow2.f32 %v1855_v39  ;;  %v5287_v59 = vsel %vm1627_vm1, %v3107_v31, 0.0  ;;  %v3109_v40 = vld [vmem:[%s4030_s24 + $0x218] sm:$0xff]  ;;  %v3110_v31 = vld [vmem:[%s4030_s24 + $0x220] sm:$0xff] }
 0x301   : > { %6444 = vst [vmem:[#allocation88_spill] sm:$0xff] %v5275_v16  ;;  %6446 = vst [vmem:[#allocation89_spill] sm:$0xff] %v5282_v38  ;;  %v3108_v16 = vld [vmem:[%s4030_s24 + $0x210] sm:$0xff]  ;;  %v5297_v32 = vsel %vm1615_vm7, %v3109_v40, 0.0  ;;  %v1842_v39 = vsub.f32 %v4818_v9, %v5148_v18  ;;  %3016 = vpow2.f32 %v1857_v13  ;;  %v1861_v45 = vmul.f32 1.442695, %v1840_v12 }
 0x302   : > { %6447 = vst [vmem:[#allocation71_spill] sm:$0xff] %v5287_v59  ;;  %v5292_v4 = vsel %vm1614_vm4, %v3108_v16, 0.0  ;;  %v5304_v59 = vsel %vm1616_vm5, %v3110_v31, 0.0  ;;  %v5309_v16 = vsel %vm1617_vm6, %v3111_v5, 0.0  ;;  %v3112_v40 = vld [vmem:[%s4030_s24 + $0x230] sm:$0xff]  ;;  %v3113_v12 = vld [vmem:[%s4030_s24 + $0x238] sm:$0xff]  ;;  %v1843_v5 = vsub.f32 %v4830_v17, %v5148_v18  ;;  %vm6474_vm4 = vmmov %vm6411_vm0 }
 0x303   : > { %6448 = vst [vmem:[#allocation93_spill] sm:$0xff] %v5309_v16  ;;  %v5314_v9 = vsel %vm1618_vm8, %v3112_v40, 0.0  ;;  %v5319_v13 = vsel %vm1619_vm9, %v3113_v12, 0.0  ;;  %v3114_v31 = vld [vmem:[%s4030_s24 + $0x240] sm:$0xff]  ;;  %3018 = vpow2.f32 %v1859_v30  ;;  %v1863_v16 = vmul.f32 1.442695, %v1841_v58 }
 0x304   : > { %6449 = vst [vmem:[#allocation94_spill] sm:$0xff] %v5314_v9  ;;  %6450 = vst [vmem:[#allocation95_spill] sm:$0xff] %v5319_v13  ;;  %v5324_v38 = vsel %vm1620_vm10, %v3114_v31, 0.0  ;;  %v3115_v40 = vld [vmem:[%s4030_s24 + $0x248] sm:$0xff]  ;;  %v3116_v25 = vld [vmem:[%s4030_s24 + $0x250] sm:$0xff]  ;;  %3020 = vpow2.f32 %v1861_v45 }
 0x305   : > { %v5331_v9 = vsel %vm1621_vm11, %v3115_v40, 0.0  ;;  %v5336_v12 = vsel %vm1622_vm12, %v3116_v25, 0.0  ;;  %v3117_v13 = vld [vmem:[%s4030_s24 + $0x258] sm:$0xff]  ;;  %v3118_v17 = vld [vmem:[%s4030_s24 + $0x260] sm:$0xff]  ;;  %v3119_v30 = vld [vmem:[%s4030_s24 + $0x268] sm:$0xff]  ;;  %3022 = vpow2.f32 %v1863_v16 }
 0x306   : > { %6451 = vst [vmem:[#allocation96_spill] sm:$0xff] %v5331_v9  ;;  %6452 = vst [vmem:[#allocation104_spill] sm:$0xff] %v5336_v12  ;;  %v5341_v31 = vsel %vm1623_vm13, %v3117_v13, 0.0  ;;  %v5346_v58 = vsel %vm1624_vm14, %v3118_v17, 0.0  ;;  %v5351_v40 = vsel %vm1625_vm15, %v3119_v30, 0.0  ;;  %v1844_v9 = vsub.f32 %v4834_v36, %v5148_v18  ;;  %v3120_v12 = vld [vmem:[%s4030_s24 + $0x270] sm:$0xff] }
 0x307   : > { %6453 = vst [vmem:[#allocation105_spill] sm:$0xff] %v5341_v31  ;;  %6454 = vst [vmem:[#allocation106_spill] sm:$0xff] %v5346_v58  ;;  %v1865_v25 = vmul.f32 1.442695, %v1842_v39  ;;  %v5358_v13 = vsel %vm6456_vm3, %v3120_v12, 0.0  ;;  %v3121_v31 = vld [vmem:[%s4030_s24 + $0x278] sm:$0xff]  ;;  %v1845_v12 = vsub.f32 %v4840_v44, %v5148_v18 }
 0x308   : > { %6455 = vst [vmem:[#allocation98_spill] sm:$0xff] %v5351_v40  ;;  %6457 = vst [vmem:[#allocation107_spill] sm:$0xff] %v5358_v13  ;;  %v5363_v17 = vsel %vm1627_vm1, %v3121_v31, 0.0  ;;  %v6459_v58 = vld [vmem:[#allocation73_spill] sm:$0xff]  ;;  %v6460_v40 = vld [vmem:[#allocation74_spill] sm:$0xff] }
 0x309   : > { %6458 = vst [vmem:[#allocation108_spill] sm:$0xff] %v5363_v17  ;;  %v5368_v30 = vsel %vm1615_vm7, %v6459_v58, 0.0  ;;  %v5373_v36 = vsel %vm1616_vm5, %v6460_v40, 0.0  ;;  %v6461_v39 = vld [vmem:[#allocation75_spill] sm:$0xff]  ;;  %v1867_v31 = vmul.f32 1.442695, %v1843_v5  ;;  %v5387_v58 = vpop.eup %3010  ;;  %3024 = vpow2.f32 %v1865_v25 }
 0x30a   : > { %v5378_v45 = vsel %vm1617_vm6, %v6461_v39, 0.0  ;;  %v6463_v17 = vld [vmem:[#allocation76_spill] sm:$0xff]  ;;  %v6465_v40 = vld [vmem:[#allocation79_spill] sm:$0xff]  ;;  %v6469_v44 = vld [vmem:[#allocation81_spill] sm:$0xff]  ;;  %v1943_v25 = vmul.f32 %v5387_v58, %v5035_v23  ;;  %vm2199_vm7 = vcmask 7168  }
 0x30b   : > { %6462 = vst [vmem:[#allocation109_spill] sm:$0xff] %v5378_v45  ;;  %v5385_v37 = vsel %vm1618_vm8, %v6463_v17, 0.0  ;;  %v5392_v13 = vsel %vm1619_vm9, %v6465_v40, 0.0  ;;  %v6467_v39 = vld [vmem:[#allocation80_spill] sm:$0xff]  ;;  %v5402_v16 = vsel %vm1621_vm11, %v6469_v44, 0.0  ;;  %v6471_v5 = vld [vmem:[#allocation82_spill] sm:$0xff]  ;;  %v1846_v40 = vsub.f32 %v4848_v49, %v5148_v18 }
 0x30c   : > { %6464 = vst [vmem:[#allocation110_spill] sm:$0xff] %v5385_v37  ;;  %6466 = vst [vmem:[#allocation119_spill] sm:$0xff] %v5392_v13  ;;  %v5397_v45 = vsel %vm1620_vm10, %v6467_v39, 0.0  ;;  %v5407_v17 = vsel %vm1622_vm12, %v6471_v5, 0.0  ;;  %v5409_v37 = vpop.eup %3012  ;;  %v1869_v13 = vmul.f32 1.442695, %v1844_v9  ;;  %v1927_v39 = vmul.f32 %v5387_v58, %v4955_v20 }
 0x30d   : > { %6468 = vst [vmem:[#allocation113_spill] sm:$0xff] %v5397_v45  ;;  %6470 = vst [vmem:[#allocation120_spill] sm:$0xff] %v5402_v16  ;;  %v5415_v45 = vpop.eup %3014  ;;  %v1847_v44 = vsub.f32 %v4852_v29, %v5148_v18  ;;  %v1885_v3 = vadd.f32 %v5409_v37, %v5387_v58  ;;  %v1928_v5 = vmul.f32 %v5409_v37, %v4960_v56  ;;  %3026 = vpow2.f32 %v1867_v31  ;;  %v3123_v23 = vld [vmem:[%s4030_s24 + $0x2e0] sm:$0xff] }
 0x30e   : > { %6472 = vst [vmem:[#allocation14_spill] sm:$0xff] %v5407_v17  ;;  %v3122_v17 = vld [vmem:[%s4030_s24 + $0x2d8] sm:$0xff]  ;;  %v5428_v9 = vpop.eup %3016  ;;  %v1871_v20 = vmul.f32 1.442695, %v1845_v12  ;;  %v1944_v29 = vmul.f32 %v5409_v37, %v5040_v52  ;;  %v1929_v46 = vmul.f32 %v5415_v45, %v4965_v35  ;;  %v1849_v12 = vsub.f32 %v4861_v51, %v5148_v18 }
 0x30f   : > { %v5426_v49 = vsel %vm1623_vm13, %v3122_v17, 0.0  ;;  %v1886_v56 = vadd.f32 %v5415_v45, %v1885_v3  ;;  %v2055_v17 = vadd.f32 %v1928_v5, %v1927_v39  ;;  %3028 = vpow2.f32 %v1869_v13 }
 0x310   : > { %6473 = vst [vmem:[#allocation15_spill] sm:$0xff] %v5426_v49  ;;  %v5439_v49 = vpop.eup %3018  ;;  %v1873_v31 = vmul.f32 1.442695, %v1846_v40  ;;  %v5446_v52 = vsel %vm1624_vm14, %v3123_v23, 0.0  ;;  %v1875_v16 = vmul.f32 1.442695, %v1847_v44  ;;  %v1930_v3 = vmul.f32 %v5428_v9, %v4970_v62 }
 0x311   : > { %v1887_v0 = vadd.f32 %v5428_v9, %v1886_v56  ;;  %v2056_v35 = vadd.f32 %v2055_v17, %v1929_v46  ;;  %v5451_v39 = vpop.eup %3020  ;;  %v1850_v5 = vsub.f32 %v4868_v2, %v5148_v18  ;;  %3030 = vpow2.f32 %v1871_v20 }
 0x312   : > { %v1945_v51 = vmul.f32 %v5415_v45, %v5045_v63  ;;  %v2072_v13 = vadd.f32 %v1944_v29, %v1943_v25  ;;  %v1877_v40 = vmul.f32 1.442695, %v1848_v60  ;;  %v1931_v56 = vmul.f32 %v5439_v49, %v4975_v43  ;;  %v5460_v46 = vpop.eup %3022 }
 0x313   : > { %v1888_v44 = vadd.f32 %v5439_v49, %v1887_v0  ;;  %v2057_v62 = vadd.f32 %v2056_v35, %v1930_v3  ;;  %3032 = vpow2.f32 %v1873_v31  ;;  %v1879_v17 = vmul.f32 1.442695, %v1849_v12  ;;  %v5467_v25 = vpop.eup %3024  ;;  %v3124_v31 = vld [vmem:[%s4030_s24 + $0x2e8] sm:$0xff] }
 0x314   : > { %v1946_v2 = vmul.f32 %v5428_v9, %v5050_v15  ;;  %v2073_v18 = vadd.f32 %v2072_v13, %v1945_v51  ;;  %3034 = vpow2.f32 %v1875_v16  ;;  %v1932_v60 = vmul.f32 %v5451_v39, %v4980_v61  ;;  %v3125_v15 = vld [vmem:[%s4030_s24 + $0x2f0] sm:$0xff]  ;;  %v3126_v13 = vld [vmem:[%s4030_s24 + $0x2f8] sm:$0xff] }
 0x315   : > { %v1889_v63 = vadd.f32 %v5451_v39, %v1888_v44  ;;  %v2058_v20 = vadd.f32 %v2057_v62, %v1931_v56  ;;  %v1947_v43 = vmul.f32 %v5439_v49, %v5055_v27  ;;  %v5474_v12 = vsel %vm1625_vm15, %v3124_v31, 0.0 }
 0x316   : > { %v2074_v29 = vadd.f32 %v2073_v18, %v1946_v2  ;;  %v5479_v16 = vsel %vm6474_vm4, %v3125_v15, 0.0  ;;  %v1881_v23 = vmul.f32 1.442695, %v1850_v5  ;;  %v1933_v0 = vmul.f32 %v5460_v46, %v4985_v48 }
 0x317   : > { %v1890_v61 = vadd.f32 %v5460_v46, %v1889_v63  ;;  %v2059_v3 = vadd.f32 %v2058_v20, %v1932_v60  ;;  %v5484_v35 = vpop.eup %3026  ;;  %3036 = vpow2.f32 %v1877_v40  ;;  %v1948_v27 = vmul.f32 %v5451_v39, %v5060_v42 }
 0x318   : > { %v2075_v51 = vadd.f32 %v2074_v29, %v1947_v43  ;;  %v5491_v44 = vsel %vm1627_vm1, %v3126_v13, 0.0  ;;  %3038 = vpow2.f32 %v1879_v17  ;;  %v1934_v48 = vmul.f32 %v5467_v25, %v4990_v14  ;;  %v3127_v43 = vld [vmem:[%s4030_s24 + $0x320] sm:$0xff] }
 0x319   : > { %6475 = vst [vmem:[#allocation16_spill] sm:$0xff] %v5491_v44  ;;  %v1891_v5 = vadd.f32 %v5467_v25, %v1890_v61  ;;  %v2060_v56 = vadd.f32 %v2059_v3, %v1933_v0  ;;  %v5496_v62 = vpop.eup %3028  ;;  %v1949_v42 = vmul.f32 %v5460_v46, %v5065_v50  ;;  %v1959_v2 = vmul.f32 %v5387_v58, %v5115_v54  ;;  %v6492_v44 = vld [vmem:[#allocation44_spill] sm:$0xff] }
 0x31a   : > { %v2076_v40 = vadd.f32 %v2075_v51, %v1948_v27  ;;  %v1960_v17 = vmul.f32 %v5409_v37, %v5120_v21  ;;  %3040 = vpow2.f32 %v1881_v23  ;;  %v1935_v14 = vmul.f32 %v5484_v35, %v4995_v55  ;;  %v3128_v21 = vld [vmem:[%s4030_s24 + $0x328] sm:$0xff]  ;;  %v3129_v23 = vld [vmem:[%s4030_s24 + $0x330] sm:$0xff]  ;;  %v3130_v27 = vld [vmem:[%s4030_s24 + $0x338] sm:$0xff] }
 0x31b   : > { %v1892_v18 = vadd.f32 %v5484_v35, %v1891_v5  ;;  %v2061_v63 = vadd.f32 %v2060_v56, %v1934_v48  ;;  %v5507_v60 = vpop.eup %3030  ;;  %v1950_v50 = vmul.f32 %v5467_v25, %v5070_v28  ;;  %v5514_v54 = vsel %vm1616_vm5, %v3127_v43, 0.0  ;;  %v6476_v5 = vld [vmem:[#allocation116_spill] sm:$0xff]  ;;  %v6480_v43 = vld [vmem:[#allocation117_spill] sm:$0xff]  ;;  %vm6553_vm5 = vmmov %vm6411_vm0 }
 0x31c   : > { %v2077_v20 = vadd.f32 %v2076_v40, %v1949_v42  ;;  %v5519_v29 = vsel %vm1617_vm6, %v3128_v21, 0.0  ;;  %v1936_v31 = vmul.f32 %v5496_v62, %v5000_v26  ;;  %v5527_v28 = vsel %vm1618_vm8, %v3129_v23, 0.0  ;;  %v6477_v40 = vld [vmem:[#allocation39_spill] sm:$0xff] }
 0x31d   : > { %v1893_v55 = vadd.f32 %v5496_v62, %v1892_v18  ;;  %v2062_v15 = vadd.f32 %v2061_v63, %v1935_v14  ;;  %v5529_v61 = vpop.eup %3032  ;;  %v1951_v6 = vmul.f32 %v5484_v35, %v5075_v24  ;;  %v1961_v3 = vmul.f32 %v5415_v45, %v5125_v22  ;;  %v6478_v18 = vld [vmem:[#allocation32_spill] sm:$0xff]  ;;  %v6479_v63 = vld [vmem:[#allocation35_spill] sm:$0xff] }
 0x31e   : > { %v2078_v0 = vadd.f32 %v2077_v20, %v1950_v50  ;;  %v5538_v51 = vsel %vm1619_vm9, %v3130_v27, 0.0  ;;  %v5540_v26 = vpop.eup %3034  ;;  %v1937_v48 = vmul.f32 %v5507_v60, %v6476_v5  ;;  %v2089_v42 = vadd.f32 %v1960_v17, %v1959_v2  ;;  %v6481_v2 = vld [vmem:[#allocation118_spill] sm:$0xff] }
 0x31f   : > { %v1894_v13 = vadd.f32 %v5507_v60, %v1893_v55  ;;  %v2063_v56 = vadd.f32 %v2062_v15, %v1936_v31  ;;  %v1952_v24 = vmul.f32 %v5496_v62, %v6477_v40  ;;  %v1953_v22 = vmul.f32 %v5507_v60, %v6478_v18  ;;  %v6482_v31 = vld [vmem:[#allocation40_spill] sm:$0xff] }
 0x320   : > { %v2079_v14 = vadd.f32 %v2078_v0, %v1951_v6  ;;  %v1962_v50 = vmul.f32 %v5428_v9, %v6479_v63  ;;  %v1938_v21 = vmul.f32 %v5529_v61, %v6480_v43  ;;  %v2090_v23 = vadd.f32 %v2089_v42, %v1961_v3  ;;  %v6483_v6 = vld [vmem:[#allocation43_spill] sm:$0xff]  ;;  %v6484_v63 = vld [vmem:[#allocation33_spill] sm:$0xff]  ;;  %v6485_v42 = vld [vmem:[#allocation36_spill] sm:$0xff] }
 0x321   : > { %v1895_v20 = vadd.f32 %v5529_v61, %v1894_v13  ;;  %v2064_v55 = vadd.f32 %v2063_v56, %v1937_v48  ;;  %v5554_v27 = vpop.eup %3036  ;;  %v1939_v17 = vmul.f32 %v5540_v26, %v6481_v2  ;;  %v1954_v15 = vmul.f32 %v5529_v61, %v6482_v31  ;;  %v6486_v2 = vld [vmem:[#allocation61_spill] sm:$0xff] }
 0x322   : > { %v2080_v5 = vadd.f32 %v2079_v14, %v1952_v24  ;;  %v1963_v0 = vmul.f32 %v5439_v49, %v6483_v6  ;;  %v5562_v40 = vpop.eup %3038  ;;  %v1955_v3 = vmul.f32 %v5540_v26, %v6484_v63  ;;  %v2091_v48 = vadd.f32 %v2090_v23, %v1962_v50  ;;  %v6487_v24 = vld [vmem:[#allocation62_spill] sm:$0xff]  ;;  %v6490_v23 = vld [vmem:[#allocation41_spill] sm:$0xff] }
 0x323   : > { %v1896_v13 = vadd.f32 %v5540_v26, %v1895_v20  ;;  %v2065_v18 = vadd.f32 %v2064_v55, %v1938_v21  ;;  %v1964_v43 = vmul.f32 %v5451_v39, %v6485_v42  ;;  %v1975_v31 = vmul.f32 %v5387_v58, %v6486_v2  ;;  %v6488_v20 = vld [vmem:[#allocation30_spill] sm:$0xff] }
 0x324   : > { %v2081_v56 = vadd.f32 %v2080_v5, %v1953_v22  ;;  %v1976_v14 = vmul.f32 %v5409_v37, %v6487_v24  ;;  %v5573_v6 = vpop.eup %3040  ;;  %v1940_v21 = vmul.f32 %v5554_v27, %v6488_v20  ;;  %v2092_v63 = vadd.f32 %v2091_v48, %v1963_v0  ;;  %v6489_v50 = vld [vmem:[#allocation38_spill] sm:$0xff]  ;;  %v6493_v20 = vld [vmem:[#allocation31_spill] sm:$0xff] }
 0x325   : > { %v1897_v11 = vadd.f32 %v5554_v27, %v1896_v13  ;;  %v2066_v55 = vadd.f32 %v2065_v18, %v1939_v17  ;;  %v1941_v22 = vmul.f32 %v5562_v40, %v6489_v50  ;;  %v1956_v5 = vmul.f32 %v5554_v27, %v6490_v23  ;;  %v6491_v42 = vld [vmem:[#allocation34_spill] sm:$0xff]  ;;  %v6494_v18 = vld [vmem:[#allocation63_spill] sm:$0xff] }
 0x326   : > { %v1957_v2 = vmul.f32 %v5562_v40, %v6491_v42  ;;  %v2082_v10 = vadd.f32 %v2081_v56, %v1954_v15  ;;  %v1965_v13 = vmul.f32 %v5460_v46, %v6492_v44  ;;  %v2093_v7 = vadd.f32 %v2092_v63, %v1964_v43  ;;  %v6495_v42 = vld [vmem:[#allocation46_spill] sm:$0xff]  ;;  %v6497_v43 = vld [vmem:[#allocation55_spill] sm:$0xff] }
 0x327   : > { %v1898_v24 = vadd.f32 %v5562_v40, %v1897_v11  ;;  %v2067_v8 = vadd.f32 %v2066_v55, %v1940_v21  ;;  %v1942_v17 = vmul.f32 %v5573_v6, %v6493_v20  ;;  %v1977_v48 = vmul.f32 %v5415_v45, %v6494_v18  ;;  %v6496_v21 = vld [vmem:[#allocation47_spill] sm:$0xff]  ;;  %v6502_v18 = vld [vmem:[#allocation48_spill] sm:$0xff] }
 0x328   : > { %v2083_v0 = vadd.f32 %v2082_v10, %v1955_v3  ;;  %v2106_v50 = vadd.f32 %v1976_v14, %v1975_v31  ;;  %v1966_v15 = vmul.f32 %v5467_v25, %v6495_v42  ;;  %v2094_v11 = vadd.f32 %v2093_v7, %v1965_v13  ;;  %v6498_v31 = vld [vmem:[#allocation58_spill] sm:$0xff]  ;;  %v6501_v13 = vld [vmem:[#allocation64_spill] sm:$0xff] }
 0x329   : > { %v1899_v23 = vadd.f32 %v5573_v6, %v1898_v24  ;;  %v2068_v53 = vadd.f32 %v2067_v8, %v1941_v22  ;;  %v1967_v44 = vmul.f32 %v5484_v35, %v6496_v21  ;;  %v1978_v55 = vmul.f32 %v5428_v9, %v6497_v43  ;;  %v6499_v8 = vld [vmem:[#allocation59_spill] sm:$0xff]  ;;  %v6500_v24 = vld [vmem:[#allocation42_spill] sm:$0xff] }
 0x32a   : > { %v2084_v56 = vadd.f32 %v2083_v0, %v1956_v5  ;;  %v2107_v10 = vadd.f32 %v2106_v50, %v1977_v48  ;;  %v2095_v63 = vadd.f32 %v2094_v11, %v1966_v15  ;;  %v1991_v14 = vmul.f32 %v5387_v58, %v6498_v31  ;;  %v6504_v11 = vld [vmem:[#allocation45_spill] sm:$0xff]  ;;  %v6507_v31 = vld [vmem:[#allocation52_spill] sm:$0xff] }
 0x32b   : > { %1900 = vadd.xlane.f32.xlu0 %v1899_v23  ;;  %v2069_v3 = vadd.f32 %v2068_v53, %v1942_v17  ;;  %v1992_v22 = vmul.f32 %v5409_v37, %v6499_v8  ;;  %v1958_v7 = vmul.f32 %v5573_v6, %v6500_v24  ;;  %v1979_v20 = vmul.f32 %v5439_v49, %v6501_v13  ;;  %v6503_v53 = vld [vmem:[#allocation37_spill] sm:$0xff] }
 0x32c   : > { %v2085_v5 = vadd.f32 %v2084_v56, %v1957_v2  ;;  %v2108_v0 = vadd.f32 %v2107_v10, %v1978_v55  ;;  %v1968_v48 = vmul.f32 %v5496_v62, %v6502_v18  ;;  %v1969_v17 = vmul.f32 %v5507_v60, %v6503_v53  ;;  %v3131_v23 = vld [vmem:[%s4030_s24 + $0x340] sm:$0xff]  ;;  %v6505_v56 = vld [vmem:[#allocation68_spill] sm:$0xff] }
 0x32d   : > { %2070 = vadd.xlane.f32.xlu1 %v2069_v3  ;;  %v2096_v50 = vadd.f32 %v2095_v63, %v1967_v44  ;;  %v5613_v42 = vsel %vm1620_vm10, %v3131_v23, 0.0  ;;  %v1970_v2 = vmul.f32 %v5529_v61, %v6504_v11  ;;  %v1980_v21 = vmul.f32 %v5451_v39, %v6505_v56  ;;  %v6506_v55 = vld [vmem:[#allocation49_spill] sm:$0xff]  ;;  %v6513_v11 = vld [vmem:[#allocation78_spill] sm:$0xff] }
 0x32e   : > { %v2086_v15 = vadd.f32 %v2085_v5, %v1958_v7  ;;  %v2109_v43 = vadd.f32 %v2108_v0, %v1979_v20  ;;  %v1971_v10 = vmul.f32 %v5540_v26, %v6506_v55  ;;  %v1993_v44 = vmul.f32 %v5415_v45, %v5292_v4  ;;  %v6508_v24 = vld [vmem:[#allocation53_spill] sm:$0xff]  ;;  %v6510_v20 = vld [vmem:[#allocation54_spill] sm:$0xff] }
 0x32f   : > { %v2097_v3 = vadd.f32 %v2096_v50, %v1968_v48  ;;  %v2123_v63 = vadd.f32 %v1992_v22, %v1991_v14  ;;  %v1972_v8 = vmul.f32 %v5554_v27, %v6507_v31  ;;  %v1973_v7 = vmul.f32 %v5562_v40, %v6508_v24  ;;  %v6509_v5 = vld [vmem:[#allocation69_spill] sm:$0xff]  ;;  %v6511_v14 = vld [vmem:[#allocation70_spill] sm:$0xff]  ;;  %v6514_v24 = vld [vmem:[#allocation87_spill] sm:$0xff] }
 0x330   : > { %2087 = vadd.xlane.f32.xlu0 %v2086_v15  ;;  %v1981_v13 = vmul.f32 %v5460_v46, %v6509_v5  ;;  %v2110_v18 = vadd.f32 %v2109_v43, %v1980_v21  ;;  %v1974_v0 = vmul.f32 %v5573_v6, %v6510_v20  ;;  %v1994_v48 = vmul.f32 %v5428_v9, %v5297_v32  ;;  %v6512_v23 = vld [vmem:[#allocation77_spill] sm:$0xff] }
 0x331   : > { %v2098_v53 = vadd.f32 %v2097_v3, %v1969_v17  ;;  %v2124_v4 = vadd.f32 %v2123_v63, %v1993_v44  ;;  %v1982_v22 = vmul.f32 %v5467_v25, %v6511_v14  ;;  %v2007_v15 = vmul.f32 %v5387_v58, %v6512_v23  ;;  %v6515_v5 = vld [vmem:[#allocation93_spill] sm:$0xff]  ;;  %v6520_v23 = vld [vmem:[#allocation95_spill] sm:$0xff] }
 0x332   : > { %v2111_v50 = vadd.f32 %v2110_v18, %v1981_v13  ;;  %v2008_v56 = vmul.f32 %v5409_v37, %v6513_v11  ;;  %v1983_v21 = vmul.f32 %v5484_v35, %v5248_v33  ;;  %v1995_v17 = vmul.f32 %v5439_v49, %v5304_v59  ;;  %v6516_v59 = vld [vmem:[#allocation88_spill] sm:$0xff] }
 0x333   : > { %v2099_v55 = vadd.f32 %v2098_v53, %v1970_v2  ;;  %v2125_v43 = vadd.f32 %v2124_v4, %v1994_v48  ;;  %v1984_v32 = vmul.f32 %v5496_v62, %v5255_v47  ;;  %v1985_v3 = vmul.f32 %v5507_v60, %v5260_v57  ;;  %v6517_v47 = vld [vmem:[#allocation60_spill] sm:$0xff]  ;;  %v6518_v4 = vld [vmem:[#allocation89_spill] sm:$0xff] }
 0x334   : > { %v1986_v44 = vmul.f32 %v5529_v61, %v5265_v1  ;;  %v2112_v63 = vadd.f32 %v2111_v50, %v1982_v22  ;;  %v1987_v2 = vmul.f32 %v5540_v26, %v6514_v24  ;;  %v1996_v33 = vmul.f32 %v5451_v39, %v6515_v5  ;;  %v6522_v24 = vld [vmem:[#allocation84_spill] sm:$0xff] }
 0x335   : > { %v2100_v31 = vadd.f32 %v2099_v55, %v1971_v10  ;;  %v2126_v13 = vadd.f32 %v2125_v43, %v1995_v17  ;;  %v1988_v18 = vmul.f32 %v5554_v27, %v6516_v59  ;;  %v2009_v53 = vmul.f32 %v5415_v45, %v6517_v47  ;;  %v6519_v10 = vld [vmem:[#allocation94_spill] sm:$0xff]  ;;  %v6525_v47 = vld [vmem:[#allocation109_spill] sm:$0xff] }
 0x336   : > { %v2113_v20 = vadd.f32 %v2112_v63, %v1983_v21  ;;  %v2140_v57 = vadd.f32 %v2008_v56, %v2007_v15  ;;  %v1989_v1 = vmul.f32 %v5562_v40, %v6518_v4  ;;  %v1997_v14 = vmul.f32 %v5460_v46, %v6519_v10  ;;  %v6527_v4 = vld [vmem:[#allocation119_spill] sm:$0xff]  ;;  %v6528_v10 = vld [vmem:[#allocation85_spill] sm:$0xff] }
 0x337   : > { %v2101_v48 = vadd.f32 %v2100_v31, %v1972_v8  ;;  %v2127_v22 = vadd.f32 %v2126_v13, %v1996_v33  ;;  %v1998_v11 = vmul.f32 %v5467_v25, %v6520_v23  ;;  %v2010_v55 = vmul.f32 %v5428_v9, %v5368_v30  ;;  %v6521_v31 = vld [vmem:[#allocation83_spill] sm:$0xff]  ;;  %v6523_v13 = vld [vmem:[#allocation96_spill] sm:$0xff] }
 0x338   : > { %v2114_v50 = vadd.f32 %v2113_v20, %v1984_v32  ;;  %v2141_v21 = vadd.f32 %v2140_v57, %v2009_v53  ;;  %v1999_v15 = vmul.f32 %v5484_v35, %v5324_v38  ;;  %v2011_v56 = vmul.f32 %v5439_v49, %v5373_v36 }
 0x339   : > { %v2102_v17 = vadd.f32 %v2101_v48, %v1973_v7  ;;  %v2128_v8 = vadd.f32 %v2127_v22, %v1997_v14  ;;  %v2023_v32 = vmul.f32 %v5387_v58, %v6521_v31  ;;  %v2024_v5 = vmul.f32 %v5409_v37, %v6522_v24  ;;  %v6524_v7 = vld [vmem:[#allocation104_spill] sm:$0xff]  ;;  %v6529_v22 = vld [vmem:[#allocation86_spill] sm:$0xff] }
 0x33a   : > { %v2115_v43 = vadd.f32 %v2114_v50, %v1985_v3  ;;  %v2142_v63 = vadd.f32 %v2141_v21, %v2010_v55  ;;  %v2000_v30 = vmul.f32 %v5496_v62, %v6523_v13  ;;  %v2001_v59 = vmul.f32 %v5507_v60, %v6524_v7  ;;  %v6526_v3 = vld [vmem:[#allocation110_spill] sm:$0xff]  ;;  %v6530_v55 = vld [vmem:[#allocation99_spill] sm:$0xff] }
 0x33b   : > { %v2103_v33 = vadd.f32 %v2102_v17, %v1974_v0  ;;  %v2129_v38 = vadd.f32 %v2128_v8, %v1998_v11  ;;  %v2012_v36 = vmul.f32 %v5451_v39, %v6525_v47  ;;  %v2013_v53 = vmul.f32 %v5460_v46, %v6526_v3  ;;  %v6531_v8 = vld [vmem:[#allocation100_spill] sm:$0xff] }
 0x33c   : > { %v2116_v20 = vadd.f32 %v2115_v43, %v1986_v44  ;;  %v2143_v57 = vadd.f32 %v2142_v63, %v2011_v56  ;;  %v2014_v0 = vmul.f32 %v5467_v25, %v6527_v4  ;;  %v2025_v14 = vmul.f32 %v5415_v45, %v6528_v10  ;;  %v6533_v63 = vld [vmem:[#allocation102_spill] sm:$0xff] }
 0x33d   : > { %2104 = vadd.xlane.f32.xlu1 %v2103_v33  ;;  %v2130_v48 = vadd.f32 %v2129_v38, %v1999_v15  ;;  %v2026_v50 = vmul.f32 %v5428_v9, %v6529_v22  ;;  %v2157_v11 = vadd.f32 %v2024_v5, %v2023_v32  ;;  %v2039_v21 = vmul.f32 %v5387_v58, %v6530_v55  ;;  %v6532_v15 = vld [vmem:[#allocation101_spill] sm:$0xff]  ;;  %v6535_v5 = vld [vmem:[#allocation71_spill] sm:$0xff]  ;;  %v3132_v4 = vld [vmem:[%s4030_s24 + $0x348] sm:$0xff] }
 0x33e   : > { %v2117_v23 = vadd.f32 %v2116_v20, %v1987_v2  ;;  %v2144_v44 = vadd.f32 %v2143_v57, %v2012_v36  ;;  %v2040_v56 = vmul.f32 %v5409_v37, %v6531_v8  ;;  %v2041_v43 = vmul.f32 %v5415_v45, %v6532_v15  ;;  %v6534_v2 = vld [vmem:[#allocation103_spill] sm:$0xff]  ;;  %v6537_v38 = vld [vmem:[#allocation113_spill] sm:$0xff]  ;;  %v6538_v36 = vld [vmem:[#allocation106_spill] sm:$0xff] }
 0x33f   : > { %v2131_v17 = vadd.f32 %v2130_v48, %v2000_v30  ;;  %v2042_v31 = vmul.f32 %v5428_v9, %v6533_v63  ;;  %v2158_v13 = vadd.f32 %v2157_v11, %v2025_v14  ;;  %v2043_v32 = vmul.f32 %v5439_v49, %v6534_v2  ;;  %v6536_v30 = vld [vmem:[#allocation105_spill] sm:$0xff]  ;;  %v6539_v57 = vld [vmem:[#allocation120_spill] sm:$0xff]  ;;  %v3133_v11 = vld [vmem:[%s4030_s24 + $0x350] sm:$0xff] }
 0x340   : > { %v2118_v24 = vadd.f32 %v2117_v23, %v1988_v18  ;;  %v2145_v33 = vadd.f32 %v2144_v44, %v2013_v53  ;;  %v1990_v58 = vmul.f32 %v5573_v6, %v6535_v5  ;;  %v2002_v7 = vmul.f32 %v5529_v61, %v6536_v30  ;;  %v6542_v23 = vld [vmem:[#allocation14_spill] sm:$0xff]  ;;  %v6545_v2 = vld [vmem:[#allocation15_spill] sm:$0xff] }
 0x341   : > { %v2132_v37 = vadd.f32 %v2131_v17, %v2001_v59  ;;  %v2015_v45 = vmul.f32 %v5484_v35, %v6537_v38  ;;  %v2027_v18 = vmul.f32 %v5439_v49, %v5514_v54  ;;  %v2159_v47 = vadd.f32 %v2158_v13, %v2026_v50  ;;  %v6541_v49 = vld [vmem:[#allocation98_spill] sm:$0xff] }
 0x342   : > { %v2119_v20 = vadd.f32 %v2118_v24, %v1989_v1  ;;  %v2146_v9 = vadd.f32 %v2145_v33, %v2014_v0  ;;  %v2003_v3 = vmul.f32 %v5540_v26, %v6538_v36  ;;  %v2016_v48 = vmul.f32 %v5496_v62, %v6539_v57  ;;  %v6544_v24 = vld [vmem:[#allocation107_spill] sm:$0xff]  ;;  %v3147_v30 = vld [vmem:[%s4030_s24 + $0x3e8] sm:$0xff] }
 0x343   : > { %v2133_v53 = vadd.f32 %v2132_v37, %v2002_v7  ;;  %v1781_v59 = vsel %vm1621_vm11, %v3132_v4, 0.0  ;;  %v2028_v1 = vmul.f32 %v5451_v39, %v5519_v29  ;;  %v2160_v0 = vadd.f32 %v2159_v47, %v2027_v18  ;;  %v3135_v18 = vld [vmem:[%s4030_s24 + $0x3a8] sm:$0xff]  ;;  %v3136_v4 = vld [vmem:[%s4030_s24 + $0x3b0] sm:$0xff] }
 0x344   : > { %v2120_v14 = vadd.f32 %v2119_v20, %v1990_v58  ;;  %v2147_v22 = vadd.f32 %v2146_v9, %v2015_v45  ;;  %v2004_v54 = vmul.f32 %v5554_v27, %v6541_v49  ;;  %v2017_v44 = vmul.f32 %v5507_v60, %v6542_v23  ;;  %v3134_v58 = vld [vmem:[%s4030_s24 + $0x358] sm:$0xff] }
 0x345   : > { %v2134_v50 = vadd.f32 %v2133_v53, %v2003_v3  ;;  %v1782_v17 = vsel %vm1622_vm12, %v3133_v11, 0.0  ;;  %v2029_v15 = vmul.f32 %v5460_v46, %v5527_v28  ;;  %v2161_v63 = vadd.f32 %v2160_v0, %v2028_v1  ;;  %v6547_v20 = vld [vmem:[#allocation108_spill] sm:$0xff] }
 0x346   : > { %2121 = vadd.xlane.f32.xlu0 %v2120_v14  ;;  %v2148_v8 = vadd.f32 %v2147_v22, %v2016_v48  ;;  %v2174_v29 = vadd.f32 %v2040_v56, %v2039_v21  ;;  %v2005_v33 = vmul.f32 %v5562_v40, %v6544_v24  ;;  %v2018_v5 = vmul.f32 %v5529_v61, %v6545_v2  ;;  %v3138_v49 = vld [vmem:[%s4030_s24 + $0x3b8] sm:$0xff] }
 0x347   : > { %v2135_v13 = vadd.f32 %v2134_v50, %v2004_v54  ;;  %v1783_v7 = vsel %vm1623_vm13, %v3134_v58, 0.0  ;;  %v2030_v38 = vmul.f32 %v5467_v25, %v5538_v51  ;;  %v2162_v45 = vadd.f32 %v2161_v63, %v2029_v15 }
 0x348   : > { %v2149_v37 = vadd.f32 %v2148_v8, %v2017_v44  ;;  %v2175_v28 = vadd.f32 %v2174_v29, %v2041_v43  ;;  %v2006_v21 = vmul.f32 %v5573_v6, %v6547_v20  ;;  %v2019_v9 = vmul.f32 %v5540_v26, %v5446_v52  ;;  %v6550_v44 = vld [vmem:[#allocation16_spill] sm:$0xff]  ;;  %v3139_v8 = vld [vmem:[%s4030_s24 + $0x3c0] sm:$0xff]  ;;  %v3143_v20 = vld [vmem:[%s4030_s24 + $0x3d0] sm:$0xff] }
 0x349   : > { %v2136_v56 = vadd.f32 %v2135_v13, %v2005_v33  ;;  %v1793_v47 = vsel %vm1617_vm6, %v3135_v18, 0.0  ;;  %v2031_v3 = vmul.f32 %v5484_v35, %v5613_v42  ;;  %v2163_v53 = vadd.f32 %v2162_v45, %v2030_v38  ;;  %v3140_v33 = vld [vmem:[%s4030_s24 + $0x368] sm:$0xff]  ;;  %v3142_v45 = vld [vmem:[%s4030_s24 + $0x370] sm:$0xff]  ;;  %vm6555_vm6 = vmmov %vm6411_vm0 }
 0x34a   : > { %v2150_v36 = vadd.f32 %v2149_v37, %v2018_v5  ;;  %v2176_v51 = vadd.f32 %v2175_v28, %v2042_v31  ;;  %v2020_v57 = vmul.f32 %v5554_v27, %v5474_v12  ;;  %v2032_v48 = vmul.f32 %v5496_v62, %v1781_v59  ;;  %v3137_v31 = vld [vmem:[%s4030_s24 + $0x360] sm:$0xff]  ;;  %v3141_v5 = vld [vmem:[%s4030_s24 + $0x3c8] sm:$0xff] }
 0x34b   : > { %v2137_v43 = vadd.f32 %v2136_v56, %v2006_v21  ;;  %v1794_v52 = vsel %vm1618_vm8, %v3136_v4, 0.0  ;;  %v2164_v14 = vadd.f32 %v2163_v53, %v2031_v3  ;;  %v2044_v22 = vmul.f32 %v5451_v39, %v1793_v47  ;;  %v3144_v47 = vld [vmem:[%s4030_s24 + $0x378] sm:$0xff] }
 0x34c   : > { %v2151_v19 = vadd.f32 %v2150_v36, %v2019_v9  ;;  %v2177_v1 = vadd.f32 %v2176_v51, %v2043_v32  ;;  %v2021_v42 = vmul.f32 %v5562_v40, %v5479_v16  ;;  %v1784_v12 = vsel %vm1624_vm14, %v3137_v31, 0.0  ;;  %v3145_v3 = vld [vmem:[%s4030_s24 + $0x3d8] sm:$0xff]  ;;  %v3148_v31 = vld [vmem:[%s4030_s24 + $0x3f0] sm:$0xff] }
 0x34d   : > { %2138 = vadd.xlane.f32.xlu1 %v2137_v43  ;;  %v2033_v59 = vmul.f32 %v5507_v60, %v1782_v17  ;;  %v1795_v54 = vsel %vm1619_vm9, %v3138_v49, 0.0  ;;  %v2165_v23 = vadd.f32 %v2164_v14, %v2032_v48  ;;  %v2045_v39 = vmul.f32 %v5460_v46, %v1794_v52  ;;  %v3146_v48 = vld [vmem:[%s4030_s24 + $0x3e0] sm:$0xff]  ;;  %v3149_v49 = vld [vmem:[%s4030_s24 + $0x3f8] sm:$0xff] }
 0x34e   : > { %v2152_v50 = vadd.f32 %v2151_v19, %v2020_v57  ;;  %v2178_v32 = vadd.f32 %v2177_v1, %v2044_v22  ;;  %v2022_v16 = vmul.f32 %v5573_v6, %v6550_v44  ;;  %v2034_v11 = vmul.f32 %v5529_v61, %v1783_v7 }
 0x34f   : > { %v1796_v17 = vsel %vm1620_vm10, %v3139_v8, 0.0  ;;  %v2166_v63 = vadd.f32 %v2165_v23, %v2033_v59  ;;  %v2046_v29 = vmul.f32 %v5467_v25, %v1795_v54  ;;  %v1785_v46 = vsel %vm1625_vm15, %v3140_v33, 0.0  ;;  %v6559_v8 = vld [vmem:[#allocation13_spill] sm:$0xff] }
 0x350   : > { %v2153_v15 = vadd.f32 %v2152_v50, %v2021_v42  ;;  %v2179_v24 = vadd.f32 %v2178_v32, %v2045_v39  ;;  %v2035_v2 = vmul.f32 %v5540_v26, %v1784_v12  ;;  %v1797_v58 = vsel %vm1621_vm11, %v3141_v5, 0.0  ;;  %v6556_v39 = vld [vmem:[#allocation56_spill] sm:$0xff]  ;;  %v6557_v32 = vld [vmem:[#allocation57_spill] sm:$0xff] }
 0x351   : > { %v2167_v7 = vadd.f32 %v2166_v63, %v2034_v11  ;;  %v2047_v37 = vmul.f32 %v5484_v35, %v1796_v17  ;;  %v1786_v28 = vsel %vm6553_vm5, %v3142_v45, 0.0  ;;  %v1798_v21 = vsel %vm1622_vm12, %v3143_v20, 0.0  ;;  %v1906_v33 = vld [vmem:[#allocation4 + $0x8] sm:$0xff]  ;;  %v1909_v20 = vld [vmem:[#allocation4 + $0x20] sm:$0xff] }
 0x352   : > { %v2154_v34 = vadd.f32 %v2153_v15, %v2022_v16  ;;  %v2180_v38 = vadd.f32 %v2179_v24, %v2046_v29  ;;  %v2036_v56 = vmul.f32 %v5554_v27, %v1785_v46  ;;  %v2048_v9 = vmul.f32 %v5496_v62, %v1797_v58  ;;  %v1905_v15 = vld [vmem:[#allocation4] sm:$0xff]  ;;  %v1907_v58 = vld [vmem:[#allocation4 + $0x10] sm:$0xff] }
 0x353   : > { %v2168_v10 = vadd.f32 %v2167_v7, %v2035_v2  ;;  %v1787_v36 = vsel %vm1627_vm1, %v3144_v47, 0.0  ;;  %v1799_v53 = vsel %vm1623_vm13, %v3145_v3, 0.0  ;;  %v2037_v55 = vmul.f32 %v5562_v40, %v1786_v28 }
 0x354   : > { %2155 = vadd.xlane.f32.xlu0 %v2154_v34  ;;  %v2181_v18 = vadd.f32 %v2180_v38, %v2047_v37  ;;  %v2049_v43 = vmul.f32 %v5507_v60, %v1798_v21  ;;  %v1800_v62 = vsel %vm1624_vm14, %v3146_v48, 0.0  ;;  %v2038_v4 = vmul.f32 %v5573_v6, %v1787_v36  ;;  %v1908_v38 = vld [vmem:[#allocation4 + $0x18] sm:$0xff]  ;;  %v1911_v36 = vld [vmem:[#allocation4 + $0x30] sm:$0xff] }
 0x355   : > { %v2169_v51 = vadd.f32 %v2168_v10, %v2036_v56  ;;  %v2050_v19 = vmul.f32 %v5529_v61, %v1799_v53  ;;  %v1801_v22 = vsel %vm1625_vm15, %v3147_v30, 0.0  ;;  %v2051_v42 = vmul.f32 %v5540_v26, %v1800_v62 }
 0x356   : > { %v2182_v57 = vadd.f32 %v2181_v18, %v2048_v9  ;;  %v1802_v0 = vsel %vm6555_vm6, %v3148_v31, 0.0  ;;  %v2052_v12 = vmul.f32 %v5554_v27, %v1801_v22  ;;  %v1803_v61 = vsel %vm1627_vm1, %v3149_v49, 0.0  ;;  %v1883_v27 = vld [vmem:[#allocation3] sm:$0x1]  ;;  %v1910_v9 = vld [vmem:[#allocation4 + $0x28] sm:$0xff] }
 0x357   : > { %v2170_v52 = vadd.f32 %v2169_v51, %v2037_v55  ;;  %v2053_v41 = vmul.f32 %v5562_v40, %v1802_v0  ;;  %v2054_v50 = vmul.f32 %v5573_v6, %v1803_v61  ;;  %v6558_v44 = vsub.f32 %v6556_v39, %v6557_v32  ;;  %v1912_v51 = vld [vmem:[#allocation4 + $0x38] sm:$0xff] }
 0x358   : > { %v2183_v14 = vadd.f32 %v2182_v57, %v2049_v43  ;;  %vm6560_vm8 = vcmask 0   ;;  %vm2293_vm9 = vcmask (!%p2807_p2), 130048   ;;  %vm2317_vm10 = vcmask (!%p2807_p2), 122880  }
 0x359   : > { %v2171_v1 = vadd.f32 %v2170_v52, %v2038_v4  ;;  %v1824_v16 = vmul.f32 1.442695, %v6558_v44  ;;  %v3379_v4 = vmov (!%p2807_p2), 0   ;;  %v2239_v44 = vld [vmem:[%s6077_s3 + $0x10] sm:$0xff] (!%p2807_p2) }
 0x35a   : > { %v2184_v60 = vadd.f32 %v2183_v14, %v2050_v19  ;;  %3151 = vset.pattern.permute.xlu1 (!%p2807_p2), %v3379_v4  ;;  %3150 = vset.pattern.permute.xlu0 (!%p2807_p2), %v3379_v4  ;;  %v2244_v4 = vld [vmem:[%s6077_s3 + $0x38] sm:$0xff] (!%p2807_p2) }
 0x35b   : > { %2172 = vadd.xlane.f32.xlu1 %v2171_v1  ;;  %3042 = vpow2.f32 %v1824_v16  ;;  %v2455_v16 = vld [vmem:[%s6083_s9 + $0x10] sm:$0xff] (!%p2807_p2) }
 0x35c   : > { %v2185_v59 = vadd.f32 %v2184_v60, %v2051_v42 }
 0x35e   : > { %v2186_v54 = vadd.f32 %v2185_v59, %v2052_v12 }
 0x360   : > { %v2187_v23 = vadd.f32 %v2186_v54, %v2053_v41 }
 0x362   : > { %v2188_v26 = vadd.f32 %v2187_v23, %v2054_v50  ;;  %v2237_v23 = vld [vmem:[%s6077_s3] sm:$0xff] (!%p2807_p2) }
 0x364   : > { %2189 = vadd.xlane.f32.xlu0 %v2188_v26  ;;  %v2453_v26 = vld [vmem:[%s6083_s9] sm:$0xff] (!%p2807_p2) }
 0x365   : > { %v3043_v11 = vpop.eup %3042 }
 0x366   : > { %v1917_v17 = vrot.slane %v3043_v11, %v6559_v8  ;;  %v1884_v63 = vmul.f32 %v3043_v11, %v1883_v27  ;;  %v2238_v8 = vld [vmem:[%s6077_s3 + $0x8] sm:$0xff] (!%p2807_p2) }
 0x368   : > { %v1919_v40 = vmul.f32 %v1917_v17, %v1905_v15  ;;  %v1920_v46 = vmul.f32 %v1917_v17, %v1906_v33  ;;  %v1921_v34 = vmul.f32 %v1917_v17, %v1907_v58  ;;  %v1922_v45 = vmul.f32 %v1917_v17, %v1908_v38  ;;  %v2240_v15 = vld [vmem:[%s6077_s3 + $0x18] sm:$0xff] (!%p2807_p2)  ;;  %v2457_v58 = vld [vmem:[%s6083_s9 + $0x20] sm:$0xff] (!%p2807_p2) }
 0x369   : > { %v1923_v21 = vmul.f32 %v1917_v17, %v1909_v20  ;;  %v1924_v18 = vmul.f32 %v1917_v17, %v1910_v9  ;;  %v1925_v3 = vmul.f32 %v1917_v17, %v1911_v36  ;;  %v1926_v43 = vmul.f32 %v1917_v17, %v1912_v51  ;;  %v2454_v17 = vld [vmem:[%s6083_s9 + $0x8] sm:$0xff] (!%p2807_p2) }
 0x36a   : > { %v2458_v20 = vld [vmem:[%s6083_s9 + $0x28] sm:$0xff] (!%p2807_p2) }
 0x3b8   : > { %v1901_v29 = vpop.xlane.xlu0 %1900 }
 0x3b9   : > { %v1902_v24 = vadd.f32 %v1901_v29, %v1884_v63  ;;  %v2456_v63 = vld [vmem:[%s6083_s9 + $0x18] sm:$0xff] (!%p2807_p2) }
 0x3ba   : > { %v2071_v6 = vpop.xlane.xlu1 %2070 }
 0x3bb   : > { %1904 = vst.msk [vmem:[#allocation3] sm:$0x1] %vm6560_vm8, %v1902_v24  ;;  %v2191_v13 = vadd.f32 %v2071_v6, %v1919_v40 }
 0x3bd   : > { %2200 = vst.msk [vmem:[#allocation4] sm:$0xff] %vm2199_vm7, %v2191_v13  ;;  %v2088_v2 = vpop.xlane.xlu0 %2087 }
 0x3be   : > { %v2192_v5 = vadd.f32 %v2088_v2, %v1920_v46 }
 0x3c0   : > { %2201 = vst.msk [vmem:[#allocation4 + $0x8] sm:$0xff] %vm2199_vm7, %v2192_v5  ;;  %v2241_v5 = vld [vmem:[%s6077_s3 + $0x20] sm:$0xff] (!%p2807_p2) }
 0x3c2   : > { %v2808_v62 = vld [vmem:[#allocation3] ss:$0 sm:$0xff] (!%p2807_p2) }
 0x3c3   : > { %3152 = vrcp.f32 (!%p2807_p2), %v2808_v62 }
 0x3c4   : > { %v2213_v19 = vld [vmem:[#allocation4] sm:$0xff] (!%p2807_p2) }
 0x3c7   : > { %v2214_v22 = vld [vmem:[#allocation4 + $0x8] sm:$0xff] (!%p2807_p2) }
 0x3ca   : > { %v2105_v7 = vpop.xlane.xlu1 %2104 }
 0x3cb   : > { %v2193_v37 = vadd.f32 %v2105_v7, %v1921_v34 }
 0x3cd   : > { %2202 = vst.msk [vmem:[#allocation4 + $0x10] sm:$0xff] %vm2199_vm7, %v2193_v37  ;;  %v3153_v14 = vpop.eup (!%p2807_p2), %3152 }
 0x3ce   : > { %v2229_v42 = vmul.f32 (!%p2807_p2), %v3153_v14, %v2213_v19  ;;  %v2230_v31 = vmul.f32 (!%p2807_p2), %v3153_v14, %v2214_v22 }
 0x3d0   : > { %2247 = vperm.xlu0 (!%p2807_p2), %3150, %v2229_v42  }
 0x3d3   : > { %v2122_v25 = vpop.xlane.xlu0 %2121 }
 0x3d4   : > { %v2194_v28 = vadd.f32 %v2122_v25, %v1922_v45  ;;  %v2215_v52 = vld [vmem:[#allocation4 + $0x10] sm:$0xff] (!%p2807_p2)  ;;  %2252 = vperm.xlu0 (!%p2807_p2), %3150, %v2230_v31  }
 0x3d5   : > { %v2231_v1 = vmul.f32 (!%p2807_p2), %v3153_v14, %v2215_v52  ;;  %v2460_v52 = vld [vmem:[%s6083_s9 + $0x38] sm:$0xff] (!%p2807_p2) }
 0x3d6   : > { %2203 = vst.msk [vmem:[#allocation4 + $0x18] sm:$0xff] %vm2199_vm7, %v2194_v28  ;;  %v2242_v28 = vld [vmem:[%s6077_s3 + $0x28] sm:$0xff] (!%p2807_p2) }
 0x3d7   : > { %2257 = vperm.xlu1 (!%p2807_p2), %3151, %v2231_v1  }
 0x3da   : > { %v2139_v56 = vpop.xlane.xlu1 %2138 }
 0x3db   : > { %v2195_v10 = vadd.f32 %v2139_v56, %v1923_v21 }
 0x3dd   : > { %2204 = vst.msk [vmem:[#allocation4 + $0x20] sm:$0xff] %vm2199_vm7, %v2195_v10  ;;  %v2216_v30 = vld [vmem:[#allocation4 + $0x18] sm:$0xff] (!%p2807_p2) }
 0x3de   : > { %v2232_v60 = vmul.f32 (!%p2807_p2), %v3153_v14, %v2216_v30 }
 0x3e0   : > { %2262 = vperm.xlu1 (!%p2807_p2), %3151, %v2232_v60  }
 0x3e1   : > { %v2156_v47 = vpop.xlane.xlu0 %2155 }
 0x3e2   : > { %v2196_v35 = vadd.f32 %v2156_v47, %v1924_v18 }
 0x3e4   : > { %2205 = vst.msk [vmem:[#allocation4 + $0x28] sm:$0xff] %vm2199_vm7, %v2196_v35  ;;  %v2217_v12 = vld [vmem:[#allocation4 + $0x20] sm:$0xff] (!%p2807_p2) }
 0x3e5   : > { %v2233_v49 = vmul.f32 (!%p2807_p2), %v3153_v14, %v2217_v12 }
 0x3e7   : > { %2267 = vperm.xlu0 (!%p2807_p2), %3150, %v2233_v49  }
 0x3e8   : > { %v2173_v53 = vpop.xlane.xlu1 %2172 }
 0x3e9   : > { %v2197_v55 = vadd.f32 %v2173_v53, %v1925_v3  ;;  %v2243_v3 = vld [vmem:[%s6077_s3 + $0x30] sm:$0xff] (!%p2807_p2) }
 0x3ea   : > { %v2459_v53 = vld [vmem:[%s6083_s9 + $0x30] sm:$0xff] (!%p2807_p2) }
 0x3eb   : > { %2206 = vst.msk [vmem:[#allocation4 + $0x30] sm:$0xff] %vm2199_vm7, %v2197_v55  ;;  %v2218_v0 = vld [vmem:[#allocation4 + $0x28] sm:$0xff] (!%p2807_p2) }
 0x3ec   : > { %v2234_v59 = vmul.f32 (!%p2807_p2), %v3153_v14, %v2218_v0 }
 0x3ee   : > { %2212 = sbr.rel (%p2807_p2) target bundleno = 1677 (0x68d), region = 154  ;;  %2272 = vperm.xlu1 (!%p2807_p2), %3151, %v2234_v59  }
 0x3f1   : > { %v2190_v57 = vpop.xlane.xlu0 %2189 }
 0x3f2   : > { %v2198_v48 = vadd.f32 %v2190_v57, %v1926_v43  ;;  %v2219_v41 = vld [vmem:[#allocation4 + $0x30] sm:$0xff] (!%p2807_p2) }
 0x3f3   : > { %v2235_v50 = vmul.f32 (!%p2807_p2), %v3153_v14, %v2219_v41 }
 0x3f4   : > { %2207 = vst.msk [vmem:[#allocation4 + $0x38] sm:$0xff] %vm2199_vm7, %v2198_v48 }
 0x3f5   : > { %2277 = vperm.xlu0 %3150, %v2235_v50  }
 0x3fb   : > { %v2220_v61 = vld [vmem:[#allocation4 + $0x38] sm:$0xff] }
 0x3fc   : > { %v2236_v54 = vmul.f32 %v3153_v14, %v2220_v61 }
 0x3fe   : > { %2282 = vperm.xlu1 %3151, %v2236_v54  }
 0x44f   : > { %v2248_v32 = vpop.permute.xlu0 %2247 }
 0x450   : > { %v2285_v11 = vmul.f32 %v2248_v32, %v2237_v23  ;;  %v2461_v27 = vmul.f32 %v2453_v26, %v2248_v32 }
 0x452   : > { %v2294_v46 = vsel %vm2293_vm9, %v2285_v11, 0.0  ;;  %v2469_v2 = vsel %vm2293_vm9, %v2461_v27, 0.0 }
 0x453   : > { %v2253_v24 = vpop.permute.xlu0 %2252 }
 0x454   : > { %v2286_v6 = vmul.f32 %v2253_v24, %v2238_v8  ;;  %v2462_v13 = vmul.f32 %v2454_v17, %v2253_v24 }
 0x456   : > { %v2258_v39 = vpop.permute.xlu1 %2257  ;;  %v2295_v37 = vsel %vm2293_vm9, %v2286_v6, 0.0  ;;  %v2470_v38 = vsel %vm2293_vm9, %v2462_v13, 0.0  ;;  %v2490_v6 = vld [vmem:[%s6084_s10] sm:$0x1] }
 0x457   : > { %v2287_v40 = vmul.f32 %v2258_v39, %v2239_v44  ;;  %v2463_v33 = vmul.f32 %v2455_v16, %v2258_v39  ;;  %v2296_v45 = vadd.f32 %v2295_v37, %v2294_v46  ;;  %v2471_v25 = vadd.f32 %v2470_v38, %v2469_v2  ;;  %v2315_v13 = vld [vmem:[%s6078_s4] sm:$0x1] }
 0x459   : > { %v2297_v10 = vsel %vm2293_vm9, %v2287_v40, 0.0  ;;  %v2472_v9 = vsel %vm2293_vm9, %v2463_v33, 0.0 }
 0x45a   : > { %v2298_v35 = vadd.f32 %v2297_v10, %v2296_v45  ;;  %v2473_v36 = vadd.f32 %v2472_v9, %v2471_v25 }
 0x45f   : > { %v2263_v29 = vpop.permute.xlu1 %2262 }
 0x460   : > { %v2288_v34 = vmul.f32 %v2263_v29, %v2240_v15  ;;  %v2464_v7 = vmul.f32 %v2456_v63, %v2263_v29 }
 0x462   : > { %v2299_v55 = vsel %vm2293_vm9, %v2288_v34, 0.0  ;;  %v2474_v51 = vsel %vm2293_vm9, %v2464_v7, 0.0 }
 0x463   : > { %v2300_v48 = vadd.f32 %v2299_v55, %v2298_v35  ;;  %v2475_v62 = vadd.f32 %v2474_v51, %v2473_v36  ;;  %v2332_v51 = vld [vmem:[%s6079_s5] sm:$0x1] }
 0x466   : > { %v2268_v56 = vpop.permute.xlu0 %2267 }
 0x467   : > { %v2289_v18 = vmul.f32 %v2268_v56, %v2241_v5  ;;  %v2465_v47 = vmul.f32 %v2457_v58, %v2268_v56 }
 0x469   : > { %v2301_v30 = vsel %vm2293_vm9, %v2289_v18, 0.0  ;;  %v2476_v22 = vsel %vm2293_vm9, %v2465_v47, 0.0 }
 0x46a   : > { %v2302_v60 = vadd.f32 %v2301_v30, %v2300_v48  ;;  %v2477_v31 = vadd.f32 %v2476_v22, %v2475_v62  ;;  %v2338_v22 = vld [vmem:[%s6563_s19 + $0x8] sm:$0xff] }
 0x46d   : > { %v2273_v21 = vpop.permute.xlu1 %2272 }
 0x46e   : > { %v2290_v43 = vmul.f32 %v2273_v21, %v2242_v28  ;;  %v2466_v57 = vmul.f32 %v2458_v20, %v2273_v21 }
 0x470   : > { %v2303_v0 = vsel %vm2293_vm9, %v2290_v43, 0.0  ;;  %v2478_v12 = vsel %vm2293_vm9, %v2466_v57, 0.0  ;;  %v2334_v57 = vld [vmem:[%s6561_s25] sm:$0x1] }
 0x471   : > { %v2304_v61 = vadd.f32 %v2303_v0, %v2302_v60  ;;  %v2479_v41 = vadd.f32 %v2478_v12, %v2477_v31  ;;  %v2507_v31 = vld [vmem:[%s6565_s30] sm:$0x1]  ;;  %v2340_v0 = vld [vmem:[%s6563_s19 + $0x18] sm:$0xff]  ;;  %v2339_v12 = vld [vmem:[%s6563_s19 + $0x10] sm:$0xff] }
 0x474   : > { %v2278_v14 = vpop.permute.xlu0 %2277 }
 0x475   : > { %v2291_v1 = vmul.f32 %v2278_v14, %v2243_v3  ;;  %v2467_v42 = vmul.f32 %v2459_v53, %v2278_v14 }
 0x477   : > { %v2305_v54 = vsel %vm2293_vm9, %v2291_v1, 0.0  ;;  %v2480_v50 = vsel %vm2293_vm9, %v2467_v42, 0.0  ;;  %v2337_v1 = vld [vmem:[%s6563_s19] sm:$0xff] }
 0x478   : > { %v2306_v23 = vadd.f32 %v2305_v54, %v2304_v61  ;;  %v2481_v26 = vadd.f32 %v2480_v50, %v2479_v41  ;;  %v6564_v42 = vld [vmem:[#allocation13_spill] sm:$0xff] }
 0x47d   : > { %v2283_v19 = vpop.permute.xlu1 %2282 }
 0x47e   : > { %v2292_v59 = vmul.f32 %v2283_v19, %v2244_v4  ;;  %v2468_v49 = vmul.f32 %v2460_v52, %v2283_v19  ;;  %v2505_v52 = vld [vmem:[%s6562_s23] sm:$0x1] }
 0x480   : > { %v2307_v39 = vsel %vm2293_vm9, %v2292_v59, 0.0  ;;  %v2482_v32 = vsel %vm2293_vm9, %v2468_v49, 0.0 }
 0x481   : > { %v2308_v44 = vadd.f32 %v2307_v39, %v2306_v23  ;;  %v2483_v16 = vadd.f32 %v2482_v32, %v2481_v26  ;;  %v2342_v26 = vld [vmem:[%s6563_s19 + $0x28] sm:$0xff]  ;;  %v2341_v39 = vld [vmem:[%s6563_s19 + $0x20] sm:$0xff] }
 0x483   : > { %v2309_v11 = vrot.slane %v2308_v44, 4  ;;  %v2484_v27 = vrot.slane %v2483_v16, 4 }
 0x485   : > { %v2485_v8 = vadd.f32 %v2484_v27, %v2483_v16  ;;  %v2310_v17 = vadd.f32 %v2309_v11, %v2308_v44 }
 0x487   : > { %v2486_v15 = vrot.slane %v2485_v8, 2  ;;  %v2311_v63 = vrot.slane %v2310_v17, 2 }
 0x489   : > { %v2487_v29 = vadd.f32 %v2486_v15, %v2485_v8  ;;  %v2312_v24 = vadd.f32 %v2311_v63, %v2310_v17  ;;  %v2344_v8 = vld [vmem:[%s6563_s19 + $0x38] sm:$0xff]  ;;  %v2343_v17 = vld [vmem:[%s6563_s19 + $0x30] sm:$0xff] }
 0x48b   : > { %v2488_v40 = vrot.slane %v2487_v29, 1  ;;  %v2313_v33 = vrot.slane %v2312_v24, 1 }
 0x48d   : > { %v2489_v46 = vadd.f32 %v2488_v40, %v2487_v29  ;;  %v2314_v2 = vadd.f32 %v2313_v33, %v2312_v24  ;;  %v2511_v33 = vld [vmem:[%s6566_s14 + $0x8] sm:$0xff] }
 0x48f   : > { %v2491_v5 = vadd.f32 %v2490_v6, %v2489_v46  ;;  %v2316_v58 = vadd.f32 %v2315_v13, %v2314_v2  ;;  %v2510_v6 = vld [vmem:[%s6566_s14] sm:$0xff] }
 0x491   : > { %v2492_v34 = vsel %vm2317_vm10, %v2491_v5, 0.0  ;;  %v2318_v7 = vsel %vm2317_vm10, %v2316_v58, 0.0 }
 0x492   : > { %2493 = vadd.xlane.f32.xlu1 %v2492_v34  ;;  %2319 = vadd.xlane.f32.xlu0 %v2318_v7  ;;  %v2512_v34 = vld [vmem:[%s6566_s14 + $0x10] sm:$0xff] }
 0x51f   : > { %v2494_v37 = vpop.xlane.xlu1 %2493  ;;  %v2320_v38 = vpop.xlane.xlu0 %2319 }
 0x520   : > { %v2495_v45 = vmul.f32 0.0625, %v2494_v37  ;;  %v2322_v25 = vmul.f32 0.0625, %v2320_v38 }
 0x522   : > { %v2496_v28 = vsub.f32 %v2491_v5, %v2495_v45  ;;  %v2323_v20 = vsub.f32 %v2316_v58, %v2322_v25  ;;  %v2513_v58 = vld [vmem:[%s6566_s14 + $0x18] sm:$0xff]  ;;  %v2515_v25 = vld [vmem:[%s6566_s14 + $0x28] sm:$0xff] }
 0x524   : > { %v2324_v21 = vmul.f32 %v2323_v20, %v2323_v20  ;;  %v2497_v10 = vmul.f32 %v2496_v28, %v2496_v28 }
 0x526   : > { %v2325_v56 = vsel %vm2317_vm10, %v2324_v21, 0.0  ;;  %v2498_v9 = vsel %vm2317_vm10, %v2497_v10, 0.0 }
 0x527   : > { %2326 = vadd.xlane.f32.xlu0 %v2325_v56 }
 0x52b   : > { %2499 = vadd.xlane.f32.xlu0 %v2498_v9  ;;  %v2517_v9 = vld [vmem:[%s6566_s14 + $0x38] sm:$0xff] }
 0x5b4   : > { %v2327_v18 = vpop.xlane.xlu0 %2326 }
 0x5b5   : > { %v2328_v47 = vmul.f32 0.0625, %v2327_v18  ;;  %v2516_v18 = vld [vmem:[%s6566_s14 + $0x30] sm:$0xff] }
 0x5b7   : > { %v2329_v35 = vadd.f32 1e-05, %v2328_v47 }
 0x5b8   : > { %v2500_v36 = vpop.xlane.xlu0 %2499 }
 0x5b9   : > { %3154 = vrsqrt.f32 %v2329_v35  ;;  %v2501_v3 = vmul.f32 0.0625, %v2500_v36 }
 0x5bb   : > { %v2502_v53 = vadd.f32 1e-05, %v2501_v3 }
 0x5bd   : > { %3156 = vrsqrt.f32 %v2502_v53 }
 0x5c3   : > { %v3155_v55 = vpop.eup %3154 }
 0x5c4   : > { %v2331_v43 = vmul.f32 %v3155_v55, %v2323_v20 }
 0x5c6   : > { %v2333_v48 = vmul.f32 %v2332_v51, %v2331_v43  ;;  %v2381_v51 = vld [vmem:[%s6567_s26] sm:$0xff]  ;;  %v2382_v43 = vld [vmem:[%s6568_s17 + $0x8] sm:$0xff]  ;;  %s6569_s26 = sld [smem:[#allocation128_spill]] }
 0x5c7   : > { %v3157_v62 = vpop.eup %3156 }
 0x5c8   : > { %v2335_v4 = vadd.f32 %v2334_v57, %v2333_v48  ;;  %v2504_v19 = vmul.f32 %v3157_v62, %v2496_v28  ;;  %v2514_v28 = vld [vmem:[%s6566_s14 + $0x20] sm:$0xff] }
 0x5ca   : > { %v2336_v14 = vmax.f32 %v2335_v4, 0.0  ;;  %v2506_v30 = vmul.f32 %v2505_v52, %v2504_v19  ;;  %v2383_v52 = vld [vmem:[%s6568_s17 + $0x10] sm:$0xff]  ;;  %v2384_v19 = vld [vmem:[%s6568_s17 + $0x18] sm:$0xff] }
 0x5cc   : > { %v2348_v60 = vrot.slane %v2336_v14, %v6564_v42  ;;  %v2508_v61 = vadd.f32 %v2507_v31, %v2506_v30  ;;  %s6570_s11 = smov %s6569_s26 }
 0x5ce   : > { %v2350_v59 = vmul.f32 %v2348_v60, %v2338_v22  ;;  %v2349_v49 = vmul.f32 %v2348_v60, %v2337_v1  ;;  %v2352_v50 = vmul.f32 %v2348_v60, %v2340_v0  ;;  %v2351_v23 = vmul.f32 %v2348_v60, %v2339_v12  ;;  %v2385_v12 = vld [vmem:[%s6568_s17 + $0x20] sm:$0xff] }
 0x5cf   : > { %v2509_v32 = vmax.f32 %v2508_v61, 0.0  ;;  %v2354_v11 = vmul.f32 %v2348_v60, %v2342_v26  ;;  %v2353_v27 = vmul.f32 %v2348_v60, %v2341_v39  ;;  %v2356_v15 = vmul.f32 %v2348_v60, %v2344_v8 }
 0x5d0   : > { %v2360_v41 = vsel %vm2293_vm9, %v2350_v59, 0.0  ;;  %v2357_v54 = vsel %vm2293_vm9, %v2349_v49, 0.0  ;;  %v2366_v44 = vsel %vm2293_vm9, %v2352_v50, 0.0  ;;  %v2363_v16 = vsel %vm2293_vm9, %v2351_v23, 0.0  ;;  %v2386_v59 = vld [vmem:[%s6568_s17 + $0x28] sm:$0xff] }
 0x5d1   : > { %2361 = vadd.xlane.f32.xlu0 %v2360_v41  ;;  %2358 = vadd.xlane.f32.xlu1 %v2357_v54  ;;  %v2521_v63 = vrot.slane %v2509_v32, %v6564_v42  ;;  %v2372_v29 = vsel %vm2293_vm9, %v2354_v11, 0.0  ;;  %v2369_v24 = vsel %vm2293_vm9, %v2353_v27, 0.0  ;;  %v2355_v40 = vmul.f32 %v2348_v60, %v2343_v17  ;;  %v2387_v32 = vld [vmem:[%s6568_s17 + $0x30] sm:$0xff] }
 0x5d2   : > { %v2378_v13 = vsel %vm2293_vm9, %v2356_v15, 0.0 }
 0x5d3   : > { %v2375_v46 = vsel %vm2293_vm9, %v2355_v40, 0.0  ;;  %v2523_v2 = vmul.f32 %v2521_v63, %v2511_v33  ;;  %v2522_v5 = vmul.f32 %v2521_v63, %v2510_v6  ;;  %v2525_v38 = vmul.f32 %v2521_v63, %v2513_v58  ;;  %v2555_v40 = vld [vmem:[%s6570_s11 + $0x8] sm:$0xff] }
 0x5d4   : > { %v2524_v45 = vmul.f32 %v2521_v63, %v2512_v34  ;;  %v2527_v56 = vmul.f32 %v2521_v63, %v2515_v25  ;;  %v2526_v10 = vmul.f32 %v2521_v63, %v2514_v28  ;;  %v2529_v36 = vmul.f32 %v2521_v63, %v2517_v9  ;;  %v2557_v25 = vld [vmem:[%s6570_s11 + $0x18] sm:$0xff] }
 0x5d5   : > { %2367 = vadd.xlane.f32.xlu0 %v2366_v44  ;;  %2364 = vadd.xlane.f32.xlu1 %v2363_v16  ;;  %v2533_v7 = vsel %vm2293_vm9, %v2523_v2, 0.0  ;;  %v2530_v37 = vsel %vm2293_vm9, %v2522_v5, 0.0  ;;  %v2539_v20 = vsel %vm2293_vm9, %v2525_v38, 0.0  ;;  %v2528_v3 = vmul.f32 %v2521_v63, %v2516_v18  ;;  %v2388_v44 = vld [vmem:[%s6568_s17 + $0x38] sm:$0xff] }
 0x5d6   : > { %v2536_v21 = vsel %vm2293_vm9, %v2524_v45, 0.0  ;;  %v2545_v47 = vsel %vm2293_vm9, %v2527_v56, 0.0  ;;  %v2542_v35 = vsel %vm2293_vm9, %v2526_v10, 0.0  ;;  %v2551_v53 = vsel %vm2293_vm9, %v2529_v36, 0.0  ;;  %v2556_v45 = vld [vmem:[%s6570_s11 + $0x10] sm:$0xff]  ;;  %v2559_v36 = vld [vmem:[%s6570_s11 + $0x28] sm:$0xff] }
 0x5d7   : > { %v2548_v55 = vsel %vm2293_vm9, %v2528_v3, 0.0 }
 0x5d9   : > { %2373 = vadd.xlane.f32.xlu0 %v2372_v29  ;;  %2370 = vadd.xlane.f32.xlu1 %v2369_v24  ;;  %v2554_v24 = vld [vmem:[%s6569_s26] sm:$0xff] }
 0x5dd   : > { %2379 = vadd.xlane.f32.xlu0 %v2378_v13  ;;  %2376 = vadd.xlane.f32.xlu1 %v2375_v46 }
 0x5e1   : > { %2534 = vadd.xlane.f32.xlu0 %v2533_v7  ;;  %2531 = vadd.xlane.f32.xlu1 %v2530_v37 }
 0x5e5   : > { %2540 = vadd.xlane.f32.xlu0 %v2539_v20  ;;  %2537 = vadd.xlane.f32.xlu1 %v2536_v21 }
 0x5e9   : > { %2546 = vadd.xlane.f32.xlu0 %v2545_v47  ;;  %2543 = vadd.xlane.f32.xlu1 %v2542_v35  ;;  %v2558_v35 = vld [vmem:[%s6570_s11 + $0x20] sm:$0xff] }
 0x5ed   : > { %2552 = vadd.xlane.f32.xlu0 %v2551_v53  ;;  %2549 = vadd.xlane.f32.xlu1 %v2548_v55 }
 0x65e   : > { %v2359_v57 = vpop.xlane.xlu1 %2358  ;;  %v2362_v48 = vpop.xlane.xlu0 %2361 }
 0x65f   : > { %v2389_v62 = vadd.f32 %v2381_v51, %v2359_v57  ;;  %v2390_v4 = vadd.f32 %v2382_v43, %v2362_v48 }
 0x661   : > { %v2397_v14 = vsub.f32 0.0, %v2389_v62  ;;  %v2398_v30 = vsub.f32 0.0, %v2390_v4  ;;  %v2560_v4 = vld [vmem:[%s6570_s11 + $0x30] sm:$0xff] }
 0x662   : > { %v2365_v22 = vpop.xlane.xlu1 %2364  ;;  %v2368_v1 = vpop.xlane.xlu0 %2367 }
 0x663   : > { %v2405_v42 = vmul.f32 1.442695, %v2397_v14  ;;  %v2407_v60 = vmul.f32 1.442695, %v2398_v30  ;;  %v2391_v31 = vadd.f32 %v2383_v52, %v2365_v22  ;;  %v2392_v0 = vadd.f32 %v2384_v19, %v2368_v1  ;;  %v2561_v52 = vld [vmem:[%s6570_s11 + $0x38] sm:$0xff] }
 0x665   : > { %3158 = vpow2.f32 %v2405_v42  ;;  %v2399_v49 = vsub.f32 0.0, %v2391_v31  ;;  %v2400_v61 = vsub.f32 0.0, %v2392_v0 }
 0x666   : > { %3160 = vpow2.f32 %v2407_v60  ;;  %v2371_v41 = vpop.xlane.xlu1 %2370  ;;  %v2374_v54 = vpop.xlane.xlu0 %2373 }
 0x667   : > { %v2409_v50 = vmul.f32 1.442695, %v2399_v49  ;;  %v2411_v23 = vmul.f32 1.442695, %v2400_v61  ;;  %v2393_v26 = vadd.f32 %v2385_v12, %v2371_v41  ;;  %v2394_v39 = vadd.f32 %v2386_v59, %v2374_v54 }
 0x669   : > { %3162 = vpow2.f32 %v2409_v50  ;;  %v2401_v16 = vsub.f32 0.0, %v2393_v26  ;;  %v2402_v11 = vsub.f32 0.0, %v2394_v39 }
 0x66a   : > { %3164 = vpow2.f32 %v2411_v23  ;;  %v2377_v27 = vpop.xlane.xlu1 %2376  ;;  %v2380_v8 = vpop.xlane.xlu0 %2379 }
 0x66b   : > { %v2413_v17 = vmul.f32 1.442695, %v2401_v16  ;;  %v2415_v15 = vmul.f32 1.442695, %v2402_v11  ;;  %v2395_v63 = vadd.f32 %v2387_v32, %v2377_v27  ;;  %v2396_v29 = vadd.f32 %v2388_v44, %v2380_v8 }
 0x66d   : > { %3166 = vpow2.f32 %v2413_v17  ;;  %v2403_v33 = vsub.f32 0.0, %v2395_v63  ;;  %v2404_v6 = vsub.f32 0.0, %v2396_v29 }
 0x66e   : > { %3168 = vpow2.f32 %v2415_v15  ;;  %v2532_v13 = vpop.xlane.xlu1 %2531  ;;  %v2535_v46 = vpop.xlane.xlu0 %2534 }
 0x66f   : > { %v3159_v2 = vpop.eup %3158  ;;  %v2417_v5 = vmul.f32 1.442695, %v2403_v33  ;;  %v2562_v58 = vadd.f32 %v2554_v24, %v2532_v13  ;;  %v2563_v34 = vadd.f32 %v2555_v40, %v2535_v46  ;;  %v2419_v38 = vmul.f32 1.442695, %v2404_v6 }
 0x670   : > { %v3161_v7 = vpop.eup %3160  ;;  %v2421_v37 = vadd.f32 1.0, %v3159_v2 }
 0x671   : > { %v2422_v28 = vadd.f32 1.0, %v3161_v7  ;;  %3170 = vpow2.f32 %v2417_v5  ;;  %2570 = vst.msk [vmem:[%s4028_s28] sm:$0xff] %vm2199_vm7, %v2562_v58  ;;  %2571 = vst.msk [vmem:[%s4028_s28 + $0x8] sm:$0xff] %vm2199_vm7, %v2563_v34 }
 0x672   : > { %3172 = vrcp.f32 %v2421_v37  ;;  %v2538_v20 = vpop.xlane.xlu1 %2537  ;;  %v2541_v21 = vpop.xlane.xlu0 %2540 }
 0x673   : > { %v3163_v56 = vpop.eup %3162  ;;  %3174 = vrcp.f32 %v2422_v28  ;;  %v2564_v10 = vadd.f32 %v2556_v45, %v2538_v20  ;;  %v2565_v9 = vadd.f32 %v2557_v25, %v2541_v21 }
 0x674   : > { %v3165_v18 = vpop.eup %3164  ;;  %v2423_v47 = vadd.f32 1.0, %v3163_v56  ;;  %3176 = vpow2.f32 %v2419_v38 }
 0x675   : > { %v2424_v3 = vadd.f32 1.0, %v3165_v18  ;;  %2572 = vst.msk [vmem:[%s4028_s28 + $0x10] sm:$0xff] %vm2199_vm7, %v2564_v10  ;;  %2573 = vst.msk [vmem:[%s4028_s28 + $0x18] sm:$0xff] %vm2199_vm7, %v2565_v9 }
 0x676   : > { %3178 = vrcp.f32 %v2423_v47  ;;  %v2544_v53 = vpop.xlane.xlu1 %2543  ;;  %v2547_v55 = vpop.xlane.xlu0 %2546 }
 0x677   : > { %v3167_v51 = vpop.eup %3166  ;;  %3180 = vrcp.f32 %v2424_v3  ;;  %v2566_v43 = vadd.f32 %v2558_v35, %v2544_v53  ;;  %v2567_v57 = vadd.f32 %v2559_v36, %v2547_v55 }
 0x678   : > { %v3169_v48 = vpop.eup %3168  ;;  %v2425_v62 = vadd.f32 1.0, %v3167_v51 }
 0x679   : > { %v2426_v19 = vadd.f32 1.0, %v3169_v48  ;;  %2574 = vst.msk [vmem:[%s4028_s28 + $0x20] sm:$0xff] %vm2199_vm7, %v2566_v43  ;;  %2575 = vst.msk [vmem:[%s4028_s28 + $0x28] sm:$0xff] %vm2199_vm7, %v2567_v57 }
 0x67a   : > { %3182 = vrcp.f32 %v2425_v62  ;;  %v2550_v14 = vpop.xlane.xlu1 %2549  ;;  %v2553_v30 = vpop.xlane.xlu0 %2552 }
 0x67b   : > { %v3171_v22 = vpop.eup %3170  ;;  %3184 = vrcp.f32 %v2426_v19  ;;  %v2568_v1 = vadd.f32 %v2560_v4, %v2550_v14  ;;  %v2569_v42 = vadd.f32 %v2561_v52, %v2553_v30 }
 0x67c   : > { %v3173_v60 = vpop.eup %3172  ;;  %v2427_v31 = vadd.f32 1.0, %v3171_v22 }
 0x67d   : > { %v3175_v0 = vpop.eup %3174  ;;  %2445 = vst.msk [vmem:[%s4023_s27] sm:$0xff] %vm2199_vm7, %v3173_v60  ;;  %2576 = vst.msk [vmem:[%s4028_s28 + $0x30] sm:$0xff] %vm2199_vm7, %v2568_v1 }
 0x67e   : > { %2577 = vst.msk [vmem:[%s4028_s28 + $0x38] sm:$0xff] %vm2199_vm7, %v2569_v42  ;;  %v3177_v12 = vpop.eup %3176  ;;  %2446 = vst.msk [vmem:[%s4023_s27 + $0x8] sm:$0xff] %vm2199_vm7, %v3175_v0  ;;  %3186 = vrcp.f32 %v2427_v31 }
 0x67f   : > { %v2428_v59 = vadd.f32 1.0, %v3177_v12 }
 0x680   : > { %v3179_v49 = vpop.eup %3178 }
 0x681   : > { %v3181_v61 = vpop.eup %3180  ;;  %2447 = vst.msk [vmem:[%s4023_s27 + $0x10] sm:$0xff] %vm2199_vm7, %v3179_v49  ;;  %3188 = vrcp.f32 %v2428_v59 }
 0x682   : > { %2448 = vst.msk [vmem:[%s4023_s27 + $0x18] sm:$0xff] %vm2199_vm7, %v3181_v61 }
 0x684   : > { %v3183_v41 = vpop.eup %3182 }
 0x685   : > { %v3185_v54 = vpop.eup %3184  ;;  %2449 = vst.msk [vmem:[%s4023_s27 + $0x20] sm:$0xff] %vm2199_vm7, %v3183_v41 }
 0x686   : > { %2450 = vst.msk [vmem:[%s4023_s27 + $0x28] sm:$0xff] %vm2199_vm7, %v3185_v54 }
 0x688   : > { %v3187_v50 = vpop.eup %3186 }
 0x689   : > { %2451 = vst.msk [vmem:[%s4023_s27 + $0x30] sm:$0xff] %vm2199_vm7, %v3187_v50 }
 0x68b   : > { %v3189_v23 = vpop.eup %3188 }
 0x68c   : > { %2452 = vst.msk [vmem:[%s4023_s27 + $0x38] sm:$0xff] %vm2199_vm7, %v3189_v23 }
 0x68d PF: > { %s29_s29 = sadd.s32 1, %s3308_s29   ;;  %s6571_s23 = sld [smem:[#allocation7_spill]] }
 0x68e   : > { %p26_p3 = scmp.ge.s32.totalorder %s29_s29, 6   ;;  %s6572_s24 = sld [smem:[#allocation12_spill]] }
 0x68f   : > { %s6573_s25 = sld [smem:[#allocation8_spill]]  ;;  %s6574_s26 = sld [smem:[#allocation9_spill]] }
 0x690   : > { %s6575_s27 = sld [smem:[#allocation10_spill]]  ;;  %s6576_s28 = sld [smem:[#allocation11_spill]] }
 0x691   :  { %28 = sbr.rel (!%p26_p3) target bundleno = 13 (0xd), region = 263 }

</bundles_post_ra>
